<compile_context>
chip_gen: v6e
topology: v6e:2x2x1
jax: 0.10.0
libtpu: 0.0.40
codegen_flags: <defaults>
</compile_context>

<pallas_src>
import numpy as np
import jax
import jax.numpy as jnp
from jax.experimental import pallas as pl
from jax.experimental.pallas import tpu as pltpu

FT_OUT_SIZE = 1280
HIDDEN = 100
HIDDEN_PAD = 128          # 100 -> 128 lane-aligned padding
N_CLASSES = 7
N_DOMAINS = 4
OUT_PAD = 128             # packed lane-dense output slab width
DOM_OFF = 64              # domain log-probs occupy lanes 64..67 of the slab
BN_EPS = 1e-5


# ----------------------------- Pallas kernel --------------------------------
def cnn_heads_kernel(feat_ref, w1_ref, b1_ref, w2_ref, b2_ref,
                     dw3_ref, db3_ref, wf_ref, bf_ref, out_ref):
    # AdaptiveAvgPool2d((1,1)) + flatten: the 1/(H*W) scale is folded into w1,
    # so a plain f32 sum over the spatial axis suffices.
    fm = feat_ref[...]                                     # (Bt, H*W, 1280) bf16
    feature = jnp.sum(fm.astype(jnp.float32), axis=1)      # (Bt, 1280) f32
    feature = feature.astype(jnp.bfloat16)                 # bf16 MXU operand

    def lin(x, w_ref, b_ref):
        return jnp.dot(x, w_ref[...], preferred_element_type=jnp.float32) + b_ref[...]

    # Layer 1 of both heads fused: one (Bt,1280)@(1280,256) bf16 MXU pass
    # (class hidden in lanes 0..127, domain hidden in lanes 128..255).
    h12 = jnp.maximum(lin(feature, w1_ref, b1_ref), 0.0)   # (Bt, 256) f32
    # Layer 2 of both heads fused as a block-diagonal (256,256) matmul.
    h2 = jnp.maximum(lin(h12, w2_ref, b2_ref), 0.0)        # (Bt, 256) f32
    # Domain layer 3 (the class head has no third hidden layer).
    g3 = jnp.maximum(lin(h2[:, HIDDEN_PAD:], dw3_ref, db3_ref), 0.0)   # (Bt,128)
    # Final projections fused block-diagonally; logits land directly in the
    # packed output slab: class logits -> lanes 0..6, domain -> lanes 64..67.
    hfin = jnp.concatenate([h2[:, :HIDDEN_PAD], g3], axis=1)           # (Bt,256)
    logits = lin(hfin, wf_ref, bf_ref)                                 # (Bt,128)

    # Group-wise (masked) log-softmax computed on the full lane-dense slab:
    # class lanes normalize together, domain lanes normalize together, padded
    # lanes are written as 0 and discarded by the wrapper.  exp(-1e30 - m)
    # underflows to exactly 0, so the masked sums equal the narrow-group sums.
    lane = jax.lax.broadcasted_iota(jnp.int32, logits.shape, 1)
    is_dom = lane >= DOM_OFF
    valid = (lane < N_CLASSES) | ((lane >= DOM_OFF) & (lane < DOM_OFF + N_DOMAINS))
    neg = jnp.float32(-1e30)
    z = jnp.where(valid, logits, neg)
    m_cls = jnp.max(jnp.where(is_dom, neg, z), axis=1, keepdims=True)
    m_dom = jnp.max(jnp.where(is_dom, z, neg), axis=1, keepdims=True)
    m = jnp.where(is_dom, m_dom, m_cls)
    e = jnp.where(valid, jnp.exp(z - m), 0.0)
    s_cls = jnp.sum(jnp.where(is_dom, 0.0, e), axis=1, keepdims=True)
    s_dom = jnp.sum(jnp.where(is_dom, e, 0.0), axis=1, keepdims=True)
    lse = jnp.where(is_dom, jnp.log(s_dom), jnp.log(s_cls))
    out_ref[...] = jnp.where(valid, z - m - lse, 0.0)      # single unmasked store


# ------------------------------ wrapper --------------------------------------
def _device_info():
    """Generation-aware knobs: #TensorCores, batch-tile cap, scoped-VMEM limit.
    v7x has 2 TCs but only 64 MiB VMEM; v5e/v6e have 1 TC and 128 MiB."""
    kind = ""
    try:
        kind = jax.devices()[0].device_kind.lower()
    except Exception:
        pass
    is_v7 = ("v7" in kind) or ("7x" in kind)
    n_tc = 2 if is_v7 else 1
    b_cap = 32 if is_v7 else 128
    vmem_bytes = (48 if is_v7 else 96) * 1024 * 1024
    return n_tc, b_cap, vmem_bytes


def _pick_batch_tile(B, n_tc, cap):
    """One grid step per TensorCore when possible (1 step on v5e/v6e, 2 on
    v7x), capped so the double-buffered bf16 feature tile plus its f32 pooling
    temp stay inside the per-generation scoped-VMEM budget."""
    if B <= 8 or B % 8 != 0:
        return B
    bt = min(-(-B // max(n_tc, 1)), cap)
    bt -= bt % 8
    bt = max(bt, 8)
    while bt > 8 and B % bt:
        bt -= 8
    return bt if B % bt == 0 else B


def cnn_model_forward(feat_map_nhwc, alpha, kernel_params):
    """CNNModel forward on a backbone feature map.

    feat_map_nhwc: (B, H, W, 1280) bf16 NHWC feature map (backbone emits NHWC
    directly -> no transpose round-trips HBM).  `alpha` only scales gradients
    in ReverseLayerF.backward -> unused in the forward pass.
    """
    del alpha
    B, H, W, C = feat_map_nhwc.shape
    assert C == FT_OUT_SIZE
    feat = feat_map_nhwc.reshape(B, H * W, C)        # free reshape, no relayout

    n_tc, b_cap, vmem_bytes = _device_info()
    b_tile = _pick_batch_tile(B, n_tc, b_cap)
    assert B % b_tile == 0
    n_steps = B // b_tile
    grid = (n_steps,)

    in_specs = [pl.BlockSpec((b_tile, H * W, C), lambda i: (i, 0, 0))]
    # Weights/biases: full-array blocks with constant index maps -> fetched
    # once and kept resident in VMEM across batch-grid steps.
    in_specs += [pl.BlockSpec(p.shape, lambda i: (0, 0)) for p in kernel_params]
    out_specs = pl.BlockSpec((b_tile, OUT_PAD), lambda i: (i, 0))

    flops = 2 * B * (H * W * C                      # pooling adds
                     + C * 2 * HIDDEN_PAD           # fused layer 1
                     + (2 * HIDDEN_PAD) ** 2        # fused layer 2
                     + HIDDEN_PAD ** 2              # domain layer 3
                     + 2 * HIDDEN_PAD * OUT_PAD)    # fused final projection
    bytes_accessed = (feat.size * feat.dtype.itemsize
                      + sum(int(p.size) * p.dtype.itemsize for p in kernel_params)
                      + B * OUT_PAD * 4)
    cost = pl.CostEstimate(flops=int(flops),
                           transcendentals=int(B * OUT_PAD),
                           bytes_accessed=int(bytes_accessed))

    packed = pl.pallas_call(
        cnn_heads_kernel,
        grid=grid,
        in_specs=in_specs,
        out_specs=out_specs,
        out_shape=jax.ShapeDtypeStruct((B, OUT_PAD), jnp.float32),
        compiler_params=pltpu.CompilerParams(
            # Batch-grid steps are independent: shard across TCs when there is
            # more than one step (v7x); single-step grids on v5e/v6e avoid all
            # per-step overhead.
            dimension_semantics=("parallel",) if n_steps > 1 else ("arbitrary",),
            vmem_limit_bytes=vmem_bytes),
        cost_estimate=cost,
    )(feat, *kernel_params)

    class_out = packed[:, :N_CLASSES]
    domain_out = packed[:, DOM_OFF:DOM_OFF + N_DOMAINS]
    return class_out, domain_out


# ------------------------- deterministic parameters ---------------------------
def init_raw_params(key):
    """PyTorch-like raw parameters (unfused, unpadded, explicit BN stats)."""
    it = iter(jax.random.split(key, 40))

    def linear(fi, fo):
        bound = 1.0 / float(np.sqrt(fi))
        return (jax.random.uniform(next(it), (fi, fo), jnp.float32, -bound, bound),
                jax.random.uniform(next(it), (fo,), jnp.float32, -bound, bound))

    def bn(n):
        gamma = jax.random.uniform(next(it), (n,), jnp.float32, 0.5, 1.5)
        beta = 0.1 * jax.random.normal(next(it), (n,), jnp.float32)
        mean = 0.1 * jax.random.normal(next(it), (n,), jnp.float32)
        var = jax.random.uniform(next(it), (n,), jnp.float32, 0.5, 1.5)
        return (gamma, beta, mean, var)

    cls = {}
    cls["w1"], cls["b1"] = linear(FT_OUT_SIZE, HIDDEN); cls["bn1"] = bn(HIDDEN)
    cls["w2"], cls["b2"] = linear(HIDDEN, HIDDEN);      cls["bn2"] = bn(HIDDEN)
    cls["w3"], cls["b3"] = linear(HIDDEN, N_CLASSES)
    dom = {}
    dom["w1"], dom["b1"] = linear(FT_OUT_SIZE, HIDDEN); dom["bn1"] = bn(HIDDEN)
    dom["w2"], dom["b2"] = linear(HIDDEN, HIDDEN);      dom["bn2"] = bn(HIDDEN)
    dom["w3"], dom["b3"] = linear(HIDDEN, HIDDEN);      dom["bn3"] = bn(HIDDEN)
    dom["w4"], dom["b4"] = linear(HIDDEN, N_DOMAINS)
    return {"class": cls, "domain": dom}


def _fold_bn(w, b, gamma, beta, mean, var, eps=BN_EPS):
    # BN(x @ w + b) == x @ (w * k) + ((b - mean) * k + beta),  k = gamma/sqrt(var+eps)
    k = gamma / jnp.sqrt(var + eps)
    return w * k[None, :], (b - mean) * k + beta


def prepare_kernel_params(raw, hw):
    """Fold eval-mode BatchNorm + the 1/(H*W) pooling scale into the linears,
    fuse the two heads into block-diagonal weights, zero-pad 100-wide hidden
    dims to 128, and route the final projections straight into the packed
    128-wide output slab.  Zero padding is exact through ReLU/matmul."""
    c, d = raw["class"], raw["domain"]
    cw1, cb1 = _fold_bn(c["w1"], c["b1"], *c["bn1"])
    cw2, cb2 = _fold_bn(c["w2"], c["b2"], *c["bn2"])
    dw1, db1 = _fold_bn(d["w1"], d["b1"], *d["bn1"])
    dw2, db2 = _fold_bn(d["w2"], d["b2"], *d["bn2"])
    dw3, db3 = _fold_bn(d["w3"], d["b3"], *d["bn3"])

    inv_hw = 1.0 / float(hw)

    # Fused layer 1: (1280, 256) bf16, pooling scale folded in.
    w1 = jnp.zeros((FT_OUT_SIZE, 2 * HIDDEN_PAD), jnp.float32)
    w1 = w1.at[:, :HIDDEN].set(cw1 * inv_hw)
    w1 = w1.at[:, HIDDEN_PAD:HIDDEN_PAD + HIDDEN].set(dw1 * inv_hw)
    b1 = jnp.zeros((1, 2 * HIDDEN_PAD), jnp.float32)
    b1 = b1.at[0, :HIDDEN].set(cb1).at[0, HIDDEN_PAD:HIDDEN_PAD + HIDDEN].set(db1)

    # Fused layer 2: block-diagonal (256, 256).
    w2 = jnp.zeros((2 * HIDDEN_PAD, 2 * HIDDEN_PAD), jnp.float32)
    w2 = w2.at[:HIDDEN, :HIDDEN].set(cw2)
    w2 = w2.at[HIDDEN_PAD:HIDDEN_PAD + HIDDEN,
               HIDDEN_PAD:HIDDEN_PAD + HIDDEN].set(dw2)
    b2 = jnp.zeros((1, 2 * HIDDEN_PAD), jnp.float32)
    b2 = b2.at[0, :HIDDEN].set(cb2).at[0, HIDDEN_PAD:HIDDEN_PAD + HIDDEN].set(db2)

    # Domain layer 3 (padded 100 -> 128).
    dw3p = jnp.zeros((HIDDEN_PAD, HIDDEN_PAD), jnp.float32).at[:HIDDEN, :HIDDEN].set(dw3)
    db3p = jnp.zeros((1, HIDDEN_PAD), jnp.float32).at[0, :HIDDEN].set(db3)

    # Fused final projections -> (256, 128) weight whose output IS the packed
    # slab: class logits at lanes 0..6, domain logits at lanes 64..67.
    wf = jnp.zeros((2 * HIDDEN_PAD, OUT_PAD), jnp.float32)
    wf = wf.at[:HIDDEN, :N_CLASSES].set(c["w3"])
    wf = wf.at[HIDDEN_PAD:HIDDEN_PAD + HIDDEN,
               DOM_OFF:DOM_OFF + N_DOMAINS].set(d["w4"])
    bf = jnp.zeros((1, OUT_PAD), jnp.float32)
    bf = bf.at[0, :N_CLASSES].set(c["b3"])
    bf = bf.at[0, DOM_OFF:DOM_OFF + N_DOMAINS].set(d["b4"])

    return (w1.astype(jnp.bfloat16), b1, w2, b2, dw3p, db3p, wf, bf)


# ------------------------------ references -----------------------------------
def reference_forward_mirror(feat_map_nhwc, kparams):
    """Mirrors the kernel's fused/padded params and bf16 layer-1 quantization
    exactly -> tight numerical check of the kernel data path."""
    B, H, W, C = feat_map_nhwc.shape
    w1, b1, w2, b2, dw3p, db3p, wf, bf = kparams
    x = jnp.sum(feat_map_nhwc.reshape(B, H * W, C).astype(jnp.float32), axis=1)
    x = x.astype(jnp.bfloat16)

    def lsm(z):
        return z - jax.scipy.special.logsumexp(z, axis=1, keepdims=True)

    h12 = jnp.maximum(jnp.dot(x, w1, preferred_element_type=jnp.float32) + b1, 0.0)
    h2 = jnp.maximum(h12 @ w2 + b2, 0.0)
    g3 = jnp.maximum(h2[:, HIDDEN_PAD:] @ dw3p + db3p, 0.0)
    hfin = jnp.concatenate([h2[:, :HIDDEN_PAD], g3], axis=1)
    logits = hfin @ wf + bf
    return (lsm(logits[:, :N_CLASSES]),
            lsm(logits[:, DOM_OFF:DOM_OFF + N_DOMAINS]))


def reference_forward_f32(feat_map_nhwc, raw):
    """Pure-f32 PyTorch-semantics reference: mean pool, explicit eval-mode
    BatchNorm1d with running stats, unfused/unpadded linears."""
    x = jnp.mean(feat_map_nhwc.astype(jnp.float32), axis=(1, 2))   # (B, 1280)

    def bn(h, gamma, beta, mean, var):
        return (h - mean) / jnp.sqrt(var + BN_EPS) * gamma + beta

    def lsm(z):
        return z - jax.scipy.special.logsumexp(z, axis=1, keepdims=True)

    c, d = raw["class"], raw["domain"]
    h = jnp.maximum(bn(x @ c["w1"] + c["b1"], *c["bn1"]), 0.0)
    h = jnp.maximum(bn(h @ c["w2"] + c["b2"], *c["bn2"]), 0.0)
    class_out = lsm(h @ c["w3"] + c["b3"])

    g = jnp.maximum(bn(x @ d["w1"] + d["b1"], *d["bn1"]), 0.0)
    g = jnp.maximum(bn(g @ d["w2"] + d["b2"], *d["bn2"]), 0.0)
    g = jnp.maximum(bn(g @ d["w3"] + d["b3"], *d["bn3"]), 0.0)
    domain_out = lsm(g @ d["w4"] + d["b4"])
    return class_out, domain_out


# -------------------------------- main -----------------------------------------
if __name__ == "__main__":
    key = jax.random.PRNGKey(0)
    k_feat, k_param = jax.random.split(key)

    # efficientnet_b0 backbone on 224x224 images -> (B, 7, 7, 1280) features.
    # TODO(synk): the conv backbone itself is not translated; its feature map is
    # supplied directly as a synthetic bf16 NHWC tensor.
    B, H, W = 16, 7, 7
    feat_map = jax.random.normal(
        k_feat, (B, H, W, FT_OUT_SIZE), jnp.float32).astype(jnp.bfloat16)
    alpha = jnp.float32(0.5)  # only used by ReverseLayerF.backward

    raw_params = init_raw_params(k_param)
    kernel_params = prepare_kernel_params(raw_params, H * W)

    fwd = jax.jit(cnn_model_forward)
    class_out, domain_out = fwd(feat_map, alpha, kernel_params)
    jax.block_until_ready((class_out, domain_out))

    # Tight check vs. a reference that mirrors the kernel's fused params and
    # bf16 layer-1 quantization.
    ref_c, ref_d = reference_forward_mirror(feat_map, kernel_params)
    np.testing.assert_allclose(np.asarray(class_out), np.asarray(ref_c),
                               rtol=5e-3, atol=5e-3)
    np.testing.assert_allclose(np.asarray(domain_out), np.asarray(ref_d),
                               rtol=5e-3, atol=5e-3)

    # Looser check vs. the pure-f32 PyTorch-semantics reference (validates BN
    # folding, head fusion and zero padding; slack covers bf16 layer 1).
    sem_c, sem_d = reference_forward_f32(feat_map, raw_params)
    np.testing.assert_allclose(np.asarray(class_out), np.asarray(sem_c),
                               rtol=2e-2, atol=2e-2)
    np.testing.assert_allclose(np.asarray(domain_out), np.asarray(sem_d),
                               rtol=2e-2, atol=2e-2)

    assert class_out.shape == (B, N_CLASSES) and domain_out.shape == (B, N_DOMAINS)
    print("KERNEL_OK")
</pallas_src>

<mosaic_0001>
module attributes {stable_mosaic.version = 11 : i64} {
  func.func @cnn_heads_kernel(%arg0: i32, %arg1: memref<16x49x1280xbf16, #tpu.memory_space<vmem>>, %arg2: memref<1280x256xbf16, #tpu.memory_space<vmem>>, %arg3: memref<1x256xf32, #tpu.memory_space<vmem>>, %arg4: memref<256x256xf32, #tpu.memory_space<vmem>>, %arg5: memref<1x256xf32, #tpu.memory_space<vmem>>, %arg6: memref<128x128xf32, #tpu.memory_space<vmem>>, %arg7: memref<1x128xf32, #tpu.memory_space<vmem>>, %arg8: memref<256x128xf32, #tpu.memory_space<vmem>>, %arg9: memref<1x128xf32, #tpu.memory_space<vmem>>, %arg10: memref<16x128xf32, #tpu.memory_space<vmem>>) attributes {dimension_semantics = [#tpu.dimension_semantics<arbitrary>], iteration_bounds = array<i64: 1>, scalar_prefetch = 0 : i64, scratch_operands = 0 : i64, tpu.core_type = #tpu.core_type<tc>, window_params = [{transform_indices = @transform_0, window_bounds = array<i64: 16, 49, 1280>}, {pipeline_mode = #tpu.pipeline_mode<synchronous>, transform_indices = @transform_1, window_bounds = array<i64: 1280, 256>}, {pipeline_mode = #tpu.pipeline_mode<synchronous>, transform_indices = @transform_2, window_bounds = array<i64: 1, 256>}, {pipeline_mode = #tpu.pipeline_mode<synchronous>, transform_indices = @transform_3, window_bounds = array<i64: 256, 256>}, {pipeline_mode = #tpu.pipeline_mode<synchronous>, transform_indices = @transform_4, window_bounds = array<i64: 1, 256>}, {pipeline_mode = #tpu.pipeline_mode<synchronous>, transform_indices = @transform_5, window_bounds = array<i64: 128, 128>}, {pipeline_mode = #tpu.pipeline_mode<synchronous>, transform_indices = @transform_6, window_bounds = array<i64: 1, 128>}, {pipeline_mode = #tpu.pipeline_mode<synchronous>, transform_indices = @transform_7, window_bounds = array<i64: 256, 128>}, {pipeline_mode = #tpu.pipeline_mode<synchronous>, transform_indices = @transform_8, window_bounds = array<i64: 1, 128>}, {transform_indices = @transform_9, window_bounds = array<i64: 16, 128>}]} {
    %c0 = arith.constant 0 : index
    %c0_0 = arith.constant 0 : index
    %c0_1 = arith.constant 0 : index
    %0 = vector.load %arg1[%c0, %c0_0, %c0_1] : memref<16x49x1280xbf16, #tpu.memory_space<vmem>>, vector<16x49x1280xbf16>
    %1 = arith.extf %0 : vector<16x49x1280xbf16> to vector<16x49x1280xf32>
    %cst = arith.constant dense<0.000000e+00> : vector<16x1280xf32>
    %2 = vector.multi_reduction <add>, %1, %cst [1] : vector<16x49x1280xf32> to vector<16x1280xf32>
    %3 = arith.truncf %2 : vector<16x1280xf32> to vector<16x1280xbf16>
    %c0_2 = arith.constant 0 : index
    %c0_3 = arith.constant 0 : index
    %4 = vector.load %arg2[%c0_2, %c0_3] : memref<1280x256xbf16, #tpu.memory_space<vmem>>, vector<1280x256xbf16>
    %cst_4 = arith.constant dense<0.000000e+00> : vector<16x256xf32>
    %5 = tpu.matmul %3, %4, %cst_4 {dimension_numbers = #tpu.dot_dimension_numbers<[1], [0], [0], [1], [0, 0, 1, 1], [], []>} : vector<16x1280xbf16>, vector<1280x256xbf16>, vector<16x256xf32> -> vector<16x256xf32>
    %c0_5 = arith.constant 0 : index
    %c0_6 = arith.constant 0 : index
    %6 = vector.load %arg3[%c0_5, %c0_6] : memref<1x256xf32, #tpu.memory_space<vmem>>, vector<1x256xf32>
    %7 = vector.broadcast %6 : vector<1x256xf32> to vector<16x256xf32>
    %8 = arith.addf %5, %7 : vector<16x256xf32>
    %cst_7 = arith.constant 0.000000e+00 : f32
    %9 = vector.broadcast %cst_7 : f32 to vector<16x256xf32>
    %10 = arith.maximumf %8, %9 : vector<16x256xf32>
    %c0_8 = arith.constant 0 : index
    %c0_9 = arith.constant 0 : index
    %11 = vector.load %arg4[%c0_8, %c0_9] : memref<256x256xf32, #tpu.memory_space<vmem>>, vector<256x256xf32>
    %cst_10 = arith.constant dense<0.000000e+00> : vector<16x256xf32>
    %12 = tpu.matmul %10, %11, %cst_10 {dimension_numbers = #tpu.dot_dimension_numbers<[1], [0], [0], [1], [0, 0, 1, 1], [], []>} : vector<16x256xf32>, vector<256x256xf32>, vector<16x256xf32> -> vector<16x256xf32>
    %c0_11 = arith.constant 0 : index
    %c0_12 = arith.constant 0 : index
    %13 = vector.load %arg5[%c0_11, %c0_12] : memref<1x256xf32, #tpu.memory_space<vmem>>, vector<1x256xf32>
    %14 = vector.broadcast %13 : vector<1x256xf32> to vector<16x256xf32>
    %15 = arith.addf %12, %14 : vector<16x256xf32>
    %cst_13 = arith.constant 0.000000e+00 : f32
    %16 = vector.broadcast %cst_13 : f32 to vector<16x256xf32>
    %17 = arith.maximumf %15, %16 : vector<16x256xf32>
    %18 = vector.extract_strided_slice %17 {offsets = [0, 128], sizes = [16, 128], strides = [1, 1]} : vector<16x256xf32> to vector<16x128xf32>
    %c0_14 = arith.constant 0 : index
    %c0_15 = arith.constant 0 : index
    %19 = vector.load %arg6[%c0_14, %c0_15] : memref<128x128xf32, #tpu.memory_space<vmem>>, vector<128x128xf32>
    %cst_16 = arith.constant dense<0.000000e+00> : vector<16x128xf32>
    %20 = tpu.matmul %18, %19, %cst_16 {dimension_numbers = #tpu.dot_dimension_numbers<[1], [0], [0], [1], [0, 0, 1, 1], [], []>} : vector<16x128xf32>, vector<128x128xf32>, vector<16x128xf32> -> vector<16x128xf32>
    %c0_17 = arith.constant 0 : index
    %c0_18 = arith.constant 0 : index
    %21 = vector.load %arg7[%c0_17, %c0_18] : memref<1x128xf32, #tpu.memory_space<vmem>>, vector<1x128xf32>
    %22 = vector.broadcast %21 : vector<1x128xf32> to vector<16x128xf32>
    %23 = arith.addf %20, %22 : vector<16x128xf32>
    %cst_19 = arith.constant 0.000000e+00 : f32
    %24 = vector.broadcast %cst_19 : f32 to vector<16x128xf32>
    %25 = arith.maximumf %23, %24 : vector<16x128xf32>
    %26 = vector.extract_strided_slice %17 {offsets = [0, 0], sizes = [16, 128], strides = [1, 1]} : vector<16x256xf32> to vector<16x128xf32>
    %27 = tpu.concatenate %26, %25 in 1 : vector<16x128xf32>, vector<16x128xf32> -> vector<16x256xf32>
    %c0_20 = arith.constant 0 : index
    %c0_21 = arith.constant 0 : index
    %28 = vector.load %arg8[%c0_20, %c0_21] : memref<256x128xf32, #tpu.memory_space<vmem>>, vector<256x128xf32>
    %cst_22 = arith.constant dense<0.000000e+00> : vector<16x128xf32>
    %29 = tpu.matmul %27, %28, %cst_22 {dimension_numbers = #tpu.dot_dimension_numbers<[1], [0], [0], [1], [0, 0, 1, 1], [], []>} : vector<16x256xf32>, vector<256x128xf32>, vector<16x128xf32> -> vector<16x128xf32>
    %c0_23 = arith.constant 0 : index
    %c0_24 = arith.constant 0 : index
    %30 = vector.load %arg9[%c0_23, %c0_24] : memref<1x128xf32, #tpu.memory_space<vmem>>, vector<1x128xf32>
    %31 = vector.broadcast %30 : vector<1x128xf32> to vector<16x128xf32>
    %32 = arith.addf %29, %31 : vector<16x128xf32>
    %33 = tpu.iota {dimensions = array<i32: 1>} : vector<16x128xi32>
    %c64_i32 = arith.constant 64 : i32
    %34 = vector.broadcast %c64_i32 : i32 to vector<16x128xi32>
    %35 = arith.cmpi sge, %33, %34 : vector<16x128xi32>
    %c7_i32 = arith.constant 7 : i32
    %36 = vector.broadcast %c7_i32 : i32 to vector<16x128xi32>
    %37 = arith.cmpi slt, %33, %36 : vector<16x128xi32>
    %c64_i32_25 = arith.constant 64 : i32
    %38 = vector.broadcast %c64_i32_25 : i32 to vector<16x128xi32>
    %39 = arith.cmpi sge, %33, %38 : vector<16x128xi32>
    %c68_i32 = arith.constant 68 : i32
    %40 = vector.broadcast %c68_i32 : i32 to vector<16x128xi32>
    %41 = arith.cmpi slt, %33, %40 : vector<16x128xi32>
    %42 = arith.andi %39, %41 : vector<16x128xi1>
    %43 = arith.ori %37, %42 : vector<16x128xi1>
    %cst_26 = arith.constant -1.000000e+30 : f32
    %44 = vector.broadcast %cst_26 : f32 to vector<16x128xf32>
    %45 = arith.select %43, %32, %44 : vector<16x128xi1>, vector<16x128xf32>
    %cst_27 = arith.constant -1.000000e+30 : f32
    %46 = vector.broadcast %cst_27 : f32 to vector<16x128xf32>
    %47 = arith.select %35, %46, %45 : vector<16x128xi1>, vector<16x128xf32>
    %cst_28 = arith.constant dense<0xFF800000> : vector<16xf32>
    %48 = vector.multi_reduction <maximumf>, %47, %cst_28 [1] : vector<16x128xf32> to vector<16xf32>
    %49 = vector.shape_cast %48 : vector<16xf32> to vector<16x1xf32>
    %cst_29 = arith.constant -1.000000e+30 : f32
    %50 = vector.broadcast %cst_29 : f32 to vector<16x128xf32>
    %51 = arith.select %35, %45, %50 : vector<16x128xi1>, vector<16x128xf32>
    %cst_30 = arith.constant dense<0xFF800000> : vector<16xf32>
    %52 = vector.multi_reduction <maximumf>, %51, %cst_30 [1] : vector<16x128xf32> to vector<16xf32>
    %53 = vector.shape_cast %52 : vector<16xf32> to vector<16x1xf32>
    %54 = vector.shape_cast %53 : vector<16x1xf32> to vector<16x1xf32>
    %55 = vector.broadcast %54 : vector<16x1xf32> to vector<16x128xf32>
    %56 = vector.shape_cast %49 : vector<16x1xf32> to vector<16x1xf32>
    %57 = vector.broadcast %56 : vector<16x1xf32> to vector<16x128xf32>
    %58 = arith.select %35, %55, %57 : vector<16x128xi1>, vector<16x128xf32>
    %59 = arith.subf %45, %58 : vector<16x128xf32>
    %60 = math.exp %59 : vector<16x128xf32>
    %cst_31 = arith.constant 0.000000e+00 : f32
    %61 = vector.broadcast %cst_31 : f32 to vector<16x128xf32>
    %62 = arith.select %43, %60, %61 : vector<16x128xi1>, vector<16x128xf32>
    %cst_32 = arith.constant 0.000000e+00 : f32
    %63 = vector.broadcast %cst_32 : f32 to vector<16x128xf32>
    %64 = arith.select %35, %63, %62 : vector<16x128xi1>, vector<16x128xf32>
    %cst_33 = arith.constant dense<0.000000e+00> : vector<16xf32>
    %65 = vector.multi_reduction <add>, %64, %cst_33 [1] : vector<16x128xf32> to vector<16xf32>
    %66 = vector.shape_cast %65 : vector<16xf32> to vector<16x1xf32>
    %cst_34 = arith.constant 0.000000e+00 : f32
    %67 = vector.broadcast %cst_34 : f32 to vector<16x128xf32>
    %68 = arith.select %35, %62, %67 : vector<16x128xi1>, vector<16x128xf32>
    %cst_35 = arith.constant dense<0.000000e+00> : vector<16xf32>
    %69 = vector.multi_reduction <add>, %68, %cst_35 [1] : vector<16x128xf32> to vector<16xf32>
    %70 = vector.shape_cast %69 : vector<16xf32> to vector<16x1xf32>
    %71 = math.log %70 : vector<16x1xf32>
    %72 = math.log %66 : vector<16x1xf32>
    %73 = vector.shape_cast %71 : vector<16x1xf32> to vector<16x1xf32>
    %74 = vector.broadcast %73 : vector<16x1xf32> to vector<16x128xf32>
    %75 = vector.shape_cast %72 : vector<16x1xf32> to vector<16x1xf32>
    %76 = vector.broadcast %75 : vector<16x1xf32> to vector<16x128xf32>
    %77 = arith.select %35, %74, %76 : vector<16x128xi1>, vector<16x128xf32>
    %78 = arith.subf %45, %58 : vector<16x128xf32>
    %79 = arith.subf %78, %77 : vector<16x128xf32>
    %cst_36 = arith.constant 0.000000e+00 : f32
    %80 = vector.broadcast %cst_36 : f32 to vector<16x128xf32>
    %81 = arith.select %43, %79, %80 : vector<16x128xi1>, vector<16x128xf32>
    %c0_37 = arith.constant 0 : index
    %c0_38 = arith.constant 0 : index
    %82 = vector.load %arg10[%c0_37, %c0_38] : memref<16x128xf32, #tpu.memory_space<vmem>>, vector<16x128xf32>
    tpu.vector_store %arg10[%c0_37, %c0_38], %81 {strides = array<i32>} : memref<16x128xf32, #tpu.memory_space<vmem>>, vector<16x128xf32>,
    return
  }
  func.func @transform_0(%arg0: i32) -> (i32, i32, i32) {
    %c0_i32 = arith.constant 0 : i32
    %c0_i32_0 = arith.constant 0 : i32
    %c0_i32_1 = arith.constant 0 : i32
    return %arg0, %c0_i32, %c0_i32_0 : i32, i32, i32
  }
  func.func @transform_1(%arg0: i32) -> (i32, i32) {
    %c0_i32 = arith.constant 0 : i32
    %c0_i32_0 = arith.constant 0 : i32
    %c0_i32_1 = arith.constant 0 : i32
    return %c0_i32, %c0_i32_0 : i32, i32
  }
  func.func @transform_2(%arg0: i32) -> (i32, i32) {
    %c0_i32 = arith.constant 0 : i32
    %c0_i32_0 = arith.constant 0 : i32
    %c0_i32_1 = arith.constant 0 : i32
    return %c0_i32, %c0_i32_0 : i32, i32
  }
  func.func @transform_3(%arg0: i32) -> (i32, i32) {
    %c0_i32 = arith.constant 0 : i32
    %c0_i32_0 = arith.constant 0 : i32
    %c0_i32_1 = arith.constant 0 : i32
    return %c0_i32, %c0_i32_0 : i32, i32
  }
  func.func @transform_4(%arg0: i32) -> (i32, i32) {
    %c0_i32 = arith.constant 0 : i32
    %c0_i32_0 = arith.constant 0 : i32
    %c0_i32_1 = arith.constant 0 : i32
    return %c0_i32, %c0_i32_0 : i32, i32
  }
  func.func @transform_5(%arg0: i32) -> (i32, i32) {
    %c0_i32 = arith.constant 0 : i32
    %c0_i32_0 = arith.constant 0 : i32
    %c0_i32_1 = arith.constant 0 : i32
    return %c0_i32, %c0_i32_0 : i32, i32
  }
  func.func @transform_6(%arg0: i32) -> (i32, i32) {
    %c0_i32 = arith.constant 0 : i32
    %c0_i32_0 = arith.constant 0 : i32
    %c0_i32_1 = arith.constant 0 : i32
    return %c0_i32, %c0_i32_0 : i32, i32
  }
  func.func @transform_7(%arg0: i32) -> (i32, i32) {
    %c0_i32 = arith.constant 0 : i32
    %c0_i32_0 = arith.constant 0 : i32
    %c0_i32_1 = arith.constant 0 : i32
    return %c0_i32, %c0_i32_0 : i32, i32
  }
  func.func @transform_8(%arg0: i32) -> (i32, i32) {
    %c0_i32 = arith.constant 0 : i32
    %c0_i32_0 = arith.constant 0 : i32
    %c0_i32_1 = arith.constant 0 : i32
    return %c0_i32, %c0_i32_0 : i32, i32
  }
  func.func @transform_9(%arg0: i32) -> (i32, i32) {
    %c0_i32 = arith.constant 0 : i32
    %c0_i32_0 = arith.constant 0 : i32
    return %arg0, %c0_i32 : i32, i32
  }
}

</mosaic_0001>

<bundles_post_ra>
// kernel: cnn_model_forward.1
= control target key start
LH: loop header
LB: loop body
LE: loop exit
PB: predicated region body
PF: predicated region fallthrough
CT: control target
= control target key end

     0   :  { %vm1717_vm0 = vcmask 1040384   ;;  %vm4445_vm1 = vcmask 1041409   ;;  %vm4447_vm2 = vcmask 1042434   ;;  %vm4449_vm3 = vcmask 1043459   ;;  %s14297_s1 = inlined_call_operand.vmem [shape: bf16[1280,256], index: 1, kind: input, shape index: {}]   ;;  %s14298_s0 = inlined_call_operand.vmem [shape: bf16[16,49,1280], index: 0, kind: input, shape index: {}]   ;;  %s14299_s3 = inlined_call_operand.vmem [shape: f32[256,256], index: 3, kind: input, shape index: {}]   ;;  %s14300_s5 = inlined_call_operand.vmem [shape: f32[128,128], index: 5, kind: input, shape index: {}]   ;;  %s14301_s2 = inlined_call_operand.vmem [shape: f32[1,256], index: 2, kind: input, shape index: {}]   ;;  %s14302_s7 = inlined_call_operand.vmem [shape: f32[256,128], index: 7, kind: input, shape index: {}]   ;;  %s14303_s4 = inlined_call_operand.vmem [shape: f32[1,256], index: 4, kind: input, shape index: {}]   ;;  %s14304_s6 = inlined_call_operand.vmem [shape: f32[1,128], index: 6, kind: input, shape index: {}]   ;;  %s14305_s8 = inlined_call_operand.vmem [shape: f32[1,128], index: 8, kind: input, shape index: {}]   ;;  %s14306_s9 = inlined_call_operand.vmem [shape: f32[16,128], index: 9, kind: output, shape index: {}]  }
   0x1   :  { %v6318_v0 = vld [vmem:[%s14297_s1 + $0x74] ss:$8 sps:$4 sm:$0xff]   ;;  %v6320_v1 = vld [vmem:[%s14297_s1 + $0x70] ss:$8 sps:$4 sm:$0xff]   ;;  %v6324_v4 = vld [vmem:[%s14297_s1 + $0x64] ss:$8 sps:$4 sm:$0xff]  }
   0x2   :  { %5412 = vmatprep.subr.bf16.mxu0 %v6318_v0  ;;  %v6321_v2 = vld [vmem:[%s14297_s1 + $0x174] ss:$8 sps:$4 sm:$0xff]   ;;  %v6323_v3 = vld [vmem:[%s14297_s1 + $0x170] ss:$8 sps:$4 sm:$0xff]   ;;  %v6326_v5 = vld [vmem:[%s14297_s1 + $0x60] ss:$8 sps:$4 sm:$0xff]  }
   0x3   :  { %5413 = vmatpush1.bf16.msra.mxu0 %v6320_v1  ;;  %5455 = vmatprep.subr.bf16.mxu1 %v6321_v2  ;;  %v6327_v6 = vld [vmem:[%s14297_s1 + $0x164] ss:$8 sps:$4 sm:$0xff]   ;;  %v6329_v7 = vld [vmem:[%s14297_s1 + $0x160] ss:$8 sps:$4 sm:$0xff]   ;;  %v6330_v8 = vld [vmem:[%s14297_s1 + $0x54] ss:$8 sps:$4 sm:$0xff]  }
   0x4   :  { %5456 = vmatpush1.bf16.msra.mxu1 %v6323_v3  ;;  %5414 = vmatprep.subr.bf16.mxu0 %v6324_v4  ;;  %v6332_v9 = vld [vmem:[%s14297_s1 + $0x50] ss:$8 sps:$4 sm:$0xff]   ;;  %v6333_v10 = vld [vmem:[%s14297_s1 + $0x154] ss:$8 sps:$4 sm:$0xff]   ;;  %v6336_v11 = vld [vmem:[%s14297_s1 + $0x44] ss:$8 sps:$4 sm:$0xff]  }
   0x5   :  { %5457 = vmatprep.subr.bf16.mxu1 %v6327_v6  ;;  %v6335_v12 = vld [vmem:[%s14297_s1 + $0x150] ss:$8 sps:$4 sm:$0xff]   ;;  %v6339_v13 = vld [vmem:[%s14297_s1 + $0x144] ss:$8 sps:$4 sm:$0xff]   ;;  %v6338_v14 = vld [vmem:[%s14297_s1 + $0x40] ss:$8 sps:$4 sm:$0xff]  }
   0x6   :  { %v6342_v15 = vld [vmem:[%s14297_s1 + $0x34] ss:$8 sps:$4 sm:$0xff]   ;;  %v6341_v16 = vld [vmem:[%s14297_s1 + $0x140] ss:$8 sps:$4 sm:$0xff]   ;;  %v6344_v18 = vld [vmem:[%s14297_s1 + $0x30] ss:$8 sps:$4 sm:$0xff]  }
   0x7   :  { %5415 = vmatpush1.bf16.msra.mxu0 %v6326_v5  ;;  %v6345_v17 = vld [vmem:[%s14297_s1 + $0x134] ss:$8 sps:$4 sm:$0xff]   ;;  %v6348_v19 = vld [vmem:[%s14297_s1 + $0x24] ss:$8 sps:$4 sm:$0xff]   ;;  %v6347_v20 = vld [vmem:[%s14297_s1 + $0x130] ss:$8 sps:$4 sm:$0xff]  }
   0x8   :  { %5416 = vmatprep.subr.bf16.mxu0 %v6330_v8  ;;  %5458 = vmatpush1.bf16.msra.mxu1 %v6329_v7  ;;  %v6351_v21 = vld [vmem:[%s14297_s1 + $0x124] ss:$8 sps:$4 sm:$0xff]   ;;  %v6350_v22 = vld [vmem:[%s14297_s1 + $0x20] ss:$8 sps:$4 sm:$0xff]   ;;  %v6354_v23 = vld [vmem:[%s14297_s1 + $0x14] ss:$8 sps:$4 sm:$0xff]  }
   0x9   :  { %5459 = vmatprep.subr.bf16.mxu1 %v6333_v10  ;;  %v6353_v24 = vld [vmem:[%s14297_s1 + $0x120] ss:$8 sps:$4 sm:$0xff]   ;;  %v6357_v25 = vld [vmem:[%s14297_s1 + $0x114] ss:$8 sps:$4 sm:$0xff]   ;;  %v6356_v26 = vld [vmem:[%s14297_s1 + $0x10] ss:$8 sps:$4 sm:$0xff]  }
   0xa   :  { %v6360_v27 = vld [vmem:[%s14297_s1 + $0x4] ss:$8 sps:$4 sm:$0xff]   ;;  %v6359_v28 = vld [vmem:[%s14297_s1 + $0x110] ss:$8 sps:$4 sm:$0xff]   ;;  %v6362_v30 = vld [vmem:[%s14297_s1] ss:$8 sps:$4 sm:$0xff]  }
   0xb   :  { %5417 = vmatpush1.bf16.msra.mxu0 %v6332_v9  ;;  %v6363_v29 = vld [vmem:[%s14297_s1 + $0x104] ss:$8 sps:$4 sm:$0xff]   ;;  %v6366_v31 = vld [vmem:[%s14297_s1 + $0xf4] ss:$8 sps:$4 sm:$0xff]   ;;  %v6365_v32 = vld [vmem:[%s14297_s1 + $0x100] ss:$8 sps:$4 sm:$0xff]  }
   0xc   :  { %5418 = vmatprep.subr.bf16.mxu0 %v6336_v11  ;;  %5460 = vmatpush1.bf16.msra.mxu1 %v6335_v12  ;;  %v6369_v33 = vld [vmem:[%s14297_s1 + $0x1f4] ss:$8 sps:$4 sm:$0xff]   ;;  %v6368_v34 = vld [vmem:[%s14297_s1 + $0xf0] ss:$8 sps:$4 sm:$0xff]   ;;  %v6372_v35 = vld [vmem:[%s14297_s1 + $0xe4] ss:$8 sps:$4 sm:$0xff]  }
   0xd   :  { %5461 = vmatprep.subr.bf16.mxu1 %v6339_v13  ;;  %v6371_v36 = vld [vmem:[%s14297_s1 + $0x1f0] ss:$8 sps:$4 sm:$0xff]   ;;  %v6375_v37 = vld [vmem:[%s14297_s1 + $0x1e4] ss:$8 sps:$4 sm:$0xff]   ;;  %v6374_v38 = vld [vmem:[%s14297_s1 + $0xe0] ss:$8 sps:$4 sm:$0xff]  }
   0xe   :  { %v6378_v39 = vld [vmem:[%s14297_s1 + $0xd4] ss:$8 sps:$4 sm:$0xff]   ;;  %v6377_v40 = vld [vmem:[%s14297_s1 + $0x1e0] ss:$8 sps:$4 sm:$0xff]   ;;  %v6380_v42 = vld [vmem:[%s14297_s1 + $0xd0] ss:$8 sps:$4 sm:$0xff]  }
   0xf   :  { %5419 = vmatpush1.bf16.msra.mxu0 %v6338_v14  ;;  %v6381_v41 = vld [vmem:[%s14297_s1 + $0x1d4] ss:$8 sps:$4 sm:$0xff]   ;;  %v6383_v43 = vld [vmem:[%s14297_s1 + $0x1d0] ss:$8 sps:$4 sm:$0xff]   ;;  %v6384_v44 = vld [vmem:[%s14297_s1 + $0xc4] ss:$8 sps:$4 sm:$0xff]  }
  0x10   :  { %5420 = vmatprep.subr.bf16.mxu0 %v6342_v15  ;;  %5462 = vmatpush1.bf16.msra.mxu1 %v6341_v16  ;;  %v6386_v45 = vld [vmem:[%s14297_s1 + $0xc0] ss:$8 sps:$4 sm:$0xff]   ;;  %v6387_v46 = vld [vmem:[%s14297_s1 + $0x1c4] ss:$8 sps:$4 sm:$0xff]   ;;  %v6390_v47 = vld [vmem:[%s14297_s1 + $0xb4] ss:$8 sps:$4 sm:$0xff]  }
  0x11   :  { %5463 = vmatprep.subr.bf16.mxu1 %v6345_v17  ;;  %v6767_v48 = vld [vmem:[%s14298_s0] sm:$0xff]  ;;  %v6772_v49 = vld [vmem:[%s14298_s0 + $0x28] sm:$0xff]  ;;  %v6780_v51 = vld [vmem:[%s14298_s0 + $0x50] sm:$0xff]  ;;  %vm4451_vm4 = vcmask 1044484   ;;  %vm4453_vm5 = vcmask 1045509   ;;  %vm4455_vm6 = vcmask 1046534  }
  0x12   :  { %15071 = vst [vmem:[#allocation2_spill] sm:$0xff] %v6767_v48  ;;  %v6389_v50 = vld [vmem:[%s14297_s1 + $0x1c0] ss:$8 sps:$4 sm:$0xff]   ;;  %v6785_v52 = vld [vmem:[%s14298_s0 + $0x78] sm:$0xff]  ;;  %v6806_v59 = vld [vmem:[%s14298_s0 + $0xf0] sm:$0x11] }
  0x13   :  { %5421 = vmatpush1.bf16.msra.mxu0 %v6344_v18  ;;  %v6790_v53 = vld [vmem:[%s14298_s0 + $0xa0] sm:$0xff]  ;;  %v6393_v57 = vld [vmem:[%s14297_s1 + $0x1b4] ss:$8 sps:$4 sm:$0xff]   ;;  %v6801_v58 = vld [vmem:[%s14298_s0 + $0xc8] sm:$0xff]  ;;  %15072 = vst [vmem:[#allocation3_spill] sm:$0xff] %v6806_v59  ;;  %vm4457_vm7 = vcmask 1047559  }
  0x14   :  { %5422 = vmatprep.subr.bf16.mxu0 %v6348_v19  ;;  %5464 = vmatpush1.bf16.msra.mxu1 %v6347_v20  ;;  %v6811_v60 = vld [vmem:[%s14298_s0 + $0x118] sm:$0xff]  ;;  %v6820_v1 = vld [vmem:[%s14298_s0 + $0x140] sm:$0xff]  ;;  %v6825_v2 = vld [vmem:[%s14298_s0 + $0x168] sm:$0xff] }
  0x15   :  { %5465 = vmatprep.subr.bf16.mxu1 %v6351_v21  ;;  %15073 = vst [vmem:[#allocation4_spill] sm:$0xff] %v6811_v60  ;;  %v6830_v3 = vld [vmem:[%s14298_s0 + $0x190] sm:$0xff]  ;;  %v6839_v8 = vld [vmem:[%s14298_s0 + $0x1b8] sm:$0xff]  ;;  %v6844_v9 = vld [vmem:[%s14298_s0 + $0x1e0] sm:$0xff] }
  0x16   :  { %v6849_v10 = vld [vmem:[%s14298_s0 + $0x208] sm:$0x11]  ;;  %v6392_v15 = vld [vmem:[%s14297_s1 + $0xb0] ss:$8 sps:$4 sm:$0xff]   ;;  %v6405_v0 = vld [vmem:[%s14297_s1 + $0x194] ss:$8 sps:$4 sm:$0xff]  }
  0x17   :  { %5423 = vmatpush1.bf16.msra.mxu0 %v6350_v22  ;;  %15074 = vst [vmem:[#allocation5_spill] sm:$0xff] %v6849_v10  ;;  %v6861_v16 = vld [vmem:[%s14298_s0 + $0x230] sm:$0xff]  ;;  %v6866_v17 = vld [vmem:[%s14298_s0 + $0x258] sm:$0xff]  ;;  %v6396_v22 = vld [vmem:[%s14297_s1 + $0xa4] ss:$8 sps:$4 sm:$0xff]  }
  0x18   :  { %5424 = vmatprep.subr.bf16.mxu0 %v6354_v23  ;;  %5466 = vmatpush1.bf16.msra.mxu1 %v6353_v24  ;;  %15075 = vst [vmem:[#allocation6_spill] sm:$0xff] %v6861_v16  ;;  %15076 = vst [vmem:[#allocation7_spill] sm:$0xff] %v6866_v17  ;;  %v6878_v23 = vld [vmem:[%s14298_s0 + $0x280] sm:$0xff]  ;;  %v6883_v24 = vld [vmem:[%s14298_s0 + $0x2a8] sm:$0xff] }
  0x19   :  { %5467 = vmatprep.subr.bf16.mxu1 %v6357_v25  ;;  %v6951_v7 = vld [vmem:[%s14298_s0 + $0x3e8] sm:$0xff]  ;;  %v6980_v21 = vld [vmem:[%s14298_s0 + $0x460] sm:$0xff]  ;;  %v6404_v19 = vld [vmem:[%s14297_s1 + $0x90] ss:$8 sps:$4 sm:$0xff]  }
  0x1a   :  { %15082 = vst [vmem:[#allocation13_spill] sm:$0xff] %v6951_v7  ;;  %v6401_v5 = vld [vmem:[%s14297_s1 + $0x1a0] ss:$8 sps:$4 sm:$0xff]   ;;  %15085 = vst [vmem:[#allocation16_spill] sm:$0xff] %v6980_v21  ;;  %v6997_v14 = vld [vmem:[%s14298_s0 + $0x4b0] sm:$0xff] }
  0x1b   :  { %5425 = vmatpush1.bf16.msra.mxu0 %v6356_v26  ;;  %v6963_v26 = vld [vmem:[%s14298_s0 + $0x410] sm:$0xff]  ;;  %v7002_v12 = vld [vmem:[%s14298_s0 + $0x4d8] sm:$0xff]  ;;  %v6408_v54 = vld [vmem:[%s14297_s1 + $0x84] ss:$8 sps:$4 sm:$0xff]  }
  0x1c   :  { %5426 = vmatprep.subr.bf16.mxu0 %v6360_v27  ;;  %5468 = vmatpush1.bf16.msra.mxu1 %v6359_v28  ;;  %15083 = vst [vmem:[#allocation14_spill] sm:$0xff] %v6963_v26  ;;  %15087 = vst [vmem:[#allocation18_spill] sm:$0xff] %v7002_v12  ;;  %v7036_v56 = vld [vmem:[%s14298_s0 + $0x578] sm:$0xff]  ;;  %v6411_v6 = vld [vmem:[%s14297_s1 + $0x184] ss:$8 sps:$4 sm:$0xff]  }
  0x1d   :  { %5469 = vmatprep.subr.bf16.mxu1 %v6363_v29  ;;  %v6395_v29 = vld [vmem:[%s14297_s1 + $0x1b0] ss:$8 sps:$4 sm:$0xff]   ;;  %15091 = vst [vmem:[#allocation22_spill] sm:$0xff] %v7036_v56  ;;  %v7053_v28 = vld [vmem:[%s14298_s0 + $0x5c8] sm:$0xff]  ;;  %v7163_v63 = vld [vmem:[%s14298_s0 + $0x820] sm:$0xff] }
  0x1e   :  { %15092 = vst [vmem:[#allocation23_spill] sm:$0xff] %v7053_v28  ;;  %v6410_v4 = vld [vmem:[%s14297_s1 + $0x80] ss:$8 sps:$4 sm:$0xff]   ;;  %v7065_v62 = vld [vmem:[%s14298_s0 + $0x5f0] sm:$0xff]  ;;  %15107 = vst [vmem:[#allocation38_spill] sm:$0xff] %v7163_v63 }
  0x1f   :  { %5427 = vmatpush1.bf16.msra.mxu0 %v6362_v30  ;;  %v6895_v30 = vld [vmem:[%s14298_s0 + $0x2d0] sm:$0xff]  ;;  %15093 = vst [vmem:[#allocation24_spill] sm:$0xff] %v7065_v62  ;;  %v7140_v27 = vld [vmem:[%s14298_s0 + $0x7a8] sm:$0xff]  ;;  %v7182_v20 = vld [vmem:[%s14298_s0 + $0x898] sm:$0x11] }
  0x20   :  { %5428 = vmatprep.subr.bf16.mxu0 %v6366_v31  ;;  %5470 = vmatpush1.bf16.msra.mxu1 %v6365_v32  ;;  %15077 = vst [vmem:[#allocation8_spill] sm:$0xff] %v6895_v30  ;;  %v6900_v31 = vld [vmem:[%s14298_s0 + $0x2f8] sm:$0xff]  ;;  %v7031_v32 = vld [vmem:[%s14298_s0 + $0x550] sm:$0x11]  ;;  %15104 = vst [vmem:[#allocation35_spill] sm:$0xff] %v7140_v27 }
  0x21   :  { %5471 = vmatprep.subr.bf16.mxu1 %v6369_v33  ;;  %15078 = vst [vmem:[#allocation9_spill] sm:$0xff] %v6900_v31  ;;  %v6946_v33 = vld [vmem:[%s14298_s0 + $0x3c0] sm:$0xff]  ;;  %15090 = vst [vmem:[#allocation21_spill] sm:$0xff] %v7031_v32  ;;  %v7149_v25 = vld [vmem:[%s14298_s0 + $0x7d0] sm:$0xff] }
  0x22   :  { %15081 = vst [vmem:[#allocation12_spill] sm:$0xff] %v6946_v33  ;;  %15105 = vst [vmem:[#allocation36_spill] sm:$0xff] %v7149_v25  ;;  %v7177_v11 = vld [vmem:[%s14298_s0 + $0x870] sm:$0xff]  ;;  %v7196_v13 = vld [vmem:[%s14298_s0 + $0x8e8] sm:$0xff] }
  0x23   :  { %5429 = vmatpush2.bf16.msra.mxu0 %v6368_v34  ;;  %v7019_v34 = vld [vmem:[%s14298_s0 + $0x528] sm:$0xff]  ;;  %15109 = vst [vmem:[#allocation40_spill] sm:$0xff] %v7177_v11  ;;  %15110 = vst [vmem:[#allocation41_spill] sm:$0xff] %v7182_v20  ;;  %v7210_v55 = vld [vmem:[%s14298_s0 + $0x938] sm:$0xff] }
  0x24   :  { %5430 = vmatprep.subr.bf16.mxu0 %v6372_v35  ;;  %5472 = vmatpush2.bf16.msra.mxu1 %v6371_v36  ;;  %v6399_v36 = vld [vmem:[%s14297_s1 + $0x1a4] ss:$8 sps:$4 sm:$0xff]   ;;  %15089 = vst [vmem:[#allocation20_spill] sm:$0xff] %v7019_v34  ;;  %15112 = vst [vmem:[#allocation43_spill] sm:$0xff] %v7196_v13  ;;  %v7238_v63 = vld [vmem:[%s14298_s0 + $0x9d8] sm:$0xff] }
  0x25   :  { %5473 = vmatprep.subr.bf16.mxu1 %v6375_v37  ;;  %v6912_v37 = vld [vmem:[%s14298_s0 + $0x320] sm:$0x11]  ;;  %v6985_v35 = vld [vmem:[%s14298_s0 + $0x488] sm:$0xff]  ;;  %15114 = vst [vmem:[#allocation45_spill] sm:$0xff] %v7210_v55  ;;  %15118 = vst [vmem:[#allocation49_spill] sm:$0xff] %v7238_v63 }
  0x26   :  { %15086 = vst [vmem:[#allocation17_spill] sm:$0xff] %v6985_v35  ;;  %v7247_v18 = vld [vmem:[%s14298_s0 + $0xa00] sm:$0xff]  ;;  %v7252_v11 = vld [vmem:[%s14298_s0 + $0xa28] sm:$0xff]  ;;  %v7261_v61 = vld [vmem:[%s14298_s0 + $0xa50] sm:$0xff] }
  0x27   :  { %5431 = vmatpush2.bf16.msra.mxu0 %v6374_v38  ;;  %v6917_v38 = vld [vmem:[%s14298_s0 + $0x348] sm:$0xff]  ;;  %15119 = vst [vmem:[#allocation50_spill] sm:$0xff] %v7247_v18  ;;  %15120 = vst [vmem:[#allocation51_spill] sm:$0xff] %v7252_v11  ;;  %v7303_v34 = vld [vmem:[%s14298_s0 + $0xb40] sm:$0xff] }
  0x28   :  { %5432 = vmatprep.subr.bf16.mxu0 %v6378_v39  ;;  %5474 = vmatpush2.bf16.msra.mxu1 %v6377_v40  ;;  %15079 = vst [vmem:[#allocation10_spill] sm:$0xff] %v6917_v38  ;;  %v7205_v40 = vld [vmem:[%s14298_s0 + $0x910] sm:$0xff]  ;;  %15121 = vst [vmem:[#allocation52_spill] sm:$0xff] %v7261_v61  ;;  %v7322_v18 = vld [vmem:[%s14298_s0 + $0xbb8] sm:$0xff] }
  0x29   :  { %5475 = vmatprep.subr.bf16.mxu1 %v6381_v41  ;;  %v7168_v41 = vld [vmem:[%s14298_s0 + $0x848] sm:$0xff]  ;;  %15113 = vst [vmem:[#allocation44_spill] sm:$0xff] %v7205_v40  ;;  %v7233_v39 = vld [vmem:[%s14298_s0 + $0x9b0] sm:$0x11]  ;;  %15127 = vst [vmem:[#allocation58_spill] sm:$0xff] %v7303_v34 }
  0x2a   :  { %15108 = vst [vmem:[#allocation39_spill] sm:$0xff] %v7168_v41  ;;  %15117 = vst [vmem:[#allocation48_spill] sm:$0xff] %v7233_v39  ;;  %v7280_v40 = vld [vmem:[%s14298_s0 + $0xac8] sm:$0x11]  ;;  %v7317_v41 = vld [vmem:[%s14298_s0 + $0xb90] sm:$0xff] }
  0x2b   :  { %5433 = vmatpush2.bf16.msra.mxu0 %v6380_v42  ;;  %v6968_v42 = vld [vmem:[%s14298_s0 + $0x438] sm:$0x11]  ;;  %15124 = vst [vmem:[#allocation55_spill] sm:$0xff] %v7280_v40  ;;  %15129 = vst [vmem:[#allocation60_spill] sm:$0xff] %v7317_v41  ;;  %v7331_v20 = vld [vmem:[%s14298_s0 + $0xbe0] sm:$0x11] }
  0x2c   :  { %5434 = vmatprep.subr.bf16.mxu0 %v6384_v44  ;;  %5476 = vmatpush2.bf16.msra.mxu1 %v6383_v43  ;;  %v6398_v43 = vld [vmem:[%s14297_s1 + $0xa0] ss:$8 sps:$4 sm:$0xff]   ;;  %v6929_v44 = vld [vmem:[%s14298_s0 + $0x370] sm:$0xff]  ;;  %15084 = vst [vmem:[#allocation15_spill] sm:$0xff] %v6968_v42  ;;  %15130 = vst [vmem:[#allocation61_spill] sm:$0xff] %v7322_v18 }
  0x2d   :  { %5477 = vmatprep.subr.bf16.mxu1 %v6387_v46  ;;  %15080 = vst [vmem:[#allocation11_spill] sm:$0xff] %v6929_v44  ;;  %v7219_v46 = vld [vmem:[%s14298_s0 + $0x960] sm:$0xff]  ;;  %15131 = vst [vmem:[#allocation62_spill] sm:$0xff] %v7331_v20  ;;  %v7336_v61 = vld [vmem:[%s14298_s0 + $0xc08] sm:$0xff]  ;;  %v15166_v20 = vunpack.c.h.bf16 %v6772_v49 }
  0x2e   :  { %15115 = vst [vmem:[#allocation46_spill] sm:$0xff] %v7219_v46  ;;  %v7294_v46 = vld [vmem:[%s14298_s0 + $0xb18] sm:$0xff]  ;;  %15132 = vst [vmem:[#allocation63_spill] sm:$0xff] %v7336_v61  ;;  %v7341_v63 = vld [vmem:[%s14298_s0 + $0xc30] sm:$0xff] }
  0x2f   :  { %5435 = vmatpush2.bf16.msra.mxu0 %v6386_v45  ;;  %v6934_v45 = vld [vmem:[%s14298_s0 + $0x398] sm:$0xff]  ;;  %15126 = vst [vmem:[#allocation57_spill] sm:$0xff] %v7294_v46  ;;  %15133 = vst [vmem:[#allocation64_spill] sm:$0xff] %v7341_v63  ;;  %v7355_v11 = vld [vmem:[%s14298_s0 + $0xc80] sm:$0xff]  ;;  %v15167_v46 = vunpack.c.h.bf16 %v6806_v59 }
  0x30   :  { %5436 = vmatprep.subr.bf16.mxu0 %v6390_v47  ;;  %5478 = vmatpush2.bf16.msra.mxu1 %v6389_v50  ;;  %v7014_v47 = vld [vmem:[%s14298_s0 + $0x500] sm:$0xff]  ;;  %v7070_v50 = vld [vmem:[%s14298_s0 + $0x618] sm:$0xff]  ;;  %15135 = vst [vmem:[#allocation66_spill] sm:$0xff] %v7355_v11  ;;  %v7376_v13 = vld [vmem:[%s14298_s0 + $0xcd0] sm:$0xff] }
  0x31   :  { %5479 = vmatprep.subr.bf16.mxu1 %v6393_v57  ;;  %15088 = vst [vmem:[#allocation19_spill] sm:$0xff] %v7014_v47  ;;  %15094 = vst [vmem:[#allocation25_spill] sm:$0xff] %v7070_v50  ;;  %v7098_v57 = vld [vmem:[%s14298_s0 + $0x6b8] sm:$0xff]  ;;  %v7390_v39 = vld [vmem:[%s14298_s0 + $0xd20] sm:$0xff]  ;;  %v1731_v26 = vsel %vm1717_vm0, %v15167_v46, 0.0  ;;  %v15174_v46 = vunpack.c.h.bf16 %v6917_v38  ;;  %v15181_v38 = vunpack.c.h.bf16 %v7031_v32 }
  0x32   :  { %15098 = vst [vmem:[#allocation29_spill] sm:$0xff] %v7098_v57  ;;  %15137 = vst [vmem:[#allocation68_spill] sm:$0xff] %v7376_v13  ;;  %v7381_v55 = vld [vmem:[%s14298_s0 + $0xcf8] sm:$0x11]  ;;  %v7395_v41 = vld [vmem:[%s14298_s0 + $0xd48] sm:$0xff] }
  0x33   :  { %5437 = vmatpush2.bf16.msra.mxu0 %v6392_v15  ;;  %v6402_v15 = vld [vmem:[%s14297_s1 + $0x94] ss:$8 sps:$4 sm:$0xff]   ;;  %15138 = vst [vmem:[#allocation69_spill] sm:$0xff] %v7381_v55  ;;  %15139 = vst [vmem:[#allocation70_spill] sm:$0xff] %v7390_v39  ;;  %v7418_v50 = vld [vmem:[%s14298_s0 + $0xdc0] sm:$0xff] }
  0x34   :  { %5438 = vmatprep.subr.bf16.mxu0 %v6396_v22  ;;  %5480 = vmatpush2.bf16.msra.mxu1 %v6395_v29  ;;  %v6407_v22 = vld [vmem:[%s14297_s1 + $0x190] ss:$8 sps:$4 sm:$0xff]   ;;  %15140 = vst [vmem:[#allocation71_spill] sm:$0xff] %v7395_v41  ;;  %15143 = vst [vmem:[#allocation74_spill] sm:$0xff] %v7418_v50  ;;  %v7423_v63 = vld [vmem:[%s14298_s0 + $0xde8] sm:$0xff] }
  0x35   :  { %5481 = vmatprep.subr.bf16.mxu1 %v6399_v36  ;;  %v7154_v29 = vld [vmem:[%s14298_s0 + $0x7f8] sm:$0xff]  ;;  %v7191_v36 = vld [vmem:[%s14298_s0 + $0x8c0] sm:$0xff]  ;;  %15144 = vst [vmem:[#allocation75_spill] sm:$0xff] %v7423_v63  ;;  %v7432_v40 = vld [vmem:[%s14298_s0 + $0xe10] sm:$0x11] }
  0x36   :  { %15106 = vst [vmem:[#allocation37_spill] sm:$0xff] %v7154_v29  ;;  %15111 = vst [vmem:[#allocation42_spill] sm:$0xff] %v7191_v36  ;;  %v7266_v36 = vld [vmem:[%s14298_s0 + $0xa78] sm:$0xff]  ;;  %v7446_v34 = vld [vmem:[%s14298_s0 + $0xe60] sm:$0xff] }
  0x37   :  { %5439 = vmatpush2.bf16.msra.mxu0 %v6398_v43  ;;  %v7048_v43 = vld [vmem:[%s14298_s0 + $0x5a0] sm:$0xff]  ;;  %15122 = vst [vmem:[#allocation53_spill] sm:$0xff] %v7266_v36  ;;  %v7350_v36 = vld [vmem:[%s14298_s0 + $0xc58] sm:$0xff]  ;;  %15145 = vst [vmem:[#allocation76_spill] sm:$0xff] %v7432_v40 }
  0x38   :  { %5440 = vmatprep.subr.bf16.mxu0 %v6402_v15  ;;  %5482 = vmatpush2.bf16.msra.mxu1 %v6401_v5  ;;  %v7079_v15 = vld [vmem:[%s14298_s0 + $0x640] sm:$0xff]  ;;  %v7084_v5 = vld [vmem:[%s14298_s0 + $0x668] sm:$0x11]  ;;  %15134 = vst [vmem:[#allocation65_spill] sm:$0xff] %v7350_v36  ;;  %v7409_v29 = vld [vmem:[%s14298_s0 + $0xd98] sm:$0xff] }
  0x39   :  { %5483 = vmatprep.subr.bf16.mxu1 %v6405_v0  ;;  %15095 = vst [vmem:[#allocation26_spill] sm:$0xff] %v7079_v15  ;;  %15096 = vst [vmem:[#allocation27_spill] sm:$0xff] %v7084_v5  ;;  %v7126_v0 = vld [vmem:[%s14298_s0 + $0x758] sm:$0xff]  ;;  %v7224_v15 = vld [vmem:[%s14298_s0 + $0x988] sm:$0xff] }
  0x3a   :  { %15102 = vst [vmem:[#allocation33_spill] sm:$0xff] %v7126_v0  ;;  %15116 = vst [vmem:[#allocation47_spill] sm:$0xff] %v7224_v15  ;;  %v7275_v0 = vld [vmem:[%s14298_s0 + $0xaa0] sm:$0xff]  ;;  %v7308_v15 = vld [vmem:[%s14298_s0 + $0xb68] sm:$0xff] }
  0x3b   :  { %5441 = vmatpush2.bf16.msra.mxu0 %v6404_v19  ;;  %v7112_v19 = vld [vmem:[%s14298_s0 + $0x708] sm:$0xff]  ;;  %15123 = vst [vmem:[#allocation54_spill] sm:$0xff] %v7275_v0  ;;  %15128 = vst [vmem:[#allocation59_spill] sm:$0xff] %v7308_v15  ;;  %v7437_v11 = vld [vmem:[%s14298_s0 + $0xe38] sm:$0xff] }
  0x3c   :  { %5442 = vmatprep.subr.bf16.mxu0 %v6408_v54  ;;  %5484 = vmatpush2.bf16.msra.mxu1 %v6407_v22  ;;  %v7093_v54 = vld [vmem:[%s14298_s0 + $0x690] sm:$0xff]  ;;  %v7107_v22 = vld [vmem:[%s14298_s0 + $0x6e0] sm:$0xff]  ;;  %15100 = vst [vmem:[#allocation31_spill] sm:$0xff] %v7112_v19  ;;  %15142 = vst [vmem:[#allocation73_spill] sm:$0xff] %v7409_v29 }
  0x3d   :  { %15097 = vst [vmem:[#allocation28_spill] sm:$0xff] %v7093_v54  ;;  %5485 = vmatprep.subr.bf16.mxu1 %v6411_v6  ;;  %15099 = vst [vmem:[#allocation30_spill] sm:$0xff] %v7107_v22  ;;  %v7121_v6 = vld [vmem:[%s14298_s0 + $0x730] sm:$0xff]  ;;  %v6413_v0 = vld [vmem:[%s14297_s1 + $0x180] ss:$8 sps:$4 sm:$0xff]  }
  0x3e   :  { %15101 = vst [vmem:[#allocation32_spill] sm:$0xff] %v7121_v6  ;;  %v7289_v6 = vld [vmem:[%s14298_s0 + $0xaf0] sm:$0xff]  ;;  %15146 = vst [vmem:[#allocation77_spill] sm:$0xff] %v7437_v11  ;;  %v7451_v13 = vld [vmem:[%s14298_s0 + $0xe88] sm:$0xff] }
  0x3f   :  { %5443 = vmatpush2.bf16.msra.mxu0 %v6410_v4  ;;  %v7135_v4 = vld [vmem:[%s14298_s0 + $0x780] sm:$0x11]  ;;  %15125 = vst [vmem:[#allocation56_spill] sm:$0xff] %v7289_v6  ;;  %v7367_v6 = vld [vmem:[%s14298_s0 + $0xca8] sm:$0xff]  ;;  %15147 = vst [vmem:[#allocation78_spill] sm:$0xff] %v7446_v34 }
  0x40   :  { %15103 = vst [vmem:[#allocation34_spill] sm:$0xff] %v7135_v4  ;;  %15136 = vst [vmem:[#allocation67_spill] sm:$0xff] %v7367_v6  ;;  %5486 = vmatpush2.bf16.msra.mxu1 %v6413_v0  ;;  %v7404_v0 = vld [vmem:[%s14298_s0 + $0xd70] sm:$0xff]  ;;  %v7465_v39 = vld [vmem:[%s14298_s0 + $0xed8] sm:$0xff] }
  0x41   :  { %15141 = vst [vmem:[#allocation72_spill] sm:$0xff] %v7404_v0  ;;  %15148 = vst [vmem:[#allocation79_spill] sm:$0xff] %v7451_v13  ;;  %v7460_v15 = vld [vmem:[%s14298_s0 + $0xeb0] sm:$0xff]  ;;  %v7474_v18 = vld [vmem:[%s14298_s0 + $0xf00] sm:$0xff]  ;;  %v15170_v13 = vunpack.c.h.bf16 %v6849_v10 }
  0x42   :  { %15149 = vst [vmem:[#allocation80_spill] sm:$0xff] %v7460_v15  ;;  %15150 = vst [vmem:[#allocation81_spill] sm:$0xff] %v7465_v39  ;;  %v7479_v0 = vld [vmem:[%s14298_s0 + $0xf28] sm:$0x11]  ;;  %v7488_v61 = vld [vmem:[%s14298_s0 + $0xf50] sm:$0xff] }
  0x43   :  { %15151 = vst [vmem:[#allocation82_spill] sm:$0xff] %v7474_v18  ;;  %15152 = vst [vmem:[#allocation83_spill] sm:$0xff] %v7479_v0  ;;  %v7493_v50 = vld [vmem:[%s14298_s0 + $0xf78] sm:$0xff]  ;;  %v7502_v36 = vld [vmem:[%s14298_s0 + $0xfa0] sm:$0xff]  ;;  %v15169_v0 = vunpack.c.h.bf16 %v6820_v1  ;;  %v1861_v11 = vsel %vm1717_vm0, %v15170_v13, 0.0  ;;  %v15177_v13 = vunpack.c.h.bf16 %v6780_v51 }
  0x44   :  { %15153 = vst [vmem:[#allocation84_spill] sm:$0xff] %v7488_v61  ;;  %15154 = vst [vmem:[#allocation85_spill] sm:$0xff] %v7493_v50  ;;  %v7507_v63 = vld [vmem:[%s14298_s0 + $0xfc8] sm:$0xff]  ;;  %v7516_v6 = vld [vmem:[%s14298_s0 + $0xff0] sm:$0xff]  ;;  %v15168_v50 = vunpack.c.h.bf16 %v6811_v60  ;;  %v15175_v60 = vunpack.c.h.bf16 %v6929_v44  ;;  %v2251_v44 = vsel %vm1717_vm0, %v15181_v38, 0.0  ;;  %v15187_v38 = vunpack.c.h.bf16 %v6785_v52 }
  0x45   :  { %15155 = vst [vmem:[#allocation86_spill] sm:$0xff] %v7502_v36  ;;  %15156 = vst [vmem:[#allocation87_spill] sm:$0xff] %v7507_v63  ;;  %v7521_v34 = vld [vmem:[%s14298_s0 + $0x1018] sm:$0xff]  ;;  %v7530_v55 = vld [vmem:[%s14298_s0 + $0x1040] sm:$0x11]  ;;  %v15165_v63 = vunpack.c.h.bf16 %v6767_v48  ;;  %v15172_v48 = vunpack.c.h.bf16 %v6866_v17 }
  0x46   :  { %15157 = vst [vmem:[#allocation88_spill] sm:$0xff] %v7516_v6  ;;  %15158 = vst [vmem:[#allocation89_spill] sm:$0xff] %v7521_v34  ;;  %v7535_v15 = vld [vmem:[%s14298_s0 + $0x1068] sm:$0xff]  ;;  %v7544_v41 = vld [vmem:[%s14298_s0 + $0x1090] sm:$0xff]  ;;  %v1856_v39 = vadd.f32 %v15169_v0, %v15168_v50  ;;  %v15171_v6 = vunpack.c.h.bf16 %v6861_v16  ;;  %v2116_v59 = vadd.f32 %v15175_v60, %v15174_v46  ;;  %v15176_v50 = vunpack.c.h.bf16 %v6968_v42 }
  0x47   :  { %15159 = vst [vmem:[#allocation90_spill] sm:$0xff] %v7530_v55  ;;  %15160 = vst [vmem:[#allocation91_spill] sm:$0xff] %v7535_v15  ;;  %v7549_v18 = vld [vmem:[%s14298_s0 + $0x10b8] sm:$0xff]  ;;  %v7558_v29 = vld [vmem:[%s14298_s0 + $0x10e0] sm:$0xff]  ;;  %v1726_v34 = vadd.f32 %v15166_v20, %v15165_v63  ;;  %v15173_v63 = vunpack.c.h.bf16 %v6912_v37  ;;  %v15178_v16 = vunpack.c.h.bf16 %v6825_v2  ;;  %v15182_v46 = vunpack.c.h.bf16 %v6878_v23 }
  0x48   :  { %15161 = vst [vmem:[#allocation92_spill] sm:$0xff] %v7544_v41  ;;  %15162 = vst [vmem:[#allocation93_spill] sm:$0xff] %v7549_v18  ;;  %v7563_v61 = vld [vmem:[%s14298_s0 + $0x1108] sm:$0xff]  ;;  %v7572_v40 = vld [vmem:[%s14298_s0 + $0x1130] sm:$0xff]  ;;  %v2121_v0 = vsel %vm1717_vm0, %v15176_v50, 0.0 }
  0x49   :  { %15163 = vst [vmem:[#allocation94_spill] sm:$0xff] %v7563_v61  ;;  %v7577_v36 = vld [vmem:[%s14298_s0 + $0x1158] sm:$0x11]  ;;  %v1991_v20 = vsel %vm1717_vm0, %v15173_v63, 0.0  ;;  %v1727_v10 = vadd.f32 %v1726_v34, %v15177_v13  ;;  %v1857_v17 = vadd.f32 %v1856_v39, %v15178_v16  ;;  %v15183_v34 = vunpack.c.h.bf16 %v6934_v45 }
  0x4a   :  { %15164 = vst [vmem:[#allocation95_spill] sm:$0xff] %v7577_v36  ;;  %v1986_v36 = vadd.f32 %v15172_v48, %v15171_v6  ;;  %v15179_v48 = vunpack.c.h.bf16 %v6980_v21  ;;  %v15180_v6 = vunpack.c.h.bf16 %v6985_v35  ;;  %v6416_v60 = vld [vmem:[%s14297_s1 + $0x274] ss:$8 sps:$4 sm:$0xff]   ;;  %v15184_v16 = vunpack.c.h.bf16 %v7036_v56 }
  0x4b   :  { %v2117_v13 = vadd.f32 %v2116_v59, %v15183_v34  ;;  %v15185_v39 = vunpack.c.h.bf16 %v7048_v43  ;;  %v1728_v32 = vadd.f32 %v1727_v10, %v15187_v38  ;;  %v15188_v21 = vunpack.c.h.bf16 %v6830_v3  ;;  %5498 = vmatprep.subr.bf16.mxu0 %v6416_v60 }
  0x4c   :  { %v2246_v63 = vadd.f32 %v15180_v6, %v15179_v48  ;;  %v1987_v50 = vadd.f32 %v1986_v36, %v15182_v46  ;;  %v15186_v48 = vunpack.c.h.bf16 %v7084_v5  ;;  %v15189_v36 = vunpack.c.h.bf16 %v6997_v14 }
  0x4d   :  { %v2376_v35 = vadd.f32 %v15185_v39, %v15184_v16  ;;  %v1858_v42 = vadd.f32 %v1857_v17, %v15188_v21  ;;  %v15190_v59 = vunpack.c.h.bf16 %v7093_v54  ;;  %v15191_v34 = vunpack.c.h.bf16 %v7098_v57  ;;  %v15300_v54 = vld [vmem:[#allocation85_spill] sm:$0xff] }
  0x4e   :  { %v2381_v6 = vsel %vm1717_vm0, %v15186_v48, 0.0  ;;  %v2247_v46 = vadd.f32 %v2246_v63, %v15189_v36  ;;  %v15192_v16 = vunpack.c.h.bf16 %v6883_v24  ;;  %v15193_v48 = vunpack.c.h.bf16 %v6946_v33 }
  0x4f   :  { %v2506_v56 = vadd.f32 %v15191_v34, %v15190_v59  ;;  %v15194_v10 = vunpack.c.h.bf16 %v7053_v28  ;;  %v15195_v17 = vunpack.c.h.bf16 %v7135_v4  ;;  %v15196_v63 = vunpack.c.h.bf16 %v6790_v53  ;;  %v15282_v28 = vld [vmem:[#allocation72_spill] sm:$0xff] }
  0x50   :  { %v1988_v39 = vadd.f32 %v1987_v50, %v15192_v16  ;;  %v2118_v5 = vadd.f32 %v2117_v13, %v15193_v48  ;;  %v15197_v57 = vunpack.c.h.bf16 %v6839_v8  ;;  %v15198_v60 = vunpack.c.h.bf16 %v7002_v12 }
  0x51   :  { %v2377_v38 = vadd.f32 %v2376_v35, %v15194_v10  ;;  %v2511_v21 = vsel %vm1717_vm0, %v15195_v17, 0.0  ;;  %v1729_v36 = vadd.f32 %v1728_v32, %v15196_v63  ;;  %v15199_v50 = vunpack.c.h.bf16 %v7107_v22 }
  0x52   :  { %v1859_v59 = vadd.f32 %v1858_v42, %v15197_v57  ;;  %v2248_v34 = vadd.f32 %v2247_v46, %v15198_v60  ;;  %v15200_v13 = vunpack.c.h.bf16 %v6895_v30  ;;  %v15201_v35 = vunpack.c.h.bf16 %v6951_v7  ;;  %v15214_v7 = vld [vmem:[#allocation37_spill] sm:$0xff]  ;;  %v15284_v30 = vld [vmem:[#allocation83_spill] sm:$0xff] }
  0x53   :  { %v2507_v16 = vadd.f32 %v2506_v56, %v15199_v50  ;;  %v15202_v17 = vunpack.c.h.bf16 %v7065_v62  ;;  %v15203_v32 = vunpack.c.h.bf16 %v7140_v27  ;;  %v15204_v63 = vunpack.c.h.bf16 %v7149_v25  ;;  %v15212_v25 = vld [vmem:[#allocation25_spill] sm:$0xff] }
  0x54   :  { %v1989_v48 = vadd.f32 %v1988_v39, %v15200_v13  ;;  %v2119_v10 = vadd.f32 %v2118_v5, %v15201_v35  ;;  %v15205_v57 = vunpack.c.h.bf16 %v6801_v58  ;;  %v15206_v60 = vunpack.c.h.bf16 %v6844_v9 }
  0x55   :  { %v2378_v4 = vadd.f32 %v2377_v38, %v15202_v17  ;;  %v2636_v42 = vadd.f32 %v15204_v63, %v15203_v32  ;;  %v15207_v50 = vunpack.c.h.bf16 %v7014_v47  ;;  %v15208_v13 = vunpack.c.h.bf16 %v7112_v19  ;;  %v15210_v17 = vld [vmem:[#allocation14_spill] sm:$0xff] }
  0x56   :  { %v1730_v46 = vadd.f32 %v1729_v36, %v15205_v57  ;;  %v1860_v56 = vadd.f32 %v1859_v59, %v15206_v60  ;;  %v15209_v35 = vunpack.c.h.bf16 %v6900_v31  ;;  %v15211_v27 = vunpack.c.h.bf16 %v15210_v17  ;;  %v15216_v60 = vld [vmem:[#allocation20_spill] sm:$0xff] }
  0x57   :  { %v2249_v39 = vadd.f32 %v2248_v34, %v15207_v50  ;;  %v2508_v5 = vadd.f32 %v2507_v16, %v15208_v13  ;;  %v15213_v32 = vunpack.c.h.bf16 %v15212_v25  ;;  %v15215_v36 = vunpack.c.h.bf16 %v15214_v7  ;;  %v15218_v50 = vld [vmem:[#allocation32_spill] sm:$0xff] }
  0x58   :  { %v1990_v38 = vadd.f32 %v1989_v48, %v15209_v35  ;;  %v2120_v62 = vadd.f32 %v2119_v10, %v15211_v27  ;;  %v1732_v22 = vadd.f32 %v1731_v26, %v1730_v46  ;;  %v1862_v59 = vadd.f32 %v1861_v11, %v1860_v56  ;;  %v15220_v48 = vld [vmem:[#allocation26_spill] sm:$0xff] }
  0x59   :  { %v2379_v63 = vadd.f32 %v2378_v4, %v15213_v32  ;;  %v2637_v57 = vadd.f32 %v2636_v42, %v15215_v36  ;;  %v15217_v47 = vunpack.c.h.bf16 %v15216_v60  ;;  %v15219_v19 = vunpack.c.h.bf16 %v15218_v50  ;;  %v15222_v27 = vld [vmem:[#allocation38_spill] sm:$0xff]  ;;  %v15224_v42 = vld [vmem:[#allocation33_spill] sm:$0xff] }
  0x5a   :  { %v1992_v13 = vadd.f32 %v1991_v20, %v1990_v38  ;;  %v2122_v31 = vadd.f32 %v2121_v0, %v2120_v62  ;;  %v15221_v35 = vunpack.c.h.bf16 %v15220_v48  ;;  %v15223_v10 = vunpack.c.h.bf16 %v15222_v27 }
  0x5b   :  { %v2250_v34 = vadd.f32 %v2249_v39, %v15217_v47  ;;  %v2509_v16 = vadd.f32 %v2508_v5, %v15219_v19  ;;  %v1733_v4 = vrot.slane %v1732_v22, 4  ;;  %v1863_v32 = vrot.slane %v1862_v59, 4  ;;  %v15226_v39 = vld [vmem:[#allocation39_spill] sm:$0xff] }
  0x5c   :  { %v2380_v17 = vadd.f32 %v2379_v63, %v15221_v35  ;;  %v2638_v25 = vadd.f32 %v2637_v57, %v15223_v10  ;;  %v15225_v26 = vunpack.c.h.bf16 %v15224_v42  ;;  %v1993_v46 = vrot.slane %v1992_v13, 4  ;;  %v15228_v57 = vld [vmem:[#allocation40_spill] sm:$0xff] }
  0x5d   :  { %v2252_v7 = vadd.f32 %v2251_v44, %v2250_v34  ;;  %v2123_v56 = vrot.slane %v2122_v31, 4  ;;  %v15227_v36 = vunpack.c.h.bf16 %v15226_v39  ;;  %v1734_v20 = vadd.f32 %v1733_v4, %v1732_v22 }
  0x5e   :  { %v2510_v11 = vadd.f32 %v2509_v16, %v15225_v26  ;;  %v2382_v47 = vadd.f32 %v2381_v6, %v2380_v17  ;;  %v1864_v62 = vadd.f32 %v1863_v32, %v1862_v59  ;;  %v1994_v38 = vadd.f32 %v1993_v46, %v1992_v13  ;;  %v15230_v17 = vld [vmem:[#allocation41_spill] sm:$0xff] }
  0x5f   :  { %v2639_v19 = vadd.f32 %v2638_v25, %v15227_v36  ;;  %v2253_v0 = vrot.slane %v2252_v7, 4  ;;  %v2124_v63 = vadd.f32 %v2123_v56, %v2122_v31  ;;  %v15229_v10 = vunpack.c.h.bf16 %v15228_v57 }
  0x60   :  { %v2512_v5 = vadd.f32 %v2511_v21, %v2510_v11  ;;  %v2383_v35 = vrot.slane %v2382_v47, 4  ;;  %v1735_v44 = vrot.slane %v1734_v20, 2  ;;  %v1865_v34 = vrot.slane %v1864_v62, 2 }
  0x61   :  { %v2640_v27 = vadd.f32 %v2639_v19, %v15229_v10  ;;  %v2254_v42 = vadd.f32 %v2253_v0, %v2252_v7  ;;  %v1995_v26 = vrot.slane %v1994_v38, 2  ;;  %v2125_v48 = vrot.slane %v2124_v63, 2 }
  0x62   :  { %v2513_v16 = vrot.slane %v2512_v5, 4  ;;  %v2384_v6 = vadd.f32 %v2383_v35, %v2382_v47  ;;  %v15231_v39 = vunpack.c.h.bf16 %v15230_v17  ;;  %v1736_v22 = vadd.f32 %v1735_v44, %v1734_v20 }
  0x63   :  { %v1866_v59 = vadd.f32 %v1865_v34, %v1864_v62  ;;  %v2255_v21 = vrot.slane %v2254_v42, 2  ;;  %v1996_v31 = vadd.f32 %v1995_v26, %v1994_v38  ;;  %v2126_v4 = vadd.f32 %v2125_v48, %v2124_v63  ;;  %v15232_v63 = vld [vmem:[#allocation42_spill] sm:$0xff]  ;;  %v15234_v34 = vld [vmem:[#allocation43_spill] sm:$0xff] }
  0x64   :  { %v2641_v25 = vsel %vm1717_vm0, %v15231_v39, 0.0  ;;  %v2514_v13 = vadd.f32 %v2513_v16, %v2512_v5  ;;  %v2385_v32 = vrot.slane %v2384_v6, 2  ;;  %v1737_v46 = vrot.slane %v1736_v22, 1 }
  0x65   :  { %v2642_v11 = vadd.f32 %v2641_v25, %v2640_v27  ;;  %v1867_v56 = vrot.slane %v1866_v59, 1  ;;  %v2256_v36 = vadd.f32 %v2255_v21, %v2254_v42  ;;  %v1997_v19 = vrot.slane %v1996_v31, 1 }
  0x66   :  { %v2515_v7 = vrot.slane %v2514_v13, 2  ;;  %v2127_v0 = vrot.slane %v2126_v4, 1  ;;  %v2386_v10 = vadd.f32 %v2385_v32, %v2384_v6  ;;  %v7718_v35 = vadd.f32 %v1737_v46, %v1736_v22  ;;  %v15236_v6 = vld [vmem:[#allocation48_spill] sm:$0xff]  ;;  %v15242_v46 = vld [vmem:[#allocation55_spill] sm:$0xff] }
  0x67   :  { %v2643_v47 = vrot.slane %v2642_v11, 4  ;;  %v7720_v17 = vadd.f32 %v1867_v56, %v1866_v59  ;;  %v2257_v39 = vrot.slane %v2256_v36, 1  ;;  %v7722_v62 = vadd.f32 %v1997_v19, %v1996_v31  ;;  %v15244_v19 = vld [vmem:[#allocation44_spill] sm:$0xff] }
  0x68   :  { %v2516_v20 = vadd.f32 %v2515_v7, %v2514_v13  ;;  %v7724_v5 = vadd.f32 %v2127_v0, %v2126_v4  ;;  %v2387_v48 = vrot.slane %v2386_v10, 1  ;;  %v15233_v44 = vunpack.c.h.bf16 %v15232_v63  ;;  %v15238_v13 = vld [vmem:[#allocation49_spill] sm:$0xff]  ;;  %v15240_v4 = vld [vmem:[#allocation50_spill] sm:$0xff] }
  0x69   :  { %v2644_v27 = vadd.f32 %v2643_v47, %v2642_v11  ;;  %v7726_v38 = vadd.f32 %v2257_v39, %v2256_v36  ;;  %v15235_v16 = vunpack.c.h.bf16 %v15234_v34  ;;  %v15237_v25 = vunpack.c.h.bf16 %v15236_v6  ;;  %v15246_v39 = vld [vmem:[#allocation56_spill] sm:$0xff]  ;;  %v15254_v34 = vld [vmem:[#allocation63_spill] sm:$0xff] }
  0x6a   :  { %v2517_v42 = vrot.slane %v2516_v20, 1  ;;  %v7735_v59 = vadd.f32 %v2387_v48, %v2386_v10  ;;  %v15239_v31 = vunpack.c.h.bf16 %v15238_v13  ;;  %v15241_v32 = vunpack.c.h.bf16 %v15240_v4 }
  0x6b   :  { %v2766_v26 = vadd.f32 %v15235_v16, %v15233_v44  ;;  %v2771_v22 = vsel %vm1717_vm0, %v15237_v25, 0.0  ;;  %v2645_v21 = vrot.slane %v2644_v27, 2  ;;  %v15243_v56 = vunpack.c.h.bf16 %v15242_v46  ;;  %v15248_v16 = vld [vmem:[#allocation57_spill] sm:$0xff]  ;;  %v15250_v25 = vld [vmem:[#allocation62_spill] sm:$0xff] }
  0x6c   :  { %v2896_v11 = vadd.f32 %v15241_v32, %v15239_v31  ;;  %v7744_v7 = vadd.f32 %v2517_v42, %v2516_v20  ;;  %v15245_v0 = vunpack.c.h.bf16 %v15244_v19  ;;  %v15247_v44 = vunpack.c.h.bf16 %v15246_v39  ;;  %v15252_v31 = vld [vmem:[#allocation51_spill] sm:$0xff]  ;;  %v15256_v20 = vld [vmem:[#allocation64_spill] sm:$0xff]  ;;  %v15258_v19 = vld [vmem:[#allocation69_spill] sm:$0xff] }
  0x6d   :  { %v2901_v36 = vsel %vm1717_vm0, %v15243_v56, 0.0  ;;  %v15249_v10 = vunpack.c.h.bf16 %v15248_v16  ;;  %v15251_v6 = vunpack.c.h.bf16 %v15250_v25  ;;  %v2646_v4 = vadd.f32 %v2645_v21, %v2644_v27  ;;  %v15260_v39 = vld [vmem:[#allocation45_spill] sm:$0xff]  ;;  %v15266_v21 = vld [vmem:[#allocation71_spill] sm:$0xff] }
  0x6e   :  { %v2767_v47 = vadd.f32 %v2766_v26, %v15245_v0  ;;  %v15253_v32 = vunpack.c.h.bf16 %v15252_v31  ;;  %v15255_v56 = vunpack.c.h.bf16 %v15254_v34  ;;  %v15257_v42 = vunpack.c.h.bf16 %v15256_v20 }
  0x6f   :  { %v3026_v48 = vadd.f32 %v15249_v10, %v15247_v44  ;;  %v3031_v13 = vsel %vm1717_vm0, %v15251_v6, 0.0  ;;  %v15259_v26 = vunpack.c.h.bf16 %v15258_v19  ;;  %v15261_v16 = vunpack.c.h.bf16 %v15260_v39  ;;  %v15262_v10 = vld [vmem:[#allocation58_spill] sm:$0xff] }
  0x70   :  { %v2897_v46 = vadd.f32 %v2896_v11, %v15253_v32  ;;  %v3156_v63 = vadd.f32 %v15257_v42, %v15255_v56  ;;  %v15263_v25 = vunpack.c.h.bf16 %v15262_v10  ;;  %v15264_v6 = vld [vmem:[#allocation70_spill] sm:$0xff]  ;;  %v15267_v31 = vunpack.c.h.bf16 %v15266_v21  ;;  %v15268_v32 = vld [vmem:[#allocation76_spill] sm:$0xff] }
  0x71   :  { %v3161_v0 = vsel %vm1717_vm0, %v15259_v26, 0.0  ;;  %v2768_v44 = vadd.f32 %v2767_v47, %v15261_v16  ;;  %v15265_v27 = vunpack.c.h.bf16 %v15264_v6  ;;  %v15269_v34 = vunpack.c.h.bf16 %v15268_v32  ;;  %v15270_v42 = vld [vmem:[#allocation52_spill] sm:$0xff]  ;;  %v15272_v26 = vld [vmem:[#allocation65_spill] sm:$0xff]  ;;  %v15276_v10 = vld [vmem:[#allocation78_spill] sm:$0xff] }
  0x72   :  { %v3027_v57 = vadd.f32 %v3026_v48, %v15263_v25  ;;  %v2647_v56 = vrot.slane %v2646_v4, 1  ;;  %v15271_v19 = vunpack.c.h.bf16 %v15270_v42  ;;  %v15273_v60 = vunpack.c.h.bf16 %v15272_v26  ;;  %v15274_v47 = vld [vmem:[#allocation77_spill] sm:$0xff]  ;;  %v15278_v6 = vld [vmem:[#allocation46_spill] sm:$0xff]  ;;  %v15290_v26 = vld [vmem:[#allocation79_spill] sm:$0xff] }
  0x73   :  { %v3286_v11 = vadd.f32 %v15267_v31, %v15265_v27  ;;  %v3291_v20 = vsel %vm1717_vm0, %v15269_v34, 0.0  ;;  %v15275_v16 = vunpack.c.h.bf16 %v15274_v47  ;;  %v15277_v48 = vunpack.c.h.bf16 %v15276_v10  ;;  %v15280_v31 = vld [vmem:[#allocation59_spill] sm:$0xff]  ;;  %v15288_v10 = vld [vmem:[#allocation66_spill] sm:$0xff] }
  0x74   :  { %v2898_v50 = vadd.f32 %v2897_v46, %v15271_v19  ;;  %v3157_v39 = vadd.f32 %v3156_v63, %v15273_v60  ;;  %v15279_v12 = vunpack.c.h.bf16 %v15278_v6  ;;  %v15281_v27 = vunpack.c.h.bf16 %v15280_v31  ;;  %v15286_v60 = vld [vmem:[#allocation53_spill] sm:$0xff]  ;;  %v15292_v31 = vld [vmem:[#allocation47_spill] sm:$0xff] }
  0x75   :  { %v3416_v25 = vadd.f32 %v15277_v48, %v15275_v16  ;;  %v15283_v34 = vunpack.c.h.bf16 %v15282_v28  ;;  %v15285_v42 = vunpack.c.h.bf16 %v15284_v30  ;;  %v7792_v19 = vadd.f32 %v2647_v56, %v2646_v4  ;;  %v15294_v28 = vld [vmem:[#allocation60_spill] sm:$0xff]  ;;  %v15296_v30 = vld [vmem:[#allocation73_spill] sm:$0xff] }
  0x76   :  { %v2769_v21 = vadd.f32 %v2768_v44, %v15279_v12  ;;  %v3028_v32 = vadd.f32 %v3027_v57, %v15281_v27  ;;  %v15287_v63 = vunpack.c.h.bf16 %v15286_v60  ;;  %v15289_v16 = vunpack.c.h.bf16 %v15288_v10  ;;  %v15298_v4 = vld [vmem:[#allocation84_spill] sm:$0xff] }
  0x77   :  { %v3287_v33 = vadd.f32 %v3286_v11, %v15283_v34  ;;  %v3421_v46 = vsel %vm1717_vm0, %v15285_v42, 0.0  ;;  %v15291_v12 = vunpack.c.h.bf16 %v15290_v26  ;;  %v15293_v57 = vunpack.c.h.bf16 %v15292_v31 }
  0x78   :  { %v2899_v47 = vadd.f32 %v2898_v50, %v15287_v63  ;;  %v3158_v48 = vadd.f32 %v3157_v39, %v15289_v16  ;;  %v15295_v11 = vunpack.c.h.bf16 %v15294_v28  ;;  %v15297_v6 = vunpack.c.h.bf16 %v15296_v30  ;;  %v15302_v63 = vld [vmem:[#allocation54_spill] sm:$0xff]  ;;  %v15304_v16 = vld [vmem:[#allocation67_spill] sm:$0xff] }
  0x79   :  { %v3417_v44 = vadd.f32 %v3416_v25, %v15291_v12  ;;  %v2770_v27 = vadd.f32 %v2769_v21, %v15293_v57  ;;  %v15299_v56 = vunpack.c.h.bf16 %v15298_v4  ;;  %v15301_v60 = vunpack.c.h.bf16 %v15300_v54  ;;  %v15306_v12 = vld [vmem:[#allocation80_spill] sm:$0xff]  ;;  %v15311_v30 = vld [vmem:[#allocation74_spill] sm:$0xff] }
  0x7a   :  { %v3029_v34 = vadd.f32 %v3028_v32, %v15295_v11  ;;  %v3288_v42 = vadd.f32 %v3287_v33, %v15297_v6  ;;  %v15303_v10 = vunpack.c.h.bf16 %v15302_v63  ;;  %v15305_v26 = vunpack.c.h.bf16 %v15304_v16  ;;  %v15309_v33 = vld [vmem:[#allocation61_spill] sm:$0xff]  ;;  %v15315_v16 = vld [vmem:[#allocation68_spill] sm:$0xff] }
  0x7b   :  { %v3546_v50 = vadd.f32 %v15301_v60, %v15299_v56  ;;  %v15307_v31 = vunpack.c.h.bf16 %v15306_v12  ;;  %v15308_v57 = vunpack.c.h.bf16 %v7530_v55  ;;  %v2772_v11 = vadd.f32 %v2771_v22, %v2770_v27  ;;  %v15313_v56 = vld [vmem:[#allocation86_spill] sm:$0xff]  ;;  %v15317_v12 = vld [vmem:[#allocation81_spill] sm:$0xff] }
  0x7c   :  { %v2900_v39 = vadd.f32 %v2899_v47, %v15303_v10  ;;  %v3159_v25 = vadd.f32 %v3158_v48, %v15305_v26  ;;  %v15310_v6 = vunpack.c.h.bf16 %v15309_v33  ;;  %v15312_v54 = vunpack.c.h.bf16 %v15311_v30 }
  0x7d   :  { %v3418_v21 = vadd.f32 %v3417_v44, %v15307_v31  ;;  %v3551_v32 = vsel %vm1717_vm0, %v15308_v57, 0.0  ;;  %v15314_v28 = vunpack.c.h.bf16 %v15313_v56  ;;  %v15316_v26 = vunpack.c.h.bf16 %v15315_v16 }
  0x7e   :  { %v3030_v4 = vadd.f32 %v3029_v34, %v15310_v6  ;;  %v3289_v60 = vadd.f32 %v3288_v42, %v15312_v54  ;;  %v2902_v47 = vadd.f32 %v2901_v36, %v2900_v39  ;;  %v15318_v31 = vunpack.c.h.bf16 %v15317_v12  ;;  %v15321_v6 = vld [vmem:[#allocation75_spill] sm:$0xff]  ;;  %v15325_v39 = vld [vmem:[#allocation82_spill] sm:$0xff] }
  0x7f   :  { %v3547_v10 = vadd.f32 %v3546_v50, %v15314_v28  ;;  %v3160_v48 = vadd.f32 %v3159_v25, %v15316_v26  ;;  %v15319_v55 = vunpack.c.h.bf16 %v7535_v15  ;;  %v15320_v22 = vunpack.c.h.bf16 %v7544_v41  ;;  %v15323_v42 = vld [vmem:[#allocation87_spill] sm:$0xff] }
  0x80   :  { %v3419_v44 = vadd.f32 %v3418_v21, %v15318_v31  ;;  %v2773_v57 = vrot.slane %v2772_v11, 4  ;;  %v3032_v34 = vadd.f32 %v3031_v13, %v3030_v4  ;;  %v15322_v30 = vunpack.c.h.bf16 %v15321_v6 }
  0x81   :  { %v3676_v27 = vadd.f32 %v15320_v22, %v15319_v55  ;;  %v15324_v56 = vunpack.c.h.bf16 %v15323_v42  ;;  %v2903_v36 = vrot.slane %v2902_v47, 4  ;;  %v3162_v50 = vadd.f32 %v3161_v0, %v3160_v48  ;;  %v15328_v55 = vld [vmem:[#allocation88_spill] sm:$0xff] }
  0x82   :  { %v3290_v54 = vadd.f32 %v3289_v60, %v15322_v30  ;;  %v15326_v25 = vunpack.c.h.bf16 %v15325_v39  ;;  %v15327_v21 = vunpack.c.h.bf16 %v7549_v18  ;;  %v2774_v15 = vadd.f32 %v2773_v57, %v2772_v11  ;;  %v15331_v39 = vld [vmem:[#allocation89_spill] sm:$0xff] }
  0x83   :  { %v3548_v28 = vadd.f32 %v3547_v10, %v15324_v56  ;;  %v3033_v12 = vrot.slane %v3032_v34, 4  ;;  %v15329_v22 = vunpack.c.h.bf16 %v15328_v55  ;;  %v2904_v4 = vadd.f32 %v2903_v36, %v2902_v47 }
  0x84   :  { %v3420_v26 = vadd.f32 %v3419_v44, %v15326_v25  ;;  %v3677_v31 = vadd.f32 %v3676_v27, %v15327_v21  ;;  %v3292_v41 = vadd.f32 %v3291_v20, %v3290_v54  ;;  %v3163_v6 = vrot.slane %v3162_v50, 4 }
  0x85   :  { %v3549_v13 = vadd.f32 %v3548_v28, %v15329_v22  ;;  %v15330_v60 = vunpack.c.h.bf16 %v7558_v29  ;;  %v2775_v10 = vrot.slane %v2774_v15, 2  ;;  %v3034_v0 = vadd.f32 %v3033_v12, %v3032_v34 }
  0x86   :  { %v3422_v30 = vadd.f32 %v3421_v46, %v3420_v26  ;;  %v3293_v48 = vrot.slane %v3292_v41, 4  ;;  %v15332_v44 = vunpack.c.h.bf16 %v15331_v39  ;;  %v2905_v18 = vrot.slane %v2904_v4, 2  ;;  %v15335_v39 = vld [vmem:[#allocation95_spill] sm:$0xff] }
  0x87   :  { %v3678_v56 = vadd.f32 %v3677_v31, %v15330_v60  ;;  %v3164_v27 = vadd.f32 %v3163_v6, %v3162_v50  ;;  %v15333_v20 = vunpack.c.h.bf16 %v7563_v61  ;;  %v2776_v54 = vadd.f32 %v2775_v10, %v2774_v15 }
  0x88   :  { %v3550_v25 = vadd.f32 %v3549_v13, %v15332_v44  ;;  %v3423_v11 = vrot.slane %v3422_v30, 4  ;;  %v3035_v28 = vrot.slane %v3034_v0, 2  ;;  %v3294_v47 = vadd.f32 %v3293_v48, %v3292_v41 }
  0x89   :  { %v3679_v57 = vadd.f32 %v3678_v56, %v15333_v20  ;;  %v2906_v46 = vadd.f32 %v2905_v18, %v2904_v4  ;;  %v3165_v26 = vrot.slane %v3164_v27, 2  ;;  %v15334_v31 = vunpack.c.h.bf16 %v7572_v40 }
  0x8a   :  { %v3552_v36 = vadd.f32 %v3551_v32, %v3550_v25  ;;  %v3424_v21 = vadd.f32 %v3423_v11, %v3422_v30  ;;  %v2777_v34 = vrot.slane %v2776_v54, 1  ;;  %v3036_v22 = vadd.f32 %v3035_v28, %v3034_v0 }
  0x8b   :  { %v3680_v12 = vadd.f32 %v3679_v57, %v15334_v31  ;;  %v3295_v60 = vrot.slane %v3294_v47, 2  ;;  %v2907_v44 = vrot.slane %v2906_v46, 1  ;;  %v3166_v6 = vadd.f32 %v3165_v26, %v3164_v27 }
  0x8c   :  { %v3553_v13 = vrot.slane %v3552_v36, 4  ;;  %v3425_v50 = vrot.slane %v3424_v21, 2  ;;  %v15336_v61 = vunpack.c.h.bf16 %v15335_v39  ;;  %v2778_v56 = vadd.f32 %v2777_v34, %v2776_v54 }
  0x8d   :  { %v3037_v41 = vrot.slane %v3036_v22, 1  ;;  %v3296_v32 = vadd.f32 %v3295_v60, %v3294_v47  ;;  %v2908_v4 = vadd.f32 %v2907_v44, %v2906_v46  ;;  %v3167_v30 = vrot.slane %v3166_v6, 1 }
  0x8e   :  { %v3681_v15 = vsel %vm1717_vm0, %v15336_v61, 0.0  ;;  %v3554_v18 = vadd.f32 %v3553_v13, %v3552_v36  ;;  %v3426_v10 = vadd.f32 %v3425_v50, %v3424_v21  ;;  %v3794_v20 = vpack.c.bf16 %v7718_v35, %v7718_v35 }
  0x8f   :  { %v3682_v48 = vadd.f32 %v3681_v15, %v3680_v12  ;;  %v3038_v25 = vadd.f32 %v3037_v41, %v3036_v22  ;;  %v3297_v11 = vrot.slane %v3296_v32, 1  ;;  %v3168_v27 = vadd.f32 %v3167_v30, %v3166_v6 }
  0x90   :  { %v3555_v0 = vrot.slane %v3554_v18, 2  ;;  %v3427_v57 = vrot.slane %v3426_v10, 1  ;;  %v3804_v61 = vpack.c.bf16 %v7720_v17, %v7720_v17  ;;  %v3814_v36 = vpack.c.bf16 %v7722_v62, %v7722_v62 }
  0x91   :  { %v3683_v28 = vrot.slane %v3682_v48, 4  ;;  %v3298_v54 = vadd.f32 %v3297_v11, %v3296_v32  ;;  %v3824_v46 = vpack.c.bf16 %v7724_v5, %v7724_v5  ;;  %v3834_v35 = vpack.c.bf16 %v7726_v38, %v7726_v38 }
  0x92   :  { %v3556_v47 = vadd.f32 %v3555_v0, %v3554_v18  ;;  %v3428_v26 = vadd.f32 %v3427_v57, %v3426_v10  ;;  %v3844_v31 = vpack.c.bf16 %v7735_v59, %v7735_v59  ;;  %v3854_v12 = vpack.c.bf16 %v7744_v7, %v7744_v7 }
  0x93   :  { %v3684_v21 = vadd.f32 %v3683_v28, %v3682_v48  ;;  %v3864_v62 = vpack.c.bf16 %v7792_v19, %v7792_v19  ;;  %v3874_v34 = vpack.c.bf16 %v2778_v56, %v2778_v56  ;;  %v3884_v22 = vpack.c.bf16 %v2908_v4, %v2908_v4 }
  0x94   :  { %v3557_v17 = vrot.slane %v3556_v47, 1  ;;  %v3894_v60 = vpack.c.bf16 %v3038_v25, %v3038_v25  ;;  %v3904_v13 = vpack.c.bf16 %v3168_v27, %v3168_v27  ;;  %v3914_v38 = vpack.c.bf16 %v3298_v54, %v3298_v54 }
  0x95   :  { %v3685_v5 = vrot.slane %v3684_v21, 2  ;;  %v3924_v6 = vpack.c.bf16 %v3428_v26, %v3428_v26  ;;  %v4286_v50 = vunpack.c.l.b16 %v3794_v20  ;;  %v4296_v15 = vunpack.c.l.b16 %v3804_v61 }
  0x96   :  { %v3558_v44 = vadd.f32 %v3557_v17, %v3556_v47  ;;  %v4306_v41 = vunpack.c.l.b16 %v3814_v36  ;;  %v4316_v32 = vunpack.c.l.b16 %v3824_v46  ;;  %v4326_v18 = vunpack.c.l.b16 %v3834_v35  ;;  %v15337_v36 = vld [vmem:[#allocation2_spill] sm:$0xff]  ;;  %v15340_v35 = vld [vmem:[#allocation3_spill] sm:$0xff] }
  0x97   :  { %v3686_v59 = vadd.f32 %v3685_v5, %v3684_v21  ;;  %v4336_v30 = vunpack.c.l.b16 %v3844_v31  ;;  %v4346_v19 = vunpack.c.l.b16 %v3854_v12  ;;  %v4356_v10 = vunpack.c.l.b16 %v3864_v62  ;;  %v15342_v5 = vld [vmem:[#allocation4_spill] sm:$0xff] }
  0x98   :  { %v3934_v7 = vpack.c.bf16 %v3558_v44, %v3558_v44  ;;  %v4366_v48 = vunpack.c.l.b16 %v3874_v34  ;;  %v4376_v4 = vunpack.c.l.b16 %v3884_v22  ;;  %v4386_v25 = vunpack.c.l.b16 %v3894_v60 }
  0x99   :  { %v3687_v56 = vrot.slane %v3686_v59, 1  ;;  %v4396_v11 = vunpack.c.l.b16 %v3904_v13  ;;  %v4406_v0 = vunpack.c.l.b16 %v3914_v38  ;;  %v4416_v27 = vunpack.c.l.b16 %v3924_v6 }
  0x9a   :  { %v4426_v28 = vunpack.c.l.b16 %v3934_v7  ;;  %v4459_v20 = vsel %vm4445_vm1, %v4296_v15, %v4286_v50  ;;  %v4529_v61 = vsel %vm4445_vm1, %v4376_v4, %v4366_v48  ;;  %v15338_v46 = vunpack.c.l.bf16 %v15337_v36  ;;  %v15346_v50 = vld [vmem:[#allocation5_spill] sm:$0xff] }
  0x9b   :  { %v3688_v57 = vadd.f32 %v3687_v56, %v3686_v59  ;;  %v4460_v54 = vsel %vm4447_vm2, %v4306_v41, %v4459_v20  ;;  %v4530_v47 = vsel %vm4447_vm2, %v4386_v25, %v4529_v61  ;;  %v15339_v26 = vunpack.c.l.bf16 %v6772_v49  ;;  %v15350_v25 = vld [vmem:[#allocation6_spill] sm:$0xff] }
  0x9c   :  { %v15341_v31 = vunpack.c.l.bf16 %v15340_v35  ;;  %v4461_v62 = vsel %vm4449_vm3, %v4316_v32, %v4460_v54  ;;  %v4531_v34 = vsel %vm4449_vm3, %v4396_v11, %v4530_v47  ;;  %v15343_v22 = vunpack.c.l.bf16 %v15342_v5  ;;  %v15360_v35 = vld [vmem:[#allocation11_spill] sm:$0xff]  ;;  %v15365_v5 = vld [vmem:[#allocation16_spill] sm:$0xff] }
  0x9d   :  { %v1712_v21 = vadd.f32 %v15339_v26, %v15338_v46  ;;  %v3944_v12 = vpack.c.bf16 %v3688_v57, %v3688_v57  ;;  %v15344_v60 = vunpack.c.l.bf16 %v6820_v1  ;;  %v4462_v44 = vsel %vm4451_vm4, %v4326_v18, %v4461_v62  ;;  %v15358_v26 = vld [vmem:[#allocation10_spill] sm:$0xff]  ;;  %v15363_v62 = vld [vmem:[#allocation15_spill] sm:$0xff] }
  0x9e   :  { %v1718_v17 = vsel %vm1717_vm0, %v15341_v31, 0.0  ;;  %v4532_v38 = vsel %vm4451_vm4, %v4406_v0, %v4531_v34  ;;  %v15345_v49 = vunpack.c.l.bf16 %v6780_v51  ;;  %v15347_v59 = vunpack.c.l.bf16 %v15346_v50  ;;  %v15352_v0 = vld [vmem:[#allocation7_spill] sm:$0xff] }
  0x9f   :  { %v1843_v13 = vadd.f32 %v15344_v60, %v15343_v22  ;;  %v4436_v41 = vunpack.c.l.b16 %v3944_v12  ;;  %v4463_v32 = vsel %vm4453_vm5, %v4336_v30, %v4462_v44  ;;  %v4533_v7 = vsel %vm4453_vm5, %v4416_v27, %v4532_v38  ;;  %v15367_v60 = vld [vmem:[#allocation17_spill] sm:$0xff] }
  0xa0   :  { %v1713_v6 = vadd.f32 %v1712_v21, %v15345_v49  ;;  %v1848_v15 = vsel %vm1717_vm0, %v15347_v59, 0.0  ;;  %v15348_v56 = vunpack.c.l.bf16 %v6825_v2  ;;  %v4464_v48 = vsel %vm4455_vm6, %v4346_v19, %v4463_v32  ;;  %v15369_v44 = vld [vmem:[#allocation21_spill] sm:$0xff]  ;;  %v15374_v32 = vld [vmem:[#allocation22_spill] sm:$0xff] }
  0xa1   :  { %v4534_v18 = vsel %vm4455_vm6, %v4426_v28, %v4533_v7  ;;  %v15349_v4 = vunpack.c.l.bf16 %v6785_v52  ;;  %v15351_v11 = vunpack.c.l.bf16 %v15350_v25  ;;  %v15353_v57 = vunpack.c.l.bf16 %v15352_v0  ;;  %v15379_v25 = vld [vmem:[#allocation27_spill] sm:$0xff] }
  0xa2   :  { %v1844_v1 = vadd.f32 %v1843_v13, %v15348_v56  ;;  %v4465_v61 = vsel %vm4457_vm7, %v4356_v10, %v4464_v48  ;;  %v4535_v30 = vsel %vm4457_vm7, %v4436_v41, %v4534_v18  ;;  %v15354_v27 = vunpack.c.l.bf16 %v6830_v3 }
  0xa3   :  { %v1714_v51 = vadd.f32 %v1713_v6, %v15349_v4  ;;  %v1973_v20 = vadd.f32 %v15353_v57, %v15351_v11  ;;  %v15355_v54 = vunpack.c.l.bf16 %v6912_v37  ;;  %v4593_v28 = vpack.c.b16 %v4535_v30, %v4465_v61  ;;  %v15383_v57 = vld [vmem:[#allocation29_spill] sm:$0xff]  ;;  %v15385_v30 = vld [vmem:[#allocation8_spill] sm:$0xff] }
  0xa4   :  { %v1845_v2 = vadd.f32 %v1844_v1, %v15354_v27  ;;  %v15356_v52 = vunpack.c.l.bf16 %v6790_v53  ;;  %v15357_v36 = vunpack.c.l.bf16 %v6878_v23  ;;  %v15359_v21 = vunpack.c.l.bf16 %v15358_v26 }
  0xa5   :  { %v1978_v19 = vsel %vm1717_vm0, %v15355_v54, 0.0  ;;  %v15361_v10 = vunpack.c.l.bf16 %v15360_v35  ;;  %v15362_v12 = vunpack.c.l.bf16 %v6839_v8  ;;  %v15364_v34 = vunpack.c.l.bf16 %v15363_v62  ;;  %5444 = vmatprep.mubr.bf16.mxu0 %v4593_v28  ;;  %v15389_v28 = vld [vmem:[#allocation23_spill] sm:$0xff]  ;;  %v15397_v62 = vld [vmem:[#allocation9_spill] sm:$0xff] }
  0xa6   :  { %v1715_v47 = vadd.f32 %v1714_v51, %v15356_v52  ;;  %v1974_v46 = vadd.f32 %v1973_v20, %v15357_v36  ;;  %v15366_v22 = vunpack.c.l.bf16 %v15365_v5  ;;  %v15368_v53 = vunpack.c.l.bf16 %v15367_v60  ;;  %v15391_v36 = vld [vmem:[#allocation18_spill] sm:$0xff] }
  0xa7   :  { %v2103_v31 = vadd.f32 %v15361_v10, %v15359_v21  ;;  %v1846_v3 = vadd.f32 %v1845_v2, %v15362_v12  ;;  %v2108_v37 = vsel %vm1717_vm0, %v15364_v34, 0.0  ;;  %v15370_v23 = vunpack.c.l.bf16 %v15369_v44  ;;  %v15387_v2 = vld [vmem:[#allocation12_spill] sm:$0xff]  ;;  %v15393_v21 = vld [vmem:[#allocation30_spill] sm:$0xff] }
  0xa8   :  { %v2233_v13 = vadd.f32 %v15368_v53, %v15366_v22  ;;  %v15371_v49 = vunpack.c.l.bf16 %v6801_v58  ;;  %v15372_v8 = vunpack.c.l.bf16 %v6883_v24  ;;  %v15373_v59 = vunpack.c.l.bf16 %v6934_v45  ;;  %v15381_v24 = vld [vmem:[#allocation28_spill] sm:$0xff]  ;;  %v15399_v22 = vld [vmem:[#allocation13_spill] sm:$0xff] }
  0xa9   :  { %v2238_v38 = vsel %vm1717_vm0, %v15370_v23, 0.0  ;;  %v15375_v7 = vunpack.c.l.bf16 %v15374_v32  ;;  %v15376_v56 = vunpack.c.l.bf16 %v7048_v43  ;;  %v15377_v48 = vunpack.c.l.bf16 %v6844_v9  ;;  %v15407_v32 = vld [vmem:[#allocation35_spill] sm:$0xff] }
  0xaa   :  { %v1716_v6 = vadd.f32 %v1715_v47, %v15371_v49  ;;  %v1975_v50 = vadd.f32 %v1974_v46, %v15372_v8  ;;  %v2104_v41 = vadd.f32 %v2103_v31, %v15373_v59  ;;  %v15378_v4 = vunpack.c.l.bf16 %v6997_v14  ;;  %v15395_v31 = vld [vmem:[#allocation34_spill] sm:$0xff]  ;;  %v15403_v49 = vld [vmem:[#allocation19_spill] sm:$0xff] }
  0xab   :  { %v2363_v1 = vadd.f32 %v15376_v56, %v15375_v7  ;;  %v1847_v18 = vadd.f32 %v1846_v3, %v15377_v48  ;;  %v15380_v58 = vunpack.c.l.bf16 %v15379_v25  ;;  %v15382_v0 = vunpack.c.l.bf16 %v15381_v24  ;;  %v15409_v56 = vld [vmem:[#allocation36_spill] sm:$0xff]  ;;  %v15413_v24 = vld [vmem:[#allocation25_spill] sm:$0xff] }
  0xac   :  { %v2234_v51 = vadd.f32 %v2233_v13, %v15378_v4  ;;  %v15384_v45 = vunpack.c.l.bf16 %v15383_v57  ;;  %v1719_v61 = vadd.f32 %v1718_v17, %v1716_v6  ;;  %v15386_v27 = vunpack.c.l.bf16 %v15385_v30  ;;  %v15401_v13 = vld [vmem:[#allocation24_spill] sm:$0xff] }
  0xad   :  { %v2368_v11 = vsel %vm1717_vm0, %v15380_v58, 0.0  ;;  %v15388_v54 = vunpack.c.l.bf16 %v15387_v2  ;;  %v15390_v52 = vunpack.c.l.bf16 %v15389_v28  ;;  %v1849_v47 = vadd.f32 %v1848_v15, %v1847_v18 }
  0xae   :  { %v2493_v20 = vadd.f32 %v15384_v45, %v15382_v0  ;;  %v1976_v43 = vadd.f32 %v1975_v50, %v15386_v27  ;;  %v15392_v46 = vunpack.c.l.bf16 %v15391_v36  ;;  %v15394_v35 = vunpack.c.l.bf16 %v15393_v21  ;;  %v15405_v50 = vld [vmem:[#allocation31_spill] sm:$0xff] }
  0xaf   :  { %v2105_v9 = vadd.f32 %v2104_v41, %v15388_v54  ;;  %v2364_v14 = vadd.f32 %v2363_v1, %v15390_v52  ;;  %v15396_v12 = vunpack.c.l.bf16 %v15395_v31  ;;  %v1720_v3 = vrot.slane %v1719_v61, 4 }
  0xb0   :  { %v2235_v26 = vadd.f32 %v2234_v51, %v15392_v46  ;;  %v2494_v10 = vadd.f32 %v2493_v20, %v15394_v35  ;;  %v15398_v34 = vunpack.c.l.bf16 %v15397_v62  ;;  %v15400_v60 = vunpack.c.l.bf16 %v15399_v22  ;;  %v15411_v51 = vld [vmem:[#allocation14_spill] sm:$0xff]  ;;  %v15415_v20 = vld [vmem:[#allocation20_spill] sm:$0xff] }
  0xb1   :  { %v2498_v17 = vsel %vm1717_vm0, %v15396_v12, 0.0  ;;  %v15402_v44 = vunpack.c.l.bf16 %v15401_v13  ;;  %v1850_v23 = vrot.slane %v1849_v47, 4  ;;  %v15404_v6 = vunpack.c.l.bf16 %v15403_v49  ;;  %v15425_v12 = vld [vmem:[#allocation38_spill] sm:$0xff] }
  0xb2   :  { %v1977_v5 = vadd.f32 %v1976_v43, %v15398_v34  ;;  %v2106_v53 = vadd.f32 %v2105_v9, %v15400_v60  ;;  %v15406_v59 = vunpack.c.l.bf16 %v15405_v50  ;;  %v15408_v7 = vunpack.c.l.bf16 %v15407_v32  ;;  %v15417_v43 = vld [vmem:[#allocation32_spill] sm:$0xff]  ;;  %v15419_v9 = vld [vmem:[#allocation37_spill] sm:$0xff] }
  0xb3   :  { %v2365_v15 = vadd.f32 %v2364_v14, %v15402_v44  ;;  %v2236_v8 = vadd.f32 %v2235_v26, %v15404_v6  ;;  %v15410_v1 = vunpack.c.l.bf16 %v15409_v56  ;;  %v1721_v18 = vadd.f32 %v1720_v3, %v1719_v61  ;;  %v15429_v32 = vld [vmem:[#allocation40_spill] sm:$0xff] }
  0xb4   :  { %v2495_v41 = vadd.f32 %v2494_v10, %v15406_v59  ;;  %v1979_v4 = vadd.f32 %v1978_v19, %v1977_v5  ;;  %v15412_v25 = vunpack.c.l.bf16 %v15411_v51  ;;  %v15414_v0 = vunpack.c.l.bf16 %v15413_v24  ;;  %v15421_v19 = vld [vmem:[#allocation26_spill] sm:$0xff]  ;;  %v15423_v10 = vld [vmem:[#allocation33_spill] sm:$0xff] }
  0xb5   :  { %v2623_v48 = vadd.f32 %v15410_v1, %v15408_v7  ;;  %v1851_v45 = vadd.f32 %v1850_v23, %v1849_v47  ;;  %v15416_v30 = vunpack.c.l.bf16 %v15415_v20  ;;  %v15418_v2 = vunpack.c.l.bf16 %v15417_v43 }
  0xb6   :  { %v2107_v58 = vadd.f32 %v2106_v53, %v15412_v25  ;;  %v2366_v57 = vadd.f32 %v2365_v15, %v15414_v0  ;;  %v15420_v28 = vunpack.c.l.bf16 %v15419_v9  ;;  %v1722_v14 = vrot.slane %v1721_v18, 2  ;;  %v15427_v15 = vld [vmem:[#allocation39_spill] sm:$0xff]  ;;  %v15431_v25 = vld [vmem:[#allocation41_spill] sm:$0xff] }
  0xb7   :  { %v2237_v27 = vadd.f32 %v2236_v8, %v15416_v30  ;;  %v2496_v54 = vadd.f32 %v2495_v41, %v15418_v2  ;;  %v1980_v36 = vrot.slane %v1979_v4, 4  ;;  %v15422_v46 = vunpack.c.l.bf16 %v15421_v19  ;;  %v15433_v2 = vld [vmem:[#allocation42_spill] sm:$0xff]  ;;  %v15435_v9 = vld [vmem:[#allocation43_spill] sm:$0xff]  ;;  %v15437_v19 = vld [vmem:[#allocation48_spill] sm:$0xff] }
  0xb8   :  { %v2624_v52 = vadd.f32 %v2623_v48, %v15420_v28  ;;  %v2109_v61 = vadd.f32 %v2108_v37, %v2107_v58  ;;  %v1852_v21 = vrot.slane %v1851_v45, 2  ;;  %v15424_v31 = vunpack.c.l.bf16 %v15423_v10  ;;  %v15439_v10 = vld [vmem:[#allocation44_spill] sm:$0xff] }
  0xb9   :  { %v2367_v26 = vadd.f32 %v2366_v57, %v15422_v46  ;;  %v2239_v35 = vadd.f32 %v2238_v38, %v2237_v27  ;;  %v15426_v3 = vunpack.c.l.bf16 %v15425_v12  ;;  %v1723_v34 = vadd.f32 %v1722_v14, %v1721_v18  ;;  %v15441_v12 = vld [vmem:[#allocation49_spill] sm:$0xff] }
  0xba   :  { %v2497_v47 = vadd.f32 %v2496_v54, %v15424_v31  ;;  %v1981_v5 = vadd.f32 %v1980_v36, %v1979_v4  ;;  %v2110_v22 = vrot.slane %v2109_v61, 4  ;;  %v1853_v53 = vadd.f32 %v1852_v21, %v1851_v45 }
  0xbb   :  { %v2625_v62 = vadd.f32 %v2624_v52, %v15426_v3  ;;  %v2369_v60 = vadd.f32 %v2368_v11, %v2367_v26  ;;  %v2240_v13 = vrot.slane %v2239_v35, 4  ;;  %v15428_v37 = vunpack.c.l.bf16 %v15427_v15  ;;  %v15445_v15 = vld [vmem:[#allocation45_spill] sm:$0xff] }
  0xbc   :  { %v2499_v44 = vadd.f32 %v2498_v17, %v2497_v47  ;;  %v1724_v49 = vrot.slane %v1723_v34, 1  ;;  %v1982_v6 = vrot.slane %v1981_v5, 2  ;;  %v2111_v8 = vadd.f32 %v2110_v22, %v2109_v61 }
  0xbd   :  { %v2626_v23 = vadd.f32 %v2625_v62, %v15428_v37  ;;  %v2370_v38 = vrot.slane %v2369_v60, 4  ;;  %v1854_v50 = vrot.slane %v1853_v53, 1  ;;  %v2241_v59 = vadd.f32 %v2240_v13, %v2239_v35  ;;  %v15443_v62 = vld [vmem:[#allocation50_spill] sm:$0xff] }
  0xbe   :  { %v2500_v41 = vrot.slane %v2499_v44, 4  ;;  %v15430_v7 = vunpack.c.l.bf16 %v15429_v32  ;;  %v1702_v1 = vunpack.c.l.bf16 %v15335_v39  ;;  %v1983_v48 = vadd.f32 %v1982_v6, %v1981_v5 }
  0xbf   :  { %v2112_v11 = vrot.slane %v2111_v8, 2  ;;  %v2371_v18 = vadd.f32 %v2370_v38, %v2369_v60  ;;  %v8002_v4 = vadd.f32 %v1724_v49, %v1723_v34  ;;  %v2242_v17 = vrot.slane %v2241_v59, 2  ;;  %v15447_v49 = vld [vmem:[#allocation51_spill] sm:$0xff] }
  0xc0   :  { %v2627_v56 = vadd.f32 %v2626_v23, %v15430_v7  ;;  %v2501_v51 = vadd.f32 %v2500_v41, %v2499_v44  ;;  %v15432_v58 = vunpack.c.l.bf16 %v15431_v25  ;;  %v1984_v0 = vrot.slane %v1983_v48, 1  ;;  %v15449_v38 = vld [vmem:[#allocation55_spill] sm:$0xff] }
  0xc1   :  { %v2113_v57 = vadd.f32 %v2112_v11, %v2111_v8  ;;  %v2372_v45 = vrot.slane %v2371_v18, 2  ;;  %v8007_v30 = vadd.f32 %v1854_v50, %v1853_v53  ;;  %v2243_v27 = vadd.f32 %v2242_v17, %v2241_v59  ;;  %v15453_v11 = vld [vmem:[#allocation57_spill] sm:$0xff] }
  0xc2   :  { %v2628_v24 = vsel %vm1717_vm0, %v15432_v58, 0.0  ;;  %v2502_v43 = vrot.slane %v2501_v51, 2  ;;  %v15434_v54 = vunpack.c.l.bf16 %v15433_v2  ;;  %v15436_v28 = vunpack.c.l.bf16 %v15435_v9 }
  0xc3   :  { %v2629_v20 = vadd.f32 %v2628_v24, %v2627_v56  ;;  %v2114_v14 = vrot.slane %v2113_v57, 1  ;;  %v2373_v36 = vadd.f32 %v2372_v45, %v2371_v18  ;;  %v15438_v46 = vunpack.c.l.bf16 %v15437_v19  ;;  %v15451_v56 = vld [vmem:[#allocation56_spill] sm:$0xff]  ;;  %v15459_v45 = vld [vmem:[#allocation62_spill] sm:$0xff] }
  0xc4   :  { %v2753_v52 = vadd.f32 %v15436_v28, %v15434_v54  ;;  %v2244_v21 = vrot.slane %v2243_v27, 1  ;;  %v2503_v35 = vadd.f32 %v2502_v43, %v2501_v51  ;;  %v15440_v31 = vunpack.c.l.bf16 %v15439_v10  ;;  %v15455_v51 = vld [vmem:[#allocation46_spill] sm:$0xff]  ;;  %v15457_v24 = vld [vmem:[#allocation52_spill] sm:$0xff]  ;;  %v15469_v10 = vld [vmem:[#allocation71_spill] sm:$0xff] }
  0xc5   :  { %v2630_v61 = vrot.slane %v2629_v20, 4  ;;  %v2758_v26 = vsel %vm1717_vm0, %v15438_v46, 0.0  ;;  %v15442_v3 = vunpack.c.l.bf16 %v15441_v12  ;;  %v15444_v34 = vunpack.c.l.bf16 %v15443_v62  ;;  %v15463_v54 = vld [vmem:[#allocation64_spill] sm:$0xff]  ;;  %v15467_v46 = vld [vmem:[#allocation70_spill] sm:$0xff]  ;;  %v15471_v12 = vld [vmem:[#allocation47_spill] sm:$0xff] }
  0xc6   :  { %v2754_v47 = vadd.f32 %v2753_v52, %v15440_v31  ;;  %v8022_v22 = vadd.f32 %v1984_v0, %v1983_v48  ;;  %v8024_v60 = vadd.f32 %v2114_v14, %v2113_v57  ;;  %v2374_v53 = vrot.slane %v2373_v36, 1 }
  0xc7   :  { %v2883_v5 = vadd.f32 %v15444_v34, %v15442_v3  ;;  %v2631_v13 = vadd.f32 %v2630_v61, %v2629_v20  ;;  %v2504_v44 = vrot.slane %v2503_v35, 1  ;;  %v15446_v37 = vunpack.c.l.bf16 %v15445_v15  ;;  %v15473_v34 = vld [vmem:[#allocation53_spill] sm:$0xff] }
  0xc8   :  { %v15448_v6 = vunpack.c.l.bf16 %v15447_v49  ;;  %v15450_v50 = vunpack.c.l.bf16 %v15449_v38  ;;  %v8033_v41 = vadd.f32 %v2244_v21, %v2243_v27  ;;  %v8035_v32 = vadd.f32 %v2374_v53, %v2373_v36  ;;  %v15461_v27 = vld [vmem:[#allocation63_spill] sm:$0xff]  ;;  %v15465_v36 = vld [vmem:[#allocation58_spill] sm:$0xff]  ;;  %v15475_v15 = vld [vmem:[#allocation65_spill] sm:$0xff] }
  0xc9   :  { %v2755_v23 = vadd.f32 %v2754_v47, %v15446_v37  ;;  %v2632_v7 = vrot.slane %v2631_v13, 2  ;;  %v15452_v48 = vunpack.c.l.bf16 %v15451_v56  ;;  %v15454_v18 = vunpack.c.l.bf16 %v15453_v11  ;;  %v15479_v49 = vld [vmem:[#allocation59_spill] sm:$0xff]  ;;  %v15481_v38 = vld [vmem:[#allocation72_spill] sm:$0xff] }
  0xca   :  { %v2884_v8 = vadd.f32 %v2883_v5, %v15448_v6  ;;  %v2888_v59 = vsel %vm1717_vm0, %v15450_v50, 0.0  ;;  %v15456_v25 = vunpack.c.l.bf16 %v15455_v51  ;;  %v15458_v0 = vunpack.c.l.bf16 %v15457_v24  ;;  %v15483_v56 = vld [vmem:[#allocation76_spill] sm:$0xff]  ;;  %v15487_v51 = vld [vmem:[#allocation78_spill] sm:$0xff] }
  0xcb   :  { %v3013_v17 = vadd.f32 %v15454_v18, %v15452_v48  ;;  %v15460_v20 = vunpack.c.l.bf16 %v15459_v45  ;;  %v15462_v2 = vunpack.c.l.bf16 %v15461_v27  ;;  %v15464_v9 = vunpack.c.l.bf16 %v15463_v54  ;;  %v15485_v18 = vld [vmem:[#allocation77_spill] sm:$0xff]  ;;  %v15492_v54 = vld [vmem:[#allocation60_spill] sm:$0xff] }
  0xcc   :  { %v2756_v58 = vadd.f32 %v2755_v23, %v15456_v25  ;;  %v2885_v57 = vadd.f32 %v2884_v8, %v15458_v0  ;;  %v8052_v52 = vadd.f32 %v2504_v44, %v2503_v35  ;;  %v2633_v14 = vadd.f32 %v2632_v7, %v2631_v13  ;;  %v15477_v35 = vld [vmem:[#allocation69_spill] sm:$0xff] }
  0xcd   :  { %v3018_v43 = vsel %vm1717_vm0, %v15460_v20, 0.0  ;;  %v3143_v28 = vadd.f32 %v15464_v9, %v15462_v2  ;;  %v15466_v61 = vunpack.c.l.bf16 %v15465_v36  ;;  %v15468_v21 = vunpack.c.l.bf16 %v15467_v46  ;;  %v15490_v20 = vld [vmem:[#allocation66_spill] sm:$0xff]  ;;  %v15494_v36 = vld [vmem:[#allocation73_spill] sm:$0xff]  ;;  %v15496_v46 = vld [vmem:[#allocation79_spill] sm:$0xff] }
  0xce   :  { %v15470_v31 = vunpack.c.l.bf16 %v15469_v10  ;;  %v15472_v3 = vunpack.c.l.bf16 %v15471_v12  ;;  %v15474_v5 = vunpack.c.l.bf16 %v15473_v34  ;;  %v15476_v37 = vunpack.c.l.bf16 %v15475_v15  ;;  %v15504_v15 = vld [vmem:[#allocation85_spill] sm:$0xff] }
  0xcf   :  { %v3014_v19 = vadd.f32 %v3013_v17, %v15466_v61  ;;  %v15478_v44 = vunpack.c.l.bf16 %v15477_v35  ;;  %v15480_v6 = vunpack.c.l.bf16 %v15479_v49  ;;  %v15482_v50 = vunpack.c.l.bf16 %v15481_v38  ;;  %v15507_v49 = vld [vmem:[#allocation74_spill] sm:$0xff]  ;;  %v15509_v38 = vld [vmem:[#allocation80_spill] sm:$0xff] }
  0xd0   :  { %v3273_v47 = vadd.f32 %v15470_v31, %v15468_v21  ;;  %v2757_v62 = vadd.f32 %v2756_v58, %v15472_v3  ;;  %v2886_v53 = vadd.f32 %v2885_v57, %v15474_v5  ;;  %v3144_v23 = vadd.f32 %v3143_v28, %v15476_v37  ;;  %v15498_v31 = vld [vmem:[#allocation83_spill] sm:$0xff]  ;;  %v15502_v5 = vld [vmem:[#allocation84_spill] sm:$0xff] }
  0xd1   :  { %v3148_v13 = vsel %vm1717_vm0, %v15478_v44, 0.0  ;;  %v3015_v8 = vadd.f32 %v3014_v19, %v15480_v6  ;;  %v15484_v48 = vunpack.c.l.bf16 %v15483_v56  ;;  %v15486_v17 = vunpack.c.l.bf16 %v15485_v18  ;;  %v15511_v56 = vld [vmem:[#allocation90_spill] sm:$0xff] }
  0xd2   :  { %v3274_v7 = vadd.f32 %v3273_v47, %v15482_v50  ;;  %v15488_v25 = vunpack.c.l.bf16 %v15487_v51  ;;  %v2634_v24 = vrot.slane %v2633_v14, 1  ;;  %v2759_v0 = vadd.f32 %v2758_v26, %v2757_v62 }
  0xd3   :  { %v3278_v11 = vsel %vm1717_vm0, %v15484_v48, 0.0  ;;  %v15489_v57 = vunpack.c.l.bf16 %v15302_v63  ;;  %v15491_v27 = vunpack.c.l.bf16 %v15490_v20  ;;  %v15493_v9 = vunpack.c.l.bf16 %v15492_v54  ;;  %v15500_v63 = vld [vmem:[#allocation67_spill] sm:$0xff]  ;;  %v15518_v54 = vld [vmem:[#allocation81_spill] sm:$0xff] }
  0xd4   :  { %v3403_v58 = vadd.f32 %v15488_v25, %v15486_v17  ;;  %v15495_v61 = vunpack.c.l.bf16 %v15494_v36  ;;  %v15497_v21 = vunpack.c.l.bf16 %v15496_v46  ;;  %v15499_v47 = vunpack.c.l.bf16 %v15498_v31  ;;  %v15516_v20 = vld [vmem:[#allocation75_spill] sm:$0xff] }
  0xd5   :  { %v2887_v45 = vadd.f32 %v2886_v53, %v15489_v57  ;;  %v3145_v2 = vadd.f32 %v3144_v23, %v15491_v27  ;;  %v3016_v28 = vadd.f32 %v3015_v8, %v15493_v9  ;;  %v2760_v26 = vrot.slane %v2759_v0, 4  ;;  %v15520_v36 = vld [vmem:[#allocation91_spill] sm:$0xff] }
  0xd6   :  { %v3275_v19 = vadd.f32 %v3274_v7, %v15495_v61  ;;  %v3404_v10 = vadd.f32 %v3403_v58, %v15497_v21  ;;  %v3408_v12 = vsel %vm1717_vm0, %v15499_v47, 0.0  ;;  %v15501_v62 = vunpack.c.l.bf16 %v15500_v63  ;;  %v15514_v58 = vld [vmem:[#allocation86_spill] sm:$0xff] }
  0xd7   :  { %v2889_v3 = vadd.f32 %v2888_v59, %v2887_v45  ;;  %v15503_v53 = vunpack.c.l.bf16 %v15502_v5  ;;  %v15505_v37 = vunpack.c.l.bf16 %v15504_v15  ;;  %v15506_v35 = vunpack.c.l.bf16 %v15309_v33  ;;  %v15527_v5 = vld [vmem:[#allocation93_spill] sm:$0xff] }
  0xd8   :  { %v3146_v34 = vadd.f32 %v3145_v2, %v15501_v62  ;;  %v15508_v6 = vunpack.c.l.bf16 %v15507_v49  ;;  %v15510_v50 = vunpack.c.l.bf16 %v15509_v38  ;;  %v15512_v48 = vunpack.c.l.bf16 %v15511_v56 }
  0xd9   :  { %v3533_v23 = vadd.f32 %v15505_v37, %v15503_v53  ;;  %v3017_v44 = vadd.f32 %v3016_v28, %v15506_v35  ;;  %v2761_v18 = vadd.f32 %v2760_v26, %v2759_v0  ;;  %v2890_v17 = vrot.slane %v2889_v3, 4 }
  0xda   :  { %v3276_v8 = vadd.f32 %v3275_v19, %v15508_v6  ;;  %v3405_v7 = vadd.f32 %v3404_v10, %v15510_v50  ;;  %v3538_v59 = vsel %vm1717_vm0, %v15512_v48, 0.0  ;;  %v15513_v51 = vunpack.c.l.bf16 %v15315_v16  ;;  %v15522_v19 = vld [vmem:[#allocation92_spill] sm:$0xff] }
  0xdb   :  { %v15515_v57 = vunpack.c.l.bf16 %v15514_v58  ;;  %v3019_v33 = vadd.f32 %v3018_v43, %v3017_v44  ;;  %v15517_v27 = vunpack.c.l.bf16 %v15516_v20  ;;  %v15519_v9 = vunpack.c.l.bf16 %v15518_v54  ;;  %v15525_v43 = vld [vmem:[#allocation82_spill] sm:$0xff] }
  0xdc   :  { %v3147_v25 = vadd.f32 %v3146_v34, %v15513_v51  ;;  %v15521_v61 = vunpack.c.l.bf16 %v15520_v36  ;;  %v15523_v46 = vunpack.c.l.bf16 %v15522_v19  ;;  %v2762_v0 = vrot.slane %v2761_v18, 2 }
  0xdd   :  { %v3534_v45 = vadd.f32 %v3533_v23, %v15515_v57  ;;  %v3277_v2 = vadd.f32 %v3276_v8, %v15517_v27  ;;  %v3406_v28 = vadd.f32 %v3405_v7, %v15519_v9  ;;  %v2891_v10 = vadd.f32 %v2890_v17, %v2889_v3  ;;  %v15531_v7 = vld [vmem:[#allocation89_spill] sm:$0xff] }
  0xde   :  { %v3663_v21 = vadd.f32 %v15523_v46, %v15521_v61  ;;  %v3149_v31 = vadd.f32 %v3148_v13, %v3147_v25  ;;  %v15524_v16 = vunpack.c.l.bf16 %v15323_v42  ;;  %v3020_v26 = vrot.slane %v3019_v33, 4  ;;  %v15533_v25 = vld [vmem:[#allocation94_spill] sm:$0xff] }
  0xdf   :  { %v3279_v63 = vadd.f32 %v3278_v11, %v3277_v2  ;;  %v15526_v62 = vunpack.c.l.bf16 %v15525_v43  ;;  %v15528_v53 = vunpack.c.l.bf16 %v15527_v5  ;;  %v2763_v37 = vadd.f32 %v2762_v0, %v2761_v18 }
  0xe0   :  { %v3535_v47 = vadd.f32 %v3534_v45, %v15524_v16  ;;  %v2892_v23 = vrot.slane %v2891_v10, 2  ;;  %v3150_v35 = vrot.slane %v3149_v31, 4  ;;  %v15529_v44 = vunpack.c.l.bf16 %v15328_v55 }
  0xe1   :  { %v3407_v34 = vadd.f32 %v3406_v28, %v15526_v62  ;;  %v3664_v15 = vadd.f32 %v3663_v21, %v15528_v53  ;;  %v3021_v6 = vadd.f32 %v3020_v26, %v3019_v33  ;;  %v3280_v3 = vrot.slane %v3279_v63, 4 }
  0xe2   :  { %v3536_v49 = vadd.f32 %v3535_v47, %v15529_v44  ;;  %v15530_v42 = vunpack.c.l.bf16 %v7558_v29  ;;  %v2764_v38 = vrot.slane %v2763_v37, 1  ;;  %v2893_v11 = vadd.f32 %v2892_v23, %v2891_v10 }
  0xe3   :  { %v3409_v13 = vadd.f32 %v3408_v12, %v3407_v34  ;;  %v3151_v50 = vadd.f32 %v3150_v35, %v3149_v31  ;;  %v15532_v56 = vunpack.c.l.bf16 %v15531_v7  ;;  %v3022_v17 = vrot.slane %v3021_v6, 2 }
  0xe4   :  { %v3665_v8 = vadd.f32 %v3664_v15, %v15530_v42  ;;  %v3281_v51 = vadd.f32 %v3280_v3, %v3279_v63  ;;  %v15534_v58 = vunpack.c.l.bf16 %v15533_v25  ;;  %v2635_v55 = vadd.f32 %v2634_v24, %v2633_v14  ;;  %v8156_v25 = vld [vmem:[%s14298_s0 + $0x8] sm:$0xff] }
  0xe5   :  { %v3537_v48 = vadd.f32 %v3536_v49, %v15532_v56  ;;  %v3410_v18 = vrot.slane %v3409_v13, 4  ;;  %v2894_v45 = vrot.slane %v2893_v11, 1  ;;  %v3152_v33 = vrot.slane %v3151_v50, 2  ;;  %15536 = vst [vmem:[#allocation54_spill] sm:$0xff] %v8156_v25 }
  0xe6   :  { %v3666_v57 = vadd.f32 %v3665_v8, %v15534_v58  ;;  %v3023_v12 = vadd.f32 %v3022_v17, %v3021_v6  ;;  %v3282_v27 = vrot.slane %v3281_v51, 2  ;;  %v15535_v2 = vunpack.c.l.bf16 %v7572_v40 }
  0xe7   :  { %v3539_v20 = vadd.f32 %v3538_v59, %v3537_v48  ;;  %v3411_v29 = vadd.f32 %v3410_v18, %v3409_v13  ;;  %v2765_v9 = vadd.f32 %v2764_v38, %v2763_v37  ;;  %v3153_v28 = vadd.f32 %v3152_v33, %v3151_v50  ;;  %v8161_v33 = vld [vmem:[%s14298_s0 + $0x30] sm:$0xff] }
  0xe8   :  { %v3667_v54 = vadd.f32 %v3666_v57, %v15535_v2  ;;  %v3668_v61 = vsel %vm1717_vm0, %v1702_v1, 0.0  ;;  %v3024_v19 = vrot.slane %v3023_v12, 1  ;;  %v3283_v46 = vadd.f32 %v3282_v27, %v3281_v51 }
  0xe9   :  { %v3540_v36 = vrot.slane %v3539_v20, 4  ;;  %v3412_v21 = vrot.slane %v3411_v29, 2  ;;  %v2895_v24 = vadd.f32 %v2894_v45, %v2893_v11  ;;  %v3154_v0 = vrot.slane %v3153_v28, 1 }
  0xea   :  { %v3669_v14 = vadd.f32 %v3668_v61, %v3667_v54  ;;  %v3793_v10 = vpack.c.bf16 %v8002_v4, %v8002_v4  ;;  %v3284_v31 = vrot.slane %v3283_v46, 1  ;;  %v3803_v47 = vpack.c.bf16 %v8007_v30, %v8007_v30 }
  0xeb   :  { %v3541_v59 = vadd.f32 %v3540_v36, %v3539_v20  ;;  %v3413_v40 = vadd.f32 %v3412_v21, %v3411_v29  ;;  %v3025_v26 = vadd.f32 %v3024_v19, %v3023_v12  ;;  %v3155_v39 = vadd.f32 %v3154_v0, %v3153_v28  ;;  %v8170_v28 = vld [vmem:[%s14298_s0 + $0x58] sm:$0xff]  ;;  %v8461_v36 = vld [vmem:[%s14298_s0 + $0x6c0] sm:$0xff] }
  0xec   :  { %v3670_v16 = vrot.slane %v3669_v14, 4  ;;  %v3813_v1 = vpack.c.bf16 %v8022_v22, %v8022_v22  ;;  %v3285_v43 = vadd.f32 %v3284_v31, %v3283_v46  ;;  %v3823_v5 = vpack.c.bf16 %v8024_v60, %v8024_v60  ;;  %v8178_v46 = vld [vmem:[%s14298_s0 + $0x80] sm:$0xff]  ;;  %15562 = vst [vmem:[#allocation30_spill] sm:$0xff] %v8461_v36  ;;  %v8564_v31 = vld [vmem:[%s14298_s0 + $0x918] sm:$0xff] }
  0xed   :  { %v3542_v63 = vrot.slane %v3541_v59, 2  ;;  %v3414_v62 = vrot.slane %v3413_v40, 1  ;;  %v3833_v4 = vpack.c.bf16 %v8033_v41, %v8033_v41  ;;  %v3843_v15 = vpack.c.bf16 %v8035_v32, %v8035_v32  ;;  %15577 = vst [vmem:[#allocation33_spill] sm:$0xff] %v8564_v31  ;;  %v8629_v21 = vld [vmem:[%s14298_s0 + $0xa80] sm:$0xff] }
  0xee   :  { %v3671_v34 = vadd.f32 %v3670_v16, %v3669_v14  ;;  %v3853_v30 = vpack.c.bf16 %v8052_v52, %v8052_v52  ;;  %v3863_v35 = vpack.c.bf16 %v2635_v55, %v2635_v55  ;;  %v3873_v22 = vpack.c.bf16 %v2765_v9, %v2765_v9  ;;  %v8396_v14 = vld [vmem:[%s14298_s0 + $0x558] sm:$0x11]  ;;  %15586 = vst [vmem:[#allocation49_spill] sm:$0xff] %v8629_v21  ;;  %v8713_v31 = vld [vmem:[%s14298_s0 + $0xc60] sm:$0xff] }
  0xef   :  { %v3543_v53 = vadd.f32 %v3542_v63, %v3541_v59  ;;  %v3415_v37 = vadd.f32 %v3414_v62, %v3413_v40  ;;  %v3883_v49 = vpack.c.bf16 %v2895_v24, %v2895_v24  ;;  %v3893_v6 = vpack.c.bf16 %v3025_v26, %v3025_v26  ;;  %v8200_v26 = vld [vmem:[%s14298_s0 + $0xf8] sm:$0x11]  ;;  %v8209_v62 = vld [vmem:[%s14298_s0 + $0x120] sm:$0xff]  ;;  %15598 = vst [vmem:[#allocation58_spill] sm:$0xff] %v8713_v31 }
  0xf0   :  { %v3672_v23 = vrot.slane %v3671_v34, 2  ;;  %v3903_v3 = vpack.c.bf16 %v3155_v39, %v3155_v39  ;;  %v3913_v60 = vpack.c.bf16 %v3285_v43, %v3285_v43  ;;  %v4285_v8 = vunpack.c.l.b16 %v3793_v10  ;;  %v8187_v10 = vld [vmem:[%s14298_s0 + $0xa8] sm:$0xff]  ;;  %15537 = vst [vmem:[#allocation61_spill] sm:$0xff] %v8200_v26  ;;  %15538 = vst [vmem:[#allocation68_spill] sm:$0xff] %v8209_v62  ;;  %v8508_v63 = vld [vmem:[%s14298_s0 + $0x7d8] sm:$0xff] }
  0xf1   :  { %v3544_v44 = vrot.slane %v3543_v53, 1  ;;  %v3923_v42 = vpack.c.bf16 %v3415_v37, %v3415_v37  ;;  %v4295_v41 = vunpack.c.l.b16 %v3803_v47  ;;  %v4305_v11 = vunpack.c.l.b16 %v3813_v1  ;;  %v8195_v47 = vld [vmem:[%s14298_s0 + $0xd0] sm:$0xff]  ;;  %v8382_v39 = vld [vmem:[%s14298_s0 + $0x508] sm:$0xff]  ;;  %15569 = vst [vmem:[#allocation35_spill] sm:$0xff] %v8508_v63  ;;  %v8704_v21 = vld [vmem:[%s14298_s0 + $0xc38] sm:$0xff] }
  0xf2   :  { %v3673_v13 = vadd.f32 %v3672_v23, %v3671_v34  ;;  %v4315_v50 = vunpack.c.l.b16 %v3823_v5  ;;  %v4325_v7 = vunpack.c.l.b16 %v3833_v4  ;;  %v4335_v56 = vunpack.c.l.b16 %v3843_v15  ;;  %v8214_v34 = vld [vmem:[%s14298_s0 + $0x148] sm:$0xff]  ;;  %v8226_v37 = vld [vmem:[%s14298_s0 + $0x170] sm:$0xff]  ;;  %v8231_v23 = vld [vmem:[%s14298_s0 + $0x198] sm:$0xff]  ;;  %15554 = vst [vmem:[#allocation22_spill] sm:$0xff] %v8382_v39 }
  0xf3   :  { %v3545_v38 = vadd.f32 %v3544_v44, %v3543_v53  ;;  %v4345_v52 = vunpack.c.l.b16 %v3853_v30  ;;  %v4365_v17 = vunpack.c.l.b16 %v3873_v22  ;;  %v4375_v51 = vunpack.c.l.b16 %v3883_v49  ;;  %v6414_v30 = vld [vmem:[%s14297_s1 + $0x270] ss:$8 sps:$4 sm:$0xff]   ;;  %v8238_v49 = vld [vmem:[%s14298_s0 + $0x1c0] sm:$0xff]  ;;  %v8494_v5 = vld [vmem:[%s14298_s0 + $0x788] sm:$0x11]  ;;  %15597 = vst [vmem:[#allocation64_spill] sm:$0xff] %v8704_v21 }
  0xf4   :  { %v3674_v32 = vrot.slane %v3673_v13, 1  ;;  %v4385_v18 = vunpack.c.l.b16 %v3893_v6  ;;  %v4355_v57 = vunpack.c.l.b16 %v3863_v35  ;;  %v4395_v55 = vunpack.c.l.b16 %v3903_v3  ;;  %v8243_v6 = vld [vmem:[%s14298_s0 + $0x1e8] sm:$0xff]  ;;  %v8452_v53 = vld [vmem:[%s14298_s0 + $0x698] sm:$0xff]  ;;  %v8475_v22 = vld [vmem:[%s14298_s0 + $0x710] sm:$0xff]  ;;  %15567 = vst [vmem:[#allocation19_spill] sm:$0xff] %v8494_v5 }
  0xf5   :  { %v3933_v48 = vpack.c.bf16 %v3545_v38, %v3545_v38  ;;  %v4405_v45 = vunpack.c.l.b16 %v3913_v60  ;;  %v4415_v20 = vunpack.c.l.b16 %v3923_v42  ;;  %v4446_v27 = vsel %vm4445_vm1, %v4295_v41, %v4285_v8  ;;  %v8251_v42 = vld [vmem:[%s14298_s0 + $0x210] sm:$0x11]  ;;  %v8256_v8 = vld [vmem:[%s14298_s0 + $0x238] sm:$0xff]  ;;  %v8405_v60 = vld [vmem:[%s14298_s0 + $0x580] sm:$0xff]  ;;  %15561 = vst [vmem:[#allocation18_spill] sm:$0xff] %v8452_v53 }
  0xf6   :  { %v3675_v58 = vadd.f32 %v3674_v32, %v3673_v13  ;;  %v4522_v29 = vsel %vm4445_vm1, %v4375_v51, %v4365_v17  ;;  %v4448_v54 = vsel %vm4447_vm2, %v4305_v11, %v4446_v27  ;;  %15539 = vst [vmem:[#allocation87_spill] sm:$0xff] %v8251_v42  ;;  %15540 = vst [vmem:[#allocation88_spill] sm:$0xff] %v8256_v8  ;;  %v8265_v32 = vld [vmem:[%s14298_s0 + $0x260] sm:$0xff]  ;;  %v8279_v51 = vld [vmem:[%s14298_s0 + $0x2b0] sm:$0xff] }
  0xf7   :  { %v4425_v12 = vunpack.c.l.b16 %v3933_v48  ;;  %v4523_v9 = vsel %vm4447_vm2, %v4385_v18, %v4522_v29  ;;  %v4450_v61 = vsel %vm4449_vm3, %v4315_v50, %v4448_v54  ;;  %v8284_v18 = vld [vmem:[%s14298_s0 + $0x2d8] sm:$0xff]  ;;  %v8377_v54 = vld [vmem:[%s14298_s0 + $0x4e0] sm:$0xff]  ;;  %v8410_v29 = vld [vmem:[%s14298_s0 + $0x5a8] sm:$0xff]  ;;  %15564 = vst [vmem:[#allocation9_spill] sm:$0xff] %v8475_v22 }
  0xf8   :  { %v3943_v2 = vpack.c.bf16 %v3675_v58, %v3675_v58  ;;  %v4524_v19 = vsel %vm4449_vm3, %v4395_v55, %v4523_v9  ;;  %v4452_v0 = vsel %vm4451_vm4, %v4325_v7, %v4450_v61  ;;  %v8270_v7 = vld [vmem:[%s14298_s0 + $0x288] sm:$0xff]  ;;  %15541 = vst [vmem:[#allocation95_spill] sm:$0xff] %v8284_v18  ;;  %v8307_v9 = vld [vmem:[%s14298_s0 + $0x350] sm:$0xff]  ;;  %v8312_v61 = vld [vmem:[%s14298_s0 + $0x378] sm:$0xff] }
  0xf9   :  { %v4525_v59 = vsel %vm4451_vm4, %v4405_v45, %v4524_v19  ;;  %v4454_v40 = vsel %vm4453_vm5, %v4335_v56, %v4452_v0  ;;  %15544 = vst [vmem:[#allocation4_spill] sm:$0xff] %v8307_v9  ;;  %15545 = vst [vmem:[#allocation5_spill] sm:$0xff] %v8312_v61  ;;  %v8368_v17 = vld [vmem:[%s14298_s0 + $0x4b8] sm:$0xff]  ;;  %v8419_v27 = vld [vmem:[%s14298_s0 + $0x5d0] sm:$0xff] }
  0xfa   :  { %v4435_v24 = vunpack.c.l.b16 %v3943_v2  ;;  %v4526_v16 = vsel %vm4453_vm5, %v4415_v20, %v4525_v59  ;;  %v4456_v1 = vsel %vm4455_vm6, %v4345_v52, %v4454_v40  ;;  %v8293_v20 = vld [vmem:[%s14298_s0 + $0x300] sm:$0xff]  ;;  %v8363_v59 = vld [vmem:[%s14298_s0 + $0x490] sm:$0xff]  ;;  %15552 = vst [vmem:[#allocation17_spill] sm:$0xff] %v8368_v17  ;;  %15553 = vst [vmem:[#allocation21_spill] sm:$0xff] %v8377_v54 }
  0xfb   :  { %v4527_v43 = vsel %vm4455_vm6, %v4425_v12, %v4526_v16  ;;  %v4458_v4 = vsel %vm4457_vm7, %v4355_v57, %v4456_v1  ;;  %15542 = vst [vmem:[#allocation2_spill] sm:$0xff] %v8293_v20  ;;  %v8298_v12 = vld [vmem:[%s14298_s0 + $0x328] sm:$0x11]  ;;  %v8321_v40 = vld [vmem:[%s14298_s0 + $0x3a0] sm:$0xff]  ;;  %15551 = vst [vmem:[#allocation16_spill] sm:$0xff] %v8363_v59 }
  0xfc   :  { %v4528_v15 = vsel %vm4457_vm7, %v4435_v24, %v4527_v43  ;;  %15543 = vst [vmem:[#allocation3_spill] sm:$0xff] %v8298_v12  ;;  %v8326_v16 = vld [vmem:[%s14298_s0 + $0x3c8] sm:$0xff]  ;;  %v8391_v52 = vld [vmem:[%s14298_s0 + $0x530] sm:$0xff]  ;;  %15556 = vst [vmem:[#allocation28_spill] sm:$0xff] %v8419_v27 }
  0xfd   :  { %v4592_v44 = vpack.c.b16 %v4528_v15, %v4458_v4  ;;  %15546 = vst [vmem:[#allocation6_spill] sm:$0xff] %v8326_v16  ;;  %v8349_v15 = vld [vmem:[%s14298_s0 + $0x440] sm:$0x11]  ;;  %v8354_v57 = vld [vmem:[%s14298_s0 + $0x468] sm:$0xff]  ;;  %15555 = vst [vmem:[#allocation27_spill] sm:$0xff] %v8391_v52 }
  0xfe   :  { %15549 = vst [vmem:[#allocation11_spill] sm:$0xff] %v8349_v15  ;;  %15550 = vst [vmem:[#allocation15_spill] sm:$0xff] %v8354_v57  ;;  %v8424_v55 = vld [vmem:[%s14298_s0 + $0x5f8] sm:$0xff]  ;;  %v8433_v45 = vld [vmem:[%s14298_s0 + $0x620] sm:$0xff] }
  0xff   :  { %5445 = vmatmul.mubr.bf16.vlgmr.msra.gmra.mxu0 %v4592_v44  ;;  %v8340_v44 = vld [vmem:[%s14298_s0 + $0x418] sm:$0xff]  ;;  %15557 = vst [vmem:[#allocation29_spill] sm:$0xff] %v8424_v55  ;;  %15558 = vst [vmem:[#allocation8_spill] sm:$0xff] %v8433_v45  ;;  %v8438_v58 = vld [vmem:[%s14298_s0 + $0x648] sm:$0xff] }
 0x100   :  { %5499 = vmatpush1.bf16.msra.mxu0 %v6414_v30  ;;  %v8335_v30 = vld [vmem:[%s14298_s0 + $0x3f0] sm:$0xff]  ;;  %15548 = vst [vmem:[#allocation10_spill] sm:$0xff] %v8340_v44  ;;  %15559 = vst [vmem:[#allocation12_spill] sm:$0xff] %v8438_v58  ;;  %v8466_v48 = vld [vmem:[%s14298_s0 + $0x6e8] sm:$0xff]  ;;  %v15634_v44 = vunpack.c.h.bf16 %v8256_v8  ;;  %v15641_v8 = vunpack.c.h.bf16 %v8354_v57  ;;  %v15647_v57 = vunpack.c.h.bf16 %v8410_v29 }
 0x101   :  { %15547 = vst [vmem:[#allocation7_spill] sm:$0xff] %v8335_v30  ;;  %v8447_v4 = vld [vmem:[%s14298_s0 + $0x670] sm:$0x11]  ;;  %15563 = vst [vmem:[#allocation34_spill] sm:$0xff] %v8466_v48  ;;  %v8480_v13 = vld [vmem:[%s14298_s0 + $0x738] sm:$0xff] }
 0x102   :  { %15560 = vst [vmem:[#allocation23_spill] sm:$0xff] %v8447_v4  ;;  %15565 = vst [vmem:[#allocation13_spill] sm:$0xff] %v8480_v13  ;;  %v8489_v50 = vld [vmem:[%s14298_s0 + $0x760] sm:$0xff]  ;;  %v8503_v24 = vld [vmem:[%s14298_s0 + $0x7b0] sm:$0xff] }
 0x103   :  { %15566 = vst [vmem:[#allocation24_spill] sm:$0xff] %v8489_v50  ;;  %15568 = vst [vmem:[#allocation31_spill] sm:$0xff] %v8503_v24  ;;  %v8517_v1 = vld [vmem:[%s14298_s0 + $0x800] sm:$0xff]  ;;  %v8522_v0 = vld [vmem:[%s14298_s0 + $0x828] sm:$0xff] }
 0x104   :  { %15570 = vst [vmem:[#allocation36_spill] sm:$0xff] %v8517_v1  ;;  %15571 = vst [vmem:[#allocation14_spill] sm:$0xff] %v8522_v0  ;;  %v8531_v43 = vld [vmem:[%s14298_s0 + $0x850] sm:$0xff]  ;;  %v8536_v2 = vld [vmem:[%s14298_s0 + $0x878] sm:$0xff] }
 0x105   :  { %15572 = vst [vmem:[#allocation25_spill] sm:$0xff] %v8531_v43  ;;  %15573 = vst [vmem:[#allocation20_spill] sm:$0xff] %v8536_v2  ;;  %v8545_v41 = vld [vmem:[%s14298_s0 + $0x8a0] sm:$0x11]  ;;  %v8550_v11 = vld [vmem:[%s14298_s0 + $0x8c8] sm:$0xff] }
 0x106   :  { %15574 = vst [vmem:[#allocation32_spill] sm:$0xff] %v8545_v41  ;;  %15575 = vst [vmem:[#allocation37_spill] sm:$0xff] %v8550_v11  ;;  %v8559_v3 = vld [vmem:[%s14298_s0 + $0x8f0] sm:$0xff]  ;;  %v8573_v35 = vld [vmem:[%s14298_s0 + $0x940] sm:$0xff] }
 0x107   :  { %15576 = vst [vmem:[#allocation26_spill] sm:$0xff] %v8559_v3  ;;  %15578 = vst [vmem:[#allocation38_spill] sm:$0xff] %v8573_v35  ;;  %v8578_v50 = vld [vmem:[%s14298_s0 + $0x968] sm:$0xff]  ;;  %v8587_v19 = vld [vmem:[%s14298_s0 + $0x990] sm:$0xff] }
 0x108   :  { %15579 = vst [vmem:[#allocation39_spill] sm:$0xff] %v8578_v50  ;;  %15580 = vst [vmem:[#allocation40_spill] sm:$0xff] %v8587_v19  ;;  %v8592_v58 = vld [vmem:[%s14298_s0 + $0x9b8] sm:$0x11]  ;;  %v8601_v56 = vld [vmem:[%s14298_s0 + $0x9e0] sm:$0xff] }
 0x109   :  { %15581 = vst [vmem:[#allocation41_spill] sm:$0xff] %v8592_v58  ;;  %15582 = vst [vmem:[#allocation42_spill] sm:$0xff] %v8601_v56  ;;  %v8606_v43 = vld [vmem:[%s14298_s0 + $0xa08] sm:$0xff]  ;;  %v8615_v38 = vld [vmem:[%s14298_s0 + $0xa30] sm:$0xff] }
 0x10a   :  { %15583 = vst [vmem:[#allocation43_spill] sm:$0xff] %v8606_v43  ;;  %15584 = vst [vmem:[#allocation48_spill] sm:$0xff] %v8615_v38  ;;  %v8620_v41 = vld [vmem:[%s14298_s0 + $0xa58] sm:$0xff]  ;;  %v8634_v3 = vld [vmem:[%s14298_s0 + $0xaa8] sm:$0xff] }
 0x10b   :  { %15585 = vst [vmem:[#allocation44_spill] sm:$0xff] %v8620_v41  ;;  %15587 = vst [vmem:[#allocation50_spill] sm:$0xff] %v8634_v3  ;;  %v8643_v13 = vld [vmem:[%s14298_s0 + $0xad0] sm:$0x11]  ;;  %v8648_v35 = vld [vmem:[%s14298_s0 + $0xaf8] sm:$0xff] }
 0x10c   :  { %15588 = vst [vmem:[#allocation45_spill] sm:$0xff] %v8643_v13  ;;  %15589 = vst [vmem:[#allocation51_spill] sm:$0xff] %v8648_v35  ;;  %v8657_v1 = vld [vmem:[%s14298_s0 + $0xb20] sm:$0xff]  ;;  %v8662_v19 = vld [vmem:[%s14298_s0 + $0xb48] sm:$0xff] }
 0x10d   :  { %15590 = vst [vmem:[#allocation55_spill] sm:$0xff] %v8657_v1  ;;  %15591 = vst [vmem:[#allocation56_spill] sm:$0xff] %v8662_v19  ;;  %v8671_v0 = vld [vmem:[%s14298_s0 + $0xb70] sm:$0xff]  ;;  %v8676_v56 = vld [vmem:[%s14298_s0 + $0xb98] sm:$0xff] }
 0x10e   :  { %15592 = vst [vmem:[#allocation57_spill] sm:$0xff] %v8671_v0  ;;  %15593 = vst [vmem:[#allocation46_spill] sm:$0xff] %v8676_v56  ;;  %v8685_v2 = vld [vmem:[%s14298_s0 + $0xbc0] sm:$0xff]  ;;  %v8690_v38 = vld [vmem:[%s14298_s0 + $0xbe8] sm:$0x11] }
 0x10f   :  { %15594 = vst [vmem:[#allocation52_spill] sm:$0xff] %v8685_v2  ;;  %15595 = vst [vmem:[#allocation62_spill] sm:$0xff] %v8690_v38  ;;  %v8699_v11 = vld [vmem:[%s14298_s0 + $0xc10] sm:$0xff]  ;;  %v8718_v3 = vld [vmem:[%s14298_s0 + $0xc88] sm:$0xff] }
 0x110   :  { %15596 = vst [vmem:[#allocation63_spill] sm:$0xff] %v8699_v11  ;;  %15599 = vst [vmem:[#allocation70_spill] sm:$0xff] %v8718_v3  ;;  %v8727_v50 = vld [vmem:[%s14298_s0 + $0xcb0] sm:$0xff]  ;;  %v8732_v1 = vld [vmem:[%s14298_s0 + $0xcd8] sm:$0xff] }
 0x111   :  { %15600 = vst [vmem:[#allocation71_spill] sm:$0xff] %v8727_v50  ;;  %15601 = vst [vmem:[#allocation47_spill] sm:$0xff] %v8732_v1  ;;  %v8741_v58 = vld [vmem:[%s14298_s0 + $0xd00] sm:$0x11]  ;;  %v8746_v0 = vld [vmem:[%s14298_s0 + $0xd28] sm:$0xff] }
 0x112   :  { %15602 = vst [vmem:[#allocation53_spill] sm:$0xff] %v8741_v58  ;;  %15603 = vst [vmem:[#allocation65_spill] sm:$0xff] %v8746_v0  ;;  %v8755_v43 = vld [vmem:[%s14298_s0 + $0xd50] sm:$0xff]  ;;  %v8760_v2 = vld [vmem:[%s14298_s0 + $0xd78] sm:$0xff] }
 0x113   :  { %15604 = vst [vmem:[#allocation69_spill] sm:$0xff] %v8755_v43  ;;  %15605 = vst [vmem:[#allocation59_spill] sm:$0xff] %v8760_v2  ;;  %v8769_v41 = vld [vmem:[%s14298_s0 + $0xda0] sm:$0xff]  ;;  %v8774_v11 = vld [vmem:[%s14298_s0 + $0xdc8] sm:$0xff] }
 0x114   :  { %15606 = vst [vmem:[#allocation72_spill] sm:$0xff] %v8769_v41  ;;  %15607 = vst [vmem:[#allocation76_spill] sm:$0xff] %v8774_v11  ;;  %v8783_v13 = vld [vmem:[%s14298_s0 + $0xdf0] sm:$0xff]  ;;  %v8788_v31 = vld [vmem:[%s14298_s0 + $0xe18] sm:$0x11] }
 0x115   :  { %15608 = vst [vmem:[#allocation77_spill] sm:$0xff] %v8783_v13  ;;  %15609 = vst [vmem:[#allocation78_spill] sm:$0xff] %v8788_v31  ;;  %v8797_v35 = vld [vmem:[%s14298_s0 + $0xe40] sm:$0xff]  ;;  %v8802_v50 = vld [vmem:[%s14298_s0 + $0xe68] sm:$0xff] }
 0x116   :  { %15610 = vst [vmem:[#allocation66_spill] sm:$0xff] %v8797_v35  ;;  %15611 = vst [vmem:[#allocation60_spill] sm:$0xff] %v8802_v50  ;;  %v8811_v19 = vld [vmem:[%s14298_s0 + $0xe90] sm:$0xff]  ;;  %v8816_v1 = vld [vmem:[%s14298_s0 + $0xeb8] sm:$0xff] }
 0x117   :  { %15612 = vst [vmem:[#allocation73_spill] sm:$0xff] %v8811_v19  ;;  %15613 = vst [vmem:[#allocation79_spill] sm:$0xff] %v8816_v1  ;;  %v8825_v56 = vld [vmem:[%s14298_s0 + $0xee0] sm:$0xff]  ;;  %v8830_v43 = vld [vmem:[%s14298_s0 + $0xf08] sm:$0xff]  ;;  %v15630_v1 = vunpack.c.h.bf16 %v8200_v26 }
 0x118   :  { %15614 = vst [vmem:[#allocation83_spill] sm:$0xff] %v8825_v56  ;;  %15615 = vst [vmem:[#allocation67_spill] sm:$0xff] %v8830_v43  ;;  %v8839_v38 = vld [vmem:[%s14298_s0 + $0xf30] sm:$0x11]  ;;  %v8844_v41 = vld [vmem:[%s14298_s0 + $0xf58] sm:$0xff] }
 0x119   :  { %15616 = vst [vmem:[#allocation84_spill] sm:$0xff] %v8839_v38  ;;  %15617 = vst [vmem:[#allocation85_spill] sm:$0xff] %v8844_v41  ;;  %v8853_v21 = vld [vmem:[%s14298_s0 + $0xf80] sm:$0xff]  ;;  %v8858_v13 = vld [vmem:[%s14298_s0 + $0xfa8] sm:$0xff]  ;;  %v15628_v41 = vunpack.c.h.bf16 %v8156_v25  ;;  %v15629_v38 = vunpack.c.h.bf16 %v8161_v33  ;;  %v1757_v50 = vsel %vm1717_vm0, %v15630_v1, 0.0  ;;  %v15635_v25 = vunpack.c.h.bf16 %v8265_v32 }
 0x11a   :  { %15618 = vst [vmem:[#allocation74_spill] sm:$0xff] %v8853_v21  ;;  %15619 = vst [vmem:[#allocation80_spill] sm:$0xff] %v8858_v13  ;;  %v8867_v3 = vld [vmem:[%s14298_s0 + $0xfd0] sm:$0xff]  ;;  %v8872_v35 = vld [vmem:[%s14298_s0 + $0xff8] sm:$0xff]  ;;  %v15633_v13 = vunpack.c.h.bf16 %v8251_v42  ;;  %v15637_v1 = vunpack.c.h.bf16 %v8170_v28  ;;  %v15640_v42 = vunpack.c.h.bf16 %v8349_v15  ;;  %v15649_v15 = vunpack.c.h.bf16 %v8321_v40 }
 0x11b   :  { %15620 = vst [vmem:[#allocation90_spill] sm:$0xff] %v8867_v3  ;;  %15621 = vst [vmem:[#allocation86_spill] sm:$0xff] %v8872_v35  ;;  %v8881_v58 = vld [vmem:[%s14298_s0 + $0x1020] sm:$0xff]  ;;  %v8886_v19 = vld [vmem:[%s14298_s0 + $0x1048] sm:$0x11]  ;;  %v15632_v35 = vunpack.c.h.bf16 %v8214_v34 }
 0x11c   :  { %15622 = vst [vmem:[#allocation75_spill] sm:$0xff] %v8881_v58  ;;  %15623 = vst [vmem:[#allocation81_spill] sm:$0xff] %v8886_v19  ;;  %v8895_v0 = vld [vmem:[%s14298_s0 + $0x1070] sm:$0xff]  ;;  %v8900_v56 = vld [vmem:[%s14298_s0 + $0x1098] sm:$0xff]  ;;  %v15631_v58 = vunpack.c.h.bf16 %v8209_v62  ;;  %v1887_v52 = vsel %vm1717_vm0, %v15633_v13, 0.0  ;;  %v15638_v62 = vunpack.c.h.bf16 %v8307_v9  ;;  %v2147_v13 = vsel %vm1717_vm0, %v15640_v42, 0.0 }
 0x11d   :  { %15624 = vst [vmem:[#allocation91_spill] sm:$0xff] %v8895_v0  ;;  %15625 = vst [vmem:[#allocation92_spill] sm:$0xff] %v8900_v56  ;;  %v8909_v2 = vld [vmem:[%s14298_s0 + $0x10c0] sm:$0xff]  ;;  %v8914_v43 = vld [vmem:[%s14298_s0 + $0x10e8] sm:$0xff]  ;;  %v1752_v56 = vadd.f32 %v15629_v38, %v15628_v41  ;;  %v15636_v38 = vunpack.c.h.bf16 %v8298_v12  ;;  %v15644_v9 = vunpack.c.h.bf16 %v8270_v7  ;;  %v15646_v42 = vunpack.c.h.bf16 %v8405_v60 }
 0x11e   :  { %v8923_v11 = vld [vmem:[%s14298_s0 + $0x1110] sm:$0xff]  ;;  %v8928_v21 = vld [vmem:[%s14298_s0 + $0x1138] sm:$0xff]  ;;  %v8937_v31 = vld [vmem:[%s14298_s0 + $0x1160] sm:$0x11]  ;;  %v1882_v3 = vadd.f32 %v15632_v35, %v15631_v58  ;;  %v15639_v35 = vunpack.c.h.bf16 %v8312_v61 }
 0x11f   :  { %15626 = vst [vmem:[#allocation82_spill] sm:$0xff] %v8923_v11  ;;  %15627 = vst [vmem:[#allocation93_spill] sm:$0xff] %v8937_v31  ;;  %v2012_v31 = vadd.f32 %v15635_v25, %v15634_v44  ;;  %v2017_v41 = vsel %vm1717_vm0, %v15636_v38, 0.0  ;;  %v1753_v26 = vadd.f32 %v1752_v56, %v15637_v1  ;;  %v15642_v25 = vunpack.c.h.bf16 %v8363_v59  ;;  %v6419_v38 = vld [vmem:[%s14297_s1 + $0x374] ss:$8 sps:$4 sm:$0xff]  }
 0x120   :  { %v2142_v58 = vadd.f32 %v15639_v35, %v15638_v62  ;;  %v15643_v56 = vunpack.c.h.bf16 %v8226_v37  ;;  %v15645_v62 = vunpack.c.h.bf16 %v8396_v14  ;;  %v2402_v59 = vadd.f32 %v15647_v57, %v15646_v42  ;;  %5541 = vmatprep.subr.bf16.mxu1 %v6419_v38  ;;  %v6420_v38 = vld [vmem:[%s14297_s1 + $0x260] ss:$8 sps:$4 sm:$0xff]  }
 0x121   :  { %v2272_v44 = vadd.f32 %v15642_v25, %v15641_v8  ;;  %v2013_v61 = vadd.f32 %v2012_v31, %v15644_v9  ;;  %v15648_v8 = vunpack.c.h.bf16 %v8178_v46  ;;  %v15651_v31 = vunpack.c.h.bf16 %v8447_v4 }
 0x122   :  { %v1883_v1 = vadd.f32 %v1882_v3, %v15643_v56  ;;  %v2277_v35 = vsel %vm1717_vm0, %v15645_v62, 0.0  ;;  %v2143_v12 = vadd.f32 %v2142_v58, %v15649_v15  ;;  %v15650_v3 = vunpack.c.h.bf16 %v8368_v17  ;;  %v6422_v62 = vld [vmem:[%s14297_s1 + $0x264] ss:$8 sps:$4 sm:$0xff]  }
 0x123   :  { %v1754_v25 = vadd.f32 %v1753_v26, %v15648_v8  ;;  %v2407_v9 = vsel %vm1717_vm0, %v15651_v31, 0.0  ;;  %v15652_v57 = vunpack.c.h.bf16 %v8231_v23  ;;  %v15653_v26 = vunpack.c.h.bf16 %v8279_v51  ;;  %5500 = vmatprep.subr.bf16.mxu0 %v6422_v62 }
 0x124   :  { %v2273_v56 = vadd.f32 %v2272_v44, %v15650_v3  ;;  %v15654_v15 = vunpack.c.h.bf16 %v8419_v27  ;;  %v15655_v44 = vunpack.c.h.bf16 %v8452_v53  ;;  %v15656_v3 = vunpack.c.h.bf16 %v8461_v36  ;;  %5501 = vmatpush1.bf16.msra.mxu0 %v6420_v38 }
 0x125   :  { %v1884_v42 = vadd.f32 %v1883_v1, %v15652_v57  ;;  %v2014_v8 = vadd.f32 %v2013_v61, %v15653_v26  ;;  %v15657_v31 = vunpack.c.h.bf16 %v8187_v10  ;;  %v15658_v1 = vunpack.c.h.bf16 %v8326_v16 }
 0x126   :  { %v2403_v58 = vadd.f32 %v2402_v59, %v15654_v15  ;;  %v2532_v17 = vadd.f32 %v15656_v3, %v15655_v44  ;;  %v15659_v61 = vunpack.c.h.bf16 %v8377_v54  ;;  %v15660_v59 = vunpack.c.h.bf16 %v8494_v5  ;;  %v15748_v5 = vld [vmem:[#allocation59_spill] sm:$0xff] }
 0x127   :  { %v1755_v4 = vadd.f32 %v1754_v25, %v15657_v31  ;;  %v2144_v57 = vadd.f32 %v2143_v12, %v15658_v1  ;;  %v15661_v44 = vunpack.c.h.bf16 %v8238_v49  ;;  %v15662_v27 = vunpack.c.h.bf16 %v8284_v18 }
 0x128   :  { %v2274_v26 = vadd.f32 %v2273_v56, %v15659_v61  ;;  %v2537_v15 = vsel %vm1717_vm0, %v15660_v59, 0.0  ;;  %v15663_v53 = vunpack.c.h.bf16 %v8424_v55  ;;  %v15664_v31 = vunpack.c.h.bf16 %v8466_v48 }
 0x129   :  { %v1885_v3 = vadd.f32 %v1884_v42, %v15661_v44  ;;  %v2015_v36 = vadd.f32 %v2014_v8, %v15662_v27  ;;  %v15665_v56 = vunpack.c.h.bf16 %v8195_v47  ;;  %v15666_v61 = vunpack.c.h.bf16 %v8335_v30 }
 0x12a   :  { %v2404_v25 = vadd.f32 %v2403_v58, %v15663_v53  ;;  %v2533_v12 = vadd.f32 %v2532_v17, %v15664_v31  ;;  %v15667_v62 = vunpack.c.h.bf16 %v8382_v39  ;;  %v15668_v42 = vunpack.c.h.bf16 %v8503_v24  ;;  %v6428_v53 = vld [vmem:[%s14297_s1 + $0x254] ss:$8 sps:$4 sm:$0xff]   ;;  %v15676_v39 = vld [vmem:[#allocation27_spill] sm:$0xff] }
 0x12b   :  { %v1756_v1 = vadd.f32 %v1755_v4, %v15665_v56  ;;  %v2145_v59 = vadd.f32 %v2144_v57, %v15666_v61  ;;  %v15669_v27 = vunpack.c.h.bf16 %v8508_v63  ;;  %v15670_v17 = vunpack.c.h.bf16 %v8243_v6  ;;  %v6426_v56 = vld [vmem:[%s14297_s1 + $0x250] ss:$8 sps:$4 sm:$0xff]   ;;  %5502 = vmatprep.subr.bf16.mxu0 %v6428_v53 }
 0x12c   :  { %v2275_v54 = vadd.f32 %v2274_v26, %v15667_v62  ;;  %v15671_v4 = vunpack.c.h.bf16 %v8293_v20  ;;  %v15672_v57 = vunpack.c.h.bf16 %v8433_v45  ;;  %v15673_v26 = vunpack.c.h.bf16 %v8475_v22  ;;  %v15674_v62 = vld [vmem:[#allocation10_spill] sm:$0xff]  ;;  %5503 = vmatpush1.bf16.msra.mxu0 %v6426_v56 }
 0x12d   :  { %v2662_v8 = vadd.f32 %v15669_v27, %v15668_v42  ;;  %v1886_v58 = vadd.f32 %v1885_v3, %v15670_v17  ;;  %v1758_v61 = vadd.f32 %v1757_v50, %v1756_v1  ;;  %v15675_v42 = vunpack.c.h.bf16 %v15674_v62  ;;  %v15678_v17 = vld [vmem:[#allocation36_spill] sm:$0xff]  ;;  %v15746_v20 = vld [vmem:[#allocation70_spill] sm:$0xff] }
 0x12e   :  { %v2016_v38 = vadd.f32 %v2015_v36, %v15671_v4  ;;  %v2405_v44 = vadd.f32 %v2404_v25, %v15672_v57  ;;  %v2534_v31 = vadd.f32 %v2533_v12, %v15673_v26  ;;  %v15677_v63 = vunpack.c.h.bf16 %v15676_v39  ;;  %v15680_v57 = vld [vmem:[#allocation12_spill] sm:$0xff]  ;;  %v15682_v26 = vld [vmem:[#allocation13_spill] sm:$0xff] }
 0x12f   :  { %v2146_v27 = vadd.f32 %v2145_v59, %v15675_v42  ;;  %v15679_v24 = vunpack.c.h.bf16 %v15678_v17  ;;  %v1888_v4 = vadd.f32 %v1887_v52, %v1886_v58  ;;  %v15681_v45 = vunpack.c.h.bf16 %v15680_v57  ;;  %v15684_v59 = vld [vmem:[#allocation14_spill] sm:$0xff]  ;;  %v15688_v58 = vld [vmem:[#allocation25_spill] sm:$0xff]  ;;  %v15742_v17 = vld [vmem:[#allocation60_spill] sm:$0xff] }
 0x130   :  { %v2276_v3 = vadd.f32 %v2275_v54, %v15677_v63  ;;  %v2018_v25 = vadd.f32 %v2017_v41, %v2016_v38  ;;  %v15683_v22 = vunpack.c.h.bf16 %v15682_v26  ;;  %v1759_v50 = vrot.slane %v1758_v61, 4  ;;  %v6434_v63 = vld [vmem:[%s14297_s1 + $0x244] ss:$8 sps:$4 sm:$0xff]   ;;  %v15686_v41 = vld [vmem:[#allocation24_spill] sm:$0xff] }
 0x131   :  { %v2663_v36 = vadd.f32 %v2662_v8, %v15679_v24  ;;  %v2406_v12 = vadd.f32 %v2405_v44, %v15681_v45  ;;  %v2148_v1 = vadd.f32 %v2147_v13, %v2146_v27  ;;  %v15685_v42 = vunpack.c.h.bf16 %v15684_v59  ;;  %5504 = vmatprep.subr.bf16.mxu0 %v6434_v63  ;;  %v15720_v26 = vld [vmem:[#allocation38_spill] sm:$0xff] }
 0x132   :  { %v2535_v55 = vadd.f32 %v2534_v31, %v15683_v22  ;;  %v2278_v62 = vadd.f32 %v2277_v35, %v2276_v3  ;;  %v1889_v54 = vrot.slane %v1888_v4, 4  ;;  %v2019_v52 = vrot.slane %v2018_v25, 4  ;;  %v6432_v22 = vld [vmem:[%s14297_s1 + $0x240] ss:$8 sps:$4 sm:$0xff]  }
 0x133   :  { %v2664_v39 = vadd.f32 %v2663_v36, %v15685_v42  ;;  %v2408_v24 = vadd.f32 %v2407_v9, %v2406_v12  ;;  %v15687_v8 = vunpack.c.h.bf16 %v15686_v41  ;;  %v1760_v53 = vadd.f32 %v1759_v50, %v1758_v61  ;;  %5505 = vmatpush1.bf16.msra.mxu0 %v6432_v22  ;;  %v6440_v61 = vld [vmem:[%s14297_s1 + $0x234] ss:$8 sps:$4 sm:$0xff]  }
 0x134   :  { %v2149_v13 = vrot.slane %v2148_v1, 4  ;;  %v2279_v35 = vrot.slane %v2278_v62, 4  ;;  %v15689_v38 = vunpack.c.h.bf16 %v15688_v58  ;;  %v1890_v31 = vadd.f32 %v1889_v54, %v1888_v4  ;;  %v6438_v4 = vld [vmem:[%s14297_s1 + $0x230] ss:$8 sps:$4 sm:$0xff]   ;;  %5506 = vmatprep.subr.bf16.mxu0 %v6440_v61 }
 0x135   :  { %v2536_v45 = vadd.f32 %v2535_v55, %v15687_v8  ;;  %v2020_v56 = vadd.f32 %v2019_v52, %v2018_v25  ;;  %v2409_v27 = vrot.slane %v2408_v24, 4  ;;  %v1761_v9 = vrot.slane %v1760_v53, 2  ;;  %v15690_v55 = vld [vmem:[#allocation20_spill] sm:$0xff] }
 0x136   :  { %v2665_v44 = vadd.f32 %v2664_v39, %v15689_v38  ;;  %v2150_v36 = vadd.f32 %v2149_v13, %v2148_v1  ;;  %v2280_v12 = vadd.f32 %v2279_v35, %v2278_v62  ;;  %v15691_v42 = vunpack.c.h.bf16 %v15690_v55  ;;  %v15692_v1 = vld [vmem:[#allocation32_spill] sm:$0xff]  ;;  %v15714_v55 = vld [vmem:[#allocation62_spill] sm:$0xff] }
 0x137   :  { %v2538_v3 = vadd.f32 %v2537_v15, %v2536_v45  ;;  %v1891_v50 = vrot.slane %v1890_v31, 2  ;;  %v2021_v41 = vrot.slane %v2020_v56, 2  ;;  %v2410_v58 = vadd.f32 %v2409_v27, %v2408_v24  ;;  %5507 = vmatpush1.bf16.msra.mxu0 %v6438_v4 }
 0x138   :  { %v2666_v8 = vadd.f32 %v2665_v44, %v15691_v42  ;;  %v1762_v15 = vadd.f32 %v1761_v9, %v1760_v53  ;;  %v2151_v25 = vrot.slane %v2150_v36, 2  ;;  %v2281_v63 = vrot.slane %v2280_v12, 2  ;;  %v6446_v53 = vld [vmem:[%s14297_s1 + $0x224] ss:$8 sps:$4 sm:$0xff]  }
 0x139   :  { %v2539_v39 = vrot.slane %v2538_v3, 4  ;;  %v15693_v62 = vunpack.c.h.bf16 %v15692_v1  ;;  %v1892_v52 = vadd.f32 %v1891_v50, %v1890_v31  ;;  %v2022_v45 = vadd.f32 %v2021_v41, %v2020_v56  ;;  %v6444_v31 = vld [vmem:[%s14297_s1 + $0x220] ss:$8 sps:$4 sm:$0xff]   ;;  %5508 = vmatprep.subr.bf16.mxu0 %v6446_v53 }
 0x13a   :  { %v2411_v22 = vrot.slane %v2410_v58, 2  ;;  %v1763_v35 = vrot.slane %v1762_v15, 1  ;;  %v2152_v24 = vadd.f32 %v2151_v25, %v2150_v36  ;;  %v2282_v38 = vadd.f32 %v2281_v63, %v2280_v12  ;;  %v15694_v25 = vld [vmem:[#allocation37_spill] sm:$0xff]  ;;  %v15702_v53 = vld [vmem:[#allocation43_spill] sm:$0xff] }
 0x13b   :  { %v2667_v54 = vsel %vm1717_vm0, %v15693_v62, 0.0  ;;  %v2540_v13 = vadd.f32 %v2539_v39, %v2538_v3  ;;  %v1893_v27 = vrot.slane %v1892_v52, 1  ;;  %v2023_v9 = vrot.slane %v2022_v45, 1  ;;  %5509 = vmatpush1.bf16.msra.mxu0 %v6444_v31 }
 0x13c   :  { %v2668_v44 = vadd.f32 %v2667_v54, %v2666_v8  ;;  %v2412_v42 = vadd.f32 %v2411_v22, %v2410_v58  ;;  %v9106_v41 = vadd.f32 %v1763_v35, %v1762_v15  ;;  %v2153_v56 = vrot.slane %v2152_v24, 1  ;;  %v15696_v15 = vld [vmem:[#allocation26_spill] sm:$0xff]  ;;  %v15698_v35 = vld [vmem:[#allocation41_spill] sm:$0xff] }
 0x13d   :  { %v2541_v1 = vrot.slane %v2540_v13, 2  ;;  %v2283_v3 = vrot.slane %v2282_v38, 1  ;;  %v9108_v36 = vadd.f32 %v1893_v27, %v1892_v52  ;;  %v9110_v12 = vadd.f32 %v2023_v9, %v2022_v45  ;;  %v6452_v52 = vld [vmem:[%s14297_s1 + $0x214] ss:$8 sps:$4 sm:$0xff]   ;;  %v6450_v9 = vld [vmem:[%s14297_s1 + $0x210] ss:$8 sps:$4 sm:$0xff]  }
 0x13e   :  { %v2669_v61 = vrot.slane %v2668_v44, 4  ;;  %v2413_v8 = vrot.slane %v2412_v42, 1  ;;  %v9112_v39 = vadd.f32 %v2153_v56, %v2152_v24  ;;  %v15695_v63 = vunpack.c.h.bf16 %v15694_v25  ;;  %v15700_v24 = vld [vmem:[#allocation42_spill] sm:$0xff]  ;;  %v15704_v56 = vld [vmem:[#allocation33_spill] sm:$0xff]  ;;  %5510 = vmatprep.subr.bf16.mxu0 %v6452_v52  ;;  %v15722_v52 = vld [vmem:[#allocation56_spill] sm:$0xff] }
 0x13f   :  { %v2542_v50 = vadd.f32 %v2541_v1, %v2540_v13  ;;  %v9114_v58 = vadd.f32 %v2283_v3, %v2282_v38  ;;  %v15697_v62 = vunpack.c.h.bf16 %v15696_v15  ;;  %v15699_v1 = vunpack.c.h.bf16 %v15698_v35  ;;  %5511 = vmatpush1.bf16.msra.mxu0 %v6450_v9 }
 0x140   :  { %v2670_v4 = vadd.f32 %v2669_v61, %v2668_v44  ;;  %v9123_v22 = vadd.f32 %v2413_v8, %v2412_v42  ;;  %v15701_v38 = vunpack.c.h.bf16 %v15700_v24  ;;  %v15703_v44 = vunpack.c.h.bf16 %v15702_v53  ;;  %v15706_v42 = vld [vmem:[#allocation45_spill] sm:$0xff] }
 0x141   :  { %v2792_v54 = vadd.f32 %v15697_v62, %v15695_v63  ;;  %v2543_v45 = vrot.slane %v2542_v50, 1  ;;  %v2797_v13 = vsel %vm1717_vm0, %v15699_v1, 0.0  ;;  %v15705_v3 = vunpack.c.h.bf16 %v15704_v56  ;;  %v15708_v62 = vld [vmem:[#allocation51_spill] sm:$0xff] }
 0x142   :  { %v2922_v27 = vadd.f32 %v15703_v44, %v15701_v38  ;;  %v2671_v31 = vrot.slane %v2670_v4, 2  ;;  %v15707_v8 = vunpack.c.h.bf16 %v15706_v42  ;;  %v15709_v35 = vunpack.c.h.bf16 %v15708_v62  ;;  %v15710_v1 = vld [vmem:[#allocation55_spill] sm:$0xff]  ;;  %v15712_v38 = vld [vmem:[#allocation48_spill] sm:$0xff] }
 0x143   :  { %v2793_v61 = vadd.f32 %v2792_v54, %v15705_v3  ;;  %v15711_v15 = vunpack.c.h.bf16 %v15710_v1  ;;  %v9144_v53 = vadd.f32 %v2543_v45, %v2542_v50  ;;  %v15713_v44 = vunpack.c.h.bf16 %v15712_v38  ;;  %v15716_v54 = vld [vmem:[#allocation63_spill] sm:$0xff]  ;;  %v15718_v42 = vld [vmem:[#allocation64_spill] sm:$0xff] }
 0x144   :  { %v2927_v63 = vsel %vm1717_vm0, %v15707_v8, 0.0  ;;  %v15715_v59 = vunpack.c.h.bf16 %v15714_v55  ;;  %v15717_v3 = vunpack.c.h.bf16 %v15716_v54  ;;  %v15719_v57 = vunpack.c.h.bf16 %v15718_v42 }
 0x145   :  { %v3052_v24 = vadd.f32 %v15711_v15, %v15709_v35  ;;  %v2923_v25 = vadd.f32 %v2922_v27, %v15713_v44  ;;  %v2672_v62 = vadd.f32 %v2671_v31, %v2670_v4  ;;  %v15721_v1 = vunpack.c.h.bf16 %v15720_v26  ;;  %v15724_v35 = vld [vmem:[#allocation53_spill] sm:$0xff]  ;;  %v15726_v44 = vld [vmem:[#allocation44_spill] sm:$0xff]  ;;  %v15736_v26 = vld [vmem:[#allocation39_spill] sm:$0xff] }
 0x146   :  { %v3057_v56 = vsel %vm1717_vm0, %v15715_v59, 0.0  ;;  %v3182_v8 = vadd.f32 %v15719_v57, %v15717_v3  ;;  %v15723_v50 = vunpack.c.h.bf16 %v15722_v52  ;;  %v15725_v38 = vunpack.c.h.bf16 %v15724_v35  ;;  %v6458_v59 = vld [vmem:[%s14297_s1 + $0x204] ss:$8 sps:$4 sm:$0xff]   ;;  %v15730_v31 = vld [vmem:[#allocation65_spill] sm:$0xff] }
 0x147   :  { %v2794_v15 = vadd.f32 %v2793_v61, %v15721_v1  ;;  %v15727_v54 = vunpack.c.h.bf16 %v15726_v44  ;;  %v15728_v57 = vld [vmem:[#allocation58_spill] sm:$0xff]  ;;  %v15731_v3 = vunpack.c.h.bf16 %v15730_v31  ;;  %v15732_v61 = vld [vmem:[#allocation69_spill] sm:$0xff]  ;;  %v2673_v52 = vrot.slane %v2672_v62, 1  ;;  %5512 = vmatprep.subr.bf16.mxu0 %v6458_v59 }
 0x148   :  { %v3053_v45 = vadd.f32 %v3052_v24, %v15723_v50  ;;  %v3187_v27 = vsel %vm1717_vm0, %v15725_v38, 0.0  ;;  %v15729_v9 = vunpack.c.h.bf16 %v15728_v57  ;;  %v15733_v1 = vunpack.c.h.bf16 %v15732_v61  ;;  %v15734_v24 = vld [vmem:[#allocation78_spill] sm:$0xff] }
 0x149   :  { %v2924_v42 = vadd.f32 %v2923_v25, %v15727_v54  ;;  %v15735_v50 = vunpack.c.h.bf16 %v15734_v24  ;;  %v6456_v38 = vld [vmem:[%s14297_s1 + $0x200] ss:$8 sps:$4 sm:$0xff]   ;;  %v15737_v44 = vunpack.c.h.bf16 %v15736_v26  ;;  %v15738_v54 = vld [vmem:[#allocation57_spill] sm:$0xff]  ;;  %v15743_v61 = vunpack.c.h.bf16 %v15742_v17  ;;  %v15750_v26 = vld [vmem:[#allocation84_spill] sm:$0xff] }
 0x14a   :  { %v3183_v4 = vadd.f32 %v3182_v8, %v15729_v9  ;;  %v3312_v55 = vadd.f32 %v15733_v1, %v15731_v3  ;;  %v15739_v57 = vunpack.c.h.bf16 %v15738_v54  ;;  %v15740_v9 = vld [vmem:[#allocation66_spill] sm:$0xff]  ;;  %v15744_v1 = vld [vmem:[#allocation49_spill] sm:$0xff]  ;;  %v15747_v48 = vunpack.c.h.bf16 %v15746_v20  ;;  %5513 = vmatpush1.bf16.msra.mxu0 %v6456_v38 }
 0x14b   :  { %v3317_v35 = vsel %vm1717_vm0, %v15735_v50, 0.0  ;;  %v2795_v25 = vadd.f32 %v2794_v15, %v15737_v44  ;;  %v15741_v31 = vunpack.c.h.bf16 %v15740_v9  ;;  %v15745_v24 = vunpack.c.h.bf16 %v15744_v1  ;;  %v15754_v59 = vld [vmem:[#allocation46_spill] sm:$0xff]  ;;  %v15777_v1 = vld [vmem:[#allocation80_spill] sm:$0xff] }
 0x14c   :  { %v3054_v8 = vadd.f32 %v3053_v45, %v15739_v57  ;;  %v3184_v30 = vadd.f32 %v3183_v4, %v15747_v48  ;;  %v15749_v18 = vunpack.c.h.bf16 %v15748_v5  ;;  %v15751_v15 = vunpack.c.h.bf16 %v15750_v26  ;;  %v15752_v57 = vld [vmem:[#allocation40_spill] sm:$0xff] }
 0x14d   :  { %v3442_v3 = vadd.f32 %v15743_v61, %v15741_v31  ;;  %v2925_v50 = vadd.f32 %v2924_v42, %v15745_v24  ;;  %v9196_v45 = vadd.f32 %v2673_v52, %v2672_v62  ;;  %v15753_v17 = vunpack.c.h.bf16 %v15752_v57  ;;  %v15756_v42 = vld [vmem:[#allocation73_spill] sm:$0xff]  ;;  %v15762_v52 = vld [vmem:[#allocation72_spill] sm:$0xff] }
 0x14e   :  { %v3313_v16 = vadd.f32 %v3312_v55, %v15749_v18  ;;  %v3447_v44 = vsel %vm1717_vm0, %v15751_v15, 0.0  ;;  %v15755_v61 = vunpack.c.h.bf16 %v15754_v59  ;;  %v15757_v24 = vunpack.c.h.bf16 %v15756_v42  ;;  %v6464_v48 = vld [vmem:[%s14297_s1 + $0x2f4] ss:$8 sps:$4 sm:$0xff]   ;;  %v15758_v18 = vld [vmem:[#allocation50_spill] sm:$0xff]  ;;  %v15760_v15 = vld [vmem:[#allocation71_spill] sm:$0xff] }
 0x14f   :  { %v2796_v31 = vadd.f32 %v2795_v25, %v15753_v17  ;;  %v15759_v55 = vunpack.c.h.bf16 %v15758_v18  ;;  %v15761_v38 = vunpack.c.h.bf16 %v15760_v15  ;;  %v15763_v26 = vunpack.c.h.bf16 %v15762_v52  ;;  %v15764_v17 = vld [vmem:[#allocation85_spill] sm:$0xff]  ;;  %v15766_v59 = vld [vmem:[#allocation74_spill] sm:$0xff]  ;;  %v15768_v42 = vld [vmem:[#allocation52_spill] sm:$0xff]  ;;  %5514 = vmatprep.subr.bf16.mxu0 %v6464_v48 }
 0x150   :  { %v3055_v9 = vadd.f32 %v3054_v8, %v15755_v61  ;;  %v3443_v20 = vadd.f32 %v3442_v3, %v15757_v24  ;;  %v15765_v25 = vunpack.c.h.bf16 %v15764_v17  ;;  %v15767_v8 = vunpack.c.h.bf16 %v15766_v59  ;;  %v6462_v3 = vld [vmem:[%s14297_s1 + $0x2f0] ss:$8 sps:$4 sm:$0xff]  }
 0x151   :  { %v2926_v4 = vadd.f32 %v2925_v50, %v15759_v55  ;;  %v3185_v62 = vadd.f32 %v3184_v30, %v15761_v38  ;;  %v3314_v5 = vadd.f32 %v3313_v16, %v15763_v26  ;;  %v2798_v24 = vadd.f32 %v2797_v13, %v2796_v31  ;;  %v15770_v50 = vld [vmem:[#allocation79_spill] sm:$0xff]  ;;  %5515 = vmatpush2.bf16.msra.mxu0 %v6462_v3  ;;  %v15786_v3 = vld [vmem:[#allocation90_spill] sm:$0xff] }
 0x152   :  { %v3572_v61 = vadd.f32 %v15767_v8, %v15765_v25  ;;  %v15769_v54 = vunpack.c.h.bf16 %v15768_v42  ;;  %v15771_v55 = vunpack.c.h.bf16 %v15770_v50  ;;  %v15772_v30 = vunpack.c.h.bf16 %v8886_v19  ;;  %v15773_v38 = vld [vmem:[#allocation47_spill] sm:$0xff]  ;;  %v15775_v8 = vld [vmem:[#allocation76_spill] sm:$0xff] }
 0x153   :  { %v2928_v26 = vadd.f32 %v2927_v63, %v2926_v4  ;;  %v15774_v59 = vunpack.c.h.bf16 %v15773_v38  ;;  %v15776_v17 = vunpack.c.h.bf16 %v15775_v8  ;;  %v15778_v13 = vunpack.c.h.bf16 %v15777_v1  ;;  %v15779_v50 = vld [vmem:[#allocation83_spill] sm:$0xff] }
 0x154   :  { %v3056_v18 = vadd.f32 %v3055_v9, %v15769_v54  ;;  %v3444_v15 = vadd.f32 %v3443_v20, %v15771_v55  ;;  %v3577_v16 = vsel %vm1717_vm0, %v15772_v30, 0.0  ;;  %v2799_v54 = vrot.slane %v2798_v24, 4  ;;  %v15782_v30 = vld [vmem:[#allocation92_spill] sm:$0xff] }
 0x155   :  { %v3186_v25 = vadd.f32 %v3185_v62, %v15774_v59  ;;  %v3315_v52 = vadd.f32 %v3314_v5, %v15776_v17  ;;  %v3573_v31 = vadd.f32 %v3572_v61, %v15778_v13  ;;  %v15780_v20 = vunpack.c.h.bf16 %v15779_v50  ;;  %v6470_v59 = vld [vmem:[%s14297_s1 + $0x2e4] ss:$8 sps:$4 sm:$0xff]   ;;  %v15784_v62 = vld [vmem:[#allocation77_spill] sm:$0xff] }
 0x156   :  { %v3058_v9 = vadd.f32 %v3057_v56, %v3056_v18  ;;  %v15781_v19 = vunpack.c.h.bf16 %v8895_v0  ;;  %v15783_v48 = vunpack.c.h.bf16 %v15782_v30  ;;  %v2929_v4 = vrot.slane %v2928_v26, 4  ;;  %v6468_v18 = vld [vmem:[%s14297_s1 + $0x2e0] ss:$8 sps:$4 sm:$0xff]   ;;  %5516 = vmatprep.subr.bf16.mxu0 %v6470_v59 }
 0x157   :  { %v3445_v55 = vadd.f32 %v3444_v15, %v15780_v20  ;;  %v3188_v5 = vadd.f32 %v3187_v27, %v3186_v25  ;;  %v15785_v17 = vunpack.c.h.bf16 %v15784_v62  ;;  %v15787_v13 = vunpack.c.h.bf16 %v15786_v3  ;;  %v15788_v50 = vld [vmem:[#allocation67_spill] sm:$0xff]  ;;  %5517 = vmatpush2.bf16.msra.mxu0 %v6468_v18 }
 0x158   :  { %v3702_v63 = vadd.f32 %v15783_v48, %v15781_v19  ;;  %v2800_v15 = vadd.f32 %v2799_v54, %v2798_v24  ;;  %v3059_v20 = vrot.slane %v3058_v9, 4  ;;  %v15789_v19 = vunpack.c.h.bf16 %v15788_v50 }
 0x159   :  { %v3316_v61 = vadd.f32 %v3315_v52, %v15785_v17  ;;  %v3574_v56 = vadd.f32 %v3573_v31, %v15787_v13  ;;  %v15790_v30 = vunpack.c.h.bf16 %v8909_v2  ;;  %v2930_v27 = vadd.f32 %v2929_v4, %v2928_v26  ;;  %v15791_v52 = vld [vmem:[#allocation86_spill] sm:$0xff]  ;;  %v15794_v26 = vld [vmem:[#allocation75_spill] sm:$0xff]  ;;  %v6474_v4 = vld [vmem:[%s14297_s1 + $0x2d0] ss:$8 sps:$4 sm:$0xff]  }
 0x15a   :  { %v3446_v48 = vadd.f32 %v3445_v55, %v15789_v19  ;;  %v3189_v25 = vrot.slane %v3188_v5, 4  ;;  %v15792_v17 = vunpack.c.h.bf16 %v15791_v52  ;;  %v2801_v31 = vrot.slane %v2800_v15, 2  ;;  %v6476_v55 = vld [vmem:[%s14297_s1 + $0x2d4] ss:$8 sps:$4 sm:$0xff]  }
 0x15b   :  { %v3703_v0 = vadd.f32 %v3702_v63, %v15790_v30  ;;  %v3318_v62 = vadd.f32 %v3317_v35, %v3316_v61  ;;  %v3060_v13 = vadd.f32 %v3059_v20, %v3058_v9  ;;  %v15793_v24 = vunpack.c.h.bf16 %v8914_v43  ;;  %5518 = vmatprep.subr.bf16.mxu0 %v6476_v55 }
 0x15c   :  { %v3575_v3 = vadd.f32 %v3574_v56, %v15792_v17  ;;  %v3448_v1 = vadd.f32 %v3447_v44, %v3446_v48  ;;  %v2931_v19 = vrot.slane %v2930_v27, 2  ;;  %v3190_v30 = vadd.f32 %v3189_v25, %v3188_v5  ;;  %5519 = vmatpush2.bf16.msra.mxu0 %v6474_v4 }
 0x15d   :  { %v3704_v54 = vadd.f32 %v3703_v0, %v15793_v24  ;;  %v3319_v63 = vrot.slane %v3318_v62, 4  ;;  %v15795_v59 = vunpack.c.h.bf16 %v15794_v26  ;;  %v2802_v61 = vadd.f32 %v2801_v31, %v2800_v15  ;;  %v6482_v15 = vld [vmem:[%s14297_s1 + $0x2c4] ss:$8 sps:$4 sm:$0xff]  }
 0x15e   :  { %v3061_v9 = vrot.slane %v3060_v13, 2  ;;  %v3449_v44 = vrot.slane %v3448_v1, 4  ;;  %v15796_v56 = vunpack.c.h.bf16 %v8923_v11  ;;  %v2932_v18 = vadd.f32 %v2931_v19, %v2930_v27  ;;  %5520 = vmatprep.subr.bf16.mxu0 %v6482_v15 }
 0x15f   :  { %v3576_v35 = vadd.f32 %v3575_v3, %v15795_v59  ;;  %v3191_v20 = vrot.slane %v3190_v30, 2  ;;  %v3320_v48 = vadd.f32 %v3319_v63, %v3318_v62  ;;  %v2803_v5 = vrot.slane %v2802_v61, 1  ;;  %v6480_v62 = vld [vmem:[%s14297_s1 + $0x2c0] ss:$8 sps:$4 sm:$0xff]  }
 0x160   :  { %v3705_v0 = vadd.f32 %v3704_v54, %v15796_v56  ;;  %v3062_v25 = vadd.f32 %v3061_v9, %v3060_v13  ;;  %v3450_v24 = vadd.f32 %v3449_v44, %v3448_v1  ;;  %v15797_v3 = vunpack.c.h.bf16 %v8928_v21  ;;  %v15798_v13 = vld [vmem:[#allocation93_spill] sm:$0xff]  ;;  %5521 = vmatpush2.bf16.msra.mxu0 %v6480_v62 }
 0x161   :  { %v3578_v17 = vadd.f32 %v3577_v16, %v3576_v35  ;;  %v2933_v31 = vrot.slane %v2932_v18, 1  ;;  %v3192_v26 = vadd.f32 %v3191_v20, %v3190_v30  ;;  %v3321_v11 = vrot.slane %v3320_v48, 2 }
 0x162   :  { %v3706_v59 = vadd.f32 %v3705_v0, %v15797_v3  ;;  %v2804_v16 = vadd.f32 %v2803_v5, %v2802_v61  ;;  %v3063_v27 = vrot.slane %v3062_v25, 1  ;;  %v3451_v55 = vrot.slane %v3450_v24, 2  ;;  %v6488_v61 = vld [vmem:[%s14297_s1 + $0x2b4] ss:$8 sps:$4 sm:$0xff]  }
 0x163   :  { %v3579_v54 = vrot.slane %v3578_v17, 4  ;;  %v15799_v1 = vunpack.c.h.bf16 %v15798_v13  ;;  %v2934_v63 = vadd.f32 %v2933_v31, %v2932_v18  ;;  %v3193_v35 = vrot.slane %v3192_v26, 1  ;;  %5522 = vmatprep.subr.bf16.mxu0 %v6488_v61 }
 0x164   :  { %v3322_v4 = vadd.f32 %v3321_v11, %v3320_v48  ;;  %v3064_v30 = vadd.f32 %v3063_v27, %v3062_v25  ;;  %v3452_v44 = vadd.f32 %v3451_v55, %v3450_v24  ;;  %v3796_v0 = vpack.c.bf16 %v9106_v41, %v9106_v41  ;;  %v6486_v11 = vld [vmem:[%s14297_s1 + $0x2b0] ss:$8 sps:$4 sm:$0xff]  }
 0x165   :  { %v3707_v19 = vsel %vm1717_vm0, %v15799_v1, 0.0  ;;  %v3580_v9 = vadd.f32 %v3579_v54, %v3578_v17  ;;  %v3194_v20 = vadd.f32 %v3193_v35, %v3192_v26  ;;  %v3806_v18 = vpack.c.bf16 %v9108_v36, %v9108_v36  ;;  %5523 = vmatpush2.bf16.msra.mxu0 %v6486_v11 }
 0x166   :  { %v3708_v56 = vadd.f32 %v3707_v19, %v3706_v59  ;;  %v3323_v5 = vrot.slane %v3322_v4, 1  ;;  %v3453_v48 = vrot.slane %v3452_v44, 1  ;;  %v3816_v25 = vpack.c.bf16 %v9110_v12, %v9110_v12 }
 0x167   :  { %v3581_v3 = vrot.slane %v3580_v9, 2  ;;  %v3826_v41 = vpack.c.bf16 %v9112_v39, %v9112_v39  ;;  %v3836_v59 = vpack.c.bf16 %v9114_v58, %v9114_v58  ;;  %v3846_v36 = vpack.c.bf16 %v9123_v22, %v9123_v22  ;;  %v6494_v39 = vld [vmem:[%s14297_s1 + $0x2a4] ss:$8 sps:$4 sm:$0xff]   ;;  %v6492_v22 = vld [vmem:[%s14297_s1 + $0x2a0] ss:$8 sps:$4 sm:$0xff]  }
 0x168   :  { %v3709_v17 = vrot.slane %v3708_v56, 4  ;;  %v3324_v24 = vadd.f32 %v3323_v5, %v3322_v4  ;;  %v3454_v15 = vadd.f32 %v3453_v48, %v3452_v44  ;;  %v3856_v54 = vpack.c.bf16 %v9144_v53, %v9144_v53  ;;  %5524 = vmatprep.subr.bf16.mxu0 %v6494_v39  ;;  %v6498_v48 = vld [vmem:[%s14297_s1 + $0x290] ss:$8 sps:$4 sm:$0xff]  }
 0x169   :  { %v3582_v26 = vadd.f32 %v3581_v3, %v3580_v9  ;;  %v3866_v12 = vpack.c.bf16 %v9196_v45, %v9196_v45  ;;  %v3876_v27 = vpack.c.bf16 %v2804_v16, %v2804_v16  ;;  %v3886_v55 = vpack.c.bf16 %v2934_v63, %v2934_v63  ;;  %5525 = vmatpush2.bf16.msra.mxu0 %v6492_v22  ;;  %v6500_v63 = vld [vmem:[%s14297_s1 + $0x294] ss:$8 sps:$4 sm:$0xff]  }
 0x16a   :  { %v3710_v31 = vadd.f32 %v3709_v17, %v3708_v56  ;;  %v3896_v58 = vpack.c.bf16 %v3064_v30, %v3064_v30  ;;  %v3906_v19 = vpack.c.bf16 %v3194_v20, %v3194_v20  ;;  %v3916_v35 = vpack.c.bf16 %v3324_v24, %v3324_v24  ;;  %5526 = vmatprep.subr.bf16.mxu0 %v6500_v63  ;;  %v15803_v22 = vld [vmem:[#allocation61_spill] sm:$0xff] }
 0x16b   :  { %v3583_v62 = vrot.slane %v3582_v26, 1  ;;  %v3926_v4 = vpack.c.bf16 %v3454_v15, %v3454_v15  ;;  %v4288_v9 = vunpack.c.l.b16 %v3796_v0  ;;  %v4298_v45 = vunpack.c.l.b16 %v3806_v18 }
 0x16c   :  { %v3711_v1 = vrot.slane %v3710_v31, 2  ;;  %v4308_v44 = vunpack.c.l.b16 %v3816_v25  ;;  %v4318_v61 = vunpack.c.l.b16 %v3826_v41  ;;  %v4328_v5 = vunpack.c.l.b16 %v3836_v59 }
 0x16d   :  { %v3584_v53 = vadd.f32 %v3583_v62, %v3582_v26  ;;  %v4338_v16 = vunpack.c.l.b16 %v3846_v36  ;;  %v4348_v3 = vunpack.c.l.b16 %v3856_v54  ;;  %v4358_v11 = vunpack.c.l.b16 %v3866_v12  ;;  %5527 = vmatpush2.bf16.msra.mxu0 %v6498_v48  ;;  %v15800_v54 = vld [vmem:[#allocation54_spill] sm:$0xff] }
 0x16e   :  { %v3712_v56 = vadd.f32 %v3711_v1, %v3710_v31  ;;  %v4368_v20 = vunpack.c.l.b16 %v3876_v27  ;;  %v4378_v18 = vunpack.c.l.b16 %v3886_v55  ;;  %v4388_v17 = vunpack.c.l.b16 %v3896_v58  ;;  %v6506_v27 = vld [vmem:[%s14297_s1 + $0x284] ss:$8 sps:$4 sm:$0xff]  }
 0x16f   :  { %v3936_v30 = vpack.c.bf16 %v3584_v53, %v3584_v53  ;;  %v4398_v25 = vunpack.c.l.b16 %v3906_v19  ;;  %v4408_v41 = vunpack.c.l.b16 %v3916_v35  ;;  %v4418_v24 = vunpack.c.l.b16 %v3926_v4  ;;  %v15805_v35 = vld [vmem:[#allocation68_spill] sm:$0xff]  ;;  %5528 = vmatprep.subr.bf16.mxu0 %v6506_v27  ;;  %v15818_v27 = vld [vmem:[#allocation3_spill] sm:$0xff] }
 0x170   :  { %v3713_v0 = vrot.slane %v3712_v56, 1  ;;  %v4473_v59 = vsel %vm4445_vm1, %v4298_v45, %v4288_v9  ;;  %v4543_v31 = vsel %vm4445_vm1, %v4378_v18, %v4368_v20  ;;  %v15801_v12 = vunpack.c.l.bf16 %v15800_v54 }
 0x171   :  { %v4428_v26 = vunpack.c.l.b16 %v3936_v30  ;;  %v4474_v15 = vsel %vm4447_vm2, %v4308_v44, %v4473_v59  ;;  %v15802_v39 = vunpack.c.l.bf16 %v8161_v33  ;;  %v4544_v58 = vsel %vm4447_vm2, %v4388_v17, %v4543_v31  ;;  %v6504_v33 = vld [vmem:[%s14297_s1 + $0x280] ss:$8 sps:$4 sm:$0xff]   ;;  %v15814_v31 = vld [vmem:[#allocation88_spill] sm:$0xff] }
 0x172   :  { %v3714_v36 = vadd.f32 %v3713_v0, %v3712_v56  ;;  %v4475_v55 = vsel %vm4449_vm3, %v4318_v61, %v4474_v15  ;;  %v15804_v1 = vunpack.c.l.bf16 %v15803_v22  ;;  %v15806_v4 = vunpack.c.l.bf16 %v15805_v35  ;;  %v15810_v0 = vld [vmem:[#allocation87_spill] sm:$0xff]  ;;  %5529 = vmatpush2.bf16.msra.mxu0 %v6504_v33 }
 0x173   :  { %v1739_v62 = vadd.f32 %v15802_v39, %v15801_v12  ;;  %v15807_v53 = vunpack.c.l.bf16 %v8214_v34  ;;  %v4476_v44 = vsel %vm4451_vm4, %v4328_v5, %v4475_v55  ;;  %v4545_v56 = vsel %vm4449_vm3, %v4398_v25, %v4544_v58 }
 0x174   :  { %v1744_v19 = vsel %vm1717_vm0, %v15804_v1, 0.0  ;;  %v3946_v45 = vpack.c.bf16 %v3714_v36, %v3714_v36  ;;  %v15808_v61 = vunpack.c.l.bf16 %v8170_v28  ;;  %v4477_v30 = vsel %vm4453_vm5, %v4338_v16, %v4476_v44 }
 0x175   :  { %v1869_v9 = vadd.f32 %v15807_v53, %v15806_v4  ;;  %v4546_v20 = vsel %vm4451_vm4, %v4408_v41, %v4545_v56  ;;  %v15809_v34 = vunpack.c.l.bf16 %v8226_v37  ;;  %v15811_v18 = vunpack.c.l.bf16 %v15810_v0 }
 0x176   :  { %v1740_v63 = vadd.f32 %v1739_v62, %v15808_v61  ;;  %v4438_v59 = vunpack.c.l.b16 %v3946_v45  ;;  %v4478_v5 = vsel %vm4455_vm6, %v4348_v3, %v4477_v30  ;;  %v4547_v25 = vsel %vm4453_vm5, %v4418_v24, %v4546_v20  ;;  %v15832_v20 = vld [vmem:[#allocation16_spill] sm:$0xff] }
 0x177   :  { %v1870_v48 = vadd.f32 %v1869_v9, %v15809_v34  ;;  %v1874_v17 = vsel %vm1717_vm0, %v15811_v18, 0.0  ;;  %v15812_v28 = vunpack.c.l.bf16 %v8178_v46  ;;  %v4479_v16 = vsel %vm4457_vm7, %v4358_v11, %v4478_v5  ;;  %v15820_v11 = vld [vmem:[#allocation4_spill] sm:$0xff]  ;;  %v15826_v9 = vld [vmem:[#allocation11_spill] sm:$0xff] }
 0x178   :  { %v4548_v41 = vsel %vm4455_vm6, %v4428_v26, %v4547_v25  ;;  %v15813_v37 = vunpack.c.l.bf16 %v8231_v23  ;;  %v15815_v54 = vunpack.c.l.bf16 %v15814_v31  ;;  %v15816_v12 = vunpack.c.l.bf16 %v8265_v32  ;;  %v15822_v26 = vld [vmem:[#allocation5_spill] sm:$0xff] }
 0x179   :  { %v1741_v36 = vadd.f32 %v1740_v63, %v15812_v28  ;;  %v4549_v62 = vsel %vm4457_vm7, %v4438_v59, %v4548_v41  ;;  %v15817_v3 = vunpack.c.l.bf16 %v8187_v10  ;;  %v15819_v46 = vunpack.c.l.bf16 %v15818_v27  ;;  %v15830_v63 = vld [vmem:[#allocation15_spill] sm:$0xff]  ;;  %v15843_v31 = vld [vmem:[#allocation17_spill] sm:$0xff] }
 0x17a   :  { %v1871_v15 = vadd.f32 %v1870_v48, %v15813_v37  ;;  %v1999_v39 = vadd.f32 %v15816_v12, %v15815_v54  ;;  %v15821_v58 = vunpack.c.l.bf16 %v15820_v11  ;;  %v15823_v22 = vunpack.c.l.bf16 %v15822_v26  ;;  %v15839_v28 = vld [vmem:[#allocation23_spill] sm:$0xff]  ;;  %v15845_v12 = vld [vmem:[#allocation18_spill] sm:$0xff] }
 0x17b   :  { %v1742_v24 = vadd.f32 %v1741_v36, %v15817_v3  ;;  %v2004_v55 = vsel %vm1717_vm0, %v15819_v46, 0.0  ;;  %v4595_v1 = vpack.c.b16 %v4549_v62, %v4479_v16  ;;  %v15824_v35 = vunpack.c.l.bf16 %v8238_v49  ;;  %v15851_v46 = vld [vmem:[#allocation28_spill] sm:$0xff]  ;;  %v15853_v26 = vld [vmem:[#allocation19_spill] sm:$0xff] }
 0x17c   :  { %v2129_v23 = vadd.f32 %v15823_v22, %v15821_v58  ;;  %v15825_v32 = vunpack.c.l.bf16 %v8270_v7  ;;  %v15827_v33 = vunpack.c.l.bf16 %v15826_v9  ;;  %v15828_v45 = vunpack.c.l.bf16 %v8195_v47 }
 0x17d   :  { %v1872_v4 = vadd.f32 %v1871_v15, %v15824_v35  ;;  %v15829_v56 = vunpack.c.l.bf16 %v8321_v40  ;;  %v15831_v30 = vunpack.c.l.bf16 %v15830_v63  ;;  %v15833_v34 = vunpack.c.l.bf16 %v15832_v20  ;;  %5487 = vmatprep.mubr.bf16.mxu1 %v4595_v1  ;;  %v15855_v1 = vld [vmem:[#allocation7_spill] sm:$0xff] }
 0x17e   :  { %v2000_v53 = vadd.f32 %v1999_v39, %v15825_v32  ;;  %v2134_v10 = vsel %vm1717_vm0, %v15827_v33, 0.0  ;;  %v1743_v44 = vadd.f32 %v1742_v24, %v15828_v45  ;;  %v15834_v49 = vunpack.c.l.bf16 %v8396_v14  ;;  %v15841_v14 = vld [vmem:[#allocation6_spill] sm:$0xff]  ;;  %v15849_v24 = vld [vmem:[#allocation95_spill] sm:$0xff]  ;;  %v15857_v32 = vld [vmem:[#allocation21_spill] sm:$0xff] }
 0x17f   :  { %v2130_v61 = vadd.f32 %v2129_v23, %v15829_v56  ;;  %v2259_v48 = vadd.f32 %v15833_v34, %v15831_v30  ;;  %v15835_v0 = vunpack.c.l.bf16 %v8243_v6  ;;  %v15836_v59 = vunpack.c.l.bf16 %v8279_v51  ;;  %v15847_v51 = vld [vmem:[#allocation30_spill] sm:$0xff]  ;;  %v15863_v30 = vld [vmem:[#allocation29_spill] sm:$0xff] }
 0x180   :  { %v2264_v7 = vsel %vm1717_vm0, %v15834_v49, 0.0  ;;  %v15837_v5 = vunpack.c.l.bf16 %v8405_v60  ;;  %v15838_v40 = vunpack.c.l.bf16 %v8410_v29  ;;  %v15840_v36 = vunpack.c.l.bf16 %v15839_v28  ;;  %v15859_v33 = vld [vmem:[#allocation34_spill] sm:$0xff] }
 0x181   :  { %v1873_v18 = vadd.f32 %v1872_v4, %v15835_v0  ;;  %v2001_v47 = vadd.f32 %v2000_v53, %v15836_v59  ;;  %v1745_v41 = vadd.f32 %v1744_v19, %v1743_v44  ;;  %v15842_v37 = vunpack.c.l.bf16 %v15841_v14  ;;  %v15861_v56 = vld [vmem:[#allocation2_spill] sm:$0xff]  ;;  %v15867_v0 = vld [vmem:[#allocation35_spill] sm:$0xff] }
 0x182   :  { %v2389_v25 = vadd.f32 %v15838_v40, %v15837_v5  ;;  %v2394_v16 = vsel %vm1717_vm0, %v15840_v36, 0.0  ;;  %v15844_v54 = vunpack.c.l.bf16 %v15843_v31  ;;  %v15846_v39 = vunpack.c.l.bf16 %v15845_v12  ;;  %v15869_v5 = vld [vmem:[#allocation10_spill] sm:$0xff]  ;;  %v15875_v12 = vld [vmem:[#allocation8_spill] sm:$0xff] }
 0x183   :  { %v2131_v15 = vadd.f32 %v2130_v61, %v15842_v37  ;;  %v15848_v62 = vunpack.c.l.bf16 %v15847_v51  ;;  %v1875_v60 = vadd.f32 %v1874_v17, %v1873_v18  ;;  %v15850_v29 = vunpack.c.l.bf16 %v15849_v24  ;;  %v15871_v28 = vld [vmem:[#allocation22_spill] sm:$0xff]  ;;  %v15873_v37 = vld [vmem:[#allocation9_spill] sm:$0xff] }
 0x184   :  { %v2260_v6 = vadd.f32 %v2259_v48, %v15844_v54  ;;  %v15852_v11 = vunpack.c.l.bf16 %v15851_v46  ;;  %v15854_v19 = vunpack.c.l.bf16 %v15853_v26  ;;  %v1746_v23 = vrot.slane %v1745_v41, 4  ;;  %v15865_v48 = vld [vmem:[#allocation31_spill] sm:$0xff] }
 0x185   :  { %v2519_v3 = vadd.f32 %v15848_v62, %v15846_v39  ;;  %v2002_v27 = vadd.f32 %v2001_v47, %v15850_v29  ;;  %v15856_v35 = vunpack.c.l.bf16 %v15855_v1  ;;  %v15858_v53 = vunpack.c.l.bf16 %v15857_v32  ;;  %v15877_v62 = vld [vmem:[#allocation36_spill] sm:$0xff] }
 0x186   :  { %v2390_v58 = vadd.f32 %v2389_v25, %v15852_v11  ;;  %v2524_v22 = vsel %vm1717_vm0, %v15854_v19, 0.0  ;;  %v15860_v45 = vunpack.c.l.bf16 %v15859_v33  ;;  %v1876_v44 = vrot.slane %v1875_v60, 4 }
 0x187   :  { %v2132_v4 = vadd.f32 %v2131_v15, %v15856_v35  ;;  %v2261_v9 = vadd.f32 %v2260_v6, %v15858_v53  ;;  %v15862_v61 = vunpack.c.l.bf16 %v15861_v56  ;;  %v15864_v20 = vunpack.c.l.bf16 %v15863_v30  ;;  %v15883_v35 = vld [vmem:[#allocation12_spill] sm:$0xff]  ;;  %v15889_v30 = vld [vmem:[#allocation25_spill] sm:$0xff] }
 0x188   :  { %v2520_v17 = vadd.f32 %v2519_v3, %v15860_v45  ;;  %v15866_v49 = vunpack.c.l.bf16 %v15865_v48  ;;  %v15868_v18 = vunpack.c.l.bf16 %v15867_v0  ;;  %v1747_v47 = vadd.f32 %v1746_v23, %v1745_v41  ;;  %v15879_v41 = vld [vmem:[#allocation27_spill] sm:$0xff] }
 0x189   :  { %v2003_v63 = vadd.f32 %v2002_v27, %v15862_v61  ;;  %v2391_v34 = vadd.f32 %v2390_v58, %v15864_v20  ;;  %v15870_v40 = vunpack.c.l.bf16 %v15869_v5  ;;  %v15872_v36 = vunpack.c.l.bf16 %v15871_v28  ;;  %v15881_v58 = vld [vmem:[#allocation13_spill] sm:$0xff] }
 0x18a   :  { %v2649_v59 = vadd.f32 %v15868_v18, %v15866_v49  ;;  %v15874_v15 = vunpack.c.l.bf16 %v15873_v37  ;;  %v1877_v54 = vadd.f32 %v1876_v44, %v1875_v60  ;;  %v15876_v39 = vunpack.c.l.bf16 %v15875_v12 }
 0x18b   :  { %v2133_v25 = vadd.f32 %v2132_v4, %v15870_v40  ;;  %v2262_v14 = vadd.f32 %v2261_v9, %v15872_v36  ;;  %v2005_v6 = vadd.f32 %v2004_v55, %v2003_v63  ;;  %v15878_v3 = vunpack.c.l.bf16 %v15877_v62  ;;  %v15885_v55 = vld [vmem:[#allocation14_spill] sm:$0xff] }
 0x18c   :  { %v2521_v31 = vadd.f32 %v2520_v17, %v15874_v15  ;;  %v2392_v51 = vadd.f32 %v2391_v34, %v15876_v39  ;;  %v1748_v29 = vrot.slane %v1747_v47, 2  ;;  %v15880_v46 = vunpack.c.l.bf16 %v15879_v41  ;;  %v15887_v17 = vld [vmem:[#allocation24_spill] sm:$0xff] }
 0x18d   :  { %v2650_v24 = vadd.f32 %v2649_v59, %v15878_v3  ;;  %v2135_v27 = vadd.f32 %v2134_v10, %v2133_v25  ;;  %v15882_v26 = vunpack.c.l.bf16 %v15881_v58  ;;  %v1878_v23 = vrot.slane %v1877_v54, 2  ;;  %v15891_v25 = vld [vmem:[#allocation20_spill] sm:$0xff] }
 0x18e   :  { %v2263_v11 = vadd.f32 %v2262_v14, %v15880_v46  ;;  %v2006_v1 = vrot.slane %v2005_v6, 4  ;;  %v15884_v4 = vunpack.c.l.bf16 %v15883_v35  ;;  %v15886_v32 = vunpack.c.l.bf16 %v15885_v55  ;;  %v15897_v46 = vld [vmem:[#allocation26_spill] sm:$0xff] }
 0x18f   :  { %v2522_v19 = vadd.f32 %v2521_v31, %v15882_v26  ;;  %v1749_v9 = vadd.f32 %v1748_v29, %v1747_v47  ;;  %v2136_v33 = vrot.slane %v2135_v27, 4  ;;  %v15888_v44 = vunpack.c.l.bf16 %v15887_v17  ;;  %v15905_v17 = vld [vmem:[#allocation43_spill] sm:$0xff] }
 0x190   :  { %v2393_v60 = vadd.f32 %v2392_v51, %v15884_v4  ;;  %v2651_v53 = vadd.f32 %v2650_v24, %v15886_v32  ;;  %v2265_v45 = vadd.f32 %v2264_v7, %v2263_v11  ;;  %v1879_v56 = vadd.f32 %v1878_v23, %v1877_v54  ;;  %v15893_v54 = vld [vmem:[#allocation32_spill] sm:$0xff]  ;;  %v15899_v4 = vld [vmem:[#allocation33_spill] sm:$0xff] }
 0x191   :  { %v2523_v10 = vadd.f32 %v2522_v19, %v15888_v44  ;;  %v2007_v61 = vadd.f32 %v2006_v1, %v2005_v6  ;;  %v15890_v20 = vunpack.c.l.bf16 %v15889_v30  ;;  %v1750_v48 = vrot.slane %v1749_v9, 1  ;;  %v15901_v32 = vld [vmem:[#allocation41_spill] sm:$0xff] }
 0x192   :  { %v2395_v63 = vadd.f32 %v2394_v16, %v2393_v60  ;;  %v2137_v49 = vadd.f32 %v2136_v33, %v2135_v27  ;;  %v2266_v0 = vrot.slane %v2265_v45, 4  ;;  %v1880_v59 = vrot.slane %v1879_v56, 1  ;;  %v15895_v27 = vld [vmem:[#allocation37_spill] sm:$0xff]  ;;  %v15903_v33 = vld [vmem:[#allocation42_spill] sm:$0xff] }
 0x193   :  { %v2652_v34 = vadd.f32 %v2651_v53, %v15890_v20  ;;  %v2525_v18 = vadd.f32 %v2524_v22, %v2523_v10  ;;  %v2008_v5 = vrot.slane %v2007_v61, 2  ;;  %v15892_v47 = vunpack.c.l.bf16 %v15891_v25 }
 0x194   :  { %v2396_v40 = vrot.slane %v2395_v63, 4  ;;  %v1704_v7 = vunpack.c.l.bf16 %v15798_v13  ;;  %v2138_v36 = vrot.slane %v2137_v49, 2  ;;  %v2267_v14 = vadd.f32 %v2266_v0, %v2265_v45 }
 0x195   :  { %v2653_v28 = vadd.f32 %v2652_v34, %v15892_v47  ;;  %v2526_v37 = vrot.slane %v2525_v18, 4  ;;  %v9450_v15 = vadd.f32 %v1750_v48, %v1749_v9  ;;  %v2009_v16 = vadd.f32 %v2008_v5, %v2007_v61  ;;  %v15907_v48 = vld [vmem:[#allocation38_spill] sm:$0xff]  ;;  %v15911_v47 = vld [vmem:[#allocation45_spill] sm:$0xff] }
 0x196   :  { %v2397_v31 = vadd.f32 %v2396_v40, %v2395_v63  ;;  %v15894_v6 = vunpack.c.l.bf16 %v15893_v54  ;;  %v2139_v22 = vadd.f32 %v2138_v36, %v2137_v49  ;;  %v2268_v39 = vrot.slane %v2267_v14, 2 }
 0x197   :  { %v2527_v51 = vadd.f32 %v2526_v37, %v2525_v18  ;;  %v9455_v3 = vadd.f32 %v1880_v59, %v1879_v56  ;;  %v2010_v24 = vrot.slane %v2009_v16, 1  ;;  %v15896_v41 = vunpack.c.l.bf16 %v15895_v27  ;;  %v15909_v18 = vld [vmem:[#allocation48_spill] sm:$0xff] }
 0x198   :  { %v2654_v12 = vsel %vm1717_vm0, %v15894_v6, 0.0  ;;  %v2398_v29 = vrot.slane %v2397_v31, 2  ;;  %v15898_v11 = vunpack.c.l.bf16 %v15897_v46  ;;  %v2140_v26 = vrot.slane %v2139_v22, 1 }
 0x199   :  { %v2655_v62 = vadd.f32 %v2654_v12, %v2653_v28  ;;  %v2269_v19 = vadd.f32 %v2268_v39, %v2267_v14  ;;  %v2528_v23 = vrot.slane %v2527_v51, 2  ;;  %v15900_v60 = vunpack.c.l.bf16 %v15899_v4  ;;  %v15913_v14 = vld [vmem:[#allocation51_spill] sm:$0xff] }
 0x19a   :  { %v2779_v58 = vadd.f32 %v15898_v11, %v15896_v41  ;;  %v2399_v35 = vadd.f32 %v2398_v29, %v2397_v31  ;;  %v15902_v53 = vunpack.c.l.bf16 %v15901_v32  ;;  %v15904_v45 = vunpack.c.l.bf16 %v15903_v33  ;;  %v15921_v41 = vld [vmem:[#allocation56_spill] sm:$0xff]  ;;  %v15930_v33 = vld [vmem:[#allocation49_spill] sm:$0xff] }
 0x19b   :  { %v2656_v1 = vrot.slane %v2655_v62, 4  ;;  %v15906_v44 = vunpack.c.l.bf16 %v15905_v17  ;;  %v9470_v56 = vadd.f32 %v2010_v24, %v2009_v16  ;;  %v2270_v61 = vrot.slane %v2269_v19, 1  ;;  %v15915_v16 = vld [vmem:[#allocation55_spill] sm:$0xff] }
 0x19c   :  { %v2780_v55 = vadd.f32 %v2779_v58, %v15900_v60  ;;  %v2784_v9 = vsel %vm1717_vm0, %v15902_v53, 0.0  ;;  %v2529_v63 = vadd.f32 %v2528_v23, %v2527_v51  ;;  %v9472_v20 = vadd.f32 %v2140_v26, %v2139_v22  ;;  %v15917_v22 = vld [vmem:[#allocation39_spill] sm:$0xff]  ;;  %v15923_v58 = vld [vmem:[#allocation62_spill] sm:$0xff] }
 0x19d   :  { %v2909_v10 = vadd.f32 %v15906_v44, %v15904_v45  ;;  %v2657_v30 = vadd.f32 %v2656_v1, %v2655_v62  ;;  %v2400_v34 = vrot.slane %v2399_v35, 1  ;;  %v15908_v49 = vunpack.c.l.bf16 %v15907_v48  ;;  %v15919_v62 = vld [vmem:[#allocation44_spill] sm:$0xff]  ;;  %v15925_v1 = vld [vmem:[#allocation63_spill] sm:$0xff]  ;;  %v15932_v44 = vld [vmem:[#allocation65_spill] sm:$0xff] }
 0x19e   :  { %v15910_v59 = vunpack.c.l.bf16 %v15909_v18  ;;  %v2530_v40 = vrot.slane %v2529_v63, 1  ;;  %v15912_v28 = vunpack.c.l.bf16 %v15911_v47  ;;  %v15914_v37 = vunpack.c.l.bf16 %v15913_v14 }
 0x19f   :  { %v2781_v0 = vadd.f32 %v2780_v55, %v15908_v49  ;;  %v2658_v25 = vrot.slane %v2657_v30, 2  ;;  %v15916_v31 = vunpack.c.l.bf16 %v15915_v16  ;;  %v9485_v6 = vadd.f32 %v2270_v61, %v2269_v19  ;;  %v15927_v19 = vld [vmem:[#allocation64_spill] sm:$0xff]  ;;  %v15934_v61 = vld [vmem:[#allocation69_spill] sm:$0xff]  ;;  %v15944_v16 = vld [vmem:[#allocation59_spill] sm:$0xff] }
 0x1a0   :  { %v2910_v5 = vadd.f32 %v2909_v10, %v15910_v59  ;;  %v2914_v36 = vsel %vm1717_vm0, %v15912_v28, 0.0  ;;  %v9487_v12 = vadd.f32 %v2400_v34, %v2399_v35  ;;  %v15918_v39 = vunpack.c.l.bf16 %v15917_v22  ;;  %v15936_v49 = vld [vmem:[#allocation57_spill] sm:$0xff]  ;;  %v15938_v59 = vld [vmem:[#allocation58_spill] sm:$0xff] }
 0x1a1   :  { %v3039_v54 = vadd.f32 %v15916_v31, %v15914_v37  ;;  %v15920_v24 = vunpack.c.l.bf16 %v15919_v62  ;;  %v2659_v27 = vadd.f32 %v2658_v25, %v2657_v30  ;;  %v15922_v46 = vunpack.c.l.bf16 %v15921_v41  ;;  %v15942_v28 = vld [vmem:[#allocation50_spill] sm:$0xff] }
 0x1a2   :  { %v2782_v51 = vadd.f32 %v2781_v0, %v15918_v39  ;;  %v15924_v26 = vunpack.c.l.bf16 %v15923_v58  ;;  %v15926_v4 = vunpack.c.l.bf16 %v15925_v1  ;;  %v15928_v60 = vunpack.c.l.bf16 %v15927_v19  ;;  %v15946_v22 = vld [vmem:[#allocation66_spill] sm:$0xff]  ;;  %v15956_v19 = vld [vmem:[#allocation84_spill] sm:$0xff] }
 0x1a3   :  { %v2911_v29 = vadd.f32 %v2910_v5, %v15920_v24  ;;  %v3040_v11 = vadd.f32 %v3039_v54, %v15922_v46  ;;  %v9502_v55 = vadd.f32 %v2530_v40, %v2529_v63  ;;  %v15929_v32 = vunpack.c.l.bf16 %v15752_v57  ;;  %v15940_v63 = vld [vmem:[#allocation53_spill] sm:$0xff]  ;;  %v15954_v1 = vld [vmem:[#allocation78_spill] sm:$0xff] }
 0x1a4   :  { %v3044_v23 = vsel %vm1717_vm0, %v15924_v26, 0.0  ;;  %v3169_v35 = vadd.f32 %v15928_v60, %v15926_v4  ;;  %v15931_v45 = vunpack.c.l.bf16 %v15930_v33  ;;  %v15933_v10 = vunpack.c.l.bf16 %v15932_v44  ;;  %v15958_v33 = vld [vmem:[#allocation72_spill] sm:$0xff]  ;;  %v15960_v44 = vld [vmem:[#allocation73_spill] sm:$0xff] }
 0x1a5   :  { %v2783_v53 = vadd.f32 %v2782_v51, %v15929_v32  ;;  %v15935_v30 = vunpack.c.l.bf16 %v15934_v61  ;;  %v2660_v48 = vrot.slane %v2659_v27, 1  ;;  %v15937_v0 = vunpack.c.l.bf16 %v15936_v49  ;;  %v15948_v51 = vld [vmem:[#allocation60_spill] sm:$0xff]  ;;  %v15963_v49 = vld [vmem:[#allocation71_spill] sm:$0xff] }
 0x1a6   :  { %v2912_v17 = vadd.f32 %v2911_v29, %v15931_v45  ;;  %v15939_v5 = vunpack.c.l.bf16 %v15938_v59  ;;  %v15941_v40 = vunpack.c.l.bf16 %v15940_v63  ;;  %v15943_v14 = vunpack.c.l.bf16 %v15942_v28  ;;  %v15950_v29 = vld [vmem:[#allocation46_spill] sm:$0xff]  ;;  %v15965_v59 = vld [vmem:[#allocation85_spill] sm:$0xff] }
 0x1a7   :  { %v3299_v34 = vadd.f32 %v15935_v30, %v15933_v10  ;;  %v3041_v18 = vadd.f32 %v3040_v11, %v15937_v0  ;;  %v2785_v47 = vadd.f32 %v2784_v9, %v2783_v53  ;;  %v15945_v31 = vunpack.c.l.bf16 %v15944_v16  ;;  %v15952_v11 = vld [vmem:[#allocation70_spill] sm:$0xff]  ;;  %v15969_v28 = vld [vmem:[#allocation81_spill] sm:$0xff] }
 0x1a8   :  { %v3170_v25 = vadd.f32 %v3169_v35, %v15939_v5  ;;  %v3174_v57 = vsel %vm1717_vm0, %v15941_v40, 0.0  ;;  %v2913_v37 = vadd.f32 %v2912_v17, %v15943_v14  ;;  %v15947_v39 = vunpack.c.l.bf16 %v15946_v22  ;;  %v15972_v22 = vld [vmem:[#allocation79_spill] sm:$0xff] }
 0x1a9   :  { %v3300_v54 = vadd.f32 %v3299_v34, %v15945_v31  ;;  %v15949_v62 = vunpack.c.l.bf16 %v15948_v51  ;;  %v15951_v41 = vunpack.c.l.bf16 %v15950_v29  ;;  %v15953_v58 = vunpack.c.l.bf16 %v15952_v11  ;;  %v15975_v29 = vld [vmem:[#allocation80_spill] sm:$0xff]  ;;  %v15977_v11 = vld [vmem:[#allocation91_spill] sm:$0xff] }
 0x1aa   :  { %v15955_v4 = vunpack.c.l.bf16 %v15954_v1  ;;  %v15957_v60 = vunpack.c.l.bf16 %v15956_v19  ;;  %v2786_v32 = vrot.slane %v2785_v47, 4  ;;  %v2915_v53 = vadd.f32 %v2914_v36, %v2913_v37 }
 0x1ab   :  { %v3429_v24 = vadd.f32 %v15949_v62, %v15947_v39  ;;  %v3042_v46 = vadd.f32 %v3041_v18, %v15951_v41  ;;  %v3171_v26 = vadd.f32 %v3170_v25, %v15953_v58  ;;  %v15959_v45 = vunpack.c.l.bf16 %v15958_v33  ;;  %v15967_v25 = vld [vmem:[#allocation74_spill] sm:$0xff]  ;;  %v15983_v33 = vld [vmem:[#allocation83_spill] sm:$0xff] }
 0x1ac   :  { %v3304_v9 = vsel %vm1717_vm0, %v15955_v4, 0.0  ;;  %v3434_v35 = vsel %vm1717_vm0, %v15957_v60, 0.0  ;;  %v15961_v10 = vunpack.c.l.bf16 %v15960_v44  ;;  %v15962_v30 = vunpack.c.l.bf16 %v15768_v42  ;;  %v15981_v60 = vld [vmem:[#allocation77_spill] sm:$0xff] }
 0x1ad   :  { %v3301_v17 = vadd.f32 %v3300_v54, %v15959_v45  ;;  %v15964_v0 = vunpack.c.l.bf16 %v15963_v49  ;;  %v15966_v5 = vunpack.c.l.bf16 %v15965_v59  ;;  %v15968_v63 = vunpack.c.l.bf16 %v15967_v25 }
 0x1ae   :  { %v3430_v61 = vadd.f32 %v3429_v24, %v15961_v10  ;;  %v3043_v34 = vadd.f32 %v3042_v46, %v15962_v30  ;;  %v15970_v14 = vunpack.c.l.bf16 %v15969_v28  ;;  %v2787_v37 = vadd.f32 %v2786_v32, %v2785_v47 }
 0x1af   :  { %v3172_v18 = vadd.f32 %v3171_v26, %v15964_v0  ;;  %v3559_v40 = vadd.f32 %v15968_v63, %v15966_v5  ;;  %v2916_v16 = vrot.slane %v2915_v53, 4  ;;  %v15971_v31 = vunpack.c.l.bf16 %v15775_v8  ;;  %v15979_v26 = vld [vmem:[#allocation92_spill] sm:$0xff] }
 0x1b0   :  { %v3564_v36 = vsel %vm1717_vm0, %v15970_v14, 0.0  ;;  %v15973_v42 = vunpack.c.l.bf16 %v15972_v22  ;;  %v3045_v51 = vadd.f32 %v3044_v23, %v3043_v34  ;;  %v15974_v62 = vunpack.c.l.bf16 %v15773_v38  ;;  %v15985_v38 = vld [vmem:[#allocation90_spill] sm:$0xff] }
 0x1b1   :  { %v3302_v54 = vadd.f32 %v3301_v17, %v15971_v31  ;;  %v15976_v41 = vunpack.c.l.bf16 %v15975_v29  ;;  %v15978_v58 = vunpack.c.l.bf16 %v15977_v11  ;;  %v15980_v1 = vunpack.c.l.bf16 %v15979_v26 }
 0x1b2   :  { %v3431_v39 = vadd.f32 %v3430_v61, %v15973_v42  ;;  %v3173_v24 = vadd.f32 %v3172_v18, %v15974_v62  ;;  %v2788_v47 = vrot.slane %v2787_v37, 2  ;;  %v2917_v19 = vadd.f32 %v2916_v16, %v2915_v53 }
 0x1b3   :  { %v3560_v46 = vadd.f32 %v3559_v40, %v15976_v41  ;;  %v3689_v4 = vadd.f32 %v15980_v1, %v15978_v58  ;;  %v15982_v8 = vunpack.c.l.bf16 %v15981_v60  ;;  %v15984_v45 = vunpack.c.l.bf16 %v15983_v33 }
 0x1b4   :  { %v3046_v23 = vrot.slane %v3045_v51, 4  ;;  %v3175_v44 = vadd.f32 %v3174_v57, %v3173_v24  ;;  %v15986_v10 = vunpack.c.l.bf16 %v15985_v38  ;;  %v15987_v30 = vunpack.c.l.bf16 %v8909_v2 }
 0x1b5   :  { %v3303_v32 = vadd.f32 %v3302_v54, %v15982_v8  ;;  %v3432_v17 = vadd.f32 %v3431_v39, %v15984_v45  ;;  %v2789_v49 = vadd.f32 %v2788_v47, %v2787_v37  ;;  %v2918_v0 = vrot.slane %v2917_v19, 2  ;;  %v15991_v37 = vld [vmem:[#allocation75_spill] sm:$0xff]  ;;  %v15993_v39 = vld [vmem:[#allocation82_spill] sm:$0xff] }
 0x1b6   :  { %v3561_v61 = vadd.f32 %v3560_v46, %v15986_v10  ;;  %v3690_v34 = vadd.f32 %v3689_v4, %v15987_v30  ;;  %v15988_v59 = vunpack.c.l.bf16 %v15788_v50  ;;  %v3047_v5 = vadd.f32 %v3046_v23, %v3045_v51 }
 0x1b7   :  { %v3305_v18 = vadd.f32 %v3304_v9, %v3303_v32  ;;  %v3176_v25 = vrot.slane %v3175_v44, 4  ;;  %v15989_v63 = vunpack.c.l.bf16 %v15791_v52  ;;  %v15990_v28 = vunpack.c.l.bf16 %v8914_v43 }
 0x1b8   :  { %v3433_v53 = vadd.f32 %v3432_v17, %v15988_v59  ;;  %v2790_v14 = vrot.slane %v2789_v49, 1  ;;  %v2919_v16 = vadd.f32 %v2918_v0, %v2917_v19  ;;  %v3048_v2 = vrot.slane %v3047_v5, 2 }
 0x1b9   :  { %v3562_v40 = vadd.f32 %v3561_v61, %v15989_v63  ;;  %v3691_v57 = vadd.f32 %v3690_v34, %v15990_v28  ;;  %v3306_v31 = vrot.slane %v3305_v18, 4  ;;  %v3177_v22 = vadd.f32 %v3176_v25, %v3175_v44 }
 0x1ba   :  { %v3435_v54 = vadd.f32 %v3434_v35, %v3433_v53  ;;  %v15992_v42 = vunpack.c.l.bf16 %v15991_v37  ;;  %v15994_v50 = vunpack.c.l.bf16 %v15993_v39  ;;  %v9582_v51 = vadd.f32 %v2660_v48, %v2659_v27 }
 0x1bb   :  { %v2920_v24 = vrot.slane %v2919_v16, 1  ;;  %v3307_v52 = vadd.f32 %v3306_v31, %v3305_v18  ;;  %v3049_v41 = vadd.f32 %v3048_v2, %v3047_v5  ;;  %v3178_v43 = vrot.slane %v3177_v22, 2 }
 0x1bc   :  { %v3563_v9 = vadd.f32 %v3562_v40, %v15992_v42  ;;  %v3692_v62 = vadd.f32 %v3691_v57, %v15994_v50  ;;  %v3436_v29 = vrot.slane %v3435_v54, 4  ;;  %v15995_v11 = vunpack.c.l.bf16 %v8928_v21 }
 0x1bd   :  { %v2791_v35 = vadd.f32 %v2790_v14, %v2789_v49  ;;  %v3308_v26 = vrot.slane %v3307_v52, 2  ;;  %v3694_v4 = vsel %vm1717_vm0, %v1704_v7, 0.0  ;;  %v3050_v47 = vrot.slane %v3049_v41, 1 }
 0x1be   :  { %v3565_v46 = vadd.f32 %v3564_v36, %v3563_v9  ;;  %v3693_v58 = vadd.f32 %v3692_v62, %v15995_v11  ;;  %v3437_v1 = vadd.f32 %v3436_v29, %v3435_v54  ;;  %v3179_v19 = vadd.f32 %v3178_v43, %v3177_v22 }
 0x1bf   :  { %v2921_v60 = vadd.f32 %v2920_v24, %v2919_v16  ;;  %v3309_v8 = vadd.f32 %v3308_v26, %v3307_v52  ;;  %v3795_v36 = vpack.c.bf16 %v9450_v15, %v9450_v15  ;;  %v3805_v17 = vpack.c.bf16 %v9455_v3, %v9455_v3  ;;  %v9608_v24 = vld [vmem:[%s14298_s0 + $0x10] sm:$0xff]  ;;  %v9617_v26 = vld [vmem:[%s14298_s0 + $0x38] sm:$0xff] }
 0x1c0   :  { %v3566_v27 = vrot.slane %v3565_v46, 4  ;;  %v3695_v48 = vadd.f32 %v3694_v4, %v3693_v58  ;;  %v3438_v32 = vrot.slane %v3437_v1, 2  ;;  %v3180_v33 = vrot.slane %v3179_v19, 1 }
 0x1c1   :  { %v3051_v23 = vadd.f32 %v3050_v47, %v3049_v41  ;;  %v3310_v13 = vrot.slane %v3309_v8, 1  ;;  %v3815_v7 = vpack.c.bf16 %v9470_v56, %v9470_v56  ;;  %v3825_v30 = vpack.c.bf16 %v9472_v20, %v9472_v20 }
 0x1c2   :  { %v3567_v21 = vadd.f32 %v3566_v27, %v3565_v46  ;;  %v3696_v45 = vrot.slane %v3695_v48, 4  ;;  %v3439_v44 = vadd.f32 %v3438_v32, %v3437_v1  ;;  %v3181_v38 = vadd.f32 %v3180_v33, %v3179_v19  ;;  %v9624_v19 = vld [vmem:[%s14298_s0 + $0x60] sm:$0xff]  ;;  %v9632_v32 = vld [vmem:[%s14298_s0 + $0x88] sm:$0xff]  ;;  %v9859_v27 = vld [vmem:[%s14298_s0 + $0x538] sm:$0xff] }
 0x1c3   :  { %v3311_v34 = vadd.f32 %v3310_v13, %v3309_v8  ;;  %v3835_v49 = vpack.c.bf16 %v9485_v6, %v9485_v6  ;;  %v3845_v3 = vpack.c.bf16 %v9487_v12, %v9487_v12  ;;  %v3855_v59 = vpack.c.bf16 %v9502_v55, %v9502_v55  ;;  %16015 = vst [vmem:[#allocation16_spill] sm:$0xff] %v9859_v27  ;;  %v10045_v13 = vld [vmem:[%s14298_s0 + $0x8f8] sm:$0xff] }
 0x1c4   :  { %v3568_v10 = vrot.slane %v3567_v21, 2  ;;  %v3697_v61 = vadd.f32 %v3696_v45, %v3695_v48  ;;  %v3440_v15 = vrot.slane %v3439_v44, 1  ;;  %v3865_v56 = vpack.c.bf16 %v9582_v51, %v9582_v51  ;;  %v9640_v45 = vld [vmem:[%s14298_s0 + $0xb0] sm:$0xff]  ;;  %16037 = vst [vmem:[#allocation13_spill] sm:$0xff] %v10045_v13  ;;  %v10076_v27 = vld [vmem:[%s14298_s0 + $0x998] sm:$0xff] }
 0x1c5   :  { %v3875_v5 = vpack.c.bf16 %v2791_v35, %v2791_v35  ;;  %v3885_v25 = vpack.c.bf16 %v2921_v60, %v2921_v60  ;;  %v3895_v20 = vpack.c.bf16 %v3051_v23, %v3051_v23  ;;  %v3905_v28 = vpack.c.bf16 %v3181_v38, %v3181_v38  ;;  %v9654_v38 = vld [vmem:[%s14298_s0 + $0x100] sm:$0x11]  ;;  %v9854_v23 = vld [vmem:[%s14298_s0 + $0x510] sm:$0xff]  ;;  %16041 = vst [vmem:[#allocation25_spill] sm:$0xff] %v10076_v27  ;;  %v10138_v13 = vld [vmem:[%s14298_s0 + $0xad8] sm:$0x11] }
 0x1c6   :  { %v3569_v0 = vadd.f32 %v3568_v10, %v3567_v21  ;;  %v3698_v18 = vrot.slane %v3697_v61, 2  ;;  %v3441_v53 = vadd.f32 %v3440_v15, %v3439_v44  ;;  %v3915_v57 = vpack.c.bf16 %v3311_v34, %v3311_v34  ;;  %15996 = vst [vmem:[#allocation89_spill] sm:$0xff] %v9654_v38  ;;  %v9659_v10 = vld [vmem:[%s14298_s0 + $0x128] sm:$0xff]  ;;  %16014 = vst [vmem:[#allocation15_spill] sm:$0xff] %v9854_v23  ;;  %v10164_v27 = vld [vmem:[%s14298_s0 + $0xb50] sm:$0xff] }
 0x1c7   :  { %v4287_v14 = vunpack.c.l.b16 %v3795_v36  ;;  %v4297_v16 = vunpack.c.l.b16 %v3805_v17  ;;  %v4307_v12 = vunpack.c.l.b16 %v3815_v7  ;;  %v4317_v2 = vunpack.c.l.b16 %v3825_v30  ;;  %v9645_v17 = vld [vmem:[%s14298_s0 + $0xd8] sm:$0xff]  ;;  %15997 = vst [vmem:[#allocation94_spill] sm:$0xff] %v9659_v10  ;;  %v10040_v36 = vld [vmem:[%s14298_s0 + $0x8d0] sm:$0xff]  ;;  %16049 = vst [vmem:[#allocation43_spill] sm:$0xff] %v10138_v13 }
 0x1c8   :  { %v3570_v63 = vrot.slane %v3569_v0, 1  ;;  %v3699_v40 = vadd.f32 %v3698_v18, %v3697_v61  ;;  %v3925_v6 = vpack.c.bf16 %v3441_v53, %v3441_v53  ;;  %v4327_v22 = vunpack.c.l.b16 %v3835_v49  ;;  %v6417_v49 = vld [vmem:[%s14297_s1 + $0x370] ss:$8 sps:$4 sm:$0xff]   ;;  %v6425_v53 = vld [vmem:[%s14297_s1 + $0x364] ss:$8 sps:$4 sm:$0xff]   ;;  %16036 = vst [vmem:[#allocation27_spill] sm:$0xff] %v10040_v36 }
 0x1c9   :  { %v4337_v55 = vunpack.c.l.b16 %v3845_v3  ;;  %v4347_v37 = vunpack.c.l.b16 %v3855_v59  ;;  %v4367_v42 = vunpack.c.l.b16 %v3875_v5  ;;  %v4377_v9 = vunpack.c.l.b16 %v3885_v25  ;;  %v9671_v3 = vld [vmem:[%s14298_s0 + $0x150] sm:$0xff]  ;;  %v9686_v5 = vld [vmem:[%s14298_s0 + $0x1a0] sm:$0xff]  ;;  %v9691_v25 = vld [vmem:[%s14298_s0 + $0x1c8] sm:$0xff]  ;;  %16052 = vst [vmem:[#allocation45_spill] sm:$0xff] %v10164_v27 }
 0x1ca   :  { %v3571_v31 = vadd.f32 %v3570_v63, %v3569_v0  ;;  %v3700_v54 = vrot.slane %v3699_v40, 1  ;;  %v4387_v62 = vunpack.c.l.b16 %v3895_v20  ;;  %v4397_v51 = vunpack.c.l.b16 %v3905_v28  ;;  %v9676_v0 = vld [vmem:[%s14298_s0 + $0x178] sm:$0xff]  ;;  %v9699_v28 = vld [vmem:[%s14298_s0 + $0x1f0] sm:$0xff]  ;;  %v9814_v20 = vld [vmem:[%s14298_s0 + $0x448] sm:$0x11] }
 0x1cb   :  { %v4407_v52 = vunpack.c.l.b16 %v3915_v57  ;;  %v4417_v29 = vunpack.c.l.b16 %v3925_v6  ;;  %v4466_v41 = vsel %vm4445_vm1, %v4297_v16, %v4287_v14  ;;  %v4536_v43 = vsel %vm4445_vm1, %v4377_v9, %v4367_v42  ;;  %15998 = vst [vmem:[#allocation40_spill] sm:$0xff] %v9676_v0  ;;  %v9704_v57 = vld [vmem:[%s14298_s0 + $0x218] sm:$0x11]  ;;  %v6423_v42 = vld [vmem:[%s14297_s1 + $0x360] ss:$8 sps:$4 sm:$0xff]   ;;  %v9730_v9 = vld [vmem:[%s14298_s0 + $0x290] sm:$0xff] }
 0x1cc   :  { %v3701_v39 = vadd.f32 %v3700_v54, %v3699_v40  ;;  %v3935_v50 = vpack.c.bf16 %v3571_v31, %v3571_v31  ;;  %v4467_v58 = vsel %vm4447_vm2, %v4307_v12, %v4466_v41  ;;  %v4537_v35 = vsel %vm4447_vm2, %v4387_v62, %v4536_v43  ;;  %15999 = vst [vmem:[#allocation52_spill] sm:$0xff] %v9704_v57  ;;  %v9713_v31 = vld [vmem:[%s14298_s0 + $0x240] sm:$0xff]  ;;  %v9718_v54 = vld [vmem:[%s14298_s0 + $0x268] sm:$0xff]  ;;  %v9921_v59 = vld [vmem:[%s14298_s0 + $0x678] sm:$0x11] }
 0x1cd   :  { %v4357_v1 = vunpack.c.l.b16 %v3865_v56  ;;  %v4468_v4 = vsel %vm4449_vm3, %v4317_v2, %v4467_v58  ;;  %v4538_v47 = vsel %vm4449_vm3, %v4397_v51, %v4537_v35  ;;  %16000 = vst [vmem:[#allocation47_spill] sm:$0xff] %v9713_v31  ;;  %16001 = vst [vmem:[#allocation76_spill] sm:$0xff] %v9718_v54  ;;  %v9747_v41 = vld [vmem:[%s14298_s0 + $0x2e0] sm:$0xff]  ;;  %v9752_v43 = vld [vmem:[%s14298_s0 + $0x308] sm:$0xff] }
 0x1ce   :  { %v3945_v46 = vpack.c.bf16 %v3701_v39, %v3701_v39  ;;  %v4427_v11 = vunpack.c.l.b16 %v3935_v50  ;;  %v4469_v60 = vsel %vm4451_vm4, %v4327_v22, %v4468_v4  ;;  %v4539_v8 = vsel %vm4451_vm4, %v4407_v52, %v4538_v47  ;;  %v9735_v39 = vld [vmem:[%s14298_s0 + $0x2b8] sm:$0xff]  ;;  %16002 = vst [vmem:[#allocation67_spill] sm:$0xff] %v9747_v41  ;;  %16003 = vst [vmem:[#allocation86_spill] sm:$0xff] %v9752_v43  ;;  %v6437_v52 = vld [vmem:[%s14297_s1 + $0x344] ss:$8 sps:$4 sm:$0xff]  }
 0x1cf   :  { %v4470_v33 = vsel %vm4453_vm5, %v4337_v55, %v4469_v60  ;;  %v4540_v21 = vsel %vm4453_vm5, %v4417_v29, %v4539_v8  ;;  %v6431_v29 = vld [vmem:[%s14297_s1 + $0x354] ss:$8 sps:$4 sm:$0xff]   ;;  %16010 = vst [vmem:[#allocation3_spill] sm:$0xff] %v9814_v20  ;;  %v9842_v61 = vld [vmem:[%s14298_s0 + $0x4e8] sm:$0xff]  ;;  %v9871_v6 = vld [vmem:[%s14298_s0 + $0x560] sm:$0x11]  ;;  %v16089_v43 = vunpack.c.h.bf16 %v9608_v24 }
 0x1d0   :  { %v4437_v48 = vunpack.c.l.b16 %v3945_v46  ;;  %v4471_v44 = vsel %vm4455_vm6, %v4347_v37, %v4470_v33  ;;  %v4541_v7 = vsel %vm4455_vm6, %v4427_v11, %v4540_v21  ;;  %v9766_v4 = vld [vmem:[%s14298_s0 + $0x358] sm:$0xff]  ;;  %v9775_v33 = vld [vmem:[%s14298_s0 + $0x380] sm:$0xff]  ;;  %v9780_v21 = vld [vmem:[%s14298_s0 + $0x3a8] sm:$0xff]  ;;  %16013 = vst [vmem:[#allocation11_spill] sm:$0xff] %v9842_v61  ;;  %v16093_v37 = vunpack.c.h.bf16 %v9671_v3 }
 0x1d1   :  { %v4472_v34 = vsel %vm4457_vm7, %v4357_v1, %v4471_v44  ;;  %v9761_v1 = vld [vmem:[%s14298_s0 + $0x330] sm:$0x11]  ;;  %16005 = vst [vmem:[#allocation54_spill] sm:$0xff] %v9766_v4  ;;  %16006 = vst [vmem:[#allocation61_spill] sm:$0xff] %v9775_v33  ;;  %v6435_v35 = vld [vmem:[%s14297_s1 + $0x340] ss:$8 sps:$4 sm:$0xff]  }
 0x1d2   :  { %v4542_v15 = vsel %vm4457_vm7, %v4437_v48, %v4541_v7  ;;  %16004 = vst [vmem:[#allocation93_spill] sm:$0xff] %v9761_v1  ;;  %v9809_v7 = vld [vmem:[%s14298_s0 + $0x420] sm:$0xff]  ;;  %v9823_v8 = vld [vmem:[%s14298_s0 + $0x470] sm:$0xff]  ;;  %v9828_v48 = vld [vmem:[%s14298_s0 + $0x498] sm:$0xff] }
 0x1d3   :  { %v4594_v56 = vpack.c.b16 %v4542_v15, %v4472_v34  ;;  %16009 = vst [vmem:[#allocation88_spill] sm:$0xff] %v9809_v7  ;;  %16011 = vst [vmem:[#allocation4_spill] sm:$0xff] %v9823_v8  ;;  %v9837_v15 = vld [vmem:[%s14298_s0 + $0x4c0] sm:$0xff]  ;;  %v6443_v58 = vld [vmem:[%s14297_s1 + $0x334] ss:$8 sps:$4 sm:$0xff]  }
 0x1d4   :  { %16012 = vst [vmem:[#allocation5_spill] sm:$0xff] %v9828_v48  ;;  %16016 = vst [vmem:[#allocation23_spill] sm:$0xff] %v9871_v6  ;;  %v9876_v12 = vld [vmem:[%s14298_s0 + $0x588] sm:$0xff]  ;;  %v9890_v46 = vld [vmem:[%s14298_s0 + $0x5d8] sm:$0xff] }
 0x1d5   :  { %5488 = vmatmul.mubr.bf16.vlgmr.msra.gmra.mxu1 %v4594_v56  ;;  %v9792_v56 = vld [vmem:[%s14298_s0 + $0x3d0] sm:$0xff]  ;;  %16017 = vst [vmem:[#allocation6_spill] sm:$0xff] %v9876_v12  ;;  %16018 = vst [vmem:[#allocation17_spill] sm:$0xff] %v9890_v46  ;;  %v9899_v14 = vld [vmem:[%s14298_s0 + $0x600] sm:$0xff] }
 0x1d6   :  { %5542 = vmatpush1.bf16.msra.mxu1 %v6417_v49  ;;  %v6429_v49 = vld [vmem:[%s14297_s1 + $0x350] ss:$8 sps:$4 sm:$0xff]   ;;  %16007 = vst [vmem:[#allocation68_spill] sm:$0xff] %v9792_v56  ;;  %16019 = vst [vmem:[#allocation18_spill] sm:$0xff] %v9899_v14  ;;  %v9904_v51 = vld [vmem:[%s14298_s0 + $0x628] sm:$0xff] }
 0x1d7   :  { %5543 = vmatprep.subr.bf16.mxu1 %v6425_v53  ;;  %v9797_v53 = vld [vmem:[%s14298_s0 + $0x3f8] sm:$0xff]  ;;  %16020 = vst [vmem:[#allocation30_spill] sm:$0xff] %v9904_v51  ;;  %v9916_v34 = vld [vmem:[%s14298_s0 + $0x650] sm:$0xff]  ;;  %v6449_v63 = vld [vmem:[%s14297_s1 + $0x324] ss:$8 sps:$4 sm:$0xff]  }
 0x1d8   :  { %16008 = vst [vmem:[#allocation87_spill] sm:$0xff] %v9797_v53  ;;  %v6441_v11 = vld [vmem:[%s14297_s1 + $0x330] ss:$8 sps:$4 sm:$0xff]   ;;  %16021 = vst [vmem:[#allocation95_spill] sm:$0xff] %v9916_v34  ;;  %v9938_v22 = vld [vmem:[%s14298_s0 + $0x6c8] sm:$0xff] }
 0x1d9   :  { %16023 = vst [vmem:[#allocation19_spill] sm:$0xff] %v9938_v22  ;;  %v9947_v50 = vld [vmem:[%s14298_s0 + $0x6f0] sm:$0xff]  ;;  %v9952_v30 = vld [vmem:[%s14298_s0 + $0x718] sm:$0xff]  ;;  %v9966_v62 = vld [vmem:[%s14298_s0 + $0x768] sm:$0xff] }
 0x1da   :  { %5544 = vmatpush1.bf16.msra.mxu1 %v6423_v42  ;;  %v9885_v42 = vld [vmem:[%s14298_s0 + $0x5b0] sm:$0xff]  ;;  %16024 = vst [vmem:[#allocation7_spill] sm:$0xff] %v9947_v50  ;;  %16025 = vst [vmem:[#allocation21_spill] sm:$0xff] %v9952_v30  ;;  %v9983_v18 = vld [vmem:[%s14298_s0 + $0x7b8] sm:$0xff] }
 0x1db   :  { %5545 = vmatprep.subr.bf16.mxu1 %v6431_v29  ;;  %16027 = vst [vmem:[#allocation2_spill] sm:$0xff] %v9966_v62  ;;  %v9978_v29 = vld [vmem:[%s14298_s0 + $0x790] sm:$0x11]  ;;  %16029 = vst [vmem:[#allocation31_spill] sm:$0xff] %v9983_v18  ;;  %v9995_v60 = vld [vmem:[%s14298_s0 + $0x7e0] sm:$0xff] }
 0x1dc   :  { %16028 = vst [vmem:[#allocation29_spill] sm:$0xff] %v9978_v29  ;;  %v6455_v44 = vld [vmem:[%s14297_s1 + $0x314] ss:$8 sps:$4 sm:$0xff]   ;;  %16030 = vst [vmem:[#allocation35_spill] sm:$0xff] %v9995_v60  ;;  %v10000_v40 = vld [vmem:[%s14298_s0 + $0x808] sm:$0xff] }
 0x1dd   :  { %16031 = vst [vmem:[#allocation10_spill] sm:$0xff] %v10000_v40  ;;  %v10009_v47 = vld [vmem:[%s14298_s0 + $0x830] sm:$0xff]  ;;  %v10014_v55 = vld [vmem:[%s14298_s0 + $0x858] sm:$0xff]  ;;  %v10028_v16 = vld [vmem:[%s14298_s0 + $0x8a8] sm:$0x11] }
 0x1de   :  { %5546 = vmatpush1.bf16.msra.mxu1 %v6429_v49  ;;  %v9961_v49 = vld [vmem:[%s14298_s0 + $0x740] sm:$0xff]  ;;  %16032 = vst [vmem:[#allocation22_spill] sm:$0xff] %v10009_v47  ;;  %16033 = vst [vmem:[#allocation9_spill] sm:$0xff] %v10014_v55  ;;  %v10062_v2 = vld [vmem:[%s14298_s0 + $0x948] sm:$0xff] }
 0x1df   :  { %5547 = vmatprep.subr.bf16.mxu1 %v6437_v52  ;;  %v9933_v52 = vld [vmem:[%s14298_s0 + $0x6a0] sm:$0xff]  ;;  %16026 = vst [vmem:[#allocation34_spill] sm:$0xff] %v9961_v49  ;;  %16035 = vst [vmem:[#allocation36_spill] sm:$0xff] %v10028_v16  ;;  %v10071_v49 = vld [vmem:[%s14298_s0 + $0x970] sm:$0xff] }
 0x1e0   :  { %16022 = vst [vmem:[#allocation28_spill] sm:$0xff] %v9933_v52  ;;  %v6461_v62 = vld [vmem:[%s14297_s1 + $0x304] ss:$8 sps:$4 sm:$0xff]   ;;  %16039 = vst [vmem:[#allocation14_spill] sm:$0xff] %v10062_v2  ;;  %v10107_v40 = vld [vmem:[%s14298_s0 + $0xa38] sm:$0xff] }
 0x1e1   :  { %v10057_v34 = vld [vmem:[%s14298_s0 + $0x920] sm:$0xff]  ;;  %16040 = vst [vmem:[#allocation24_spill] sm:$0xff] %v10071_v49  ;;  %v10090_v47 = vld [vmem:[%s14298_s0 + $0x9e8] sm:$0xff]  ;;  %16045 = vst [vmem:[#allocation26_spill] sm:$0xff] %v10107_v40 }
 0x1e2   :  { %5548 = vmatpush1.bf16.msra.mxu1 %v6435_v35  ;;  %v10023_v35 = vld [vmem:[%s14298_s0 + $0x880] sm:$0xff]  ;;  %16038 = vst [vmem:[#allocation12_spill] sm:$0xff] %v10057_v34  ;;  %16043 = vst [vmem:[#allocation32_spill] sm:$0xff] %v10090_v47  ;;  %v6467_v36 = vld [vmem:[%s14297_s1 + $0x3f4] ss:$8 sps:$4 sm:$0xff]  }
 0x1e3   :  { %5549 = vmatprep.subr.bf16.mxu1 %v6443_v58  ;;  %v6447_v58 = vld [vmem:[%s14297_s1 + $0x320] ss:$8 sps:$4 sm:$0xff]   ;;  %16034 = vst [vmem:[#allocation8_spill] sm:$0xff] %v10023_v35  ;;  %v10102_v35 = vld [vmem:[%s14298_s0 + $0xa10] sm:$0xff]  ;;  %v10169_v2 = vld [vmem:[%s14298_s0 + $0xb78] sm:$0xff] }
 0x1e4   :  { %16044 = vst [vmem:[#allocation37_spill] sm:$0xff] %v10102_v35  ;;  %v10119_v16 = vld [vmem:[%s14298_s0 + $0xa60] sm:$0xff]  ;;  %v10124_v51 = vld [vmem:[%s14298_s0 + $0xa88] sm:$0xff]  ;;  %v10133_v34 = vld [vmem:[%s14298_s0 + $0xab0] sm:$0xff] }
 0x1e5   :  { %16046 = vst [vmem:[#allocation33_spill] sm:$0xff] %v10119_v16  ;;  %16047 = vst [vmem:[#allocation41_spill] sm:$0xff] %v10124_v51  ;;  %v10152_v49 = vld [vmem:[%s14298_s0 + $0xb28] sm:$0xff]  ;;  %v10181_v47 = vld [vmem:[%s14298_s0 + $0xba0] sm:$0xff] }
 0x1e6   :  { %5550 = vmatpush1.bf16.msra.mxu1 %v6441_v11  ;;  %v10085_v11 = vld [vmem:[%s14298_s0 + $0x9c0] sm:$0x11]  ;;  %16048 = vst [vmem:[#allocation42_spill] sm:$0xff] %v10133_v34  ;;  %16051 = vst [vmem:[#allocation48_spill] sm:$0xff] %v10152_v49  ;;  %v10186_v55 = vld [vmem:[%s14298_s0 + $0xbc8] sm:$0xff] }
 0x1e7   :  { %5551 = vmatprep.subr.bf16.mxu1 %v6449_v63  ;;  %v6453_v63 = vld [vmem:[%s14297_s1 + $0x310] ss:$8 sps:$4 sm:$0xff]   ;;  %16042 = vst [vmem:[#allocation20_spill] sm:$0xff] %v10085_v11  ;;  %16053 = vst [vmem:[#allocation51_spill] sm:$0xff] %v10169_v2  ;;  %v6473_v35 = vld [vmem:[%s14297_s1 + $0x3e4] ss:$8 sps:$4 sm:$0xff]  }
 0x1e8   :  { %16054 = vst [vmem:[#allocation55_spill] sm:$0xff] %v10181_v47  ;;  %16055 = vst [vmem:[#allocation39_spill] sm:$0xff] %v10186_v55  ;;  %v10195_v16 = vld [vmem:[%s14298_s0 + $0xbf0] sm:$0x11]  ;;  %v10200_v40 = vld [vmem:[%s14298_s0 + $0xc18] sm:$0xff] }
 0x1e9   :  { %16056 = vst [vmem:[#allocation44_spill] sm:$0xff] %v10195_v16  ;;  %16057 = vst [vmem:[#allocation56_spill] sm:$0xff] %v10200_v40  ;;  %v10214_v34 = vld [vmem:[%s14298_s0 + $0xc68] sm:$0xff]  ;;  %v10231_v51 = vld [vmem:[%s14298_s0 + $0xcb8] sm:$0xff] }
 0x1ea   :  { %5552 = vmatpush1.bf16.msra.mxu1 %v6447_v58  ;;  %v10147_v58 = vld [vmem:[%s14298_s0 + $0xb00] sm:$0xff]  ;;  %16059 = vst [vmem:[#allocation63_spill] sm:$0xff] %v10214_v34  ;;  %16061 = vst [vmem:[#allocation49_spill] sm:$0xff] %v10231_v51  ;;  %v6479_v27 = vld [vmem:[%s14297_s1 + $0x3d4] ss:$8 sps:$4 sm:$0xff]  }
 0x1eb   :  { %5553 = vmatprep.subr.bf16.mxu1 %v6455_v44  ;;  %v6459_v44 = vld [vmem:[%s14297_s1 + $0x300] ss:$8 sps:$4 sm:$0xff]   ;;  %16050 = vst [vmem:[#allocation38_spill] sm:$0xff] %v10147_v58  ;;  %v10226_v58 = vld [vmem:[%s14298_s0 + $0xc90] sm:$0xff]  ;;  %v10262_v2 = vld [vmem:[%s14298_s0 + $0xd58] sm:$0xff] }
 0x1ec   :  { %16060 = vst [vmem:[#allocation64_spill] sm:$0xff] %v10226_v58  ;;  %v10243_v49 = vld [vmem:[%s14298_s0 + $0xce0] sm:$0xff]  ;;  %v10248_v11 = vld [vmem:[%s14298_s0 + $0xd08] sm:$0x11]  ;;  %v10257_v47 = vld [vmem:[%s14298_s0 + $0xd30] sm:$0xff] }
 0x1ed   :  { %16062 = vst [vmem:[#allocation65_spill] sm:$0xff] %v10243_v49  ;;  %16063 = vst [vmem:[#allocation69_spill] sm:$0xff] %v10248_v11  ;;  %v10276_v55 = vld [vmem:[%s14298_s0 + $0xda8] sm:$0xff]  ;;  %v10293_v16 = vld [vmem:[%s14298_s0 + $0xdf8] sm:$0xff] }
 0x1ee   :  { %5554 = vmatpush1.bf16.msra.mxu1 %v6453_v63  ;;  %v10209_v63 = vld [vmem:[%s14298_s0 + $0xc40] sm:$0xff]  ;;  %16064 = vst [vmem:[#allocation57_spill] sm:$0xff] %v10257_v47  ;;  %16065 = vst [vmem:[#allocation58_spill] sm:$0xff] %v10262_v2  ;;  %v10310_v13 = vld [vmem:[%s14298_s0 + $0xe48] sm:$0xff] }
 0x1ef   :  { %5555 = vmatprep.subr.bf16.mxu1 %v6461_v62  ;;  %v6465_v62 = vld [vmem:[%s14297_s1 + $0x3f0] ss:$8 sps:$4 sm:$0xff]   ;;  %16058 = vst [vmem:[#allocation62_spill] sm:$0xff] %v10209_v63  ;;  %16067 = vst [vmem:[#allocation50_spill] sm:$0xff] %v10276_v55  ;;  %v6485_v58 = vld [vmem:[%s14297_s1 + $0x3c4] ss:$8 sps:$4 sm:$0xff]  }
 0x1f0   :  { %v10288_v63 = vld [vmem:[%s14298_s0 + $0xdd0] sm:$0xff]  ;;  %16069 = vst [vmem:[#allocation66_spill] sm:$0xff] %v10293_v16  ;;  %v10305_v34 = vld [vmem:[%s14298_s0 + $0xe20] sm:$0x11]  ;;  %16071 = vst [vmem:[#allocation46_spill] sm:$0xff] %v10310_v13 }
 0x1f1   :  { %16068 = vst [vmem:[#allocation59_spill] sm:$0xff] %v10288_v63  ;;  %16070 = vst [vmem:[#allocation60_spill] sm:$0xff] %v10305_v34  ;;  %v10319_v49 = vld [vmem:[%s14298_s0 + $0xe70] sm:$0xff]  ;;  %v10324_v51 = vld [vmem:[%s14298_s0 + $0xe98] sm:$0xff] }
 0x1f2   :  { %5556 = vmatpush1.bf16.msra.mxu1 %v6459_v44  ;;  %v10271_v44 = vld [vmem:[%s14298_s0 + $0xd80] sm:$0xff]  ;;  %16072 = vst [vmem:[#allocation70_spill] sm:$0xff] %v10319_v49  ;;  %16073 = vst [vmem:[#allocation78_spill] sm:$0xff] %v10324_v51  ;;  %v10338_v47 = vld [vmem:[%s14298_s0 + $0xee8] sm:$0xff] }
 0x1f3   :  { %5557 = vmatprep.subr.bf16.mxu1 %v6467_v36  ;;  %v6471_v36 = vld [vmem:[%s14297_s1 + $0x3e0] ss:$8 sps:$4 sm:$0xff]   ;;  %16066 = vst [vmem:[#allocation53_spill] sm:$0xff] %v10271_v44  ;;  %16075 = vst [vmem:[#allocation72_spill] sm:$0xff] %v10338_v47  ;;  %v10350_v44 = vld [vmem:[%s14298_s0 + $0xf10] sm:$0xff] }
 0x1f4   :  { %16076 = vst [vmem:[#allocation73_spill] sm:$0xff] %v10350_v44  ;;  %v10355_v11 = vld [vmem:[%s14298_s0 + $0xf38] sm:$0x11]  ;;  %v10367_v55 = vld [vmem:[%s14298_s0 + $0xf60] sm:$0xff]  ;;  %v10372_v40 = vld [vmem:[%s14298_s0 + $0xf88] sm:$0xff] }
 0x1f5   :  { %16077 = vst [vmem:[#allocation71_spill] sm:$0xff] %v10355_v11  ;;  %v6491_v63 = vld [vmem:[%s14297_s1 + $0x3b4] ss:$8 sps:$4 sm:$0xff]   ;;  %16078 = vst [vmem:[#allocation85_spill] sm:$0xff] %v10367_v55  ;;  %v10400_v49 = vld [vmem:[%s14298_s0 + $0x1028] sm:$0xff] }
 0x1f6   :  { %5558 = vmatpush2.bf16.msra.mxu1 %v6465_v62  ;;  %v10333_v62 = vld [vmem:[%s14298_s0 + $0xec0] sm:$0xff]  ;;  %16079 = vst [vmem:[#allocation74_spill] sm:$0xff] %v10372_v40  ;;  %v10381_v16 = vld [vmem:[%s14298_s0 + $0xfb0] sm:$0xff]  ;;  %v10386_v34 = vld [vmem:[%s14298_s0 + $0xfd8] sm:$0xff]  ;;  %v16092_v40 = vunpack.c.h.bf16 %v9659_v10 }
 0x1f7   :  { %5559 = vmatprep.subr.bf16.mxu1 %v6473_v35  ;;  %v6477_v35 = vld [vmem:[%s14297_s1 + $0x3d0] ss:$8 sps:$4 sm:$0xff]   ;;  %16074 = vst [vmem:[#allocation84_spill] sm:$0xff] %v10333_v62  ;;  %16080 = vst [vmem:[#allocation81_spill] sm:$0xff] %v10381_v16  ;;  %v6497_v44 = vld [vmem:[%s14297_s1 + $0x3a4] ss:$8 sps:$4 sm:$0xff]  }
 0x1f8   :  { %16081 = vst [vmem:[#allocation79_spill] sm:$0xff] %v10386_v34  ;;  %16083 = vst [vmem:[#allocation91_spill] sm:$0xff] %v10400_v49  ;;  %v10412_v62 = vld [vmem:[%s14298_s0 + $0x1050] sm:$0x11]  ;;  %v10417_v13 = vld [vmem:[%s14298_s0 + $0x1078] sm:$0xff]  ;;  %v16090_v49 = vunpack.c.h.bf16 %v9617_v26  ;;  %v16094_v34 = vunpack.c.h.bf16 %v9704_v57 }
 0x1f9   :  { %16084 = vst [vmem:[#allocation92_spill] sm:$0xff] %v10412_v62  ;;  %16085 = vst [vmem:[#allocation77_spill] sm:$0xff] %v10417_v13  ;;  %v10429_v47 = vld [vmem:[%s14298_s0 + $0x10a0] sm:$0xff]  ;;  %v10434_v2 = vld [vmem:[%s14298_s0 + $0x10c8] sm:$0xff] }
 0x1fa   :  { %5560 = vmatpush2.bf16.msra.mxu1 %v6471_v36  ;;  %v10395_v36 = vld [vmem:[%s14298_s0 + $0x1000] sm:$0xff]  ;;  %16086 = vst [vmem:[#allocation83_spill] sm:$0xff] %v10429_v47  ;;  %16087 = vst [vmem:[#allocation90_spill] sm:$0xff] %v10434_v2  ;;  %v10443_v55 = vld [vmem:[%s14298_s0 + $0x10f0] sm:$0xff]  ;;  %v1778_v47 = vadd.f32 %v16090_v49, %v16089_v43  ;;  %v1913_v7 = vsel %vm1717_vm0, %v16094_v34, 0.0  ;;  %v16095_v43 = vunpack.c.h.bf16 %v9713_v31  ;;  %v16096_v49 = vunpack.c.h.bf16 %v9718_v54 }
 0x1fb   :  { %5561 = vmatprep.subr.bf16.mxu1 %v6479_v27  ;;  %v6483_v27 = vld [vmem:[%s14297_s1 + $0x3c0] ss:$8 sps:$4 sm:$0xff]   ;;  %16082 = vst [vmem:[#allocation80_spill] sm:$0xff] %v10395_v36  ;;  %v10448_v51 = vld [vmem:[%s14298_s0 + $0x1118] sm:$0xff]  ;;  %v1908_v36 = vadd.f32 %v16093_v37, %v16092_v40  ;;  %v16098_v40 = vunpack.c.h.bf16 %v9766_v4  ;;  %v16099_v37 = vunpack.c.h.bf16 %v9775_v33  ;;  %v16100_v34 = vunpack.c.h.bf16 %v9814_v20  ;;  %v6509_v31 = vld [vmem:[%s14297_s1 + $0x384] ss:$8 sps:$4 sm:$0xff]  }
 0x1fc   :  { %16088 = vst [vmem:[#allocation75_spill] sm:$0xff] %v10448_v51  ;;  %v10462_v16 = vld [vmem:[%s14298_s0 + $0x1168] sm:$0x11]  ;;  %v6503_v11 = vld [vmem:[%s14297_s1 + $0x394] ss:$8 sps:$4 sm:$0xff]   ;;  %v16103_v4 = vunpack.c.h.bf16 %v9823_v8  ;;  %v16104_v33 = vunpack.c.h.bf16 %v9828_v48  ;;  %v16106_v20 = vunpack.c.h.bf16 %v9730_v9  ;;  %v16112_v8 = vunpack.c.h.bf16 %v9686_v5 }
 0x1fd   :  { %v2168_v57 = vadd.f32 %v16099_v37, %v16098_v40  ;;  %v16105_v37 = vunpack.c.h.bf16 %v9871_v6 }
 0x1fe   :  { %5562 = vmatpush2.bf16.msra.mxu1 %v6477_v35  ;;  %v10457_v35 = vld [vmem:[%s14298_s0 + $0x1140] sm:$0xff]  ;;  %v2298_v40 = vadd.f32 %v16104_v33, %v16103_v4  ;;  %v16110_v4 = vunpack.c.h.bf16 %v9921_v59 }
 0x1ff   :  { %5563 = vmatprep.subr.bf16.mxu1 %v6485_v58  ;;  %v6489_v58 = vld [vmem:[%s14297_s1 + $0x3b0] ss:$8 sps:$4 sm:$0xff]  }
 0x200   :  { %v2433_v33 = vsel %vm1717_vm0, %v16110_v4, 0.0  ;;  %v16117_v4 = vunpack.c.h.bf16 %v9792_v56 }
 0x202   :  { %5564 = vmatpush2.bf16.msra.mxu1 %v6483_v27  ;;  %v16091_v27 = vunpack.c.h.bf16 %v9654_v38  ;;  %v2038_v38 = vadd.f32 %v16096_v49, %v16095_v43  ;;  %v16101_v43 = vunpack.c.h.bf16 %v9624_v19 }
 0x203   :  { %5565 = vmatprep.subr.bf16.mxu1 %v6491_v63  ;;  %v6495_v63 = vld [vmem:[%s14297_s1 + $0x3a0] ss:$8 sps:$4 sm:$0xff]  }
 0x204   :  { %v1779_v49 = vadd.f32 %v1778_v47, %v16101_v43  ;;  %v2039_v54 = vadd.f32 %v2038_v38, %v16106_v20  ;;  %v16107_v47 = vunpack.c.h.bf16 %v9780_v21  ;;  %v16113_v38 = vunpack.c.h.bf16 %v9837_v15 }
 0x206   :  { %5566 = vmatpush2.bf16.msra.mxu1 %v6489_v58  ;;  %v1783_v58 = vsel %vm1717_vm0, %v16091_v27, 0.0  ;;  %v16097_v27 = vunpack.c.h.bf16 %v9761_v1  ;;  %v16102_v1 = vunpack.c.h.bf16 %v9676_v0  ;;  %v2169_v43 = vadd.f32 %v2168_v57, %v16107_v47 }
 0x207   :  { %5567 = vmatprep.subr.bf16.mxu1 %v6497_v44  ;;  %v6501_v44 = vld [vmem:[%s14297_s1 + $0x390] ss:$8 sps:$4 sm:$0xff]   ;;  %v2299_v20 = vadd.f32 %v2298_v40, %v16113_v38  ;;  %v16114_v57 = vunpack.c.h.bf16 %v9933_v52  ;;  %v16115_v47 = vunpack.c.h.bf16 %v9938_v22  ;;  %v16122_v22 = vunpack.c.h.bf16 %v9842_v61  ;;  %v16225_v52 = vld [vmem:[#allocation74_spill] sm:$0xff] }
 0x208   :  { %v2043_v10 = vsel %vm1717_vm0, %v16097_v27, 0.0  ;;  %v1909_v27 = vadd.f32 %v1908_v36, %v16102_v1  ;;  %v16108_v1 = vunpack.c.h.bf16 %v9876_v12  ;;  %v16109_v36 = vunpack.c.h.bf16 %v9885_v42 }
 0x209   :  { %v2558_v12 = vadd.f32 %v16115_v47, %v16114_v57  ;;  %v16121_v57 = vunpack.c.h.bf16 %v9691_v25 }
 0x20a   :  { %5568 = vmatpush2.bf16.msra.mxu1 %v6495_v63  ;;  %v2173_v63 = vsel %vm1717_vm0, %v16100_v34, 0.0  ;;  %v2303_v34 = vsel %vm1717_vm0, %v16105_v37, 0.0  ;;  %v2428_v48 = vadd.f32 %v16109_v36, %v16108_v1  ;;  %v16111_v37 = vunpack.c.h.bf16 %v9632_v32  ;;  %v6507_v1 = vld [vmem:[%s14297_s1 + $0x380] ss:$8 sps:$4 sm:$0xff]  }
 0x20b   :  { %5569 = vmatprep.subr.bf16.mxu1 %v6503_v11  ;;  %v6512_v11 = vld [vmem:[%s14297_s1 + $0x474] ss:$8 sps:$4 sm:$0xff]   ;;  %v1910_v0 = vadd.f32 %v1909_v27, %v16112_v8  ;;  %v16116_v36 = vunpack.c.h.bf16 %v9735_v39  ;;  %v2170_v8 = vadd.f32 %v2169_v43, %v16117_v4  ;;  %v16118_v27 = vunpack.c.h.bf16 %v9890_v46 }
 0x20c   :  { %v1780_v6 = vadd.f32 %v1779_v49, %v16111_v37  ;;  %5584 = vmatprep.subr.bf16.mxu0 %v6512_v11  ;;  %v16119_v37 = vunpack.c.h.bf16 %v9978_v29  ;;  %v16124_v4 = vunpack.c.h.bf16 %v9747_v41  ;;  %v16207_v46 = vld [vmem:[#allocation53_spill] sm:$0xff]  ;;  %v16209_v41 = vld [vmem:[#allocation71_spill] sm:$0xff] }
 0x20d   :  { %v2040_v49 = vadd.f32 %v2039_v54, %v16116_v36  ;;  %v2429_v40 = vadd.f32 %v2428_v48, %v16118_v27  ;;  %v1911_v47 = vadd.f32 %v1910_v0, %v16121_v57  ;;  %v2300_v54 = vadd.f32 %v2299_v20, %v16122_v22 }
 0x20e   :  { %5570 = vmatpush2.bf16.msra.mxu1 %v6501_v44  ;;  %v2563_v38 = vsel %vm1717_vm0, %v16119_v37, 0.0  ;;  %v16120_v44 = vunpack.c.h.bf16 %v9640_v45  ;;  %v16123_v36 = vunpack.c.h.bf16 %v9947_v50  ;;  %v16125_v27 = vunpack.c.h.bf16 %v9797_v53  ;;  %v16139_v50 = vld [vmem:[#allocation10_spill] sm:$0xff] }
 0x20f   :  { %5571 = vmatprep.subr.bf16.mxu1 %v6509_v31  ;;  %v2041_v48 = vadd.f32 %v2040_v49, %v16124_v4  ;;  %v16126_v31 = vunpack.c.h.bf16 %v9899_v14  ;;  %v16129_v57 = vunpack.c.h.bf16 %v9645_v17  ;;  %v16130_v20 = vunpack.c.h.bf16 %v9699_v28 }
 0x210   :  { %v1781_v11 = vadd.f32 %v1780_v6, %v16120_v44  ;;  %v2559_v43 = vadd.f32 %v2558_v12, %v16123_v36  ;;  %v2171_v29 = vadd.f32 %v2170_v8, %v16125_v27  ;;  %v16127_v6 = vunpack.c.h.bf16 %v9983_v18  ;;  %v16133_v27 = vld [vmem:[#allocation86_spill] sm:$0xff] }
 0x211   :  { %v2430_v37 = vadd.f32 %v2429_v40, %v16126_v31  ;;  %v16128_v44 = vunpack.c.h.bf16 %v9995_v60  ;;  %v1912_v12 = vadd.f32 %v1911_v47, %v16130_v20  ;;  %v16131_v36 = vunpack.c.h.bf16 %v9854_v23  ;;  %v16135_v31 = vld [vmem:[#allocation88_spill] sm:$0xff]  ;;  %v16137_v60 = vld [vmem:[#allocation30_spill] sm:$0xff] }
 0x212   :  { %v1782_v22 = vadd.f32 %v1781_v11, %v16129_v57  ;;  %v16132_v4 = vunpack.c.h.bf16 %v9952_v30  ;;  %v16134_v14 = vunpack.c.h.bf16 %v16133_v27  ;;  %v16136_v18 = vunpack.c.h.bf16 %v16135_v31  ;;  %5572 = vmatpush2.bf16.msra.mxu1 %v6507_v1  ;;  %v16141_v23 = vld [vmem:[#allocation16_spill] sm:$0xff]  ;;  %v16143_v30 = vld [vmem:[#allocation34_spill] sm:$0xff] }
 0x213   :  { %v2688_v0 = vadd.f32 %v16128_v44, %v16127_v6  ;;  %v2301_v49 = vadd.f32 %v2300_v54, %v16131_v36  ;;  %v16138_v6 = vunpack.c.h.bf16 %v16137_v60  ;;  %v16140_v11 = vunpack.c.h.bf16 %v16139_v50  ;;  %v16149_v1 = vld [vmem:[#allocation2_spill] sm:$0xff] }
 0x214   :  { %v2560_v8 = vadd.f32 %v2559_v43, %v16132_v4  ;;  %v2042_v40 = vadd.f32 %v2041_v48, %v16134_v14  ;;  %v2172_v53 = vadd.f32 %v2171_v29, %v16136_v18  ;;  %v1784_v47 = vadd.f32 %v1783_v58, %v1782_v22  ;;  %v16145_v48 = vld [vmem:[#allocation95_spill] sm:$0xff]  ;;  %v16147_v29 = vld [vmem:[#allocation22_spill] sm:$0xff] }
 0x215   :  { %v2431_v44 = vadd.f32 %v2430_v37, %v16138_v6  ;;  %v2689_v57 = vadd.f32 %v2688_v0, %v16140_v11  ;;  %v1914_v20 = vadd.f32 %v1913_v7, %v1912_v12  ;;  %v16142_v54 = vunpack.c.h.bf16 %v16141_v23  ;;  %v16151_v11 = vld [vmem:[#allocation9_spill] sm:$0xff] }
 0x216   :  { %v16144_v43 = vunpack.c.h.bf16 %v16143_v30  ;;  %v2044_v27 = vadd.f32 %v2043_v10, %v2042_v40  ;;  %v2174_v14 = vadd.f32 %v2173_v63, %v2172_v53  ;;  %v16146_v31 = vunpack.c.h.bf16 %v16145_v48 }
 0x217   :  { %v2302_v36 = vadd.f32 %v2301_v49, %v16142_v54  ;;  %v16148_v60 = vunpack.c.h.bf16 %v16147_v29  ;;  %v1785_v6 = vrot.slane %v1784_v47, 4  ;;  %v1915_v50 = vrot.slane %v1914_v20, 4 }
 0x218   :  { %v2561_v4 = vadd.f32 %v2560_v8, %v16144_v43  ;;  %v2432_v18 = vadd.f32 %v2431_v44, %v16146_v31  ;;  %v16150_v58 = vunpack.c.h.bf16 %v16149_v1  ;;  %v2045_v22 = vrot.slane %v2044_v27, 4 }
 0x219   :  { %v2690_v37 = vadd.f32 %v2689_v57, %v16148_v60  ;;  %v2304_v0 = vadd.f32 %v2303_v34, %v2302_v36  ;;  %v2175_v12 = vrot.slane %v2174_v14, 4  ;;  %v16152_v54 = vunpack.c.h.bf16 %v16151_v11  ;;  %v16153_v60 = vld [vmem:[#allocation8_spill] sm:$0xff] }
 0x21a   :  { %v2562_v7 = vadd.f32 %v2561_v4, %v16150_v58  ;;  %v2434_v49 = vadd.f32 %v2433_v33, %v2432_v18  ;;  %v1786_v10 = vadd.f32 %v1785_v6, %v1784_v47  ;;  %v1916_v53 = vadd.f32 %v1915_v50, %v1914_v20  ;;  %v16155_v18 = vld [vmem:[#allocation36_spill] sm:$0xff] }
 0x21b   :  { %v2691_v8 = vadd.f32 %v2690_v37, %v16152_v54  ;;  %v2305_v63 = vrot.slane %v2304_v0, 4  ;;  %v2046_v31 = vadd.f32 %v2045_v22, %v2044_v27  ;;  %v2176_v44 = vadd.f32 %v2175_v12, %v2174_v14 }
 0x21c   :  { %v2564_v40 = vadd.f32 %v2563_v38, %v2562_v7  ;;  %v2435_v43 = vrot.slane %v2434_v49, 4  ;;  %v16154_v57 = vunpack.c.h.bf16 %v16153_v60  ;;  %v1787_v34 = vrot.slane %v1786_v10, 2 }
 0x21d   :  { %v1917_v36 = vrot.slane %v1916_v53, 2  ;;  %v2306_v1 = vadd.f32 %v2305_v63, %v2304_v0  ;;  %v2047_v58 = vrot.slane %v2046_v31, 2  ;;  %v2177_v48 = vrot.slane %v2176_v44, 2 }
 0x21e   :  { %v2692_v29 = vadd.f32 %v2691_v8, %v16154_v57  ;;  %v2565_v4 = vrot.slane %v2564_v40, 4  ;;  %v2436_v33 = vadd.f32 %v2435_v43, %v2434_v49  ;;  %v16156_v11 = vunpack.c.h.bf16 %v16155_v18 }
 0x21f   :  { %v1788_v50 = vadd.f32 %v1787_v34, %v1786_v10  ;;  %v1918_v20 = vadd.f32 %v1917_v36, %v1916_v53  ;;  %v2307_v38 = vrot.slane %v2306_v1, 2  ;;  %v2048_v14 = vadd.f32 %v2047_v58, %v2046_v31  ;;  %v16159_v36 = vld [vmem:[#allocation13_spill] sm:$0xff] }
 0x220   :  { %v2693_v47 = vsel %vm1717_vm0, %v16156_v11, 0.0  ;;  %v2566_v27 = vadd.f32 %v2565_v4, %v2564_v40  ;;  %v2178_v37 = vadd.f32 %v2177_v48, %v2176_v44  ;;  %v2437_v6 = vrot.slane %v2436_v33, 2  ;;  %v16157_v44 = vld [vmem:[#allocation27_spill] sm:$0xff] }
 0x221   :  { %v2694_v7 = vadd.f32 %v2693_v47, %v2692_v29  ;;  %v1789_v22 = vrot.slane %v1788_v50, 1  ;;  %v1919_v12 = vrot.slane %v1918_v20, 1  ;;  %v2308_v54 = vadd.f32 %v2307_v38, %v2306_v1 }
 0x222   :  { %v2567_v0 = vrot.slane %v2566_v27, 2  ;;  %v2049_v8 = vrot.slane %v2048_v14, 1  ;;  %v2179_v63 = vrot.slane %v2178_v37, 1  ;;  %v2438_v57 = vadd.f32 %v2437_v6, %v2436_v33  ;;  %v16161_v33 = vld [vmem:[#allocation20_spill] sm:$0xff] }
 0x223   :  { %v2695_v49 = vrot.slane %v2694_v7, 4  ;;  %v10618_v43 = vadd.f32 %v1789_v22, %v1788_v50  ;;  %v10620_v18 = vadd.f32 %v1919_v12, %v1918_v20  ;;  %v2309_v11 = vrot.slane %v2308_v54, 1  ;;  %v16167_v22 = vld [vmem:[#allocation43_spill] sm:$0xff] }
 0x224   :  { %v2568_v10 = vadd.f32 %v2567_v0, %v2566_v27  ;;  %v10622_v53 = vadd.f32 %v2049_v8, %v2048_v14  ;;  %v10624_v40 = vadd.f32 %v2179_v63, %v2178_v37  ;;  %v2439_v48 = vrot.slane %v2438_v57, 1  ;;  %v16163_v27 = vld [vmem:[#allocation32_spill] sm:$0xff]  ;;  %v16165_v37 = vld [vmem:[#allocation37_spill] sm:$0xff] }
 0x225   :  { %v2696_v29 = vadd.f32 %v2695_v49, %v2694_v7  ;;  %v10626_v31 = vadd.f32 %v2309_v11, %v2308_v54  ;;  %v16158_v34 = vunpack.c.h.bf16 %v16157_v44  ;;  %v16160_v4 = vunpack.c.h.bf16 %v16159_v36  ;;  %v16169_v8 = vld [vmem:[#allocation12_spill] sm:$0xff]  ;;  %v16171_v11 = vld [vmem:[#allocation38_spill] sm:$0xff] }
 0x226   :  { %v2569_v1 = vrot.slane %v2568_v10, 1  ;;  %v16162_v47 = vunpack.c.h.bf16 %v16161_v33  ;;  %v10635_v20 = vadd.f32 %v2439_v48, %v2438_v57  ;;  %v16164_v14 = vunpack.c.h.bf16 %v16163_v27  ;;  %v16179_v36 = vld [vmem:[#allocation56_spill] sm:$0xff] }
 0x227   :  { %v2818_v58 = vadd.f32 %v16160_v4, %v16158_v34  ;;  %v2697_v38 = vrot.slane %v2696_v29, 2  ;;  %v16166_v6 = vunpack.c.h.bf16 %v16165_v37  ;;  %v16168_v12 = vunpack.c.h.bf16 %v16167_v22  ;;  %v16173_v4 = vld [vmem:[#allocation48_spill] sm:$0xff] }
 0x228   :  { %v2823_v50 = vsel %vm1717_vm0, %v16162_v47, 0.0  ;;  %v10644_v0 = vadd.f32 %v2569_v1, %v2568_v10  ;;  %v16170_v63 = vunpack.c.h.bf16 %v16169_v8  ;;  %v16172_v34 = vunpack.c.h.bf16 %v16171_v11  ;;  %v16175_v47 = vld [vmem:[#allocation44_spill] sm:$0xff]  ;;  %v16181_v10 = vld [vmem:[#allocation62_spill] sm:$0xff]  ;;  %v16183_v8 = vld [vmem:[#allocation69_spill] sm:$0xff] }
 0x229   :  { %v2948_v7 = vadd.f32 %v16166_v6, %v16164_v14  ;;  %v2953_v54 = vsel %vm1717_vm0, %v16168_v12, 0.0  ;;  %v16174_v57 = vunpack.c.h.bf16 %v16173_v4  ;;  %v16176_v33 = vunpack.c.h.bf16 %v16175_v47  ;;  %v16177_v14 = vld [vmem:[#allocation26_spill] sm:$0xff] }
 0x22a   :  { %v2819_v49 = vadd.f32 %v2818_v58, %v16170_v63  ;;  %v2698_v37 = vadd.f32 %v2697_v38, %v2696_v29  ;;  %v16178_v6 = vunpack.c.h.bf16 %v16177_v14  ;;  %v16180_v12 = vunpack.c.h.bf16 %v16179_v36  ;;  %v16185_v11 = vld [vmem:[#allocation14_spill] sm:$0xff] }
 0x22b   :  { %v3078_v48 = vadd.f32 %v16174_v57, %v16172_v34  ;;  %v3083_v27 = vsel %vm1717_vm0, %v16176_v33, 0.0  ;;  %v16182_v1 = vunpack.c.h.bf16 %v16181_v10  ;;  %v16184_v58 = vunpack.c.h.bf16 %v16183_v8  ;;  %v16187_v57 = vld [vmem:[#allocation45_spill] sm:$0xff]  ;;  %v16191_v38 = vld [vmem:[#allocation58_spill] sm:$0xff] }
 0x22c   :  { %v2949_v22 = vadd.f32 %v2948_v7, %v16178_v6  ;;  %v16186_v4 = vunpack.c.h.bf16 %v16185_v11  ;;  %v16188_v47 = vunpack.c.h.bf16 %v16187_v57  ;;  %v16189_v33 = vld [vmem:[#allocation57_spill] sm:$0xff]  ;;  %v16192_v14 = vunpack.c.h.bf16 %v16191_v38  ;;  %v16193_v6 = vld [vmem:[#allocation60_spill] sm:$0xff]  ;;  %v16201_v57 = vld [vmem:[#allocation70_spill] sm:$0xff] }
 0x22d   :  { %v3208_v44 = vadd.f32 %v16182_v1, %v16180_v12  ;;  %v3213_v63 = vsel %vm1717_vm0, %v16184_v58, 0.0  ;;  %v16190_v29 = vunpack.c.h.bf16 %v16189_v33  ;;  %v16194_v36 = vunpack.c.h.bf16 %v16193_v6  ;;  %v16195_v1 = vld [vmem:[#allocation33_spill] sm:$0xff]  ;;  %v16197_v58 = vld [vmem:[#allocation63_spill] sm:$0xff]  ;;  %v16203_v33 = vld [vmem:[#allocation24_spill] sm:$0xff] }
 0x22e   :  { %v2820_v34 = vadd.f32 %v2819_v49, %v16186_v4  ;;  %v3079_v60 = vadd.f32 %v3078_v48, %v16188_v47  ;;  %v2699_v12 = vrot.slane %v2698_v37, 1  ;;  %v16196_v8 = vunpack.c.h.bf16 %v16195_v1  ;;  %v16199_v49 = vld [vmem:[#allocation46_spill] sm:$0xff] }
 0x22f   :  { %v3338_v7 = vadd.f32 %v16192_v14, %v16190_v29  ;;  %v3343_v10 = vsel %vm1717_vm0, %v16194_v36, 0.0  ;;  %v16198_v23 = vunpack.c.h.bf16 %v16197_v58  ;;  %v16200_v4 = vunpack.c.h.bf16 %v16199_v49  ;;  %v16205_v14 = vld [vmem:[#allocation51_spill] sm:$0xff]  ;;  %v16215_v58 = vld [vmem:[#allocation78_spill] sm:$0xff] }
 0x230   :  { %v2950_v30 = vadd.f32 %v2949_v22, %v16196_v8  ;;  %v16202_v48 = vunpack.c.h.bf16 %v16201_v57  ;;  %v16204_v61 = vunpack.c.h.bf16 %v16203_v33  ;;  %v16206_v29 = vunpack.c.h.bf16 %v16205_v14  ;;  %v16213_v57 = vld [vmem:[#allocation64_spill] sm:$0xff]  ;;  %v16217_v14 = vld [vmem:[#allocation25_spill] sm:$0xff] }
 0x231   :  { %v3209_v11 = vadd.f32 %v3208_v44, %v16198_v23  ;;  %v16208_v36 = vunpack.c.h.bf16 %v16207_v46  ;;  %v16210_v1 = vunpack.c.h.bf16 %v16209_v41  ;;  %v10692_v8 = vadd.f32 %v2699_v12, %v2698_v37  ;;  %v16211_v23 = vld [vmem:[#allocation41_spill] sm:$0xff]  ;;  %v16219_v46 = vld [vmem:[#allocation55_spill] sm:$0xff]  ;;  %v16221_v41 = vld [vmem:[#allocation50_spill] sm:$0xff] }
 0x232   :  { %v3468_v47 = vadd.f32 %v16202_v48, %v16200_v4  ;;  %v2821_v38 = vadd.f32 %v2820_v34, %v16204_v61  ;;  %v3080_v6 = vadd.f32 %v3079_v60, %v16206_v29  ;;  %v16212_v44 = vunpack.c.h.bf16 %v16211_v23  ;;  %v16223_v37 = vld [vmem:[#allocation85_spill] sm:$0xff] }
 0x233   :  { %v3339_v56 = vadd.f32 %v3338_v7, %v16208_v36  ;;  %v3473_v22 = vsel %vm1717_vm0, %v16210_v1, 0.0  ;;  %v16214_v4 = vunpack.c.h.bf16 %v16213_v57  ;;  %v16216_v61 = vunpack.c.h.bf16 %v16215_v58 }
 0x234   :  { %v2951_v49 = vadd.f32 %v2950_v30, %v16212_v44  ;;  %v16218_v60 = vunpack.c.h.bf16 %v16217_v14  ;;  %v16220_v7 = vunpack.c.h.bf16 %v16219_v46  ;;  %v16222_v33 = vunpack.c.h.bf16 %v16221_v41  ;;  %v16227_v44 = vld [vmem:[#allocation42_spill] sm:$0xff]  ;;  %v16236_v41 = vld [vmem:[#allocation59_spill] sm:$0xff] }
 0x235   :  { %v3210_v48 = vadd.f32 %v3209_v11, %v16214_v4  ;;  %v3469_v34 = vadd.f32 %v3468_v47, %v16216_v61  ;;  %v16224_v12 = vunpack.c.h.bf16 %v16223_v37  ;;  %v16226_v23 = vunpack.c.h.bf16 %v16225_v52  ;;  %v16229_v4 = vld [vmem:[#allocation49_spill] sm:$0xff]  ;;  %v16231_v61 = vld [vmem:[#allocation84_spill] sm:$0xff] }
 0x236   :  { %v2822_v29 = vadd.f32 %v2821_v38, %v16218_v60  ;;  %v3081_v36 = vadd.f32 %v3080_v6, %v16220_v7  ;;  %v3340_v1 = vadd.f32 %v3339_v56, %v16222_v33  ;;  %v16228_v57 = vunpack.c.h.bf16 %v16227_v44  ;;  %v16234_v56 = vld [vmem:[#allocation39_spill] sm:$0xff] }
 0x237   :  { %v3598_v30 = vadd.f32 %v16226_v23, %v16224_v12  ;;  %v16230_v58 = vunpack.c.h.bf16 %v16229_v4  ;;  %v16232_v14 = vunpack.c.h.bf16 %v16231_v61  ;;  %v16233_v60 = vunpack.c.h.bf16 %v10412_v62  ;;  %v16238_v12 = vld [vmem:[#allocation81_spill] sm:$0xff]  ;;  %v16242_v61 = vld [vmem:[#allocation72_spill] sm:$0xff] }
 0x238   :  { %v2952_v11 = vadd.f32 %v2951_v49, %v16228_v57  ;;  %v2824_v7 = vadd.f32 %v2823_v50, %v2822_v29  ;;  %v16235_v33 = vunpack.c.h.bf16 %v16234_v56  ;;  %v16237_v52 = vunpack.c.h.bf16 %v16236_v41  ;;  %v16240_v4 = vld [vmem:[#allocation65_spill] sm:$0xff] }
 0x239   :  { %v3211_v47 = vadd.f32 %v3210_v48, %v16230_v58  ;;  %v3470_v38 = vadd.f32 %v3469_v34, %v16232_v14  ;;  %v3603_v6 = vsel %vm1717_vm0, %v16233_v60, 0.0  ;;  %v16239_v46 = vunpack.c.h.bf16 %v16238_v12  ;;  %v16245_v60 = vld [vmem:[#allocation83_spill] sm:$0xff] }
 0x23a   :  { %v3082_v37 = vadd.f32 %v3081_v36, %v16235_v33  ;;  %v3341_v23 = vadd.f32 %v3340_v1, %v16237_v52  ;;  %v2954_v49 = vadd.f32 %v2953_v54, %v2952_v11  ;;  %v16241_v58 = vunpack.c.h.bf16 %v16240_v4  ;;  %v16247_v33 = vld [vmem:[#allocation66_spill] sm:$0xff]  ;;  %v16249_v1 = vld [vmem:[#allocation79_spill] sm:$0xff]  ;;  %v16251_v11 = vld [vmem:[#allocation73_spill] sm:$0xff] }
 0x23b   :  { %v3599_v57 = vadd.f32 %v3598_v30, %v16239_v46  ;;  %v16243_v14 = vunpack.c.h.bf16 %v16242_v61  ;;  %v16244_v62 = vunpack.c.h.bf16 %v10417_v13  ;;  %v16246_v50 = vunpack.c.h.bf16 %v16245_v60 }
 0x23c   :  { %v3212_v48 = vadd.f32 %v3211_v47, %v16241_v58  ;;  %v2825_v56 = vrot.slane %v2824_v7, 4  ;;  %v3084_v36 = vadd.f32 %v3083_v27, %v3082_v37  ;;  %v16248_v41 = vunpack.c.h.bf16 %v16247_v33 }
 0x23d   :  { %v3471_v34 = vadd.f32 %v3470_v38, %v16243_v14  ;;  %v3728_v29 = vadd.f32 %v16246_v50, %v16244_v62  ;;  %v16250_v12 = vunpack.c.h.bf16 %v16249_v1  ;;  %v2955_v54 = vrot.slane %v2954_v49, 4  ;;  %v16254_v62 = vld [vmem:[#allocation80_spill] sm:$0xff] }
 0x23e   :  { %v3342_v52 = vadd.f32 %v3341_v23, %v16248_v41  ;;  %v3214_v30 = vadd.f32 %v3213_v63, %v3212_v48  ;;  %v16252_v47 = vunpack.c.h.bf16 %v16251_v11  ;;  %v16253_v38 = vunpack.c.h.bf16 %v10434_v2  ;;  %v16257_v11 = vld [vmem:[#allocation91_spill] sm:$0xff] }
 0x23f   :  { %v3600_v46 = vadd.f32 %v3599_v57, %v16250_v12  ;;  %v2826_v13 = vadd.f32 %v2825_v56, %v2824_v7  ;;  %v3085_v61 = vrot.slane %v3084_v36, 4  ;;  %v16255_v50 = vunpack.c.h.bf16 %v16254_v62 }
 0x240   :  { %v3472_v58 = vadd.f32 %v3471_v34, %v16252_v47  ;;  %v3729_v14 = vadd.f32 %v3728_v29, %v16253_v38  ;;  %v3344_v60 = vadd.f32 %v3343_v10, %v3342_v52  ;;  %v2956_v37 = vadd.f32 %v2955_v54, %v2954_v49 }
 0x241   :  { %v3601_v27 = vadd.f32 %v3600_v46, %v16255_v50  ;;  %v3215_v33 = vrot.slane %v3214_v30, 4  ;;  %v16256_v23 = vunpack.c.h.bf16 %v10443_v55  ;;  %v2827_v57 = vrot.slane %v2826_v13, 2 }
 0x242   :  { %v3474_v41 = vadd.f32 %v3473_v22, %v3472_v58  ;;  %v3086_v63 = vadd.f32 %v3085_v61, %v3084_v36  ;;  %v3345_v48 = vrot.slane %v3344_v60, 4  ;;  %v16258_v34 = vunpack.c.h.bf16 %v16257_v11 }
 0x243   :  { %v3730_v12 = vadd.f32 %v3729_v14, %v16256_v23  ;;  %v2957_v2 = vrot.slane %v2956_v37, 2  ;;  %v3216_v29 = vadd.f32 %v3215_v33, %v3214_v30  ;;  %v16259_v10 = vunpack.c.h.bf16 %v10448_v51 }
 0x244   :  { %v3602_v47 = vadd.f32 %v3601_v27, %v16258_v34  ;;  %v3475_v7 = vrot.slane %v3474_v41, 4  ;;  %v2828_v52 = vadd.f32 %v2827_v57, %v2826_v13  ;;  %v3087_v46 = vrot.slane %v3086_v63, 2 }
 0x245   :  { %v3731_v56 = vadd.f32 %v3730_v12, %v16259_v10  ;;  %v3346_v49 = vadd.f32 %v3345_v48, %v3344_v60  ;;  %v2958_v22 = vadd.f32 %v2957_v2, %v2956_v37  ;;  %v3217_v58 = vrot.slane %v3216_v29, 2 }
 0x246   :  { %v3604_v54 = vadd.f32 %v3603_v6, %v3602_v47  ;;  %v3476_v38 = vadd.f32 %v3475_v7, %v3474_v41  ;;  %v16260_v14 = vunpack.c.h.bf16 %v10457_v35  ;;  %v2829_v36 = vrot.slane %v2828_v52, 1 }
 0x247   :  { %v3088_v50 = vadd.f32 %v3087_v46, %v3086_v63  ;;  %v3347_v23 = vrot.slane %v3346_v49, 2  ;;  %v2959_v34 = vrot.slane %v2958_v22, 1  ;;  %v3218_v33 = vadd.f32 %v3217_v58, %v3216_v29 }
 0x248   :  { %v3732_v61 = vadd.f32 %v3731_v56, %v16260_v14  ;;  %v3605_v27 = vrot.slane %v3604_v54, 4  ;;  %v3477_v30 = vrot.slane %v3476_v38, 2  ;;  %v16261_v51 = vunpack.c.h.bf16 %v10462_v16 }
 0x249   :  { %v2830_v12 = vadd.f32 %v2829_v36, %v2828_v52  ;;  %v3089_v60 = vrot.slane %v3088_v50, 1  ;;  %v3348_v6 = vadd.f32 %v3347_v23, %v3346_v49  ;;  %v2960_v37 = vadd.f32 %v2959_v34, %v2958_v22 }
 0x24a   :  { %v3733_v13 = vsel %vm1717_vm0, %v16261_v51, 0.0  ;;  %v3606_v2 = vadd.f32 %v3605_v27, %v3604_v54  ;;  %v3219_v41 = vrot.slane %v3218_v33, 1  ;;  %v3478_v57 = vadd.f32 %v3477_v30, %v3476_v38 }
 0x24b   :  { %v3734_v48 = vadd.f32 %v3733_v13, %v3732_v61  ;;  %v3090_v47 = vadd.f32 %v3089_v60, %v3088_v50  ;;  %v3349_v7 = vrot.slane %v3348_v6, 1  ;;  %v3798_v10 = vpack.c.bf16 %v10618_v43, %v10618_v43 }
 0x24c   :  { %v3607_v63 = vrot.slane %v3606_v2, 2  ;;  %v3220_v29 = vadd.f32 %v3219_v41, %v3218_v33  ;;  %v3479_v56 = vrot.slane %v3478_v57, 1  ;;  %v3808_v51 = vpack.c.bf16 %v10620_v18, %v10620_v18 }
 0x24d   :  { %v3735_v46 = vrot.slane %v3734_v48, 4  ;;  %v3350_v52 = vadd.f32 %v3349_v7, %v3348_v6  ;;  %v3818_v49 = vpack.c.bf16 %v10622_v53, %v10622_v53  ;;  %v3828_v54 = vpack.c.bf16 %v10624_v40, %v10624_v40 }
 0x24e   :  { %v3608_v58 = vadd.f32 %v3607_v63, %v3606_v2  ;;  %v3480_v22 = vadd.f32 %v3479_v56, %v3478_v57  ;;  %v3838_v14 = vpack.c.bf16 %v10626_v31, %v10626_v31  ;;  %v3848_v43 = vpack.c.bf16 %v10635_v20, %v10635_v20 }
 0x24f   :  { %v3736_v38 = vadd.f32 %v3735_v46, %v3734_v48  ;;  %v3858_v18 = vpack.c.bf16 %v10644_v0, %v10644_v0  ;;  %v3868_v36 = vpack.c.bf16 %v10692_v8, %v10692_v8  ;;  %v3878_v50 = vpack.c.bf16 %v2830_v12, %v2830_v12 }
 0x250   :  { %v3609_v61 = vrot.slane %v3608_v58, 1  ;;  %v3888_v23 = vpack.c.bf16 %v2960_v37, %v2960_v37  ;;  %v3898_v27 = vpack.c.bf16 %v3090_v47, %v3090_v47  ;;  %v3908_v40 = vpack.c.bf16 %v3220_v29, %v3220_v29 }
 0x251   :  { %v3737_v53 = vrot.slane %v3736_v38, 2  ;;  %v3918_v33 = vpack.c.bf16 %v3350_v52, %v3350_v52  ;;  %v3928_v30 = vpack.c.bf16 %v3480_v22, %v3480_v22  ;;  %v4290_v13 = vunpack.c.l.b16 %v3798_v10 }
 0x252   :  { %v3610_v34 = vadd.f32 %v3609_v61, %v3608_v58  ;;  %v4300_v60 = vunpack.c.l.b16 %v3808_v51  ;;  %v4310_v6 = vunpack.c.l.b16 %v3818_v49  ;;  %v4320_v20 = vunpack.c.l.b16 %v3828_v54 }
 0x253   :  { %v3738_v31 = vadd.f32 %v3737_v53, %v3736_v38  ;;  %v4330_v41 = vunpack.c.l.b16 %v3838_v14  ;;  %v4340_v57 = vunpack.c.l.b16 %v3848_v43  ;;  %v4350_v0 = vunpack.c.l.b16 %v3858_v18  ;;  %v16264_v38 = vld [vmem:[#allocation89_spill] sm:$0xff] }
 0x254   :  { %v3938_v2 = vpack.c.bf16 %v3610_v34, %v3610_v34  ;;  %v4360_v7 = vunpack.c.l.b16 %v3868_v36  ;;  %v4370_v8 = vunpack.c.l.b16 %v3878_v50  ;;  %v4380_v12 = vunpack.c.l.b16 %v3888_v23  ;;  %v16266_v50 = vld [vmem:[#allocation94_spill] sm:$0xff] }
 0x255   :  { %v3739_v48 = vrot.slane %v3738_v31, 1  ;;  %v4390_v63 = vunpack.c.l.b16 %v3898_v27  ;;  %v4400_v37 = vunpack.c.l.b16 %v3908_v40  ;;  %v4410_v47 = vunpack.c.l.b16 %v3918_v33  ;;  %v16270_v33 = vld [vmem:[#allocation52_spill] sm:$0xff] }
 0x256   :  { %v4420_v29 = vunpack.c.l.b16 %v3928_v30  ;;  %v4430_v46 = vunpack.c.l.b16 %v3938_v2  ;;  %v4487_v10 = vsel %vm4445_vm1, %v4300_v60, %v4290_v13  ;;  %v4557_v51 = vsel %vm4445_vm1, %v4380_v12, %v4370_v8  ;;  %v16275_v12 = vld [vmem:[#allocation47_spill] sm:$0xff] }
 0x257   :  { %v3740_v56 = vadd.f32 %v3739_v48, %v3738_v31  ;;  %v4488_v52 = vsel %vm4447_vm2, %v4310_v6, %v4487_v10  ;;  %v4558_v58 = vsel %vm4447_vm2, %v4390_v63, %v4557_v51  ;;  %v16262_v49 = vunpack.c.l.bf16 %v9608_v24 }
 0x258   :  { %v16263_v54 = vunpack.c.l.bf16 %v9617_v26  ;;  %v16265_v14 = vunpack.c.l.bf16 %v16264_v38  ;;  %v4489_v18 = vsel %vm4449_vm3, %v4320_v20, %v4488_v52  ;;  %v4559_v36 = vsel %vm4449_vm3, %v4400_v37, %v4558_v58  ;;  %v16272_v20 = vld [vmem:[#allocation40_spill] sm:$0xff]  ;;  %v16280_v52 = vld [vmem:[#allocation93_spill] sm:$0xff]  ;;  %v16284_v38 = vld [vmem:[#allocation54_spill] sm:$0xff] }
 0x259   :  { %v3948_v61 = vpack.c.bf16 %v3740_v56, %v3740_v56  ;;  %v16267_v53 = vunpack.c.l.bf16 %v16266_v50  ;;  %v16268_v23 = vunpack.c.l.bf16 %v9671_v3  ;;  %v4490_v40 = vsel %vm4451_vm4, %v4330_v41, %v4489_v18  ;;  %v16277_v37 = vld [vmem:[#allocation76_spill] sm:$0xff]  ;;  %v16289_v50 = vld [vmem:[#allocation3_spill] sm:$0xff] }
 0x25a   :  { %v1765_v22 = vadd.f32 %v16263_v54, %v16262_v49  ;;  %v1770_v43 = vsel %vm1717_vm0, %v16265_v14, 0.0  ;;  %v4560_v24 = vsel %vm4451_vm4, %v4410_v47, %v4559_v36  ;;  %v16269_v26 = vunpack.c.l.bf16 %v9624_v19 }
 0x25b   :  { %v1895_v27 = vadd.f32 %v16268_v23, %v16267_v53  ;;  %v16271_v30 = vunpack.c.l.bf16 %v16270_v33  ;;  %v4440_v31 = vunpack.c.l.b16 %v3948_v61  ;;  %v4491_v60 = vsel %vm4453_vm5, %v4340_v57, %v4490_v40  ;;  %v16286_v61 = vld [vmem:[#allocation61_spill] sm:$0xff] }
 0x25c   :  { %v1766_v34 = vadd.f32 %v1765_v22, %v16269_v26  ;;  %v4561_v6 = vsel %vm4453_vm5, %v4420_v29, %v4560_v24  ;;  %v16273_v2 = vunpack.c.l.bf16 %v16272_v20  ;;  %v4492_v48 = vsel %vm4455_vm6, %v4350_v0, %v4491_v60  ;;  %v16293_v24 = vld [vmem:[#allocation5_spill] sm:$0xff] }
 0x25d   :  { %v1900_v13 = vsel %vm1717_vm0, %v16271_v30, 0.0  ;;  %v4562_v41 = vsel %vm4455_vm6, %v4430_v46, %v4561_v6  ;;  %v16274_v8 = vunpack.c.l.bf16 %v9632_v32  ;;  %v16276_v63 = vunpack.c.l.bf16 %v16275_v12 }
 0x25e   :  { %v1896_v3 = vadd.f32 %v1895_v27, %v16273_v2  ;;  %v16278_v47 = vunpack.c.l.bf16 %v16277_v37  ;;  %v4493_v10 = vsel %vm4457_vm7, %v4360_v7, %v4492_v48  ;;  %v4563_v57 = vsel %vm4457_vm7, %v4440_v31, %v4562_v41  ;;  %v16291_v27 = vld [vmem:[#allocation4_spill] sm:$0xff]  ;;  %v16300_v2 = vld [vmem:[#allocation6_spill] sm:$0xff] }
 0x25f   :  { %v1767_v19 = vadd.f32 %v1766_v34, %v16274_v8  ;;  %v16279_v29 = vunpack.c.l.bf16 %v9686_v5  ;;  %v16281_v58 = vunpack.c.l.bf16 %v16280_v52  ;;  %v4597_v46 = vpack.c.b16 %v4563_v57, %v4493_v10  ;;  %v16295_v34 = vld [vmem:[#allocation23_spill] sm:$0xff]  ;;  %v16312_v52 = vld [vmem:[#allocation68_spill] sm:$0xff] }
 0x260   :  { %v2025_v56 = vadd.f32 %v16278_v47, %v16276_v63  ;;  %v16282_v32 = vunpack.c.l.bf16 %v9640_v45  ;;  %v16283_v54 = vunpack.c.l.bf16 %v9730_v9  ;;  %v16285_v14 = vunpack.c.l.bf16 %v16284_v38  ;;  %v16318_v38 = vld [vmem:[#allocation7_spill] sm:$0xff] }
 0x261   :  { %v1897_v51 = vadd.f32 %v1896_v3, %v16279_v29  ;;  %v2030_v0 = vsel %vm1717_vm0, %v16281_v58, 0.0  ;;  %v16287_v7 = vunpack.c.l.bf16 %v16286_v61  ;;  %v16288_v36 = vunpack.c.l.bf16 %v9691_v25  ;;  %5530 = vmatprep.mubr.bf16.mxu0 %v4597_v46  ;;  %v16310_v29 = vld [vmem:[#allocation67_spill] sm:$0xff]  ;;  %v16314_v46 = vld [vmem:[#allocation17_spill] sm:$0xff] }
 0x262   :  { %v1768_v49 = vadd.f32 %v1767_v19, %v16282_v32  ;;  %v2026_v22 = vadd.f32 %v2025_v56, %v16283_v54  ;;  %v16290_v53 = vunpack.c.l.bf16 %v16289_v50  ;;  %v16292_v40 = vunpack.c.l.bf16 %v16291_v27  ;;  %v16308_v56 = vld [vmem:[#allocation19_spill] sm:$0xff] }
 0x263   :  { %v2155_v18 = vadd.f32 %v16287_v7, %v16285_v14  ;;  %v1898_v5 = vadd.f32 %v1897_v51, %v16288_v36  ;;  %v16294_v45 = vunpack.c.l.bf16 %v16293_v24  ;;  %v16296_v9 = vunpack.c.l.bf16 %v16295_v34  ;;  %v16316_v54 = vld [vmem:[#allocation11_spill] sm:$0xff]  ;;  %v16320_v7 = vld [vmem:[#allocation29_spill] sm:$0xff] }
 0x264   :  { %v2160_v23 = vsel %vm1717_vm0, %v16290_v53, 0.0  ;;  %v16297_v30 = vunpack.c.l.bf16 %v9645_v17  ;;  %v16298_v25 = vunpack.c.l.bf16 %v9735_v39  ;;  %v16299_v6 = vunpack.c.l.bf16 %v9780_v21  ;;  %v16306_v39 = vld [vmem:[#allocation28_spill] sm:$0xff]  ;;  %v16324_v27 = vld [vmem:[#allocation87_spill] sm:$0xff] }
 0x265   :  { %v2285_v26 = vadd.f32 %v16294_v45, %v16292_v40  ;;  %v2290_v33 = vsel %vm1717_vm0, %v16296_v9, 0.0  ;;  %v16301_v3 = vunpack.c.l.bf16 %v16300_v2  ;;  %v16302_v48 = vunpack.c.l.bf16 %v9885_v42  ;;  %v16326_v45 = vld [vmem:[#allocation18_spill] sm:$0xff]  ;;  %v16328_v9 = vld [vmem:[#allocation15_spill] sm:$0xff] }
 0x266   :  { %v1769_v31 = vadd.f32 %v1768_v49, %v16297_v30  ;;  %v2027_v60 = vadd.f32 %v2026_v22, %v16298_v25  ;;  %v2156_v20 = vadd.f32 %v2155_v18, %v16299_v6  ;;  %v16303_v8 = vunpack.c.l.bf16 %v9699_v28  ;;  %v16330_v25 = vld [vmem:[#allocation21_spill] sm:$0xff] }
 0x267   :  { %v2415_v41 = vadd.f32 %v16302_v48, %v16301_v3  ;;  %v16304_v12 = vunpack.c.l.bf16 %v9837_v15  ;;  %v16305_v17 = vunpack.c.l.bf16 %v9921_v59  ;;  %v16307_v47 = vunpack.c.l.bf16 %v16306_v39  ;;  %v16334_v3 = vld [vmem:[#allocation35_spill] sm:$0xff]  ;;  %v16338_v39 = vld [vmem:[#allocation30_spill] sm:$0xff] }
 0x268   :  { %v1899_v19 = vadd.f32 %v1898_v5, %v16303_v8  ;;  %v16309_v21 = vunpack.c.l.bf16 %v16308_v56  ;;  %v1771_v57 = vadd.f32 %v1770_v43, %v1769_v31  ;;  %v16311_v51 = vunpack.c.l.bf16 %v16310_v29  ;;  %v16322_v5 = vld [vmem:[#allocation86_spill] sm:$0xff] }
 0x269   :  { %v2286_v63 = vadd.f32 %v2285_v26, %v16304_v12  ;;  %v2420_v37 = vsel %vm1717_vm0, %v16305_v17, 0.0  ;;  %v16313_v58 = vunpack.c.l.bf16 %v16312_v52  ;;  %v16315_v32 = vunpack.c.l.bf16 %v16314_v46  ;;  %v16336_v12 = vld [vmem:[#allocation88_spill] sm:$0xff] }
 0x26a   :  { %v2545_v10 = vadd.f32 %v16309_v21, %v16307_v47  ;;  %v2028_v42 = vadd.f32 %v2027_v60, %v16311_v51  ;;  %v1901_v49 = vadd.f32 %v1900_v13, %v1899_v19  ;;  %v16317_v59 = vunpack.c.l.bf16 %v16316_v54 }
 0x26b   :  { %v2157_v28 = vadd.f32 %v2156_v20, %v16313_v58  ;;  %v2416_v15 = vadd.f32 %v2415_v41, %v16315_v32  ;;  %v16319_v14 = vunpack.c.l.bf16 %v16318_v38  ;;  %v16321_v18 = vunpack.c.l.bf16 %v16320_v7  ;;  %v16332_v20 = vld [vmem:[#allocation31_spill] sm:$0xff] }
 0x26c   :  { %v2287_v22 = vadd.f32 %v2286_v63, %v16317_v59  ;;  %v1772_v36 = vrot.slane %v1771_v57, 4  ;;  %v16323_v50 = vunpack.c.l.bf16 %v16322_v5  ;;  %v16325_v40 = vunpack.c.l.bf16 %v16324_v27 }
 0x26d   :  { %v2546_v61 = vadd.f32 %v2545_v10, %v16319_v14  ;;  %v2550_v43 = vsel %vm1717_vm0, %v16321_v18, 0.0  ;;  %v16327_v26 = vunpack.c.l.bf16 %v16326_v45  ;;  %v1902_v34 = vrot.slane %v1901_v49, 4  ;;  %v16340_v10 = vld [vmem:[#allocation16_spill] sm:$0xff]  ;;  %v16350_v18 = vld [vmem:[#allocation22_spill] sm:$0xff] }
 0x26e   :  { %v2029_v53 = vadd.f32 %v2028_v42, %v16323_v50  ;;  %v2158_v24 = vadd.f32 %v2157_v28, %v16325_v40  ;;  %v16329_v30 = vunpack.c.l.bf16 %v16328_v9  ;;  %v16331_v60 = vunpack.c.l.bf16 %v16330_v25  ;;  %v16342_v42 = vld [vmem:[#allocation34_spill] sm:$0xff] }
 0x26f   :  { %v2417_v13 = vadd.f32 %v2416_v15, %v16327_v26  ;;  %v16333_v2 = vunpack.c.l.bf16 %v16332_v20  ;;  %v16335_v48 = vunpack.c.l.bf16 %v16334_v3  ;;  %v1773_v8 = vadd.f32 %v1772_v36, %v1771_v57  ;;  %v16344_v28 = vld [vmem:[#allocation10_spill] sm:$0xff]  ;;  %v16354_v20 = vld [vmem:[#allocation8_spill] sm:$0xff] }
 0x270   :  { %v2288_v31 = vadd.f32 %v2287_v22, %v16329_v30  ;;  %v2547_v6 = vadd.f32 %v2546_v61, %v16331_v60  ;;  %v2031_v19 = vadd.f32 %v2030_v0, %v2029_v53  ;;  %v16337_v63 = vunpack.c.l.bf16 %v16336_v12  ;;  %v16346_v0 = vld [vmem:[#allocation95_spill] sm:$0xff]  ;;  %v16348_v61 = vld [vmem:[#allocation2_spill] sm:$0xff] }
 0x271   :  { %v2675_v41 = vadd.f32 %v16335_v48, %v16333_v2  ;;  %v16339_v47 = vunpack.c.l.bf16 %v16338_v39  ;;  %v1903_v21 = vadd.f32 %v1902_v34, %v1901_v49  ;;  %v16341_v29 = vunpack.c.l.bf16 %v16340_v10 }
 0x272   :  { %v2159_v17 = vadd.f32 %v2158_v24, %v16337_v63  ;;  %v16343_v52 = vunpack.c.l.bf16 %v16342_v42  ;;  %v16345_v46 = vunpack.c.l.bf16 %v16344_v28  ;;  %v1774_v15 = vrot.slane %v1773_v8, 2  ;;  %v16356_v63 = vld [vmem:[#allocation36_spill] sm:$0xff]  ;;  %v16360_v28 = vld [vmem:[#allocation13_spill] sm:$0xff] }
 0x273   :  { %v2418_v56 = vadd.f32 %v2417_v13, %v16339_v47  ;;  %v2289_v51 = vadd.f32 %v2288_v31, %v16341_v29  ;;  %v2032_v54 = vrot.slane %v2031_v19, 4  ;;  %v16347_v59 = vunpack.c.l.bf16 %v16346_v0  ;;  %v16352_v13 = vld [vmem:[#allocation9_spill] sm:$0xff]  ;;  %v16362_v0 = vld [vmem:[#allocation20_spill] sm:$0xff] }
 0x274   :  { %v2548_v58 = vadd.f32 %v2547_v6, %v16343_v52  ;;  %v2676_v32 = vadd.f32 %v2675_v41, %v16345_v46  ;;  %v2161_v57 = vadd.f32 %v2160_v23, %v2159_v17  ;;  %v1904_v38 = vrot.slane %v1903_v21, 2  ;;  %v16358_v52 = vld [vmem:[#allocation27_spill] sm:$0xff] }
 0x275   :  { %v2419_v22 = vadd.f32 %v2418_v56, %v16347_v59  ;;  %v2291_v14 = vadd.f32 %v2290_v33, %v2289_v51  ;;  %v16349_v7 = vunpack.c.l.bf16 %v16348_v61  ;;  %v16351_v36 = vunpack.c.l.bf16 %v16350_v18  ;;  %v16364_v61 = vld [vmem:[#allocation12_spill] sm:$0xff] }
 0x276   :  { %v1775_v50 = vadd.f32 %v1774_v15, %v1773_v8  ;;  %v2033_v53 = vadd.f32 %v2032_v54, %v2031_v19  ;;  %v2162_v27 = vrot.slane %v2161_v57, 4  ;;  %v1905_v24 = vadd.f32 %v1904_v38, %v1903_v21  ;;  %v16366_v18 = vld [vmem:[#allocation32_spill] sm:$0xff] }
 0x277   :  { %v2549_v49 = vadd.f32 %v2548_v58, %v16349_v7  ;;  %v2677_v5 = vadd.f32 %v2676_v32, %v16351_v36  ;;  %v2421_v40 = vadd.f32 %v2420_v37, %v2419_v22  ;;  %v2292_v45 = vrot.slane %v2291_v14, 4 }
 0x278   :  { %v16353_v23 = vunpack.c.l.bf16 %v16352_v13  ;;  %v1776_v9 = vrot.slane %v1775_v50, 1  ;;  %v2034_v30 = vrot.slane %v2033_v53, 2  ;;  %v2163_v31 = vadd.f32 %v2162_v27, %v2161_v57  ;;  %v16370_v13 = vld [vmem:[#allocation14_spill] sm:$0xff] }
 0x279   :  { %v2551_v26 = vadd.f32 %v2550_v43, %v2549_v49  ;;  %v2422_v33 = vrot.slane %v2421_v40, 4  ;;  %v1906_v25 = vrot.slane %v1905_v24, 1  ;;  %v2293_v60 = vadd.f32 %v2292_v45, %v2291_v14 }
 0x27a   :  { %v2678_v34 = vadd.f32 %v2677_v5, %v16353_v23  ;;  %v16355_v2 = vunpack.c.l.bf16 %v16354_v20  ;;  %v1706_v48 = vunpack.c.l.bf16 %v10462_v16  ;;  %v2035_v41 = vadd.f32 %v2034_v30, %v2033_v53  ;;  %v16368_v5 = vld [vmem:[#allocation37_spill] sm:$0xff] }
 0x27b   :  { %v2552_v6 = vrot.slane %v2551_v26, 4  ;;  %v2164_v37 = vrot.slane %v2163_v31, 2  ;;  %v2423_v8 = vadd.f32 %v2422_v33, %v2421_v40  ;;  %v10902_v19 = vadd.f32 %v1776_v9, %v1775_v50  ;;  %v16372_v9 = vld [vmem:[#allocation26_spill] sm:$0xff]  ;;  %v16374_v33 = vld [vmem:[#allocation43_spill] sm:$0xff] }
 0x27c   :  { %v2679_v3 = vadd.f32 %v2678_v34, %v16355_v2  ;;  %v2294_v43 = vrot.slane %v2293_v60, 2  ;;  %v16357_v17 = vunpack.c.l.bf16 %v16356_v63  ;;  %v2036_v47 = vrot.slane %v2035_v41, 1 }
 0x27d   :  { %v2553_v12 = vadd.f32 %v2552_v6, %v2551_v26  ;;  %v2165_v56 = vadd.f32 %v2164_v37, %v2163_v31  ;;  %v2424_v21 = vrot.slane %v2423_v8, 2  ;;  %v10907_v29 = vadd.f32 %v1906_v25, %v1905_v24  ;;  %v16378_v37 = vld [vmem:[#allocation48_spill] sm:$0xff] }
 0x27e   :  { %v2680_v39 = vsel %vm1717_vm0, %v16357_v17, 0.0  ;;  %v2295_v51 = vadd.f32 %v2294_v43, %v2293_v60  ;;  %v16359_v58 = vunpack.c.l.bf16 %v16358_v52  ;;  %v16361_v46 = vunpack.c.l.bf16 %v16360_v28 }
 0x27f   :  { %v2681_v10 = vadd.f32 %v2680_v39, %v2679_v3  ;;  %v2554_v42 = vrot.slane %v2553_v12, 2  ;;  %v2166_v15 = vrot.slane %v2165_v56, 1  ;;  %v2425_v54 = vadd.f32 %v2424_v21, %v2423_v8  ;;  %v16376_v3 = vld [vmem:[#allocation38_spill] sm:$0xff]  ;;  %v16382_v39 = vld [vmem:[#allocation33_spill] sm:$0xff]  ;;  %v16384_v21 = vld [vmem:[#allocation44_spill] sm:$0xff] }
 0x280   :  { %v2805_v32 = vadd.f32 %v16361_v46, %v16359_v58  ;;  %v16363_v59 = vunpack.c.l.bf16 %v16362_v0  ;;  %v2296_v38 = vrot.slane %v2295_v51, 1  ;;  %v16365_v7 = vunpack.c.l.bf16 %v16364_v61  ;;  %v16388_v58 = vld [vmem:[#allocation62_spill] sm:$0xff] }
 0x281   :  { %v2682_v57 = vrot.slane %v2681_v10, 4  ;;  %v2555_v14 = vadd.f32 %v2554_v42, %v2553_v12  ;;  %v16367_v36 = vunpack.c.l.bf16 %v16366_v18  ;;  %v16369_v50 = vunpack.c.l.bf16 %v16368_v5  ;;  %v16380_v12 = vld [vmem:[#allocation24_spill] sm:$0xff]  ;;  %v16394_v61 = vld [vmem:[#allocation58_spill] sm:$0xff]  ;;  %v16396_v18 = vld [vmem:[#allocation25_spill] sm:$0xff] }
 0x282   :  { %v2810_v22 = vsel %vm1717_vm0, %v16363_v59, 0.0  ;;  %v2806_v49 = vadd.f32 %v2805_v32, %v16365_v7  ;;  %v10922_v27 = vadd.f32 %v2036_v47, %v2035_v41  ;;  %v10924_v40 = vadd.f32 %v2166_v15, %v2165_v56  ;;  %v16392_v59 = vld [vmem:[#allocation57_spill] sm:$0xff] }
 0x283   :  { %v2935_v53 = vadd.f32 %v16369_v50, %v16367_v36  ;;  %v2426_v24 = vrot.slane %v2425_v54, 1  ;;  %v2683_v45 = vadd.f32 %v2682_v57, %v2681_v10  ;;  %v2556_v26 = vrot.slane %v2555_v14, 1  ;;  %v16398_v50 = vld [vmem:[#allocation41_spill] sm:$0xff] }
 0x284   :  { %v16371_v23 = vunpack.c.l.bf16 %v16370_v13  ;;  %v16373_v30 = vunpack.c.l.bf16 %v16372_v9  ;;  %v16375_v25 = vunpack.c.l.bf16 %v16374_v33  ;;  %v10933_v6 = vadd.f32 %v2296_v38, %v2295_v51  ;;  %v16386_v51 = vld [vmem:[#allocation56_spill] sm:$0xff]  ;;  %v16400_v13 = vld [vmem:[#allocation63_spill] sm:$0xff]  ;;  %v16406_v33 = vld [vmem:[#allocation53_spill] sm:$0xff] }
 0x285   :  { %v10935_v20 = vadd.f32 %v2426_v24, %v2425_v54  ;;  %v2684_v2 = vrot.slane %v2683_v45, 2  ;;  %v16377_v41 = vunpack.c.l.bf16 %v16376_v3  ;;  %v16379_v8 = vunpack.c.l.bf16 %v16378_v37  ;;  %v16390_v54 = vld [vmem:[#allocation45_spill] sm:$0xff]  ;;  %v16404_v9 = vld [vmem:[#allocation51_spill] sm:$0xff]  ;;  %v16408_v3 = vld [vmem:[#allocation60_spill] sm:$0xff] }
 0x286   :  { %v2807_v34 = vadd.f32 %v2806_v49, %v16371_v23  ;;  %v2936_v31 = vadd.f32 %v2935_v53, %v16373_v30  ;;  %v2940_v60 = vsel %vm1717_vm0, %v16375_v25, 0.0  ;;  %v16381_v63 = vunpack.c.l.bf16 %v16380_v12  ;;  %v16412_v12 = vld [vmem:[#allocation70_spill] sm:$0xff] }
 0x287   :  { %v3065_v43 = vadd.f32 %v16379_v8, %v16377_v41  ;;  %v16383_v47 = vunpack.c.l.bf16 %v16382_v39  ;;  %v16385_v10 = vunpack.c.l.bf16 %v16384_v21  ;;  %v16387_v52 = vunpack.c.l.bf16 %v16386_v51  ;;  %v16410_v8 = vld [vmem:[#allocation46_spill] sm:$0xff] }
 0x288   :  { %v2808_v17 = vadd.f32 %v2807_v34, %v16381_v63  ;;  %v16389_v28 = vunpack.c.l.bf16 %v16388_v58  ;;  %v10952_v32 = vadd.f32 %v2556_v26, %v2555_v14  ;;  %v2685_v15 = vadd.f32 %v2684_v2, %v2683_v45  ;;  %v16402_v14 = vld [vmem:[#allocation69_spill] sm:$0xff]  ;;  %v16417_v58 = vld [vmem:[#allocation55_spill] sm:$0xff] }
 0x289   :  { %v2937_v56 = vadd.f32 %v2936_v31, %v16383_v47  ;;  %v3070_v42 = vsel %vm1717_vm0, %v16385_v10, 0.0  ;;  %v16391_v57 = vunpack.c.l.bf16 %v16390_v54  ;;  %v16393_v38 = vunpack.c.l.bf16 %v16392_v59  ;;  %v16415_v10 = vld [vmem:[#allocation64_spill] sm:$0xff]  ;;  %v16419_v54 = vld [vmem:[#allocation50_spill] sm:$0xff] }
 0x28a   :  { %v3195_v46 = vadd.f32 %v16389_v28, %v16387_v52  ;;  %v16395_v7 = vunpack.c.l.bf16 %v16394_v61  ;;  %v16397_v36 = vunpack.c.l.bf16 %v16396_v18  ;;  %v16399_v53 = vunpack.c.l.bf16 %v16398_v50  ;;  %v16421_v59 = vld [vmem:[#allocation78_spill] sm:$0xff] }
 0x28b   :  { %v3066_v0 = vadd.f32 %v3065_v43, %v16391_v57  ;;  %v16401_v23 = vunpack.c.l.bf16 %v16400_v13  ;;  %v16403_v26 = vunpack.c.l.bf16 %v16402_v14  ;;  %v16405_v30 = vunpack.c.l.bf16 %v16404_v9  ;;  %v16429_v13 = vld [vmem:[#allocation74_spill] sm:$0xff]  ;;  %v16431_v14 = vld [vmem:[#allocation39_spill] sm:$0xff] }
 0x28c   :  { %v3325_v49 = vadd.f32 %v16395_v7, %v16393_v38  ;;  %v2809_v5 = vadd.f32 %v2808_v17, %v16397_v36  ;;  %v2938_v24 = vadd.f32 %v2937_v56, %v16399_v53  ;;  %v16407_v25 = vunpack.c.l.bf16 %v16406_v33  ;;  %v16423_v7 = vld [vmem:[#allocation71_spill] sm:$0xff]  ;;  %v16427_v53 = vld [vmem:[#allocation85_spill] sm:$0xff] }
 0x28d   :  { %v3196_v34 = vadd.f32 %v3195_v46, %v16401_v23  ;;  %v3200_v45 = vsel %vm1717_vm0, %v16403_v26, 0.0  ;;  %v3067_v31 = vadd.f32 %v3066_v0, %v16405_v30  ;;  %v16409_v41 = vunpack.c.l.bf16 %v16408_v3  ;;  %v16433_v30 = vld [vmem:[#allocation59_spill] sm:$0xff] }
 0x28e   :  { %v3326_v2 = vadd.f32 %v3325_v49, %v16407_v25  ;;  %v16411_v43 = vunpack.c.l.bf16 %v16410_v8  ;;  %v16413_v63 = vunpack.c.l.bf16 %v16412_v12  ;;  %v2686_v39 = vrot.slane %v2685_v15, 1  ;;  %v16435_v25 = vld [vmem:[#allocation84_spill] sm:$0xff] }
 0x28f   :  { %v3330_v37 = vsel %vm1717_vm0, %v16409_v41, 0.0  ;;  %v2811_v47 = vadd.f32 %v2810_v22, %v2809_v5  ;;  %v16414_v56 = vunpack.c.l.bf16 %v16227_v44  ;;  %v16416_v51 = vunpack.c.l.bf16 %v16415_v10  ;;  %v16425_v44 = vld [vmem:[#allocation49_spill] sm:$0xff]  ;;  %v16437_v41 = vld [vmem:[#allocation92_spill] sm:$0xff] }
 0x290   :  { %v3455_v17 = vadd.f32 %v16413_v63, %v16411_v43  ;;  %v16418_v28 = vunpack.c.l.bf16 %v16417_v58  ;;  %v16420_v57 = vunpack.c.l.bf16 %v16419_v54  ;;  %v16422_v38 = vunpack.c.l.bf16 %v16421_v59 }
 0x291   :  { %v2939_v21 = vadd.f32 %v2938_v24, %v16414_v56  ;;  %v3197_v52 = vadd.f32 %v3196_v34, %v16416_v51  ;;  %v16424_v49 = vunpack.c.l.bf16 %v16423_v7  ;;  %v2812_v22 = vrot.slane %v2811_v47, 4  ;;  %v16440_v56 = vld [vmem:[#allocation81_spill] sm:$0xff] }
 0x292   :  { %v3068_v46 = vadd.f32 %v3067_v31, %v16418_v28  ;;  %v3327_v0 = vadd.f32 %v3326_v2, %v16420_v57  ;;  %v3456_v61 = vadd.f32 %v3455_v17, %v16422_v38  ;;  %v16426_v5 = vunpack.c.l.bf16 %v16425_v44  ;;  %v16448_v38 = vld [vmem:[#allocation83_spill] sm:$0xff] }
 0x293   :  { %v3460_v18 = vsel %vm1717_vm0, %v16424_v49, 0.0  ;;  %v2941_v36 = vadd.f32 %v2940_v60, %v2939_v21  ;;  %v16428_v24 = vunpack.c.l.bf16 %v16427_v53  ;;  %v16430_v23 = vunpack.c.l.bf16 %v16429_v13  ;;  %v16453_v13 = vld [vmem:[#allocation90_spill] sm:$0xff] }
 0x294   :  { %v3198_v50 = vadd.f32 %v3197_v52, %v16426_v5  ;;  %v16432_v26 = vunpack.c.l.bf16 %v16431_v14  ;;  %v16434_v31 = vunpack.c.l.bf16 %v16433_v30  ;;  %v16436_v2 = vunpack.c.l.bf16 %v16435_v25  ;;  %v16442_v52 = vld [vmem:[#allocation66_spill] sm:$0xff] }
 0x295   :  { %v3585_v34 = vadd.f32 %v16430_v23, %v16428_v24  ;;  %v16438_v8 = vunpack.c.l.bf16 %v16437_v41  ;;  %v2813_v43 = vadd.f32 %v2812_v22, %v2811_v47  ;;  %v2942_v12 = vrot.slane %v2941_v36, 4 }
 0x296   :  { %v3069_v9 = vadd.f32 %v3068_v46, %v16432_v26  ;;  %v3328_v33 = vadd.f32 %v3327_v0, %v16434_v31  ;;  %v3457_v3 = vadd.f32 %v3456_v61, %v16436_v2  ;;  %v16439_v63 = vunpack.c.l.bf16 %v16240_v4  ;;  %v16444_v46 = vld [vmem:[#allocation72_spill] sm:$0xff]  ;;  %v16446_v0 = vld [vmem:[#allocation77_spill] sm:$0xff] }
 0x297   :  { %v3590_v60 = vsel %vm1717_vm0, %v16438_v8, 0.0  ;;  %v16441_v21 = vunpack.c.l.bf16 %v16440_v56  ;;  %v16443_v58 = vunpack.c.l.bf16 %v16442_v52  ;;  %v16445_v54 = vunpack.c.l.bf16 %v16444_v46 }
 0x298   :  { %v3199_v17 = vadd.f32 %v3198_v50, %v16439_v63  ;;  %v3071_v51 = vadd.f32 %v3070_v42, %v3069_v9  ;;  %v16447_v59 = vunpack.c.l.bf16 %v16446_v0  ;;  %v16449_v61 = vunpack.c.l.bf16 %v16448_v38  ;;  %v16451_v42 = vld [vmem:[#allocation73_spill] sm:$0xff] }
 0x299   :  { %v3586_v10 = vadd.f32 %v3585_v34, %v16441_v21  ;;  %v3329_v28 = vadd.f32 %v3328_v33, %v16443_v58  ;;  %v3458_v57 = vadd.f32 %v3457_v3, %v16445_v54  ;;  %v2814_v47 = vrot.slane %v2813_v43, 2 }
 0x29a   :  { %v3715_v7 = vadd.f32 %v16449_v61, %v16447_v59  ;;  %v2943_v49 = vadd.f32 %v2942_v12, %v2941_v36  ;;  %v3201_v22 = vadd.f32 %v3200_v45, %v3199_v17  ;;  %v16450_v4 = vunpack.c.l.bf16 %v16249_v1  ;;  %v16458_v17 = vld [vmem:[#allocation75_spill] sm:$0xff] }
 0x29b   :  { %v3072_v5 = vrot.slane %v3071_v51, 4  ;;  %v3331_v50 = vadd.f32 %v3330_v37, %v3329_v28  ;;  %v16452_v53 = vunpack.c.l.bf16 %v16451_v42  ;;  %v16454_v23 = vunpack.c.l.bf16 %v16453_v13 }
 0x29c   :  { %v3587_v44 = vadd.f32 %v3586_v10, %v16450_v4  ;;  %v2815_v14 = vadd.f32 %v2814_v47, %v2813_v43  ;;  %v2944_v26 = vrot.slane %v2943_v49, 2  ;;  %v3202_v9 = vrot.slane %v3201_v22, 4 }
 0x29d   :  { %v3459_v24 = vadd.f32 %v3458_v57, %v16452_v53  ;;  %v3716_v34 = vadd.f32 %v3715_v7, %v16454_v23  ;;  %v16455_v30 = vunpack.c.l.bf16 %v16254_v62  ;;  %v3073_v33 = vadd.f32 %v3072_v5, %v3071_v51 }
 0x29e   :  { %v3332_v36 = vrot.slane %v3331_v50, 4  ;;  %v16456_v1 = vunpack.c.l.bf16 %v10443_v55  ;;  %v2816_v2 = vrot.slane %v2815_v14, 1  ;;  %v2945_v37 = vadd.f32 %v2944_v26, %v2943_v49 }
 0x29f   :  { %v3588_v31 = vadd.f32 %v3587_v44, %v16455_v30  ;;  %v3461_v45 = vadd.f32 %v3460_v18, %v3459_v24  ;;  %v3203_v3 = vadd.f32 %v3202_v9, %v3201_v22  ;;  %v16457_v41 = vunpack.c.l.bf16 %v16257_v11 }
 0x2a0   :  { %v3717_v25 = vadd.f32 %v3716_v34, %v16456_v1  ;;  %v3074_v12 = vrot.slane %v3073_v33, 2  ;;  %v3333_v63 = vadd.f32 %v3332_v36, %v3331_v50  ;;  %v16459_v56 = vunpack.c.l.bf16 %v16458_v17  ;;  %v11056_v17 = vld [vmem:[%s14298_s0 + $0x18] sm:$0xff] }
 0x2a1   :  { %v3589_v8 = vadd.f32 %v3588_v31, %v16457_v41  ;;  %v3462_v43 = vrot.slane %v3461_v45, 4  ;;  %v2687_v62 = vadd.f32 %v2686_v39, %v2685_v15  ;;  %v2946_v10 = vrot.slane %v2945_v37, 1  ;;  %16461 = vst [vmem:[#allocation82_spill] sm:$0xff] %v11056_v17 }
 0x2a2   :  { %v3718_v21 = vadd.f32 %v3717_v25, %v16459_v56  ;;  %v3204_v51 = vrot.slane %v3203_v3, 2  ;;  %v3075_v18 = vadd.f32 %v3074_v12, %v3073_v33  ;;  %v3334_v58 = vrot.slane %v3333_v63, 2 }
 0x2a3   :  { %v3591_v52 = vadd.f32 %v3590_v60, %v3589_v8  ;;  %v3463_v55 = vadd.f32 %v3462_v43, %v3461_v45  ;;  %v16460_v28 = vunpack.c.l.bf16 %v10457_v35  ;;  %v2817_v54 = vadd.f32 %v2816_v2, %v2815_v14 }
 0x2a4   :  { %v3205_v57 = vadd.f32 %v3204_v51, %v3203_v3  ;;  %v3720_v0 = vsel %vm1717_vm0, %v1706_v48, 0.0  ;;  %v3076_v59 = vrot.slane %v3075_v18, 1  ;;  %v3335_v38 = vadd.f32 %v3334_v58, %v3333_v63  ;;  %v11061_v51 = vld [vmem:[%s14298_s0 + $0x40] sm:$0xff] }
 0x2a5   :  { %v3719_v46 = vadd.f32 %v3718_v21, %v16460_v28  ;;  %v3592_v11 = vrot.slane %v3591_v52, 4  ;;  %v3464_v61 = vrot.slane %v3463_v55, 2  ;;  %v2947_v39 = vadd.f32 %v2946_v10, %v2945_v37 }
 0x2a6   :  { %v3206_v7 = vrot.slane %v3205_v57, 1  ;;  %v3797_v47 = vpack.c.bf16 %v10902_v19, %v10902_v19  ;;  %v3336_v49 = vrot.slane %v3335_v38, 1  ;;  %v3807_v4 = vpack.c.bf16 %v10907_v29, %v10907_v29 }
 0x2a7   :  { %v3721_v15 = vadd.f32 %v3720_v0, %v3719_v46  ;;  %v3593_v60 = vadd.f32 %v3592_v11, %v3591_v52  ;;  %v3465_v35 = vadd.f32 %v3464_v61, %v3463_v55  ;;  %v3077_v44 = vadd.f32 %v3076_v59, %v3075_v18  ;;  %v11361_v11 = vld [vmem:[%s14298_s0 + $0x6d0] sm:$0xff] }
 0x2a8   :  { %v3207_v16 = vadd.f32 %v3206_v7, %v3205_v57  ;;  %v3817_v48 = vpack.c.bf16 %v10922_v27, %v10922_v27  ;;  %v3337_v50 = vadd.f32 %v3336_v49, %v3335_v38  ;;  %v3827_v24 = vpack.c.bf16 %v10924_v40, %v10924_v40  ;;  %v11070_v57 = vld [vmem:[%s14298_s0 + $0x68] sm:$0xff]  ;;  %v11078_v38 = vld [vmem:[%s14298_s0 + $0x90] sm:$0xff]  ;;  %16489 = vst [vmem:[#allocation86_spill] sm:$0xff] %v11361_v11 }
 0x2a9   :  { %v3722_v22 = vrot.slane %v3721_v15, 4  ;;  %v3594_v5 = vrot.slane %v3593_v60, 2  ;;  %v3466_v42 = vrot.slane %v3465_v35, 1  ;;  %v3837_v19 = vpack.c.bf16 %v10933_v6, %v10933_v6  ;;  %v11464_v49 = vld [vmem:[%s14298_s0 + $0x928] sm:$0xff]  ;;  %v11529_v61 = vld [vmem:[%s14298_s0 + $0xa90] sm:$0xff] }
 0x2aa   :  { %v3847_v23 = vpack.c.bf16 %v10935_v20, %v10935_v20  ;;  %v3857_v29 = vpack.c.bf16 %v10952_v32, %v10952_v32  ;;  %v3867_v26 = vpack.c.bf16 %v2687_v62, %v2687_v62  ;;  %v3877_v27 = vpack.c.bf16 %v2817_v54, %v2817_v54  ;;  %16504 = vst [vmem:[#allocation9_spill] sm:$0xff] %v11464_v49  ;;  %v11613_v49 = vld [vmem:[%s14298_s0 + $0xc70] sm:$0xff] }
 0x2ab   :  { %v3723_v53 = vadd.f32 %v3722_v22, %v3721_v15  ;;  %v3595_v13 = vadd.f32 %v3594_v5, %v3593_v60  ;;  %v3467_v34 = vadd.f32 %v3466_v42, %v3465_v35  ;;  %v3887_v30 = vpack.c.bf16 %v2947_v39, %v2947_v39  ;;  %v11109_v42 = vld [vmem:[%s14298_s0 + $0x130] sm:$0xff]  ;;  %v11296_v15 = vld [vmem:[%s14298_s0 + $0x568] sm:$0x11]  ;;  %16513 = vst [vmem:[#allocation14_spill] sm:$0xff] %v11529_v61 }
 0x2ac   :  { %v3897_v31 = vpack.c.bf16 %v3077_v44, %v3077_v44  ;;  %v3907_v33 = vpack.c.bf16 %v3207_v16, %v3207_v16  ;;  %v3917_v40 = vpack.c.bf16 %v3337_v50, %v3337_v50  ;;  %v4289_v1 = vunpack.c.l.b16 %v3797_v47  ;;  %v11087_v47 = vld [vmem:[%s14298_s0 + $0xb8] sm:$0xff]  ;;  %v11100_v44 = vld [vmem:[%s14298_s0 + $0x108] sm:$0x11]  ;;  %16463 = vst [vmem:[#allocation65_spill] sm:$0xff] %v11109_v42  ;;  %16525 = vst [vmem:[#allocation58_spill] sm:$0xff] %v11613_v49 }
 0x2ad   :  { %v3724_v14 = vrot.slane %v3723_v53, 2  ;;  %v3596_v9 = vrot.slane %v3595_v13, 1  ;;  %v3927_v45 = vpack.c.bf16 %v3467_v34, %v3467_v34  ;;  %v4299_v6 = vunpack.c.l.b16 %v3807_v4  ;;  %v11095_v4 = vld [vmem:[%s14298_s0 + $0xe0] sm:$0xff]  ;;  %16462 = vst [vmem:[#allocation42_spill] sm:$0xff] %v11100_v44  ;;  %v11282_v16 = vld [vmem:[%s14298_s0 + $0x518] sm:$0xff]  ;;  %v11408_v5 = vld [vmem:[%s14298_s0 + $0x7e8] sm:$0xff] }
 0x2ae   :  { %v4309_v2 = vunpack.c.l.b16 %v3817_v48  ;;  %v4319_v37 = vunpack.c.l.b16 %v3827_v24  ;;  %v4329_v3 = vunpack.c.l.b16 %v3837_v19  ;;  %v4339_v41 = vunpack.c.l.b16 %v3847_v23  ;;  %v11126_v34 = vld [vmem:[%s14298_s0 + $0x180] sm:$0xff]  ;;  %16479 = vst [vmem:[#allocation23_spill] sm:$0xff] %v11282_v16  ;;  %v11394_v24 = vld [vmem:[%s14298_s0 + $0x798] sm:$0x11]  ;;  %16496 = vst [vmem:[#allocation88_spill] sm:$0xff] %v11408_v5 }
 0x2af   :  { %v3725_v36 = vadd.f32 %v3724_v14, %v3723_v53  ;;  %v3597_v25 = vadd.f32 %v3596_v9, %v3595_v13  ;;  %v4349_v32 = vunpack.c.l.b16 %v3857_v29  ;;  %v4369_v12 = vunpack.c.l.b16 %v3877_v27  ;;  %v11114_v53 = vld [vmem:[%s14298_s0 + $0x158] sm:$0xff]  ;;  %v11131_v14 = vld [vmem:[%s14298_s0 + $0x1a8] sm:$0xff]  ;;  %v11375_v27 = vld [vmem:[%s14298_s0 + $0x720] sm:$0xff]  ;;  %16494 = vst [vmem:[#allocation31_spill] sm:$0xff] %v11394_v24 }
 0x2b0   :  { %v4379_v63 = vunpack.c.l.b16 %v3887_v30  ;;  %v4389_v43 = vunpack.c.l.b16 %v3897_v31  ;;  %v4359_v21 = vunpack.c.l.b16 %v3867_v26  ;;  %v4399_v62 = vunpack.c.l.b16 %v3907_v33  ;;  %v6510_v29 = vld [vmem:[%s14297_s1 + $0x470] ss:$8 sps:$4 sm:$0xff]   ;;  %v11352_v13 = vld [vmem:[%s14298_s0 + $0x6a8] sm:$0xff]  ;;  %16491 = vst [vmem:[#allocation18_spill] sm:$0xff] %v11375_v27  ;;  %v11459_v33 = vld [vmem:[%s14298_s0 + $0x900] sm:$0xff] }
 0x2b1   :  { %v3726_v20 = vrot.slane %v3725_v36, 1  ;;  %v3937_v8 = vpack.c.bf16 %v3597_v25, %v3597_v25  ;;  %v4409_v10 = vunpack.c.l.b16 %v3917_v40  ;;  %v4419_v52 = vunpack.c.l.b16 %v3927_v45  ;;  %v11138_v30 = vld [vmem:[%s14298_s0 + $0x1d0] sm:$0xff]  ;;  %v11143_v31 = vld [vmem:[%s14298_s0 + $0x1f8] sm:$0xff]  ;;  %v11151_v45 = vld [vmem:[%s14298_s0 + $0x220] sm:$0x11]  ;;  %16488 = vst [vmem:[#allocation29_spill] sm:$0xff] %v11352_v13 }
 0x2b2   :  { %v4480_v58 = vsel %vm4445_vm1, %v4299_v6, %v4289_v1  ;;  %v4550_v55 = vsel %vm4445_vm1, %v4379_v63, %v4369_v12  ;;  %16464 = vst [vmem:[#allocation79_spill] sm:$0xff] %v11151_v45  ;;  %v11156_v1 = vld [vmem:[%s14298_s0 + $0x248] sm:$0xff]  ;;  %v11179_v63 = vld [vmem:[%s14298_s0 + $0x2c0] sm:$0xff]  ;;  %v11305_v40 = vld [vmem:[%s14298_s0 + $0x590] sm:$0xff] }
 0x2b3   :  { %v3727_v56 = vadd.f32 %v3726_v20, %v3725_v36  ;;  %v4429_v18 = vunpack.c.l.b16 %v3937_v8  ;;  %v4481_v46 = vsel %vm4447_vm2, %v4309_v2, %v4480_v58  ;;  %v4551_v54 = vsel %vm4447_vm2, %v4389_v43, %v4550_v55  ;;  %16465 = vst [vmem:[#allocation80_spill] sm:$0xff] %v11156_v1  ;;  %v11165_v20 = vld [vmem:[%s14298_s0 + $0x270] sm:$0xff]  ;;  %16467 = vst [vmem:[#allocation89_spill] sm:$0xff] %v11179_v63  ;;  %v11184_v43 = vld [vmem:[%s14298_s0 + $0x2e8] sm:$0xff] }
 0x2b4   :  { %v4482_v0 = vsel %vm4449_vm3, %v4319_v37, %v4481_v46  ;;  %v4552_v59 = vsel %vm4449_vm3, %v4399_v62, %v4551_v54  ;;  %16466 = vst [vmem:[#allocation91_spill] sm:$0xff] %v11165_v20  ;;  %16468 = vst [vmem:[#allocation94_spill] sm:$0xff] %v11184_v43  ;;  %v11207_v54 = vld [vmem:[%s14298_s0 + $0x360] sm:$0xff]  ;;  %v11268_v12 = vld [vmem:[%s14298_s0 + $0x4c8] sm:$0xff] }
 0x2b5   :  { %v3947_v28 = vpack.c.bf16 %v3727_v56, %v3727_v56  ;;  %v4483_v7 = vsel %vm4451_vm4, %v4329_v3, %v4482_v0  ;;  %v4553_v60 = vsel %vm4451_vm4, %v4409_v10, %v4552_v59  ;;  %v11170_v3 = vld [vmem:[%s14298_s0 + $0x298] sm:$0xff]  ;;  %v11212_v0 = vld [vmem:[%s14298_s0 + $0x388] sm:$0xff]  ;;  %16477 = vst [vmem:[#allocation4_spill] sm:$0xff] %v11268_v12  ;;  %v11277_v46 = vld [vmem:[%s14298_s0 + $0x4f0] sm:$0xff] }
 0x2b6   :  { %v4484_v35 = vsel %vm4453_vm5, %v4339_v41, %v4483_v7  ;;  %v4554_v22 = vsel %vm4453_vm5, %v4419_v52, %v4553_v60  ;;  %v11193_v52 = vld [vmem:[%s14298_s0 + $0x310] sm:$0xff]  ;;  %16471 = vst [vmem:[#allocation47_spill] sm:$0xff] %v11212_v0  ;;  %v11263_v60 = vld [vmem:[%s14298_s0 + $0x4a0] sm:$0xff]  ;;  %16478 = vst [vmem:[#allocation5_spill] sm:$0xff] %v11277_v46 }
 0x2b7   :  { %v4439_v39 = vunpack.c.l.b16 %v3947_v28  ;;  %v4485_v48 = vsel %vm4455_vm6, %v4349_v32, %v4484_v35  ;;  %v4555_v50 = vsel %vm4455_vm6, %v4429_v18, %v4554_v22  ;;  %16469 = vst [vmem:[#allocation52_spill] sm:$0xff] %v11193_v52  ;;  %v11198_v18 = vld [vmem:[%s14298_s0 + $0x338] sm:$0x11]  ;;  %v11221_v35 = vld [vmem:[%s14298_s0 + $0x3b0] sm:$0xff]  ;;  %v11291_v32 = vld [vmem:[%s14298_s0 + $0x540] sm:$0xff] }
 0x2b8   :  { %v4486_v19 = vsel %vm4457_vm7, %v4359_v21, %v4485_v48  ;;  %16470 = vst [vmem:[#allocation40_spill] sm:$0xff] %v11198_v18  ;;  %v11226_v22 = vld [vmem:[%s14298_s0 + $0x3d8] sm:$0xff]  ;;  %16480 = vst [vmem:[#allocation6_spill] sm:$0xff] %v11291_v32  ;;  %v11319_v58 = vld [vmem:[%s14298_s0 + $0x5e0] sm:$0xff] }
 0x2b9   :  { %v4556_v23 = vsel %vm4457_vm7, %v4439_v39, %v4555_v50  ;;  %16472 = vst [vmem:[#allocation76_spill] sm:$0xff] %v11226_v22  ;;  %v11254_v21 = vld [vmem:[%s14298_s0 + $0x478] sm:$0xff]  ;;  %16481 = vst [vmem:[#allocation28_spill] sm:$0xff] %v11305_v40  ;;  %v11324_v62 = vld [vmem:[%s14298_s0 + $0x608] sm:$0xff] }
 0x2ba   :  { %v4596_v9 = vpack.c.b16 %v4556_v23, %v4486_v19  ;;  %v11249_v23 = vld [vmem:[%s14298_s0 + $0x450] sm:$0x11]  ;;  %16476 = vst [vmem:[#allocation3_spill] sm:$0xff] %v11254_v21  ;;  %v11310_v55 = vld [vmem:[%s14298_s0 + $0x5b8] sm:$0xff]  ;;  %16483 = vst [vmem:[#allocation67_spill] sm:$0xff] %v11319_v58 }
 0x2bb   :  { %16475 = vst [vmem:[#allocation61_spill] sm:$0xff] %v11249_v23  ;;  %16482 = vst [vmem:[#allocation19_spill] sm:$0xff] %v11310_v55  ;;  %v11333_v10 = vld [vmem:[%s14298_s0 + $0x630] sm:$0xff]  ;;  %v11338_v56 = vld [vmem:[%s14298_s0 + $0x658] sm:$0xff] }
 0x2bc   :  { %5531 = vmatmul.mubr.bf16.vlgmr.msra.gmra.mxu0 %v4596_v9  ;;  %v11240_v9 = vld [vmem:[%s14298_s0 + $0x428] sm:$0xff]  ;;  %16484 = vst [vmem:[#allocation68_spill] sm:$0xff] %v11324_v62  ;;  %16485 = vst [vmem:[#allocation17_spill] sm:$0xff] %v11333_v10  ;;  %v11347_v19 = vld [vmem:[%s14298_s0 + $0x680] sm:$0x11] }
 0x2bd   :  { %5585 = vmatpush1.bf16.msra.mxu0 %v6510_v29  ;;  %v11235_v29 = vld [vmem:[%s14298_s0 + $0x400] sm:$0xff]  ;;  %16474 = vst [vmem:[#allocation54_spill] sm:$0xff] %v11240_v9  ;;  %16486 = vst [vmem:[#allocation11_spill] sm:$0xff] %v11338_v56  ;;  %v11366_v8 = vld [vmem:[%s14298_s0 + $0x6f8] sm:$0xff]  ;;  %v16560_v9 = vunpack.c.h.bf16 %v11156_v1  ;;  %v16567_v1 = vunpack.c.h.bf16 %v11254_v21  ;;  %v16574_v21 = vunpack.c.h.bf16 %v11078_v38 }
 0x2be   :  { %16473 = vst [vmem:[#allocation93_spill] sm:$0xff] %v11235_v29  ;;  %16487 = vst [vmem:[#allocation7_spill] sm:$0xff] %v11347_v19  ;;  %v11380_v36 = vld [vmem:[%s14298_s0 + $0x748] sm:$0xff]  ;;  %v11389_v37 = vld [vmem:[%s14298_s0 + $0x770] sm:$0xff] }
 0x2bf   :  { %16490 = vst [vmem:[#allocation87_spill] sm:$0xff] %v11366_v8  ;;  %16492 = vst [vmem:[#allocation15_spill] sm:$0xff] %v11380_v36  ;;  %v11403_v39 = vld [vmem:[%s14298_s0 + $0x7c0] sm:$0xff]  ;;  %v11417_v48 = vld [vmem:[%s14298_s0 + $0x810] sm:$0xff] }
 0x2c0   :  { %16493 = vst [vmem:[#allocation21_spill] sm:$0xff] %v11389_v37  ;;  %16495 = vst [vmem:[#allocation35_spill] sm:$0xff] %v11403_v39  ;;  %v11422_v7 = vld [vmem:[%s14298_s0 + $0x838] sm:$0xff]  ;;  %v11431_v50 = vld [vmem:[%s14298_s0 + $0x860] sm:$0xff] }
 0x2c1   :  { %16497 = vst [vmem:[#allocation30_spill] sm:$0xff] %v11417_v48  ;;  %16498 = vst [vmem:[#allocation16_spill] sm:$0xff] %v11422_v7  ;;  %v11436_v28 = vld [vmem:[%s14298_s0 + $0x888] sm:$0xff]  ;;  %v11445_v6 = vld [vmem:[%s14298_s0 + $0x8b0] sm:$0x11] }
 0x2c2   :  { %16499 = vst [vmem:[#allocation34_spill] sm:$0xff] %v11431_v50  ;;  %16500 = vst [vmem:[#allocation10_spill] sm:$0xff] %v11436_v28  ;;  %v11450_v2 = vld [vmem:[%s14298_s0 + $0x8d8] sm:$0xff]  ;;  %v11473_v26 = vld [vmem:[%s14298_s0 + $0x950] sm:$0xff] }
 0x2c3   :  { %16501 = vst [vmem:[#allocation95_spill] sm:$0xff] %v11445_v6  ;;  %16502 = vst [vmem:[#allocation2_spill] sm:$0xff] %v11450_v2  ;;  %v11478_v37 = vld [vmem:[%s14298_s0 + $0x978] sm:$0xff]  ;;  %v11487_v59 = vld [vmem:[%s14298_s0 + $0x9a0] sm:$0xff] }
 0x2c4   :  { %16503 = vst [vmem:[#allocation22_spill] sm:$0xff] %v11459_v33  ;;  %16505 = vst [vmem:[#allocation8_spill] sm:$0xff] %v11473_v26  ;;  %v11492_v56 = vld [vmem:[%s14298_s0 + $0x9c8] sm:$0x11]  ;;  %v11501_v41 = vld [vmem:[%s14298_s0 + $0x9f0] sm:$0xff] }
 0x2c5   :  { %16506 = vst [vmem:[#allocation36_spill] sm:$0xff] %v11478_v37  ;;  %16507 = vst [vmem:[#allocation27_spill] sm:$0xff] %v11487_v59  ;;  %v11506_v50 = vld [vmem:[%s14298_s0 + $0xa18] sm:$0xff]  ;;  %v11515_v25 = vld [vmem:[%s14298_s0 + $0xa40] sm:$0xff] }
 0x2c6   :  { %16508 = vst [vmem:[#allocation13_spill] sm:$0xff] %v11492_v56  ;;  %16509 = vst [vmem:[#allocation20_spill] sm:$0xff] %v11501_v41  ;;  %v11520_v6 = vld [vmem:[%s14298_s0 + $0xa68] sm:$0xff]  ;;  %v11534_v33 = vld [vmem:[%s14298_s0 + $0xab8] sm:$0xff] }
 0x2c7   :  { %16510 = vst [vmem:[#allocation12_spill] sm:$0xff] %v11506_v50  ;;  %16511 = vst [vmem:[#allocation32_spill] sm:$0xff] %v11515_v25  ;;  %v11543_v36 = vld [vmem:[%s14298_s0 + $0xae0] sm:$0x11]  ;;  %v11548_v26 = vld [vmem:[%s14298_s0 + $0xb08] sm:$0xff] }
 0x2c8   :  { %16512 = vst [vmem:[#allocation37_spill] sm:$0xff] %v11520_v6  ;;  %16514 = vst [vmem:[#allocation26_spill] sm:$0xff] %v11534_v33  ;;  %v11557_v48 = vld [vmem:[%s14298_s0 + $0xb30] sm:$0xff]  ;;  %v11562_v59 = vld [vmem:[%s14298_s0 + $0xb58] sm:$0xff] }
 0x2c9   :  { %16515 = vst [vmem:[#allocation43_spill] sm:$0xff] %v11543_v36  ;;  %16516 = vst [vmem:[#allocation38_spill] sm:$0xff] %v11548_v26  ;;  %v11571_v7 = vld [vmem:[%s14298_s0 + $0xb80] sm:$0xff]  ;;  %v11576_v41 = vld [vmem:[%s14298_s0 + $0xba8] sm:$0xff] }
 0x2ca   :  { %16517 = vst [vmem:[#allocation48_spill] sm:$0xff] %v11557_v48  ;;  %16518 = vst [vmem:[#allocation24_spill] sm:$0xff] %v11562_v59  ;;  %v11585_v28 = vld [vmem:[%s14298_s0 + $0xbd0] sm:$0xff]  ;;  %v11590_v25 = vld [vmem:[%s14298_s0 + $0xbf8] sm:$0x11] }
 0x2cb   :  { %16519 = vst [vmem:[#allocation33_spill] sm:$0xff] %v11571_v7  ;;  %16520 = vst [vmem:[#allocation44_spill] sm:$0xff] %v11576_v41  ;;  %v11599_v2 = vld [vmem:[%s14298_s0 + $0xc20] sm:$0xff]  ;;  %v11604_v61 = vld [vmem:[%s14298_s0 + $0xc48] sm:$0xff] }
 0x2cc   :  { %16521 = vst [vmem:[#allocation56_spill] sm:$0xff] %v11585_v28  ;;  %16522 = vst [vmem:[#allocation62_spill] sm:$0xff] %v11590_v25  ;;  %v11618_v33 = vld [vmem:[%s14298_s0 + $0xc98] sm:$0xff]  ;;  %v11627_v37 = vld [vmem:[%s14298_s0 + $0xcc0] sm:$0xff] }
 0x2cd   :  { %16523 = vst [vmem:[#allocation45_spill] sm:$0xff] %v11599_v2  ;;  %16524 = vst [vmem:[#allocation57_spill] sm:$0xff] %v11604_v61  ;;  %v11632_v48 = vld [vmem:[%s14298_s0 + $0xce8] sm:$0xff]  ;;  %v11641_v56 = vld [vmem:[%s14298_s0 + $0xd10] sm:$0x11] }
 0x2ce   :  { %16526 = vst [vmem:[#allocation25_spill] sm:$0xff] %v11618_v33  ;;  %16527 = vst [vmem:[#allocation41_spill] sm:$0xff] %v11627_v37  ;;  %v11646_v7 = vld [vmem:[%s14298_s0 + $0xd38] sm:$0xff]  ;;  %v11655_v50 = vld [vmem:[%s14298_s0 + $0xd60] sm:$0xff] }
 0x2cf   :  { %16528 = vst [vmem:[#allocation63_spill] sm:$0xff] %v11632_v48  ;;  %16529 = vst [vmem:[#allocation69_spill] sm:$0xff] %v11641_v56  ;;  %v11660_v28 = vld [vmem:[%s14298_s0 + $0xd88] sm:$0xff]  ;;  %v11669_v6 = vld [vmem:[%s14298_s0 + $0xdb0] sm:$0xff] }
 0x2d0   :  { %16530 = vst [vmem:[#allocation51_spill] sm:$0xff] %v11646_v7  ;;  %16531 = vst [vmem:[#allocation53_spill] sm:$0xff] %v11655_v50  ;;  %v11674_v2 = vld [vmem:[%s14298_s0 + $0xdd8] sm:$0xff]  ;;  %v11683_v36 = vld [vmem:[%s14298_s0 + $0xe00] sm:$0xff] }
 0x2d1   :  { %16532 = vst [vmem:[#allocation60_spill] sm:$0xff] %v11660_v28  ;;  %16533 = vst [vmem:[#allocation46_spill] sm:$0xff] %v11669_v6  ;;  %v11688_v49 = vld [vmem:[%s14298_s0 + $0xe28] sm:$0x11]  ;;  %v11697_v26 = vld [vmem:[%s14298_s0 + $0xe50] sm:$0xff] }
 0x2d2   :  { %16534 = vst [vmem:[#allocation70_spill] sm:$0xff] %v11674_v2  ;;  %16535 = vst [vmem:[#allocation64_spill] sm:$0xff] %v11683_v36  ;;  %v11702_v37 = vld [vmem:[%s14298_s0 + $0xe78] sm:$0xff]  ;;  %v11711_v59 = vld [vmem:[%s14298_s0 + $0xea0] sm:$0xff] }
 0x2d3   :  { %16536 = vst [vmem:[#allocation55_spill] sm:$0xff] %v11688_v49  ;;  %16537 = vst [vmem:[#allocation50_spill] sm:$0xff] %v11697_v26  ;;  %v11716_v48 = vld [vmem:[%s14298_s0 + $0xec8] sm:$0xff]  ;;  %v11725_v41 = vld [vmem:[%s14298_s0 + $0xef0] sm:$0xff] }
 0x2d4   :  { %16538 = vst [vmem:[#allocation78_spill] sm:$0xff] %v11702_v37  ;;  %16539 = vst [vmem:[#allocation71_spill] sm:$0xff] %v11711_v59  ;;  %v11730_v50 = vld [vmem:[%s14298_s0 + $0xf18] sm:$0xff]  ;;  %v11739_v25 = vld [vmem:[%s14298_s0 + $0xf40] sm:$0x11] }
 0x2d5   :  { %16540 = vst [vmem:[#allocation49_spill] sm:$0xff] %v11716_v48  ;;  %16541 = vst [vmem:[#allocation85_spill] sm:$0xff] %v11725_v41  ;;  %v11744_v6 = vld [vmem:[%s14298_s0 + $0xf68] sm:$0xff]  ;;  %v11753_v61 = vld [vmem:[%s14298_s0 + $0xf90] sm:$0xff]  ;;  %v16556_v48 = vunpack.c.h.bf16 %v11100_v44 }
 0x2d6   :  { %16542 = vst [vmem:[#allocation74_spill] sm:$0xff] %v11730_v50  ;;  %16543 = vst [vmem:[#allocation39_spill] sm:$0xff] %v11739_v25  ;;  %v11758_v36 = vld [vmem:[%s14298_s0 + $0xfb8] sm:$0xff]  ;;  %v11767_v33 = vld [vmem:[%s14298_s0 + $0xfe0] sm:$0xff]  ;;  %v16555_v25 = vunpack.c.h.bf16 %v11061_v51 }
 0x2d7   :  { %16544 = vst [vmem:[#allocation59_spill] sm:$0xff] %v11744_v6  ;;  %16545 = vst [vmem:[#allocation84_spill] sm:$0xff] %v11753_v61  ;;  %v11772_v26 = vld [vmem:[%s14298_s0 + $0x1008] sm:$0xff]  ;;  %v11781_v56 = vld [vmem:[%s14298_s0 + $0x1030] sm:$0xff]  ;;  %v16554_v6 = vunpack.c.h.bf16 %v11056_v17  ;;  %v1809_v37 = vsel %vm1717_vm0, %v16556_v48, 0.0  ;;  %v16561_v17 = vunpack.c.h.bf16 %v11165_v20  ;;  %v16563_v48 = vunpack.c.h.bf16 %v11070_v57 }
 0x2d8   :  { %16546 = vst [vmem:[#allocation92_spill] sm:$0xff] %v11758_v36  ;;  %16547 = vst [vmem:[#allocation81_spill] sm:$0xff] %v11767_v33  ;;  %v11786_v59 = vld [vmem:[%s14298_s0 + $0x1058] sm:$0x11]  ;;  %v11795_v7 = vld [vmem:[%s14298_s0 + $0x1080] sm:$0xff]  ;;  %v16559_v36 = vunpack.c.h.bf16 %v11151_v45  ;;  %v16566_v45 = vunpack.c.h.bf16 %v11249_v23  ;;  %v16570_v20 = vunpack.c.h.bf16 %v11170_v3 }
 0x2d9   :  { %16548 = vst [vmem:[#allocation66_spill] sm:$0xff] %v11772_v26  ;;  %16549 = vst [vmem:[#allocation72_spill] sm:$0xff] %v11781_v56  ;;  %v11800_v41 = vld [vmem:[%s14298_s0 + $0x10a8] sm:$0xff]  ;;  %v11809_v28 = vld [vmem:[%s14298_s0 + $0x10d0] sm:$0xff]  ;;  %v16557_v56 = vunpack.c.h.bf16 %v11109_v42  ;;  %v16558_v26 = vunpack.c.h.bf16 %v11114_v53  ;;  %v16564_v42 = vunpack.c.h.bf16 %v11207_v54 }
 0x2da   :  { %16550 = vst [vmem:[#allocation77_spill] sm:$0xff] %v11786_v59  ;;  %16551 = vst [vmem:[#allocation83_spill] sm:$0xff] %v11795_v7  ;;  %v11814_v50 = vld [vmem:[%s14298_s0 + $0x10f8] sm:$0xff]  ;;  %v11823_v2 = vld [vmem:[%s14298_s0 + $0x1120] sm:$0xff]  ;;  %v1939_v32 = vsel %vm1717_vm0, %v16559_v36, 0.0  ;;  %v2199_v36 = vsel %vm1717_vm0, %v16566_v45, 0.0 }
 0x2db   :  { %16552 = vst [vmem:[#allocation73_spill] sm:$0xff] %v11800_v41  ;;  %v11828_v61 = vld [vmem:[%s14298_s0 + $0x1148] sm:$0xff]  ;;  %v11837_v49 = vld [vmem:[%s14298_s0 + $0x1170] sm:$0x11]  ;;  %v1804_v41 = vadd.f32 %v16555_v25, %v16554_v6  ;;  %v1934_v33 = vadd.f32 %v16558_v26, %v16557_v56  ;;  %v16562_v25 = vunpack.c.h.bf16 %v11198_v18  ;;  %v16565_v26 = vunpack.c.h.bf16 %v11212_v0 }
 0x2dc   :  { %16553 = vst [vmem:[#allocation90_spill] sm:$0xff] %v11837_v49  ;;  %v2064_v49 = vadd.f32 %v16561_v17, %v16560_v9  ;;  %v16568_v17 = vunpack.c.h.bf16 %v11263_v60  ;;  %v16569_v18 = vunpack.c.h.bf16 %v11126_v34 }
 0x2dd   :  { %v2069_v6 = vsel %vm1717_vm0, %v16562_v25, 0.0  ;;  %v1805_v44 = vadd.f32 %v1804_v41, %v16563_v48  ;;  %v2194_v56 = vadd.f32 %v16565_v26, %v16564_v42  ;;  %v16571_v48 = vunpack.c.h.bf16 %v11296_v15 }
 0x2de   :  { %v2324_v9 = vadd.f32 %v16568_v17, %v16567_v1  ;;  %v1935_v25 = vadd.f32 %v1934_v33, %v16569_v18  ;;  %v2065_v41 = vadd.f32 %v2064_v49, %v16570_v20  ;;  %v16572_v42 = vunpack.c.h.bf16 %v11305_v40 }
 0x2df   :  { %v2329_v0 = vsel %vm1717_vm0, %v16571_v48, 0.0  ;;  %v16573_v26 = vunpack.c.h.bf16 %v11310_v55  ;;  %v1806_v23 = vadd.f32 %v1805_v44, %v16574_v21  ;;  %v16575_v1 = vunpack.c.h.bf16 %v11221_v35  ;;  %v6513_v48 = vld [vmem:[%s14297_s1 + $0x460] ss:$8 sps:$4 sm:$0xff]  }
 0x2e0   :  { %v16576_v33 = vunpack.c.h.bf16 %v11268_v12  ;;  %v16577_v49 = vunpack.c.h.bf16 %v11347_v19  ;;  %v16578_v44 = vunpack.c.h.bf16 %v11131_v14  ;;  %v6518_v19 = vld [vmem:[%s14297_s1 + $0x454] ss:$8 sps:$4 sm:$0xff]   ;;  %v16583_v55 = vunpack.c.h.bf16 %v11087_v47 }
 0x2e1   :  { %v2454_v45 = vadd.f32 %v16573_v26, %v16572_v42  ;;  %v2195_v17 = vadd.f32 %v2194_v56, %v16575_v1  ;;  %v6515_v42 = vld [vmem:[%s14297_s1 + $0x464] ss:$8 sps:$4 sm:$0xff]   ;;  %v16579_v56 = vunpack.c.h.bf16 %v11179_v63 }
 0x2e2   :  { %v2325_v18 = vadd.f32 %v2324_v9, %v16576_v33  ;;  %v2459_v20 = vsel %vm1717_vm0, %v16577_v49, 0.0  ;;  %v1936_v21 = vadd.f32 %v1935_v25, %v16578_v44  ;;  %v16580_v9 = vunpack.c.h.bf16 %v11319_v58  ;;  %5586 = vmatprep.subr.bf16.mxu0 %v6515_v42 }
 0x2e3   :  { %v2066_v26 = vadd.f32 %v2065_v41, %v16579_v56  ;;  %v16581_v33 = vunpack.c.h.bf16 %v11352_v13  ;;  %v16582_v49 = vunpack.c.h.bf16 %v11361_v11  ;;  %v1807_v40 = vadd.f32 %v1806_v23, %v16583_v55  ;;  %5587 = vmatpush1.bf16.msra.mxu0 %v6513_v48 }
 0x2e4   :  { %v2455_v1 = vadd.f32 %v2454_v45, %v16580_v9  ;;  %v16584_v25 = vunpack.c.h.bf16 %v11226_v22  ;;  %v16585_v41 = vunpack.c.h.bf16 %v11277_v46  ;;  %v16586_v45 = vunpack.c.h.bf16 %v11394_v24  ;;  %5588 = vmatprep.subr.bf16.mxu0 %v6518_v19  ;;  %v16674_v24 = vld [vmem:[#allocation60_spill] sm:$0xff]  ;;  %v16676_v22 = vld [vmem:[#allocation39_spill] sm:$0xff] }
 0x2e5   :  { %v2584_v12 = vadd.f32 %v16582_v49, %v16581_v33  ;;  %v16587_v33 = vunpack.c.h.bf16 %v11138_v30  ;;  %v16588_v58 = vunpack.c.h.bf16 %v11184_v43  ;;  %v16589_v13 = vunpack.c.h.bf16 %v11324_v62  ;;  %v16604_v62 = vld [vmem:[#allocation30_spill] sm:$0xff] }
 0x2e6   :  { %v2196_v44 = vadd.f32 %v2195_v17, %v16584_v25  ;;  %v2326_v56 = vadd.f32 %v2325_v18, %v16585_v41  ;;  %v2589_v9 = vsel %vm1717_vm0, %v16586_v45, 0.0  ;;  %v16590_v23 = vunpack.c.h.bf16 %v11366_v8  ;;  %v6516_v18 = vld [vmem:[%s14297_s1 + $0x450] ss:$8 sps:$4 sm:$0xff]  }
 0x2e7   :  { %v1937_v49 = vadd.f32 %v1936_v21, %v16587_v33  ;;  %v2067_v11 = vadd.f32 %v2066_v26, %v16588_v58  ;;  %v2456_v55 = vadd.f32 %v2455_v1, %v16589_v13  ;;  %v16591_v25 = vunpack.c.h.bf16 %v11095_v4  ;;  %5589 = vmatpush1.bf16.msra.mxu0 %v6516_v18 }
 0x2e8   :  { %v2585_v17 = vadd.f32 %v2584_v12, %v16590_v23  ;;  %v16592_v41 = vunpack.c.h.bf16 %v11235_v29  ;;  %v16593_v45 = vunpack.c.h.bf16 %v11282_v16  ;;  %v16594_v26 = vunpack.c.h.bf16 %v11403_v39  ;;  %v6521_v12 = vld [vmem:[%s14297_s1 + $0x444] ss:$8 sps:$4 sm:$0xff]  }
 0x2e9   :  { %v1808_v42 = vadd.f32 %v1807_v40, %v16591_v25  ;;  %v16595_v13 = vunpack.c.h.bf16 %v11408_v5  ;;  %v16596_v48 = vunpack.c.h.bf16 %v11143_v31  ;;  %v16597_v40 = vunpack.c.h.bf16 %v11193_v52  ;;  %v16600_v16 = vld [vmem:[#allocation54_spill] sm:$0xff]  ;;  %v16606_v52 = vld [vmem:[#allocation11_spill] sm:$0xff]  ;;  %5590 = vmatprep.subr.bf16.mxu0 %v6521_v12 }
 0x2ea   :  { %v2197_v21 = vadd.f32 %v2196_v44, %v16592_v41  ;;  %v2327_v58 = vadd.f32 %v2326_v56, %v16593_v45  ;;  %v16598_v44 = vunpack.c.h.bf16 %v11333_v10  ;;  %v16599_v56 = vunpack.c.h.bf16 %v11375_v27  ;;  %v16608_v10 = vld [vmem:[#allocation15_spill] sm:$0xff]  ;;  %v16664_v27 = vld [vmem:[#allocation33_spill] sm:$0xff] }
 0x2eb   :  { %v2714_v1 = vadd.f32 %v16595_v13, %v16594_v26  ;;  %v1938_v33 = vadd.f32 %v1937_v49, %v16596_v48  ;;  %v2068_v23 = vadd.f32 %v2067_v11, %v16597_v40  ;;  %v1810_v45 = vadd.f32 %v1809_v37, %v1808_v42  ;;  %v16602_v13 = vld [vmem:[#allocation6_spill] sm:$0xff] }
 0x2ec   :  { %v2457_v25 = vadd.f32 %v2456_v55, %v16598_v44  ;;  %v2586_v41 = vadd.f32 %v2585_v17, %v16599_v56  ;;  %v16601_v26 = vunpack.c.h.bf16 %v16600_v16  ;;  %v16603_v5 = vunpack.c.h.bf16 %v16602_v13  ;;  %v6519_v37 = vld [vmem:[%s14297_s1 + $0x440] ss:$8 sps:$4 sm:$0xff]  }
 0x2ed   :  { %v16605_v8 = vunpack.c.h.bf16 %v16604_v62  ;;  %v1940_v49 = vadd.f32 %v1939_v32, %v1938_v33  ;;  %v2070_v48 = vadd.f32 %v2069_v6, %v2068_v23  ;;  %v16607_v11 = vunpack.c.h.bf16 %v16606_v52  ;;  %v6524_v32 = vld [vmem:[%s14297_s1 + $0x434] ss:$8 sps:$4 sm:$0xff]   ;;  %5591 = vmatpush1.bf16.msra.mxu0 %v6519_v37 }
 0x2ee   :  { %v2198_v19 = vadd.f32 %v2197_v21, %v16601_v26  ;;  %v2328_v39 = vadd.f32 %v2327_v58, %v16603_v5  ;;  %v16609_v55 = vunpack.c.h.bf16 %v16608_v10  ;;  %v1811_v17 = vrot.slane %v1810_v45, 4  ;;  %v16610_v5 = vld [vmem:[#allocation16_spill] sm:$0xff]  ;;  %v16612_v33 = vld [vmem:[#allocation21_spill] sm:$0xff]  ;;  %5592 = vmatprep.subr.bf16.mxu0 %v6524_v32  ;;  %v6525_v32 = vld [vmem:[%s14297_s1 + $0x420] ss:$8 sps:$4 sm:$0xff]  }
 0x2ef   :  { %v2715_v46 = vadd.f32 %v2714_v1, %v16605_v8  ;;  %v2458_v40 = vadd.f32 %v2457_v25, %v16607_v11  ;;  %v16611_v58 = vunpack.c.h.bf16 %v16610_v5  ;;  %v1941_v8 = vrot.slane %v1940_v49, 4  ;;  %v16614_v11 = vld [vmem:[#allocation34_spill] sm:$0xff] }
 0x2f0   :  { %v2587_v44 = vadd.f32 %v2586_v41, %v16609_v55  ;;  %v2200_v42 = vadd.f32 %v2199_v36, %v2198_v19  ;;  %v2330_v21 = vadd.f32 %v2329_v0, %v2328_v39  ;;  %v2071_v6 = vrot.slane %v2070_v48, 4  ;;  %v6522_v55 = vld [vmem:[%s14297_s1 + $0x430] ss:$8 sps:$4 sm:$0xff]  }
 0x2f1   :  { %v2716_v56 = vadd.f32 %v2715_v46, %v16611_v58  ;;  %v2460_v1 = vadd.f32 %v2459_v20, %v2458_v40  ;;  %v16613_v18 = vunpack.c.h.bf16 %v16612_v33  ;;  %v1812_v25 = vadd.f32 %v1811_v17, %v1810_v45  ;;  %v16616_v33 = vld [vmem:[#allocation10_spill] sm:$0xff]  ;;  %5593 = vmatpush1.bf16.msra.mxu0 %v6522_v55 }
 0x2f2   :  { %v2201_v41 = vrot.slane %v2200_v42, 4  ;;  %v2331_v26 = vrot.slane %v2330_v21, 4  ;;  %v16615_v36 = vunpack.c.h.bf16 %v16614_v11  ;;  %v1942_v39 = vadd.f32 %v1941_v8, %v1940_v49  ;;  %v6527_v17 = vld [vmem:[%s14297_s1 + $0x424] ss:$8 sps:$4 sm:$0xff]  }
 0x2f3   :  { %v2588_v23 = vadd.f32 %v2587_v44, %v16613_v18  ;;  %v2072_v19 = vadd.f32 %v2071_v6, %v2070_v48  ;;  %v2461_v46 = vrot.slane %v2460_v1, 4  ;;  %v1813_v58 = vrot.slane %v1812_v25, 2  ;;  %v16618_v18 = vld [vmem:[#allocation95_spill] sm:$0xff]  ;;  %5594 = vmatprep.subr.bf16.mxu0 %v6527_v17 }
 0x2f4   :  { %v2717_v0 = vadd.f32 %v2716_v56, %v16615_v36  ;;  %v2202_v20 = vadd.f32 %v2201_v41, %v2200_v42  ;;  %v2332_v40 = vadd.f32 %v2331_v26, %v2330_v21  ;;  %v16617_v44 = vunpack.c.h.bf16 %v16616_v33  ;;  %v16636_v33 = vld [vmem:[#allocation48_spill] sm:$0xff] }
 0x2f5   :  { %v2590_v12 = vadd.f32 %v2589_v9, %v2588_v23  ;;  %v1943_v49 = vrot.slane %v1942_v39, 2  ;;  %v2073_v48 = vrot.slane %v2072_v19, 2  ;;  %v2462_v56 = vadd.f32 %v2461_v46, %v2460_v1  ;;  %5595 = vmatpush1.bf16.msra.mxu0 %v6525_v32 }
 0x2f6   :  { %v2718_v45 = vadd.f32 %v2717_v0, %v16617_v44  ;;  %v1814_v37 = vadd.f32 %v1813_v58, %v1812_v25  ;;  %v2203_v8 = vrot.slane %v2202_v20, 2  ;;  %v2333_v6 = vrot.slane %v2332_v40, 2  ;;  %v6530_v25 = vld [vmem:[%s14297_s1 + $0x414] ss:$8 sps:$4 sm:$0xff]  }
 0x2f7   :  { %v2591_v9 = vrot.slane %v2590_v12, 4  ;;  %v16619_v23 = vunpack.c.h.bf16 %v16618_v18  ;;  %v1944_v21 = vadd.f32 %v1943_v49, %v1942_v39  ;;  %v2074_v41 = vadd.f32 %v2073_v48, %v2072_v19  ;;  %5596 = vmatprep.subr.bf16.mxu0 %v6530_v25 }
 0x2f8   :  { %v2463_v26 = vrot.slane %v2462_v56, 2  ;;  %v1815_v0 = vrot.slane %v1814_v37, 1  ;;  %v2204_v44 = vadd.f32 %v2203_v8, %v2202_v20  ;;  %v2334_v1 = vadd.f32 %v2333_v6, %v2332_v40  ;;  %v16620_v8 = vld [vmem:[#allocation2_spill] sm:$0xff] }
 0x2f9   :  { %v2719_v42 = vsel %vm1717_vm0, %v16619_v23, 0.0  ;;  %v2592_v36 = vadd.f32 %v2591_v9, %v2590_v12  ;;  %v1945_v58 = vrot.slane %v1944_v21, 1  ;;  %v2075_v23 = vrot.slane %v2074_v41, 1 }
 0x2fa   :  { %v2720_v46 = vadd.f32 %v2719_v42, %v2718_v45  ;;  %v2464_v39 = vadd.f32 %v2463_v26, %v2462_v56  ;;  %v12006_v49 = vadd.f32 %v1815_v0, %v1814_v37  ;;  %v2205_v12 = vrot.slane %v2204_v44, 1  ;;  %v6528_v45 = vld [vmem:[%s14297_s1 + $0x410] ss:$8 sps:$4 sm:$0xff]   ;;  %v16622_v42 = vld [vmem:[#allocation22_spill] sm:$0xff] }
 0x2fb   :  { %v2593_v19 = vrot.slane %v2592_v36, 2  ;;  %v2335_v55 = vrot.slane %v2334_v1, 1  ;;  %v12008_v9 = vadd.f32 %v1945_v58, %v1944_v21  ;;  %v12010_v18 = vadd.f32 %v2075_v23, %v2074_v41  ;;  %v6533_v41 = vld [vmem:[%s14297_s1 + $0x404] ss:$8 sps:$4 sm:$0xff]   ;;  %v16624_v0 = vld [vmem:[#allocation13_spill] sm:$0xff]  ;;  %5597 = vmatpush1.bf16.msra.mxu0 %v6528_v45 }
 0x2fc   :  { %v2721_v48 = vrot.slane %v2720_v46, 4  ;;  %v2465_v20 = vrot.slane %v2464_v39, 1  ;;  %v12015_v17 = vadd.f32 %v2205_v12, %v2204_v44  ;;  %v16621_v6 = vunpack.c.h.bf16 %v16620_v8  ;;  %5598 = vmatprep.subr.bf16.mxu0 %v6533_v41  ;;  %v6536_v45 = vld [vmem:[%s14297_s1 + $0x4f4] ss:$8 sps:$4 sm:$0xff]  }
 0x2fd   :  { %v2594_v40 = vadd.f32 %v2593_v19, %v2592_v36  ;;  %v12017_v56 = vadd.f32 %v2335_v55, %v2334_v1  ;;  %v16623_v26 = vunpack.c.h.bf16 %v16622_v42  ;;  %v16625_v58 = vunpack.c.h.bf16 %v16624_v0  ;;  %v16626_v1 = vld [vmem:[#allocation20_spill] sm:$0xff] }
 0x2fe   :  { %v2722_v37 = vadd.f32 %v2721_v48, %v2720_v46  ;;  %v12026_v36 = vadd.f32 %v2465_v20, %v2464_v39  ;;  %v16627_v23 = vunpack.c.h.bf16 %v16626_v1  ;;  %v16628_v46 = vld [vmem:[#allocation12_spill] sm:$0xff]  ;;  %v16630_v48 = vld [vmem:[#allocation9_spill] sm:$0xff]  ;;  %v16634_v39 = vld [vmem:[#allocation38_spill] sm:$0xff]  ;;  %v16637_v11 = vunpack.c.h.bf16 %v16636_v33 }
 0x2ff   :  { %v2844_v21 = vadd.f32 %v16623_v26, %v16621_v6  ;;  %v2595_v32 = vrot.slane %v2594_v40, 1  ;;  %v2849_v44 = vsel %vm1717_vm0, %v16625_v58, 0.0  ;;  %v16629_v19 = vunpack.c.h.bf16 %v16628_v46  ;;  %v16632_v26 = vld [vmem:[#allocation43_spill] sm:$0xff]  ;;  %v16638_v58 = vld [vmem:[#allocation32_spill] sm:$0xff]  ;;  %v16640_v46 = vld [vmem:[#allocation62_spill] sm:$0xff] }
 0x300   :  { %v2723_v55 = vrot.slane %v2722_v37, 2  ;;  %v16631_v6 = vunpack.c.h.bf16 %v16630_v48  ;;  %v16633_v42 = vunpack.c.h.bf16 %v16632_v26  ;;  %v16635_v20 = vunpack.c.h.bf16 %v16634_v39  ;;  %v16642_v48 = vld [vmem:[#allocation45_spill] sm:$0xff]  ;;  %v16648_v33 = vld [vmem:[#allocation24_spill] sm:$0xff] }
 0x301   :  { %v2974_v12 = vadd.f32 %v16629_v19, %v16627_v23  ;;  %v12044_v5 = vadd.f32 %v2595_v32, %v2594_v40  ;;  %v16639_v1 = vunpack.c.h.bf16 %v16638_v58  ;;  %v16641_v23 = vunpack.c.h.bf16 %v16640_v46  ;;  %v16646_v40 = vld [vmem:[#allocation8_spill] sm:$0xff]  ;;  %v16650_v46 = vld [vmem:[#allocation69_spill] sm:$0xff]  ;;  %v16656_v58 = vld [vmem:[#allocation51_spill] sm:$0xff] }
 0x302   :  { %v2845_v25 = vadd.f32 %v2844_v21, %v16631_v6  ;;  %v2979_v8 = vsel %vm1717_vm0, %v16633_v42, 0.0  ;;  %v3104_v0 = vadd.f32 %v16637_v11, %v16635_v20  ;;  %v16643_v21 = vunpack.c.h.bf16 %v16642_v48  ;;  %v16644_v6 = vld [vmem:[#allocation57_spill] sm:$0xff]  ;;  %v6531_v42 = vld [vmem:[%s14297_s1 + $0x400] ss:$8 sps:$4 sm:$0xff]  }
 0x303   :  { %v2975_v52 = vadd.f32 %v2974_v12, %v16639_v1  ;;  %v3109_v19 = vsel %vm1717_vm0, %v16641_v23, 0.0  ;;  %v16645_v26 = vunpack.c.h.bf16 %v16644_v6  ;;  %v2724_v11 = vadd.f32 %v2723_v55, %v2722_v37  ;;  %v16654_v48 = vld [vmem:[#allocation58_spill] sm:$0xff]  ;;  %5599 = vmatpush1.bf16.msra.mxu0 %v6531_v42 }
 0x304   :  { %v16647_v32 = vunpack.c.h.bf16 %v16646_v40  ;;  %v16649_v1 = vunpack.c.h.bf16 %v16648_v33  ;;  %v16651_v39 = vunpack.c.h.bf16 %v16650_v46  ;;  %v16655_v37 = vunpack.c.h.bf16 %v16654_v48  ;;  %v16662_v40 = vld [vmem:[#allocation36_spill] sm:$0xff]  ;;  %v16668_v48 = vld [vmem:[#allocation78_spill] sm:$0xff]  ;;  %5600 = vmatprep.subr.bf16.mxu0 %v6536_v45 }
 0x305   :  { %v3234_v10 = vadd.f32 %v16645_v26, %v16643_v21  ;;  %v16652_v26 = vld [vmem:[#allocation37_spill] sm:$0xff]  ;;  %v2725_v41 = vrot.slane %v2724_v11, 1  ;;  %v16663_v13 = vunpack.c.h.bf16 %v16662_v40  ;;  %v16665_v16 = vunpack.c.h.bf16 %v16664_v27  ;;  %v6539_v42 = vld [vmem:[%s14297_s1 + $0x4e4] ss:$8 sps:$4 sm:$0xff]   ;;  %v16694_v45 = vld [vmem:[#allocation56_spill] sm:$0xff] }
 0x306   :  { %v2846_v20 = vadd.f32 %v2845_v25, %v16647_v32  ;;  %v3105_v12 = vadd.f32 %v3104_v0, %v16649_v1  ;;  %v3239_v23 = vsel %vm1717_vm0, %v16651_v39, 0.0  ;;  %v16653_v21 = vunpack.c.h.bf16 %v16652_v26  ;;  %v16658_v32 = vld [vmem:[#allocation53_spill] sm:$0xff]  ;;  %v16660_v1 = vld [vmem:[#allocation55_spill] sm:$0xff] }
 0x307   :  { %v3235_v55 = vadd.f32 %v3234_v10, %v16655_v37  ;;  %v16657_v25 = vunpack.c.h.bf16 %v16656_v58  ;;  %v16659_v33 = vunpack.c.h.bf16 %v16658_v32  ;;  %v16661_v46 = vunpack.c.h.bf16 %v16660_v1  ;;  %v16670_v58 = vld [vmem:[#allocation14_spill] sm:$0xff] }
 0x308   :  { %v2976_v6 = vadd.f32 %v2975_v52, %v16653_v21  ;;  %v2847_v62 = vadd.f32 %v2846_v20, %v16663_v13  ;;  %v3106_v26 = vadd.f32 %v3105_v12, %v16665_v16  ;;  %v16666_v52 = vld [vmem:[#allocation50_spill] sm:$0xff]  ;;  %v16669_v10 = vunpack.c.h.bf16 %v16668_v48  ;;  %v6534_v16 = vld [vmem:[%s14297_s1 + $0x4f0] ss:$8 sps:$4 sm:$0xff]   ;;  %v16678_v12 = vld [vmem:[#allocation27_spill] sm:$0xff] }
 0x309   :  { %v3364_v0 = vadd.f32 %v16659_v33, %v16657_v25  ;;  %v3369_v39 = vsel %vm1717_vm0, %v16661_v46, 0.0  ;;  %v16667_v21 = vunpack.c.h.bf16 %v16666_v52  ;;  %v16671_v29 = vunpack.c.h.bf16 %v16670_v58  ;;  %v16672_v33 = vld [vmem:[#allocation25_spill] sm:$0xff]  ;;  %v16688_v52 = vld [vmem:[#allocation46_spill] sm:$0xff]  ;;  %5601 = vmatpush2.bf16.msra.mxu0 %v6534_v16 }
 0x30a   :  { %v16673_v25 = vunpack.c.h.bf16 %v16672_v33  ;;  %v16675_v46 = vunpack.c.h.bf16 %v16674_v24  ;;  %v16677_v40 = vunpack.c.h.bf16 %v16676_v22  ;;  %v12099_v20 = vadd.f32 %v2725_v41, %v2724_v11  ;;  %v16686_v48 = vld [vmem:[#allocation41_spill] sm:$0xff]  ;;  %5602 = vmatprep.subr.bf16.mxu0 %v6539_v42 }
 0x30b   :  { %v3494_v37 = vadd.f32 %v16669_v10, %v16667_v21  ;;  %v2977_v32 = vadd.f32 %v2976_v6, %v16671_v29  ;;  %v16679_v21 = vunpack.c.h.bf16 %v16678_v12  ;;  %v16680_v6 = vld [vmem:[#allocation44_spill] sm:$0xff]  ;;  %v16687_v11 = vunpack.c.h.bf16 %v16686_v48  ;;  %v16696_v58 = vld [vmem:[#allocation49_spill] sm:$0xff] }
 0x30c   :  { %v3236_v1 = vadd.f32 %v3235_v55, %v16673_v25  ;;  %v3365_v43 = vadd.f32 %v3364_v0, %v16675_v46  ;;  %v3499_v13 = vsel %vm1717_vm0, %v16677_v40, 0.0  ;;  %v16681_v10 = vunpack.c.h.bf16 %v16680_v6  ;;  %v16682_v25 = vld [vmem:[#allocation71_spill] sm:$0xff]  ;;  %v16684_v40 = vld [vmem:[#allocation26_spill] sm:$0xff] }
 0x30d   :  { %v2848_v29 = vadd.f32 %v2847_v62, %v16679_v21  ;;  %v16683_v33 = vunpack.c.h.bf16 %v16682_v25  ;;  %v16685_v46 = vunpack.c.h.bf16 %v16684_v40  ;;  %v16689_v24 = vunpack.c.h.bf16 %v16688_v52  ;;  %v16690_v21 = vld [vmem:[#allocation59_spill] sm:$0xff] }
 0x30e   :  { %v3107_v55 = vadd.f32 %v3106_v26, %v16681_v10  ;;  %v3237_v41 = vadd.f32 %v3236_v1, %v16687_v11  ;;  %v16691_v6 = vunpack.c.h.bf16 %v16690_v21  ;;  %v16692_v26 = vld [vmem:[#allocation84_spill] sm:$0xff]  ;;  %v16697_v12 = vunpack.c.h.bf16 %v16696_v58  ;;  %v16699_v11 = vld [vmem:[#allocation63_spill] sm:$0xff] }
 0x30f   :  { %v3495_v0 = vadd.f32 %v3494_v37, %v16683_v33  ;;  %v2978_v22 = vadd.f32 %v2977_v32, %v16685_v46  ;;  %v3366_v62 = vadd.f32 %v3365_v43, %v16689_v24  ;;  %v16693_v10 = vunpack.c.h.bf16 %v16692_v26  ;;  %v16701_v43 = vld [vmem:[#allocation70_spill] sm:$0xff]  ;;  %v16703_v26 = vld [vmem:[#allocation92_spill] sm:$0xff] }
 0x310   :  { %v2850_v37 = vadd.f32 %v2849_v44, %v2848_v29  ;;  %v16695_v33 = vunpack.c.h.bf16 %v16694_v45  ;;  %v16698_v32 = vunpack.c.h.bf16 %v11786_v59  ;;  %v16700_v48 = vunpack.c.h.bf16 %v16699_v11  ;;  %v6537_v29 = vld [vmem:[%s14297_s1 + $0x4e0] ss:$8 sps:$4 sm:$0xff]  }
 0x311   :  { %v3624_v25 = vadd.f32 %v16693_v10, %v16691_v6  ;;  %v3496_v63 = vadd.f32 %v3495_v0, %v16697_v12  ;;  %v2980_v1 = vadd.f32 %v2979_v8, %v2978_v22  ;;  %v16702_v21 = vunpack.c.h.bf16 %v16701_v43  ;;  %v16705_v0 = vld [vmem:[#allocation85_spill] sm:$0xff]  ;;  %v16717_v43 = vld [vmem:[#allocation66_spill] sm:$0xff]  ;;  %5603 = vmatpush2.bf16.msra.mxu0 %v6537_v29 }
 0x312   :  { %v3108_v27 = vadd.f32 %v3107_v55, %v16695_v33  ;;  %v3629_v46 = vsel %vm1717_vm0, %v16698_v32, 0.0  ;;  %v3238_v24 = vadd.f32 %v3237_v41, %v16700_v48  ;;  %v16704_v6 = vunpack.c.h.bf16 %v16703_v26  ;;  %v16708_v8 = vld [vmem:[#allocation73_spill] sm:$0xff] }
 0x313   :  { %v3367_v52 = vadd.f32 %v3366_v62, %v16702_v21  ;;  %v2851_v12 = vrot.slane %v2850_v37, 4  ;;  %v16706_v10 = vunpack.c.h.bf16 %v16705_v0  ;;  %v16707_v22 = vunpack.c.h.bf16 %v11795_v7  ;;  %v16710_v21 = vld [vmem:[#allocation64_spill] sm:$0xff]  ;;  %v16712_v26 = vld [vmem:[#allocation81_spill] sm:$0xff] }
 0x314   :  { %v3625_v44 = vadd.f32 %v3624_v25, %v16704_v6  ;;  %v3110_v55 = vadd.f32 %v3109_v19, %v3108_v27  ;;  %v16709_v48 = vunpack.c.h.bf16 %v16708_v8  ;;  %v6542_v25 = vld [vmem:[%s14297_s1 + $0x4d4] ss:$8 sps:$4 sm:$0xff]   ;;  %v2981_v16 = vrot.slane %v2980_v1, 4 }
 0x315   :  { %v3497_v33 = vadd.f32 %v3496_v63, %v16706_v10  ;;  %v3240_v62 = vadd.f32 %v3239_v23, %v3238_v24  ;;  %v16711_v32 = vunpack.c.h.bf16 %v16710_v21  ;;  %v16713_v27 = vunpack.c.h.bf16 %v16712_v26  ;;  %v16714_v10 = vld [vmem:[#allocation74_spill] sm:$0xff]  ;;  %5604 = vmatprep.subr.bf16.mxu0 %v6542_v25 }
 0x316   :  { %v3754_v41 = vadd.f32 %v16709_v48, %v16707_v22  ;;  %v2852_v0 = vadd.f32 %v2851_v12, %v2850_v37  ;;  %v3111_v63 = vrot.slane %v3110_v55, 4  ;;  %v16715_v7 = vunpack.c.h.bf16 %v16714_v10 }
 0x317   :  { %v3368_v6 = vadd.f32 %v3367_v52, %v16711_v32  ;;  %v3626_v19 = vadd.f32 %v3625_v44, %v16713_v27  ;;  %v16716_v22 = vunpack.c.h.bf16 %v11809_v28  ;;  %v2982_v48 = vadd.f32 %v2981_v16, %v2980_v1  ;;  %v6540_v52 = vld [vmem:[%s14297_s1 + $0x4d0] ss:$8 sps:$4 sm:$0xff]   ;;  %v6545_v1 = vld [vmem:[%s14297_s1 + $0x4c4] ss:$8 sps:$4 sm:$0xff]  }
 0x318   :  { %v3498_v11 = vadd.f32 %v3497_v33, %v16715_v7  ;;  %v3241_v8 = vrot.slane %v3240_v62, 4  ;;  %v16718_v59 = vunpack.c.h.bf16 %v16717_v43  ;;  %v2853_v24 = vrot.slane %v2852_v0, 2  ;;  %5605 = vmatpush2.bf16.msra.mxu0 %v6540_v52 }
 0x319   :  { %v3755_v42 = vadd.f32 %v3754_v41, %v16716_v22  ;;  %v3370_v58 = vadd.f32 %v3369_v39, %v3368_v6  ;;  %v3112_v37 = vadd.f32 %v3111_v63, %v3110_v55  ;;  %v16719_v12 = vunpack.c.h.bf16 %v11814_v50  ;;  %v6543_v22 = vld [vmem:[%s14297_s1 + $0x4c0] ss:$8 sps:$4 sm:$0xff]   ;;  %5606 = vmatprep.subr.bf16.mxu0 %v6545_v1  ;;  %v6546_v1 = vld [vmem:[%s14297_s1 + $0x4b0] ss:$8 sps:$4 sm:$0xff]  }
 0x31a   :  { %v3627_v23 = vadd.f32 %v3626_v19, %v16718_v59  ;;  %v3500_v44 = vadd.f32 %v3499_v13, %v3498_v11  ;;  %v2983_v39 = vrot.slane %v2982_v48, 2  ;;  %v3242_v33 = vadd.f32 %v3241_v8, %v3240_v62  ;;  %v16720_v59 = vld [vmem:[#allocation72_spill] sm:$0xff] }
 0x31b   :  { %v3756_v7 = vadd.f32 %v3755_v42, %v16719_v12  ;;  %v3371_v41 = vrot.slane %v3370_v58, 4  ;;  %v16721_v29 = vunpack.c.h.bf16 %v16720_v59  ;;  %v2854_v32 = vadd.f32 %v2853_v24, %v2852_v0  ;;  %v6548_v24 = vld [vmem:[%s14297_s1 + $0x4b4] ss:$8 sps:$4 sm:$0xff]  }
 0x31c   :  { %v3113_v6 = vrot.slane %v3112_v37, 2  ;;  %v3501_v27 = vrot.slane %v3500_v44, 4  ;;  %v16722_v55 = vunpack.c.h.bf16 %v11823_v2  ;;  %v2984_v11 = vadd.f32 %v2983_v39, %v2982_v48  ;;  %5607 = vmatpush2.bf16.msra.mxu0 %v6543_v22 }
 0x31d   :  { %v3628_v16 = vadd.f32 %v3627_v23, %v16721_v29  ;;  %v3243_v19 = vrot.slane %v3242_v33, 2  ;;  %v3372_v63 = vadd.f32 %v3371_v41, %v3370_v58  ;;  %v2855_v8 = vrot.slane %v2854_v32, 1  ;;  %v16724_v41 = vld [vmem:[#allocation90_spill] sm:$0xff]  ;;  %5608 = vmatprep.subr.bf16.mxu0 %v6548_v24 }
 0x31e   :  { %v3757_v13 = vadd.f32 %v3756_v7, %v16722_v55  ;;  %v3114_v62 = vadd.f32 %v3113_v6, %v3112_v37  ;;  %v3502_v42 = vadd.f32 %v3501_v27, %v3500_v44  ;;  %v16723_v23 = vunpack.c.h.bf16 %v11828_v61 }
 0x31f   :  { %v3630_v25 = vadd.f32 %v3629_v46, %v3628_v16  ;;  %v2985_v48 = vrot.slane %v2984_v11, 1  ;;  %v3244_v12 = vadd.f32 %v3243_v19, %v3242_v33  ;;  %v3373_v58 = vrot.slane %v3372_v63, 2  ;;  %v6551_v19 = vld [vmem:[%s14297_s1 + $0x4a4] ss:$8 sps:$4 sm:$0xff]  }
 0x320   :  { %v3758_v0 = vadd.f32 %v3757_v13, %v16723_v23  ;;  %v2856_v52 = vadd.f32 %v2855_v8, %v2854_v32  ;;  %v3115_v7 = vrot.slane %v3114_v62, 1  ;;  %v3503_v39 = vrot.slane %v3502_v42, 2  ;;  %5609 = vmatpush2.bf16.msra.mxu0 %v6546_v1 }
 0x321   :  { %v3631_v46 = vrot.slane %v3630_v25, 4  ;;  %v16725_v29 = vunpack.c.h.bf16 %v16724_v41  ;;  %v2986_v44 = vadd.f32 %v2985_v48, %v2984_v11  ;;  %v3245_v16 = vrot.slane %v3244_v12, 1  ;;  %5610 = vmatprep.subr.bf16.mxu0 %v6551_v19 }
 0x322   :  { %v3374_v6 = vadd.f32 %v3373_v58, %v3372_v63  ;;  %v3116_v55 = vadd.f32 %v3115_v7, %v3114_v62  ;;  %v3504_v33 = vadd.f32 %v3503_v39, %v3502_v42  ;;  %v3800_v32 = vpack.c.bf16 %v12006_v49, %v12006_v49 }
 0x323   :  { %v3759_v37 = vsel %vm1717_vm0, %v16725_v29, 0.0  ;;  %v3632_v27 = vadd.f32 %v3631_v46, %v3630_v25  ;;  %v3246_v11 = vadd.f32 %v3245_v16, %v3244_v12  ;;  %v3810_v25 = vpack.c.bf16 %v12008_v9, %v12008_v9  ;;  %v6549_v9 = vld [vmem:[%s14297_s1 + $0x4a0] ss:$8 sps:$4 sm:$0xff]  }
 0x324   :  { %v3760_v13 = vadd.f32 %v3759_v37, %v3758_v0  ;;  %v3375_v8 = vrot.slane %v3374_v6, 1  ;;  %v3505_v22 = vrot.slane %v3504_v33, 1  ;;  %v3820_v62 = vpack.c.bf16 %v12010_v18, %v12010_v18  ;;  %5611 = vmatpush2.bf16.msra.mxu0 %v6549_v9 }
 0x325   :  { %v3633_v63 = vrot.slane %v3632_v27, 2  ;;  %v3830_v42 = vpack.c.bf16 %v12015_v17, %v12015_v17  ;;  %v3840_v24 = vpack.c.bf16 %v12017_v56, %v12017_v56  ;;  %v3850_v48 = vpack.c.bf16 %v12026_v36, %v12026_v36  ;;  %v6554_v56 = vld [vmem:[%s14297_s1 + $0x494] ss:$8 sps:$4 sm:$0xff]  }
 0x326   :  { %v3761_v23 = vrot.slane %v3760_v13, 4  ;;  %v3376_v49 = vadd.f32 %v3375_v8, %v3374_v6  ;;  %v3506_v12 = vadd.f32 %v3505_v22, %v3504_v33  ;;  %v3860_v18 = vpack.c.bf16 %v12044_v5, %v12044_v5  ;;  %5612 = vmatprep.subr.bf16.mxu0 %v6554_v56 }
 0x327   :  { %v3634_v0 = vadd.f32 %v3633_v63, %v3632_v27  ;;  %v3870_v17 = vpack.c.bf16 %v12099_v20, %v12099_v20  ;;  %v3880_v36 = vpack.c.bf16 %v2856_v52, %v2856_v52  ;;  %v3890_v7 = vpack.c.bf16 %v2986_v44, %v2986_v44  ;;  %v6552_v20 = vld [vmem:[%s14297_s1 + $0x490] ss:$8 sps:$4 sm:$0xff]   ;;  %v6557_v52 = vld [vmem:[%s14297_s1 + $0x484] ss:$8 sps:$4 sm:$0xff]  }
 0x328   :  { %v3762_v58 = vadd.f32 %v3761_v23, %v3760_v13  ;;  %v3900_v39 = vpack.c.bf16 %v3116_v55, %v3116_v55  ;;  %v3910_v37 = vpack.c.bf16 %v3246_v11, %v3246_v11  ;;  %v3920_v16 = vpack.c.bf16 %v3376_v49, %v3376_v49  ;;  %5613 = vmatpush2.bf16.msra.mxu0 %v6552_v20 }
 0x329   :  { %v3635_v46 = vrot.slane %v3634_v0, 1  ;;  %v3930_v6 = vpack.c.bf16 %v3506_v12, %v3506_v12  ;;  %v4292_v1 = vunpack.c.l.b16 %v3800_v32  ;;  %v4302_v33 = vunpack.c.l.b16 %v3810_v25  ;;  %5614 = vmatprep.subr.bf16.mxu0 %v6557_v52 }
 0x32a   :  { %v3763_v29 = vrot.slane %v3762_v58, 2  ;;  %v4312_v5 = vunpack.c.l.b16 %v3820_v62  ;;  %v4322_v19 = vunpack.c.l.b16 %v3830_v42  ;;  %v4332_v8 = vunpack.c.l.b16 %v3840_v24  ;;  %v6555_v24 = vld [vmem:[%s14297_s1 + $0x480] ss:$8 sps:$4 sm:$0xff]  }
 0x32b   :  { %v3636_v27 = vadd.f32 %v3635_v46, %v3634_v0  ;;  %v4342_v63 = vunpack.c.l.b16 %v3850_v48  ;;  %v4352_v55 = vunpack.c.l.b16 %v3860_v18  ;;  %v4362_v11 = vunpack.c.l.b16 %v3870_v17  ;;  %v16726_v18 = vld [vmem:[#allocation82_spill] sm:$0xff] }
 0x32c   :  { %v3764_v13 = vadd.f32 %v3763_v29, %v3762_v58  ;;  %v4372_v32 = vunpack.c.l.b16 %v3880_v36  ;;  %v4382_v22 = vunpack.c.l.b16 %v3890_v7  ;;  %v4392_v23 = vunpack.c.l.b16 %v3900_v39  ;;  %v16729_v39 = vld [vmem:[#allocation42_spill] sm:$0xff]  ;;  %5615 = vmatpush2.bf16.msra.mxu0 %v6555_v24 }
 0x32d   :  { %v3940_v44 = vpack.c.bf16 %v3636_v27, %v3636_v27  ;;  %v4402_v62 = vunpack.c.l.b16 %v3910_v37  ;;  %v4412_v49 = vunpack.c.l.b16 %v3920_v16  ;;  %v4422_v0 = vunpack.c.l.b16 %v3930_v6  ;;  %v16731_v16 = vld [vmem:[#allocation65_spill] sm:$0xff] }
 0x32e   :  { %v3765_v25 = vrot.slane %v3764_v13, 1  ;;  %v4501_v42 = vsel %vm4445_vm1, %v4302_v33, %v4292_v1  ;;  %v4571_v58 = vsel %vm4445_vm1, %v4382_v22, %v4372_v32  ;;  %v16727_v17 = vunpack.c.l.bf16 %v16726_v18  ;;  %v16742_v18 = vld [vmem:[#allocation91_spill] sm:$0xff] }
 0x32f   :  { %v4432_v9 = vunpack.c.l.b16 %v3940_v44  ;;  %v4502_v12 = vsel %vm4447_vm2, %v4312_v5, %v4501_v42  ;;  %v16728_v56 = vunpack.c.l.bf16 %v11061_v51  ;;  %v4572_v7 = vsel %vm4447_vm2, %v4392_v23, %v4571_v58 }
 0x330   :  { %v3766_v48 = vadd.f32 %v3765_v25, %v3764_v13  ;;  %v4503_v36 = vsel %vm4449_vm3, %v4322_v19, %v4502_v12  ;;  %v16730_v29 = vunpack.c.l.bf16 %v16729_v39  ;;  %v16732_v6 = vunpack.c.l.bf16 %v16731_v16  ;;  %v16736_v25 = vld [vmem:[#allocation79_spill] sm:$0xff]  ;;  %v16740_v12 = vld [vmem:[#allocation80_spill] sm:$0xff] }
 0x331   :  { %v1791_v46 = vadd.f32 %v16728_v56, %v16727_v17  ;;  %v16733_v27 = vunpack.c.l.bf16 %v11114_v53  ;;  %v4504_v5 = vsel %vm4451_vm4, %v4332_v8, %v4503_v36  ;;  %v4573_v51 = vsel %vm4449_vm3, %v4402_v62, %v4572_v7 }
 0x332   :  { %v1796_v37 = vsel %vm1717_vm0, %v16730_v29, 0.0  ;;  %v3950_v33 = vpack.c.bf16 %v3766_v48, %v3766_v48  ;;  %v16734_v20 = vunpack.c.l.bf16 %v11070_v57  ;;  %v4505_v19 = vsel %vm4453_vm5, %v4342_v63, %v4504_v5 }
 0x333   :  { %v1921_v1 = vadd.f32 %v16733_v27, %v16732_v6  ;;  %v4574_v52 = vsel %vm4451_vm4, %v4412_v49, %v4573_v51  ;;  %v16735_v44 = vunpack.c.l.bf16 %v11126_v34  ;;  %v16737_v22 = vunpack.c.l.bf16 %v16736_v25 }
 0x334   :  { %v1792_v13 = vadd.f32 %v1791_v46, %v16734_v20  ;;  %v4442_v23 = vunpack.c.l.b16 %v3950_v33  ;;  %v4506_v8 = vsel %vm4455_vm6, %v4352_v55, %v4505_v19  ;;  %v4575_v62 = vsel %vm4453_vm5, %v4422_v0, %v4574_v52  ;;  %v16745_v46 = vld [vmem:[#allocation40_spill] sm:$0xff] }
 0x335   :  { %v1922_v32 = vadd.f32 %v1921_v1, %v16735_v44  ;;  %v1926_v53 = vsel %vm1717_vm0, %v16737_v22, 0.0  ;;  %v16738_v57 = vunpack.c.l.bf16 %v11078_v38  ;;  %v4507_v63 = vsel %vm4457_vm7, %v4362_v11, %v4506_v8  ;;  %v16752_v1 = vld [vmem:[#allocation61_spill] sm:$0xff]  ;;  %v16763_v8 = vld [vmem:[#allocation28_spill] sm:$0xff] }
 0x336   :  { %v4576_v49 = vsel %vm4455_vm6, %v4432_v9, %v4575_v62  ;;  %v16739_v34 = vunpack.c.l.bf16 %v11131_v14  ;;  %v16741_v58 = vunpack.c.l.bf16 %v16740_v12  ;;  %v16743_v17 = vunpack.c.l.bf16 %v16742_v18  ;;  %v16748_v9 = vld [vmem:[#allocation47_spill] sm:$0xff]  ;;  %v16761_v22 = vld [vmem:[#allocation89_spill] sm:$0xff] }
 0x337   :  { %v1793_v42 = vadd.f32 %v1792_v13, %v16738_v57  ;;  %v4577_v56 = vsel %vm4457_vm7, %v4442_v23, %v4576_v49  ;;  %v16744_v55 = vunpack.c.l.bf16 %v11087_v47  ;;  %v16746_v38 = vunpack.c.l.bf16 %v16745_v46  ;;  %v16756_v13 = vld [vmem:[#allocation3_spill] sm:$0xff] }
 0x338   :  { %v1923_v48 = vadd.f32 %v1922_v32, %v16739_v34  ;;  %v2051_v24 = vadd.f32 %v16743_v17, %v16741_v58  ;;  %v16747_v11 = vunpack.c.l.bf16 %v11207_v54  ;;  %v16749_v7 = vunpack.c.l.bf16 %v16748_v9  ;;  %v16771_v58 = vld [vmem:[#allocation4_spill] sm:$0xff]  ;;  %v16773_v17 = vld [vmem:[#allocation29_spill] sm:$0xff] }
 0x339   :  { %v1794_v0 = vadd.f32 %v1793_v42, %v16744_v55  ;;  %v2056_v36 = vsel %vm1717_vm0, %v16746_v38, 0.0  ;;  %v4599_v39 = vpack.c.b16 %v4577_v56, %v4507_v63  ;;  %v16750_v29 = vunpack.c.l.bf16 %v11138_v30  ;;  %v16767_v63 = vld [vmem:[#allocation7_spill] sm:$0xff]  ;;  %v16775_v56 = vld [vmem:[#allocation86_spill] sm:$0xff] }
 0x33a   :  { %v2181_v14 = vadd.f32 %v16749_v7, %v16747_v11  ;;  %v16751_v6 = vunpack.c.l.bf16 %v11170_v3  ;;  %v16753_v33 = vunpack.c.l.bf16 %v16752_v1  ;;  %v16754_v5 = vunpack.c.l.bf16 %v11095_v4  ;;  %v16777_v38 = vld [vmem:[#allocation94_spill] sm:$0xff]  ;;  %v16779_v7 = vld [vmem:[#allocation67_spill] sm:$0xff] }
 0x33b   :  { %v1924_v16 = vadd.f32 %v1923_v48, %v16750_v29  ;;  %v16755_v20 = vunpack.c.l.bf16 %v11221_v35  ;;  %v16757_v19 = vunpack.c.l.bf16 %v16756_v13  ;;  %v16758_v52 = vunpack.c.l.bf16 %v11263_v60  ;;  %5573 = vmatprep.mubr.bf16.mxu1 %v4599_v39  ;;  %v16765_v35 = vld [vmem:[#allocation19_spill] sm:$0xff] }
 0x33c   :  { %v2052_v27 = vadd.f32 %v2051_v24, %v16751_v6  ;;  %v2186_v47 = vsel %vm1717_vm0, %v16753_v33, 0.0  ;;  %v1795_v51 = vadd.f32 %v1794_v0, %v16754_v5  ;;  %v16759_v30 = vunpack.c.l.bf16 %v11296_v15  ;;  %v16769_v15 = vld [vmem:[#allocation76_spill] sm:$0xff]  ;;  %v16781_v29 = vld [vmem:[#allocation31_spill] sm:$0xff]  ;;  %v16785_v5 = vld [vmem:[#allocation5_spill] sm:$0xff] }
 0x33d   :  { %v2182_v54 = vadd.f32 %v2181_v14, %v16755_v20  ;;  %v2311_v44 = vadd.f32 %v16758_v52, %v16757_v19  ;;  %v16760_v32 = vunpack.c.l.bf16 %v11143_v31  ;;  %v16762_v23 = vunpack.c.l.bf16 %v16761_v22  ;;  %v16789_v52 = vld [vmem:[#allocation52_spill] sm:$0xff] }
 0x33e   :  { %v2316_v3 = vsel %vm1717_vm0, %v16759_v30, 0.0  ;;  %v16764_v62 = vunpack.c.l.bf16 %v16763_v8  ;;  %v16766_v57 = vunpack.c.l.bf16 %v16765_v35  ;;  %v16768_v49 = vunpack.c.l.bf16 %v16767_v63  ;;  %v16795_v8 = vld [vmem:[#allocation88_spill] sm:$0xff] }
 0x33f   :  { %v1925_v25 = vadd.f32 %v1924_v16, %v16760_v32  ;;  %v2053_v4 = vadd.f32 %v2052_v27, %v16762_v23  ;;  %v1797_v34 = vadd.f32 %v1796_v37, %v1795_v51  ;;  %v16770_v48 = vunpack.c.l.bf16 %v16769_v15  ;;  %v16783_v27 = vld [vmem:[#allocation93_spill] sm:$0xff]  ;;  %v16791_v32 = vld [vmem:[#allocation68_spill] sm:$0xff]  ;;  %v16793_v23 = vld [vmem:[#allocation35_spill] sm:$0xff] }
 0x340   :  { %v2441_v42 = vadd.f32 %v16766_v57, %v16764_v62  ;;  %v2446_v60 = vsel %vm1717_vm0, %v16768_v49, 0.0  ;;  %v16772_v18 = vunpack.c.l.bf16 %v16771_v58  ;;  %v16774_v24 = vunpack.c.l.bf16 %v16773_v17  ;;  %v16799_v15 = vld [vmem:[#allocation23_spill] sm:$0xff]  ;;  %v16801_v58 = vld [vmem:[#allocation18_spill] sm:$0xff] }
 0x341   :  { %v2183_v12 = vadd.f32 %v2182_v54, %v16770_v48  ;;  %v16776_v55 = vunpack.c.l.bf16 %v16775_v56  ;;  %v1927_v46 = vadd.f32 %v1926_v53, %v1925_v25  ;;  %v16778_v11 = vunpack.c.l.bf16 %v16777_v38  ;;  %v16787_v54 = vld [vmem:[#allocation87_spill] sm:$0xff]  ;;  %v16803_v56 = vld [vmem:[#allocation17_spill] sm:$0xff]  ;;  %v16805_v38 = vld [vmem:[#allocation30_spill] sm:$0xff] }
 0x342   :  { %v2312_v31 = vadd.f32 %v2311_v44, %v16772_v18  ;;  %v16780_v14 = vunpack.c.l.bf16 %v16779_v7  ;;  %v16782_v37 = vunpack.c.l.bf16 %v16781_v29  ;;  %v1798_v6 = vrot.slane %v1797_v34, 4 }
 0x343   :  { %v2571_v0 = vadd.f32 %v16776_v55, %v16774_v24  ;;  %v2054_v9 = vadd.f32 %v2053_v4, %v16778_v11  ;;  %v16784_v1 = vunpack.c.l.bf16 %v16783_v27  ;;  %v16786_v51 = vunpack.c.l.bf16 %v16785_v5  ;;  %v16811_v5 = vld [vmem:[#allocation11_spill] sm:$0xff] }
 0x344   :  { %v2442_v39 = vadd.f32 %v2441_v42, %v16780_v14  ;;  %v2576_v16 = vsel %vm1717_vm0, %v16782_v37, 0.0  ;;  %v16788_v13 = vunpack.c.l.bf16 %v16787_v54  ;;  %v1928_v19 = vrot.slane %v1927_v46, 4  ;;  %v16797_v42 = vld [vmem:[#allocation54_spill] sm:$0xff]  ;;  %v16809_v37 = vld [vmem:[#allocation15_spill] sm:$0xff] }
 0x345   :  { %v2184_v33 = vadd.f32 %v2183_v12, %v16784_v1  ;;  %v2313_v20 = vadd.f32 %v2312_v31, %v16786_v51  ;;  %v16790_v44 = vunpack.c.l.bf16 %v16789_v52  ;;  %v16792_v25 = vunpack.c.l.bf16 %v16791_v32  ;;  %v16815_v52 = vld [vmem:[#allocation21_spill] sm:$0xff] }
 0x346   :  { %v2572_v53 = vadd.f32 %v2571_v0, %v16788_v13  ;;  %v16794_v4 = vunpack.c.l.bf16 %v16793_v23  ;;  %v16796_v62 = vunpack.c.l.bf16 %v16795_v8  ;;  %v1799_v57 = vadd.f32 %v1798_v6, %v1797_v34  ;;  %v16807_v34 = vld [vmem:[#allocation6_spill] sm:$0xff] }
 0x347   :  { %v2055_v30 = vadd.f32 %v2054_v9, %v16790_v44  ;;  %v2443_v22 = vadd.f32 %v2442_v39, %v16792_v25  ;;  %v16798_v63 = vunpack.c.l.bf16 %v16797_v42  ;;  %v16800_v48 = vunpack.c.l.bf16 %v16799_v15 }
 0x348   :  { %v2701_v35 = vadd.f32 %v16796_v62, %v16794_v4  ;;  %v16802_v18 = vunpack.c.l.bf16 %v16801_v58  ;;  %v1929_v17 = vadd.f32 %v1928_v19, %v1927_v46  ;;  %v16804_v55 = vunpack.c.l.bf16 %v16803_v56  ;;  %v16821_v56 = vld [vmem:[#allocation95_spill] sm:$0xff] }
 0x349   :  { %v2185_v49 = vadd.f32 %v2184_v33, %v16798_v63  ;;  %v2314_v12 = vadd.f32 %v2313_v20, %v16800_v48  ;;  %v2057_v24 = vadd.f32 %v2056_v36, %v2055_v30  ;;  %v16806_v11 = vunpack.c.l.bf16 %v16805_v38  ;;  %v16813_v36 = vld [vmem:[#allocation16_spill] sm:$0xff]  ;;  %v16819_v48 = vld [vmem:[#allocation10_spill] sm:$0xff] }
 0x34a   :  { %v2573_v31 = vadd.f32 %v2572_v53, %v16802_v18  ;;  %v2444_v0 = vadd.f32 %v2443_v22, %v16804_v55  ;;  %v1800_v7 = vrot.slane %v1799_v57, 2  ;;  %v16808_v39 = vunpack.c.l.bf16 %v16807_v34  ;;  %v16817_v22 = vld [vmem:[#allocation34_spill] sm:$0xff] }
 0x34b   :  { %v2702_v9 = vadd.f32 %v2701_v35, %v16806_v11  ;;  %v2187_v14 = vadd.f32 %v2186_v47, %v2185_v49  ;;  %v16810_v6 = vunpack.c.l.bf16 %v16809_v37  ;;  %v1930_v1 = vrot.slane %v1929_v17, 2  ;;  %v16825_v37 = vld [vmem:[#allocation22_spill] sm:$0xff] }
 0x34c   :  { %v2315_v29 = vadd.f32 %v2314_v12, %v16808_v39  ;;  %v2058_v33 = vrot.slane %v2057_v24, 4  ;;  %v16812_v51 = vunpack.c.l.bf16 %v16811_v5  ;;  %v16814_v20 = vunpack.c.l.bf16 %v16813_v36  ;;  %v16823_v39 = vld [vmem:[#allocation2_spill] sm:$0xff]  ;;  %v16827_v36 = vld [vmem:[#allocation9_spill] sm:$0xff] }
 0x34d   :  { %v2574_v27 = vadd.f32 %v2573_v31, %v16810_v6  ;;  %v1801_v13 = vadd.f32 %v1800_v7, %v1799_v57  ;;  %v2188_v53 = vrot.slane %v2187_v14, 4  ;;  %v16816_v44 = vunpack.c.l.bf16 %v16815_v52  ;;  %v16831_v52 = vld [vmem:[#allocation20_spill] sm:$0xff] }
 0x34e   :  { %v2445_v46 = vadd.f32 %v2444_v0, %v16812_v51  ;;  %v2703_v54 = vadd.f32 %v2702_v9, %v16814_v20  ;;  %v2317_v19 = vadd.f32 %v2316_v3, %v2315_v29  ;;  %v1931_v30 = vadd.f32 %v1930_v1, %v1929_v17 }
 0x34f   :  { %v2575_v47 = vadd.f32 %v2574_v27, %v16816_v44  ;;  %v2059_v32 = vadd.f32 %v2058_v33, %v2057_v24  ;;  %v16818_v23 = vunpack.c.l.bf16 %v16817_v22  ;;  %v1802_v8 = vrot.slane %v1801_v13, 1 }
 0x350   :  { %v2447_v25 = vadd.f32 %v2446_v60, %v2445_v46  ;;  %v2189_v62 = vadd.f32 %v2188_v53, %v2187_v14  ;;  %v2318_v35 = vrot.slane %v2317_v19, 4  ;;  %v1932_v63 = vrot.slane %v1931_v30, 1 }
 0x351   :  { %v2704_v4 = vadd.f32 %v2703_v54, %v16818_v23  ;;  %v2577_v42 = vadd.f32 %v2576_v16, %v2575_v47  ;;  %v2060_v49 = vrot.slane %v2059_v32, 2  ;;  %v16820_v57 = vunpack.c.l.bf16 %v16819_v48  ;;  %v16833_v47 = vld [vmem:[#allocation12_spill] sm:$0xff] }
 0x352   :  { %v2448_v15 = vrot.slane %v2447_v25, 4  ;;  %v1708_v3 = vunpack.c.l.bf16 %v16724_v41  ;;  %v2190_v58 = vrot.slane %v2189_v62, 2  ;;  %v2319_v18 = vadd.f32 %v2318_v35, %v2317_v19  ;;  %v16835_v35 = vld [vmem:[#allocation8_spill] sm:$0xff] }
 0x353   :  { %v2705_v12 = vadd.f32 %v2704_v4, %v16820_v57  ;;  %v2578_v31 = vrot.slane %v2577_v42, 4  ;;  %v12347_v17 = vadd.f32 %v1802_v8, %v1801_v13  ;;  %v2061_v60 = vadd.f32 %v2060_v49, %v2059_v32  ;;  %v16829_v13 = vld [vmem:[#allocation13_spill] sm:$0xff]  ;;  %v16837_v49 = vld [vmem:[#allocation32_spill] sm:$0xff] }
 0x354   :  { %v2449_v24 = vadd.f32 %v2448_v15, %v2447_v25  ;;  %v16822_v55 = vunpack.c.l.bf16 %v16821_v56  ;;  %v2191_v16 = vadd.f32 %v2190_v58, %v2189_v62  ;;  %v2320_v38 = vrot.slane %v2319_v18, 2  ;;  %v16839_v58 = vld [vmem:[#allocation43_spill] sm:$0xff]  ;;  %v16843_v56 = vld [vmem:[#allocation48_spill] sm:$0xff] }
 0x355   :  { %v2579_v11 = vadd.f32 %v2578_v31, %v2577_v42  ;;  %v12352_v7 = vadd.f32 %v1932_v63, %v1931_v30  ;;  %v2062_v14 = vrot.slane %v2061_v60, 1  ;;  %v16824_v29 = vunpack.c.l.bf16 %v16823_v39 }
 0x356   :  { %v2706_v0 = vsel %vm1717_vm0, %v16822_v55, 0.0  ;;  %v2450_v34 = vrot.slane %v2449_v24, 2  ;;  %v16826_v6 = vunpack.c.l.bf16 %v16825_v37  ;;  %v2192_v1 = vrot.slane %v2191_v16, 1 }
 0x357   :  { %v2707_v9 = vadd.f32 %v2706_v0, %v2705_v12  ;;  %v2321_v33 = vadd.f32 %v2320_v38, %v2319_v18  ;;  %v2580_v5 = vrot.slane %v2579_v11, 2  ;;  %v16828_v20 = vunpack.c.l.bf16 %v16827_v36 }
 0x358   :  { %v2831_v27 = vadd.f32 %v16826_v6, %v16824_v29  ;;  %v2451_v46 = vadd.f32 %v2450_v34, %v2449_v24  ;;  %v16830_v53 = vunpack.c.l.bf16 %v16829_v13  ;;  %v16832_v44 = vunpack.c.l.bf16 %v16831_v52  ;;  %v16847_v34 = vld [vmem:[#allocation37_spill] sm:$0xff]  ;;  %v16849_v6 = vld [vmem:[#allocation24_spill] sm:$0xff]  ;;  %v16857_v52 = vld [vmem:[#allocation27_spill] sm:$0xff] }
 0x359   :  { %v2708_v51 = vrot.slane %v2707_v9, 4  ;;  %v16834_v30 = vunpack.c.l.bf16 %v16833_v47  ;;  %v12367_v25 = vadd.f32 %v2062_v14, %v2061_v60  ;;  %v2322_v22 = vrot.slane %v2321_v33, 1  ;;  %v16841_v60 = vld [vmem:[#allocation38_spill] sm:$0xff] }
 0x35a   :  { %v2832_v54 = vadd.f32 %v2831_v27, %v16828_v20  ;;  %v2836_v19 = vsel %vm1717_vm0, %v16830_v53, 0.0  ;;  %v2581_v23 = vadd.f32 %v2580_v5, %v2579_v11  ;;  %v12369_v8 = vadd.f32 %v2192_v1, %v2191_v16  ;;  %v16845_v11 = vld [vmem:[#allocation36_spill] sm:$0xff]  ;;  %v16851_v5 = vld [vmem:[#allocation62_spill] sm:$0xff]  ;;  %v16853_v20 = vld [vmem:[#allocation45_spill] sm:$0xff] }
 0x35b   :  { %v2961_v32 = vadd.f32 %v16834_v30, %v16832_v44  ;;  %v2709_v4 = vadd.f32 %v2708_v51, %v2707_v9  ;;  %v2452_v62 = vrot.slane %v2451_v46, 1  ;;  %v16836_v42 = vunpack.c.l.bf16 %v16835_v35  ;;  %v16859_v30 = vld [vmem:[#allocation14_spill] sm:$0xff]  ;;  %v16863_v35 = vld [vmem:[#allocation53_spill] sm:$0xff] }
 0x35c   :  { %v16838_v15 = vunpack.c.l.bf16 %v16837_v49  ;;  %v2582_v57 = vrot.slane %v2581_v23, 1  ;;  %v16840_v18 = vunpack.c.l.bf16 %v16839_v58  ;;  %v16842_v24 = vunpack.c.l.bf16 %v16841_v60  ;;  %v16867_v58 = vld [vmem:[#allocation58_spill] sm:$0xff] }
 0x35d   :  { %v2833_v63 = vadd.f32 %v2832_v54, %v16836_v42  ;;  %v2710_v12 = vrot.slane %v2709_v4, 2  ;;  %v16844_v55 = vunpack.c.l.bf16 %v16843_v56  ;;  %v12382_v16 = vadd.f32 %v2322_v22, %v2321_v33  ;;  %v16855_v33 = vld [vmem:[#allocation57_spill] sm:$0xff] }
 0x35e   :  { %v2962_v48 = vadd.f32 %v2961_v32, %v16838_v15  ;;  %v2966_v31 = vsel %vm1717_vm0, %v16840_v18, 0.0  ;;  %v12384_v38 = vadd.f32 %v2452_v62, %v2451_v46  ;;  %v16846_v9 = vunpack.c.l.bf16 %v16845_v11  ;;  %v16865_v15 = vld [vmem:[#allocation33_spill] sm:$0xff]  ;;  %v16872_v11 = vld [vmem:[#allocation60_spill] sm:$0xff] }
 0x35f   :  { %v3091_v0 = vadd.f32 %v16844_v55, %v16842_v24  ;;  %v16848_v39 = vunpack.c.l.bf16 %v16847_v34  ;;  %v2711_v37 = vadd.f32 %v2710_v12, %v2709_v4  ;;  %v16850_v27 = vunpack.c.l.bf16 %v16849_v6  ;;  %v16861_v4 = vld [vmem:[#allocation51_spill] sm:$0xff]  ;;  %v16874_v34 = vld [vmem:[#allocation50_spill] sm:$0xff] }
 0x360   :  { %v2834_v14 = vadd.f32 %v2833_v63, %v16846_v9  ;;  %v16852_v51 = vunpack.c.l.bf16 %v16851_v5  ;;  %v16854_v54 = vunpack.c.l.bf16 %v16853_v20  ;;  %v16856_v13 = vunpack.c.l.bf16 %v16855_v33  ;;  %v16880_v20 = vld [vmem:[#allocation25_spill] sm:$0xff] }
 0x361   :  { %v2963_v29 = vadd.f32 %v2962_v48, %v16848_v39  ;;  %v3092_v1 = vadd.f32 %v3091_v0, %v16850_v27  ;;  %v12399_v53 = vadd.f32 %v2582_v57, %v2581_v23  ;;  %v16858_v44 = vunpack.c.l.bf16 %v16857_v52  ;;  %v16869_v23 = vld [vmem:[#allocation69_spill] sm:$0xff] }
 0x362   :  { %v3096_v36 = vsel %vm1717_vm0, %v16852_v51, 0.0  ;;  %v3221_v46 = vadd.f32 %v16856_v13, %v16854_v54  ;;  %v16860_v32 = vunpack.c.l.bf16 %v16859_v30  ;;  %v16862_v62 = vunpack.c.l.bf16 %v16861_v4  ;;  %v16882_v13 = vld [vmem:[#allocation55_spill] sm:$0xff] }
 0x363   :  { %v2835_v47 = vadd.f32 %v2834_v14, %v16858_v44  ;;  %v16864_v42 = vunpack.c.l.bf16 %v16863_v35  ;;  %v2712_v49 = vrot.slane %v2711_v37, 1  ;;  %v16866_v48 = vunpack.c.l.bf16 %v16865_v15 }
 0x364   :  { %v2964_v22 = vadd.f32 %v2963_v29, %v16860_v32  ;;  %v16868_v18 = vunpack.c.l.bf16 %v16867_v58  ;;  %v16870_v57 = vunpack.c.l.bf16 %v16869_v23  ;;  %v16871_v55 = vunpack.c.l.bf16 %v16684_v40  ;;  %v16876_v29 = vld [vmem:[#allocation78_spill] sm:$0xff]  ;;  %v16884_v40 = vld [vmem:[#allocation39_spill] sm:$0xff]  ;;  %v16895_v23 = vld [vmem:[#allocation84_spill] sm:$0xff] }
 0x365   :  { %v3351_v63 = vadd.f32 %v16864_v42, %v16862_v62  ;;  %v3093_v12 = vadd.f32 %v3092_v1, %v16866_v48  ;;  %v2837_v56 = vadd.f32 %v2836_v19, %v2835_v47  ;;  %v16873_v9 = vunpack.c.l.bf16 %v16872_v11  ;;  %v16878_v1 = vld [vmem:[#allocation44_spill] sm:$0xff]  ;;  %v16886_v32 = vld [vmem:[#allocation46_spill] sm:$0xff]  ;;  %v16888_v62 = vld [vmem:[#allocation71_spill] sm:$0xff] }
 0x366   :  { %v3222_v60 = vadd.f32 %v3221_v46, %v16868_v18  ;;  %v3226_v24 = vsel %vm1717_vm0, %v16870_v57, 0.0  ;;  %v2965_v0 = vadd.f32 %v2964_v22, %v16871_v55  ;;  %v16875_v39 = vunpack.c.l.bf16 %v16874_v34  ;;  %v16891_v48 = vld [vmem:[#allocation41_spill] sm:$0xff]  ;;  %v16893_v18 = vld [vmem:[#allocation59_spill] sm:$0xff]  ;;  %v16899_v34 = vld [vmem:[#allocation70_spill] sm:$0xff] }
 0x367   :  { %v3352_v14 = vadd.f32 %v3351_v63, %v16873_v9  ;;  %v16877_v6 = vunpack.c.l.bf16 %v16876_v29  ;;  %v16879_v5 = vunpack.c.l.bf16 %v16878_v1  ;;  %v16881_v54 = vunpack.c.l.bf16 %v16880_v20  ;;  %v16897_v11 = vld [vmem:[#allocation77_spill] sm:$0xff] }
 0x368   :  { %v16883_v46 = vunpack.c.l.bf16 %v16882_v13  ;;  %v16885_v52 = vunpack.c.l.bf16 %v16884_v40  ;;  %v2838_v47 = vrot.slane %v2837_v56, 4  ;;  %v2967_v30 = vadd.f32 %v2966_v31, %v2965_v0 }
 0x369   :  { %v3481_v27 = vadd.f32 %v16877_v6, %v16875_v39  ;;  %v3094_v51 = vadd.f32 %v3093_v12, %v16879_v5  ;;  %v3223_v33 = vadd.f32 %v3222_v60, %v16881_v54  ;;  %v16887_v22 = vunpack.c.l.bf16 %v16886_v32  ;;  %v16901_v6 = vld [vmem:[#allocation49_spill] sm:$0xff]  ;;  %v16903_v5 = vld [vmem:[#allocation63_spill] sm:$0xff]  ;;  %v16905_v54 = vld [vmem:[#allocation92_spill] sm:$0xff] }
 0x36a   :  { %v3356_v19 = vsel %vm1717_vm0, %v16883_v46, 0.0  ;;  %v3486_v44 = vsel %vm1717_vm0, %v16885_v52, 0.0  ;;  %v16889_v35 = vunpack.c.l.bf16 %v16888_v62  ;;  %v16890_v63 = vunpack.c.l.bf16 %v16694_v45  ;;  %v16907_v46 = vld [vmem:[#allocation83_spill] sm:$0xff]  ;;  %v16909_v52 = vld [vmem:[#allocation73_spill] sm:$0xff] }
 0x36b   :  { %v3353_v4 = vadd.f32 %v3352_v14, %v16887_v22  ;;  %v16892_v12 = vunpack.c.l.bf16 %v16891_v48  ;;  %v16894_v60 = vunpack.c.l.bf16 %v16893_v18  ;;  %v16896_v57 = vunpack.c.l.bf16 %v16895_v23 }
 0x36c   :  { %v3482_v42 = vadd.f32 %v3481_v27, %v16889_v35  ;;  %v3095_v15 = vadd.f32 %v3094_v51, %v16890_v63  ;;  %v16898_v9 = vunpack.c.l.bf16 %v16897_v11  ;;  %v2839_v0 = vadd.f32 %v2838_v47, %v2837_v56  ;;  %v16912_v35 = vld [vmem:[#allocation85_spill] sm:$0xff] }
 0x36d   :  { %v3224_v58 = vadd.f32 %v3223_v33, %v16892_v12  ;;  %v3611_v55 = vadd.f32 %v16896_v57, %v16894_v60  ;;  %v2968_v14 = vrot.slane %v2967_v30, 4  ;;  %v16900_v39 = vunpack.c.l.bf16 %v16899_v34 }
 0x36e   :  { %v3616_v31 = vsel %vm1717_vm0, %v16898_v9, 0.0  ;;  %v16902_v45 = vunpack.c.l.bf16 %v16901_v6  ;;  %v3097_v1 = vadd.f32 %v3096_v36, %v3095_v15  ;;  %v16904_v51 = vunpack.c.l.bf16 %v16903_v5 }
 0x36f   :  { %v3354_v29 = vadd.f32 %v3353_v4, %v16900_v39  ;;  %v16906_v33 = vunpack.c.l.bf16 %v16905_v54  ;;  %v16908_v40 = vunpack.c.l.bf16 %v16907_v46  ;;  %v16910_v32 = vunpack.c.l.bf16 %v16909_v52 }
 0x370   :  { %v3483_v27 = vadd.f32 %v3482_v42, %v16902_v45  ;;  %v3225_v20 = vadd.f32 %v3224_v58, %v16904_v51  ;;  %v2840_v56 = vrot.slane %v2839_v0, 2  ;;  %v2969_v47 = vadd.f32 %v2968_v14, %v2967_v30 }
 0x371   :  { %v3612_v13 = vadd.f32 %v3611_v55, %v16906_v33  ;;  %v3741_v22 = vadd.f32 %v16910_v32, %v16908_v40  ;;  %v16911_v62 = vunpack.c.l.bf16 %v16710_v21  ;;  %v16913_v63 = vunpack.c.l.bf16 %v16912_v35 }
 0x372   :  { %v3098_v36 = vrot.slane %v3097_v1, 4  ;;  %v3227_v15 = vadd.f32 %v3226_v24, %v3225_v20  ;;  %v16914_v48 = vunpack.c.l.bf16 %v16712_v26  ;;  %v16915_v58 = vunpack.c.l.bf16 %v11809_v28 }
 0x373   :  { %v3355_v4 = vadd.f32 %v3354_v29, %v16911_v62  ;;  %v3484_v42 = vadd.f32 %v3483_v27, %v16913_v63  ;;  %v2841_v60 = vadd.f32 %v2840_v56, %v2839_v0  ;;  %v2970_v23 = vrot.slane %v2969_v47, 2 }
 0x374   :  { %v3613_v12 = vadd.f32 %v3612_v13, %v16914_v48  ;;  %v3742_v18 = vadd.f32 %v3741_v22, %v16915_v58  ;;  %v16916_v55 = vunpack.c.l.bf16 %v16714_v10  ;;  %v3099_v11 = vadd.f32 %v3098_v36, %v3097_v1 }
 0x375   :  { %v3357_v57 = vadd.f32 %v3356_v19, %v3355_v4  ;;  %v3228_v21 = vrot.slane %v3227_v15, 4  ;;  %v16917_v9 = vunpack.c.l.bf16 %v16717_v43  ;;  %v16918_v34 = vunpack.c.l.bf16 %v11814_v50 }
 0x376   :  { %v3485_v30 = vadd.f32 %v3484_v42, %v16916_v55  ;;  %v2842_v39 = vrot.slane %v2841_v60, 1  ;;  %v2971_v26 = vadd.f32 %v2970_v23, %v2969_v47  ;;  %v3100_v28 = vrot.slane %v3099_v11, 2 }
 0x377   :  { %v3614_v14 = vadd.f32 %v3613_v12, %v16917_v9  ;;  %v3743_v24 = vadd.f32 %v3742_v18, %v16918_v34  ;;  %v3358_v29 = vrot.slane %v3357_v57, 4  ;;  %v3229_v45 = vadd.f32 %v3228_v21, %v3227_v15 }
 0x378   :  { %v3487_v6 = vadd.f32 %v3486_v44, %v3485_v30  ;;  %v16919_v0 = vunpack.c.l.bf16 %v16720_v59  ;;  %v16920_v10 = vunpack.c.l.bf16 %v11823_v2  ;;  %v12479_v1 = vadd.f32 %v2712_v49, %v2711_v37 }
 0x379   :  { %v2972_v5 = vrot.slane %v2971_v26, 1  ;;  %v3359_v43 = vadd.f32 %v3358_v29, %v3357_v57  ;;  %v3101_v20 = vadd.f32 %v3100_v28, %v3099_v11  ;;  %v3230_v50 = vrot.slane %v3229_v45, 2 }
 0x37a   :  { %v3615_v19 = vadd.f32 %v3614_v14, %v16919_v0  ;;  %v3744_v27 = vadd.f32 %v3743_v24, %v16920_v10  ;;  %v3488_v51 = vrot.slane %v3487_v6, 4  ;;  %v16921_v33 = vunpack.c.l.bf16 %v11828_v61 }
 0x37b   :  { %v2843_v44 = vadd.f32 %v2842_v39, %v2841_v60  ;;  %v3360_v46 = vrot.slane %v3359_v43, 2  ;;  %v3746_v59 = vsel %vm1717_vm0, %v1708_v3, 0.0  ;;  %v3102_v2 = vrot.slane %v3101_v20, 1 }
 0x37c   :  { %v3617_v54 = vadd.f32 %v3616_v31, %v3615_v19  ;;  %v3745_v13 = vadd.f32 %v3744_v27, %v16921_v33  ;;  %v3489_v40 = vadd.f32 %v3488_v51, %v3487_v6  ;;  %v3231_v52 = vadd.f32 %v3230_v50, %v3229_v45 }
 0x37d   :  { %v2973_v32 = vadd.f32 %v2972_v5, %v2971_v26  ;;  %v3361_v22 = vadd.f32 %v3360_v46, %v3359_v43  ;;  %v3799_v31 = vpack.c.bf16 %v12347_v17, %v12347_v17  ;;  %v3809_v4 = vpack.c.bf16 %v12352_v7, %v12352_v7 }
 0x37e   :  { %v3618_v37 = vrot.slane %v3617_v54, 4  ;;  %v3747_v49 = vadd.f32 %v3746_v59, %v3745_v13  ;;  %v3490_v56 = vrot.slane %v3489_v40, 2  ;;  %v3232_v47 = vrot.slane %v3231_v52, 1 }
 0x37f   :  { %v3103_v35 = vadd.f32 %v3102_v2, %v3101_v20  ;;  %v3362_v41 = vrot.slane %v3361_v22, 1  ;;  %v3819_v3 = vpack.c.bf16 %v12367_v25, %v12367_v25  ;;  %v3829_v48 = vpack.c.bf16 %v12369_v8, %v12369_v8  ;;  %v12516_v2 = vld [vmem:[%s14298_s0 + $0x48] sm:$0xff] }
 0x380   :  { %v3619_v61 = vadd.f32 %v3618_v37, %v3617_v54  ;;  %v3748_v62 = vrot.slane %v3747_v49, 4  ;;  %v3491_v63 = vadd.f32 %v3490_v56, %v3489_v40  ;;  %v3233_v42 = vadd.f32 %v3232_v47, %v3231_v52  ;;  %v12535_v47 = vld [vmem:[%s14298_s0 + $0xc0] sm:$0xff] }
 0x381   :  { %v3363_v12 = vadd.f32 %v3362_v41, %v3361_v22  ;;  %v3839_v58 = vpack.c.bf16 %v12382_v16, %v12382_v16  ;;  %v3849_v7 = vpack.c.bf16 %v12384_v38, %v12384_v38  ;;  %v3859_v23 = vpack.c.bf16 %v12399_v53, %v12399_v53  ;;  %v12544_v41 = vld [vmem:[%s14298_s0 + $0xe8] sm:$0xff] }
 0x382   :  { %v3620_v36 = vrot.slane %v3619_v61, 2  ;;  %v3749_v15 = vadd.f32 %v3748_v62, %v3747_v49  ;;  %v3492_v17 = vrot.slane %v3491_v63, 1  ;;  %v3869_v25 = vpack.c.bf16 %v12479_v1, %v12479_v1  ;;  %v12975_v62 = vld [vmem:[%s14298_s0 + $0xa98] sm:$0xff] }
 0x383   :  { %v3879_v55 = vpack.c.bf16 %v2843_v44, %v2843_v44  ;;  %v3889_v30 = vpack.c.bf16 %v2973_v32, %v2973_v32  ;;  %v3899_v8 = vpack.c.bf16 %v3103_v35, %v3103_v35  ;;  %v3909_v9 = vpack.c.bf16 %v3233_v42, %v3233_v42  ;;  %v12509_v44 = vld [vmem:[%s14298_s0 + $0x20] sm:$0xff]  ;;  %v12523_v32 = vld [vmem:[%s14298_s0 + $0x70] sm:$0xff]  ;;  %16973 = vst [vmem:[#allocation22_spill] sm:$0xff] %v12975_v62 }
 0x384   :  { %v3621_v18 = vadd.f32 %v3620_v36, %v3619_v61  ;;  %v3750_v60 = vrot.slane %v3749_v15, 2  ;;  %v3493_v57 = vadd.f32 %v3492_v17, %v3491_v63  ;;  %v3919_v14 = vpack.c.bf16 %v3363_v12, %v3363_v12  ;;  %16922 = vst [vmem:[#allocation75_spill] sm:$0xff] %v12509_v44  ;;  %v12549_v63 = vld [vmem:[%s14298_s0 + $0x110] sm:$0x11]  ;;  %v12563_v12 = vld [vmem:[%s14298_s0 + $0x160] sm:$0xff]  ;;  %v12807_v61 = vld [vmem:[%s14298_s0 + $0x6d8] sm:$0xff] }
 0x385   :  { %v4291_v34 = vunpack.c.l.b16 %v3799_v31  ;;  %v4301_v24 = vunpack.c.l.b16 %v3809_v4  ;;  %v4311_v38 = vunpack.c.l.b16 %v3819_v3  ;;  %v4321_v29 = vunpack.c.l.b16 %v3829_v48  ;;  %v12530_v31 = vld [vmem:[%s14298_s0 + $0x98] sm:$0xff]  ;;  %16923 = vst [vmem:[#allocation26_spill] sm:$0xff] %v12549_v63  ;;  %v12728_v17 = vld [vmem:[%s14298_s0 + $0x520] sm:$0xff]  ;;  %v12742_v3 = vld [vmem:[%s14298_s0 + $0x570] sm:$0x11] }
 0x386   :  { %v3622_v11 = vrot.slane %v3621_v18, 1  ;;  %v3751_v21 = vadd.f32 %v3750_v60, %v3749_v15  ;;  %v3929_v16 = vpack.c.bf16 %v3493_v57, %v3493_v57  ;;  %v4331_v6 = vunpack.c.l.b16 %v3839_v58  ;;  %v12558_v48 = vld [vmem:[%s14298_s0 + $0x138] sm:$0xff]  ;;  %v12575_v60 = vld [vmem:[%s14298_s0 + $0x1b0] sm:$0xff]  ;;  %16938 = vst [vmem:[#allocation47_spill] sm:$0xff] %v12728_v17  ;;  %16940 = vst [vmem:[#allocation3_spill] sm:$0xff] %v12742_v3 }
 0x387   :  { %v4341_v53 = vunpack.c.l.b16 %v3849_v7  ;;  %v4351_v28 = vunpack.c.l.b16 %v3859_v23  ;;  %v4371_v45 = vunpack.c.l.b16 %v3879_v55  ;;  %v4381_v0 = vunpack.c.l.b16 %v3889_v30  ;;  %16924 = vst [vmem:[#allocation56_spill] sm:$0xff] %v12558_v48  ;;  %v12583_v55 = vld [vmem:[%s14298_s0 + $0x1d8] sm:$0xff]  ;;  %v12588_v30 = vld [vmem:[%s14298_s0 + $0x200] sm:$0xff]  ;;  %16949 = vst [vmem:[#allocation94_spill] sm:$0xff] %v12807_v61 }
 0x388   :  { %v3623_v39 = vadd.f32 %v3622_v11, %v3621_v18  ;;  %v3752_v26 = vrot.slane %v3751_v21, 1  ;;  %v4391_v27 = vunpack.c.l.b16 %v3899_v8  ;;  %v4401_v1 = vunpack.c.l.b16 %v3909_v9  ;;  %v12570_v18 = vld [vmem:[%s14298_s0 + $0x188] sm:$0xff]  ;;  %v12751_v9 = vld [vmem:[%s14298_s0 + $0x598] sm:$0xff]  ;;  %v12854_v11 = vld [vmem:[%s14298_s0 + $0x7f0] sm:$0xff] }
 0x389   :  { %v4411_v5 = vunpack.c.l.b16 %v3919_v14  ;;  %v4421_v43 = vunpack.c.l.b16 %v3929_v16  ;;  %v4494_v51 = vsel %vm4445_vm1, %v4301_v24, %v4291_v34  ;;  %v4564_v20 = vsel %vm4445_vm1, %v4381_v0, %v4371_v45  ;;  %v12597_v14 = vld [vmem:[%s14298_s0 + $0x228] sm:$0x11]  ;;  %v12602_v16 = vld [vmem:[%s14298_s0 + $0x250] sm:$0xff]  ;;  %16941 = vst [vmem:[#allocation89_spill] sm:$0xff] %v12751_v9  ;;  %v12835_v8 = vld [vmem:[%s14298_s0 + $0x778] sm:$0xff] }
 0x38a   :  { %v3753_v19 = vadd.f32 %v3752_v26, %v3751_v21  ;;  %v3939_v10 = vpack.c.bf16 %v3623_v39, %v3623_v39  ;;  %v4495_v33 = vsel %vm4447_vm2, %v4311_v38, %v4494_v51  ;;  %v4565_v13 = vsel %vm4447_vm2, %v4391_v27, %v4564_v20  ;;  %16925 = vst [vmem:[#allocation64_spill] sm:$0xff] %v12597_v14  ;;  %v12611_v26 = vld [vmem:[%s14298_s0 + $0x278] sm:$0xff]  ;;  %v12625_v0 = vld [vmem:[%s14298_s0 + $0x2c8] sm:$0xff]  ;;  %v12644_v51 = vld [vmem:[%s14298_s0 + $0x340] sm:$0x11] }
 0x38b   :  { %v4361_v46 = vunpack.c.l.b16 %v3869_v25  ;;  %v4496_v40 = vsel %vm4449_vm3, %v4321_v29, %v4495_v33  ;;  %v4566_v59 = vsel %vm4449_vm3, %v4401_v1, %v4565_v13  ;;  %16926 = vst [vmem:[#allocation81_spill] sm:$0xff] %v12602_v16  ;;  %16927 = vst [vmem:[#allocation74_spill] sm:$0xff] %v12611_v26  ;;  %v12616_v29 = vld [vmem:[%s14298_s0 + $0x2a0] sm:$0xff]  ;;  %v12653_v13 = vld [vmem:[%s14298_s0 + $0x368] sm:$0xff] }
 0x38c   :  { %v3949_v50 = vpack.c.bf16 %v3753_v19, %v3753_v19  ;;  %v4431_v54 = vunpack.c.l.b16 %v3939_v10  ;;  %v4497_v37 = vsel %vm4451_vm4, %v4331_v6, %v4496_v40  ;;  %v4567_v49 = vsel %vm4451_vm4, %v4411_v5, %v4566_v59  ;;  %v12630_v19 = vld [vmem:[%s14298_s0 + $0x2f0] sm:$0xff]  ;;  %16930 = vst [vmem:[#allocation90_spill] sm:$0xff] %v12653_v13  ;;  %v12709_v27 = vld [vmem:[%s14298_s0 + $0x4a8] sm:$0xff]  ;;  %v12723_v59 = vld [vmem:[%s14298_s0 + $0x4f8] sm:$0xff] }
 0x38d   :  { %v4498_v22 = vsel %vm4453_vm5, %v4341_v53, %v4497_v37  ;;  %v4568_v56 = vsel %vm4453_vm5, %v4421_v43, %v4567_v49  ;;  %16928 = vst [vmem:[#allocation66_spill] sm:$0xff] %v12630_v19  ;;  %v12639_v43 = vld [vmem:[%s14298_s0 + $0x318] sm:$0xff]  ;;  %v12700_v37 = vld [vmem:[%s14298_s0 + $0x480] sm:$0xff]  ;;  %16936 = vst [vmem:[#allocation91_spill] sm:$0xff] %v12709_v27 }
 0x38e   :  { %v4441_v52 = vunpack.c.l.b16 %v3949_v50  ;;  %v4499_v4 = vsel %vm4455_vm6, %v4351_v28, %v4498_v22  ;;  %v4569_v35 = vsel %vm4455_vm6, %v4431_v54, %v4568_v56  ;;  %16929 = vst [vmem:[#allocation72_spill] sm:$0xff] %v12639_v43  ;;  %v12667_v49 = vld [vmem:[%s14298_s0 + $0x3b8] sm:$0xff]  ;;  %v12672_v22 = vld [vmem:[%s14298_s0 + $0x3e0] sm:$0xff]  ;;  %v12714_v33 = vld [vmem:[%s14298_s0 + $0x4d0] sm:$0xff] }
 0x38f   :  { %v4500_v36 = vsel %vm4457_vm7, %v4361_v46, %v4499_v4  ;;  %v12658_v46 = vld [vmem:[%s14298_s0 + $0x390] sm:$0xff]  ;;  %16932 = vst [vmem:[#allocation42_spill] sm:$0xff] %v12672_v22  ;;  %16937 = vst [vmem:[#allocation40_spill] sm:$0xff] %v12723_v59  ;;  %v12737_v50 = vld [vmem:[%s14298_s0 + $0x548] sm:$0xff] }
 0x390   :  { %v4570_v15 = vsel %vm4457_vm7, %v4441_v52, %v4569_v35  ;;  %16931 = vst [vmem:[#allocation82_spill] sm:$0xff] %v12658_v46  ;;  %16939 = vst [vmem:[#allocation61_spill] sm:$0xff] %v12737_v50  ;;  %v12756_v21 = vld [vmem:[%s14298_s0 + $0x5c0] sm:$0xff]  ;;  %v12765_v20 = vld [vmem:[%s14298_s0 + $0x5e8] sm:$0xff] }
 0x391   :  { %v4598_v7 = vpack.c.b16 %v4570_v15, %v4500_v36  ;;  %v12681_v15 = vld [vmem:[%s14298_s0 + $0x408] sm:$0xff]  ;;  %v12695_v36 = vld [vmem:[%s14298_s0 + $0x458] sm:$0x11]  ;;  %16942 = vst [vmem:[#allocation28_spill] sm:$0xff] %v12756_v21  ;;  %16943 = vst [vmem:[#allocation19_spill] sm:$0xff] %v12765_v20 }
 0x392   :  { %16933 = vst [vmem:[#allocation65_spill] sm:$0xff] %v12681_v15  ;;  %16935 = vst [vmem:[#allocation80_spill] sm:$0xff] %v12695_v36  ;;  %v12770_v1 = vld [vmem:[%s14298_s0 + $0x610] sm:$0xff]  ;;  %v12779_v5 = vld [vmem:[%s14298_s0 + $0x638] sm:$0xff] }
 0x393   :  { %5574 = vmatmul.mubr.bf16.vlgmr.msra.gmra.mxu1 %v4598_v7  ;;  %v12686_v7 = vld [vmem:[%s14298_s0 + $0x430] sm:$0xff]  ;;  %16944 = vst [vmem:[#allocation7_spill] sm:$0xff] %v12770_v1  ;;  %16945 = vst [vmem:[#allocation76_spill] sm:$0xff] %v12779_v5  ;;  %v12784_v10 = vld [vmem:[%s14298_s0 + $0x660] sm:$0xff]  ;;  %v17014_v5 = vunpack.c.h.bf16 %v12516_v2 }
 0x394   :  { %16934 = vst [vmem:[#allocation79_spill] sm:$0xff] %v12686_v7  ;;  %16946 = vst [vmem:[#allocation4_spill] sm:$0xff] %v12784_v10  ;;  %v12793_v35 = vld [vmem:[%s14298_s0 + $0x688] sm:$0x11]  ;;  %v12798_v45 = vld [vmem:[%s14298_s0 + $0x6b0] sm:$0xff]  ;;  %v17015_v7 = vunpack.c.h.bf16 %v12549_v63 }
 0x395   :  { %16947 = vst [vmem:[#allocation29_spill] sm:$0xff] %v12793_v35  ;;  %16948 = vst [vmem:[#allocation86_spill] sm:$0xff] %v12798_v45  ;;  %v12812_v4 = vld [vmem:[%s14298_s0 + $0x700] sm:$0xff]  ;;  %v12821_v39 = vld [vmem:[%s14298_s0 + $0x728] sm:$0xff] }
 0x396   :  { %16950 = vst [vmem:[#allocation67_spill] sm:$0xff] %v12812_v4  ;;  %16951 = vst [vmem:[#allocation31_spill] sm:$0xff] %v12821_v39  ;;  %v12826_v28 = vld [vmem:[%s14298_s0 + $0x750] sm:$0xff]  ;;  %v12840_v24 = vld [vmem:[%s14298_s0 + $0x7a0] sm:$0x11]  ;;  %v1835_v43 = vsel %vm1717_vm0, %v17015_v7, 0.0  ;;  %v17022_v7 = vunpack.c.h.bf16 %v12653_v13  ;;  %v17029_v13 = vunpack.c.h.bf16 %v12742_v3 }
 0x397   :  { %16952 = vst [vmem:[#allocation93_spill] sm:$0xff] %v12826_v28  ;;  %16953 = vst [vmem:[#allocation5_spill] sm:$0xff] %v12835_v8  ;;  %v12849_v25 = vld [vmem:[%s14298_s0 + $0x7c8] sm:$0xff]  ;;  %v12863_v56 = vld [vmem:[%s14298_s0 + $0x818] sm:$0xff] }
 0x398   :  { %16954 = vst [vmem:[#allocation87_spill] sm:$0xff] %v12840_v24  ;;  %16955 = vst [vmem:[#allocation52_spill] sm:$0xff] %v12849_v25  ;;  %v12868_v52 = vld [vmem:[%s14298_s0 + $0x840] sm:$0xff]  ;;  %v12877_v53 = vld [vmem:[%s14298_s0 + $0x868] sm:$0xff] }
 0x399   :  { %16956 = vst [vmem:[#allocation68_spill] sm:$0xff] %v12854_v11  ;;  %16957 = vst [vmem:[#allocation35_spill] sm:$0xff] %v12863_v56  ;;  %v12882_v54 = vld [vmem:[%s14298_s0 + $0x890] sm:$0xff]  ;;  %v12891_v58 = vld [vmem:[%s14298_s0 + $0x8b8] sm:$0x11]  ;;  %v17013_v56 = vunpack.c.h.bf16 %v12509_v44  ;;  %v17020_v44 = vunpack.c.h.bf16 %v12611_v26 }
 0x39a   :  { %16958 = vst [vmem:[#allocation88_spill] sm:$0xff] %v12868_v52  ;;  %16959 = vst [vmem:[#allocation54_spill] sm:$0xff] %v12877_v53  ;;  %v12896_v38 = vld [vmem:[%s14298_s0 + $0x8e0] sm:$0xff]  ;;  %v12905_v23 = vld [vmem:[%s14298_s0 + $0x908] sm:$0xff] }
 0x39b   :  { %16960 = vst [vmem:[#allocation23_spill] sm:$0xff] %v12882_v54  ;;  %16961 = vst [vmem:[#allocation18_spill] sm:$0xff] %v12891_v58  ;;  %v12910_v42 = vld [vmem:[%s14298_s0 + $0x930] sm:$0xff]  ;;  %v12919_v57 = vld [vmem:[%s14298_s0 + $0x958] sm:$0xff] }
 0x39c   :  { %16962 = vst [vmem:[#allocation17_spill] sm:$0xff] %v12896_v38  ;;  %16963 = vst [vmem:[#allocation30_spill] sm:$0xff] %v12905_v23  ;;  %v12924_v8 = vld [vmem:[%s14298_s0 + $0x980] sm:$0xff]  ;;  %v12933_v40 = vld [vmem:[%s14298_s0 + $0x9a8] sm:$0xff] }
 0x39d   :  { %16964 = vst [vmem:[#allocation6_spill] sm:$0xff] %v12910_v42  ;;  %16965 = vst [vmem:[#allocation15_spill] sm:$0xff] %v12919_v57  ;;  %v12938_v28 = vld [vmem:[%s14298_s0 + $0x9d0] sm:$0x11]  ;;  %v12947_v6 = vld [vmem:[%s14298_s0 + $0x9f8] sm:$0xff] }
 0x39e   :  { %16966 = vst [vmem:[#allocation11_spill] sm:$0xff] %v12924_v8  ;;  %16967 = vst [vmem:[#allocation16_spill] sm:$0xff] %v12933_v40  ;;  %v12952_v53 = vld [vmem:[%s14298_s0 + $0xa20] sm:$0xff]  ;;  %v12961_v34 = vld [vmem:[%s14298_s0 + $0xa48] sm:$0xff] }
 0x39f   :  { %16968 = vst [vmem:[#allocation21_spill] sm:$0xff] %v12938_v28  ;;  %16969 = vst [vmem:[#allocation34_spill] sm:$0xff] %v12947_v6  ;;  %v12966_v58 = vld [vmem:[%s14298_s0 + $0xa70] sm:$0xff]  ;;  %v12980_v23 = vld [vmem:[%s14298_s0 + $0xac0] sm:$0xff] }
 0x3a0   :  { %16970 = vst [vmem:[#allocation10_spill] sm:$0xff] %v12952_v53  ;;  %16971 = vst [vmem:[#allocation95_spill] sm:$0xff] %v12961_v34  ;;  %v12989_v10 = vld [vmem:[%s14298_s0 + $0xae8] sm:$0x11]  ;;  %v12994_v57 = vld [vmem:[%s14298_s0 + $0xb10] sm:$0xff] }
 0x3a1   :  { %16972 = vst [vmem:[#allocation2_spill] sm:$0xff] %v12966_v58  ;;  %16974 = vst [vmem:[#allocation9_spill] sm:$0xff] %v12980_v23  ;;  %v13003_v50 = vld [vmem:[%s14298_s0 + $0xb38] sm:$0xff]  ;;  %v13008_v40 = vld [vmem:[%s14298_s0 + $0xb60] sm:$0xff] }
 0x3a2   :  { %16975 = vst [vmem:[#allocation13_spill] sm:$0xff] %v12989_v10  ;;  %16976 = vst [vmem:[#allocation20_spill] sm:$0xff] %v12994_v57  ;;  %v13017_v52 = vld [vmem:[%s14298_s0 + $0xb88] sm:$0xff]  ;;  %v13022_v6 = vld [vmem:[%s14298_s0 + $0xbb0] sm:$0xff] }
 0x3a3   :  { %16977 = vst [vmem:[#allocation12_spill] sm:$0xff] %v13003_v50  ;;  %16978 = vst [vmem:[#allocation8_spill] sm:$0xff] %v13008_v40  ;;  %v13031_v54 = vld [vmem:[%s14298_s0 + $0xbd8] sm:$0xff]  ;;  %v13036_v34 = vld [vmem:[%s14298_s0 + $0xc00] sm:$0x11] }
 0x3a4   :  { %16979 = vst [vmem:[#allocation32_spill] sm:$0xff] %v13017_v52  ;;  %16980 = vst [vmem:[#allocation43_spill] sm:$0xff] %v13022_v6  ;;  %v13045_v38 = vld [vmem:[%s14298_s0 + $0xc28] sm:$0xff]  ;;  %v13050_v62 = vld [vmem:[%s14298_s0 + $0xc50] sm:$0xff] }
 0x3a5   :  { %16981 = vst [vmem:[#allocation38_spill] sm:$0xff] %v13031_v54  ;;  %16982 = vst [vmem:[#allocation48_spill] sm:$0xff] %v13036_v34  ;;  %v13059_v42 = vld [vmem:[%s14298_s0 + $0xc78] sm:$0xff]  ;;  %v13064_v23 = vld [vmem:[%s14298_s0 + $0xca0] sm:$0xff] }
 0x3a6   :  { %16983 = vst [vmem:[#allocation36_spill] sm:$0xff] %v13045_v38  ;;  %16984 = vst [vmem:[#allocation37_spill] sm:$0xff] %v13050_v62  ;;  %v13073_v8 = vld [vmem:[%s14298_s0 + $0xcc8] sm:$0xff]  ;;  %v13078_v50 = vld [vmem:[%s14298_s0 + $0xcf0] sm:$0xff] }
 0x3a7   :  { %16985 = vst [vmem:[#allocation24_spill] sm:$0xff] %v13059_v42  ;;  %16986 = vst [vmem:[#allocation62_spill] sm:$0xff] %v13064_v23  ;;  %v13087_v28 = vld [vmem:[%s14298_s0 + $0xd18] sm:$0x11]  ;;  %v13092_v52 = vld [vmem:[%s14298_s0 + $0xd40] sm:$0xff] }
 0x3a8   :  { %16987 = vst [vmem:[#allocation45_spill] sm:$0xff] %v13073_v8  ;;  %16988 = vst [vmem:[#allocation57_spill] sm:$0xff] %v13078_v50  ;;  %v13101_v53 = vld [vmem:[%s14298_s0 + $0xd68] sm:$0xff]  ;;  %v13106_v54 = vld [vmem:[%s14298_s0 + $0xd90] sm:$0xff] }
 0x3a9   :  { %16989 = vst [vmem:[#allocation27_spill] sm:$0xff] %v13087_v28  ;;  %16990 = vst [vmem:[#allocation14_spill] sm:$0xff] %v13092_v52  ;;  %v13115_v58 = vld [vmem:[%s14298_s0 + $0xdb8] sm:$0xff]  ;;  %v13120_v38 = vld [vmem:[%s14298_s0 + $0xde0] sm:$0xff] }
 0x3aa   :  { %16991 = vst [vmem:[#allocation51_spill] sm:$0xff] %v13101_v53  ;;  %16992 = vst [vmem:[#allocation53_spill] sm:$0xff] %v13106_v54  ;;  %v13129_v10 = vld [vmem:[%s14298_s0 + $0xe08] sm:$0xff]  ;;  %v13134_v42 = vld [vmem:[%s14298_s0 + $0xe30] sm:$0x11] }
 0x3ab   :  { %16993 = vst [vmem:[#allocation33_spill] sm:$0xff] %v13115_v58  ;;  %16994 = vst [vmem:[#allocation58_spill] sm:$0xff] %v13120_v38  ;;  %v13143_v57 = vld [vmem:[%s14298_s0 + $0xe58] sm:$0xff]  ;;  %v13148_v8 = vld [vmem:[%s14298_s0 + $0xe80] sm:$0xff] }
 0x3ac   :  { %16995 = vst [vmem:[#allocation69_spill] sm:$0xff] %v13129_v10  ;;  %16996 = vst [vmem:[#allocation60_spill] sm:$0xff] %v13134_v42  ;;  %v13157_v40 = vld [vmem:[%s14298_s0 + $0xea8] sm:$0xff]  ;;  %v13162_v50 = vld [vmem:[%s14298_s0 + $0xed0] sm:$0xff] }
 0x3ad   :  { %16997 = vst [vmem:[#allocation50_spill] sm:$0xff] %v13143_v57  ;;  %16998 = vst [vmem:[#allocation78_spill] sm:$0xff] %v13148_v8  ;;  %v13171_v6 = vld [vmem:[%s14298_s0 + $0xef8] sm:$0xff]  ;;  %v13176_v53 = vld [vmem:[%s14298_s0 + $0xf20] sm:$0xff]  ;;  %v17017_v8 = vunpack.c.h.bf16 %v12563_v12 }
 0x3ae   :  { %16999 = vst [vmem:[#allocation44_spill] sm:$0xff] %v13157_v40  ;;  %17000 = vst [vmem:[#allocation25_spill] sm:$0xff] %v13162_v50  ;;  %v13185_v34 = vld [vmem:[%s14298_s0 + $0xf48] sm:$0x11]  ;;  %v13190_v58 = vld [vmem:[%s14298_s0 + $0xf70] sm:$0xff]  ;;  %v17016_v50 = vunpack.c.h.bf16 %v12558_v48  ;;  %v17023_v48 = vunpack.c.h.bf16 %v12658_v46  ;;  %v2355_v46 = vsel %vm1717_vm0, %v17029_v13, 0.0  ;;  %v17036_v13 = vunpack.c.h.bf16 %v12575_v60 }
 0x3af   :  { %17001 = vst [vmem:[#allocation55_spill] sm:$0xff] %v13171_v6  ;;  %17002 = vst [vmem:[#allocation39_spill] sm:$0xff] %v13176_v53  ;;  %v13199_v62 = vld [vmem:[%s14298_s0 + $0xf98] sm:$0xff]  ;;  %v13204_v10 = vld [vmem:[%s14298_s0 + $0xfc0] sm:$0xff] }
 0x3b0   :  { %17003 = vst [vmem:[#allocation46_spill] sm:$0xff] %v13185_v34  ;;  %17004 = vst [vmem:[#allocation71_spill] sm:$0xff] %v13190_v58  ;;  %v13213_v23 = vld [vmem:[%s14298_s0 + $0xfe8] sm:$0xff]  ;;  %v13218_v57 = vld [vmem:[%s14298_s0 + $0x1010] sm:$0xff]  ;;  %v1960_v42 = vadd.f32 %v17017_v8, %v17016_v50  ;;  %v17019_v58 = vunpack.c.h.bf16 %v12602_v16  ;;  %v2220_v63 = vadd.f32 %v17023_v48, %v17022_v7  ;;  %v17024_v8 = vunpack.c.h.bf16 %v12695_v36 }
 0x3b1   :  { %17005 = vst [vmem:[#allocation41_spill] sm:$0xff] %v13199_v62  ;;  %17006 = vst [vmem:[#allocation59_spill] sm:$0xff] %v13204_v10  ;;  %v13227_v28 = vld [vmem:[%s14298_s0 + $0x1038] sm:$0xff]  ;;  %v13232_v40 = vld [vmem:[%s14298_s0 + $0x1060] sm:$0x11]  ;;  %v17026_v16 = vunpack.c.h.bf16 %v12570_v18  ;;  %v17030_v48 = vunpack.c.h.bf16 %v12616_v29 }
 0x3b2   :  { %17007 = vst [vmem:[#allocation84_spill] sm:$0xff] %v13213_v23  ;;  %17008 = vst [vmem:[#allocation77_spill] sm:$0xff] %v13227_v28  ;;  %v13241_v52 = vld [vmem:[%s14298_s0 + $0x1088] sm:$0xff]  ;;  %v13246_v6 = vld [vmem:[%s14298_s0 + $0x10b0] sm:$0xff]  ;;  %v1830_v28 = vadd.f32 %v17014_v5, %v17013_v56  ;;  %v17018_v23 = vunpack.c.h.bf16 %v12597_v14  ;;  %v17021_v5 = vunpack.c.h.bf16 %v12644_v51  ;;  %v2225_v50 = vsel %vm1717_vm0, %v17024_v8, 0.0 }
 0x3b3   :  { %17009 = vst [vmem:[#allocation70_spill] sm:$0xff] %v13232_v40  ;;  %17010 = vst [vmem:[#allocation49_spill] sm:$0xff] %v13241_v52  ;;  %v13255_v54 = vld [vmem:[%s14298_s0 + $0x10d8] sm:$0xff]  ;;  %v13260_v53 = vld [vmem:[%s14298_s0 + $0x1100] sm:$0xff]  ;;  %v1961_v26 = vadd.f32 %v1960_v42, %v17026_v16  ;;  %v17031_v8 = vunpack.c.h.bf16 %v12667_v49  ;;  %v17034_v16 = vunpack.c.h.bf16 %v12793_v35  ;;  %v17041_v35 = vunpack.c.h.bf16 %v12672_v22 }
 0x3b4   :  { %17011 = vst [vmem:[#allocation63_spill] sm:$0xff] %v13246_v6  ;;  %v13269_v38 = vld [vmem:[%s14298_s0 + $0x1128] sm:$0xff]  ;;  %v13274_v62 = vld [vmem:[%s14298_s0 + $0x1150] sm:$0xff]  ;;  %v13279_v34 = vld [vmem:[%s14298_s0 + $0x1178] sm:$0x11]  ;;  %v1965_v10 = vsel %vm1717_vm0, %v17018_v23, 0.0  ;;  %v17025_v23 = vunpack.c.h.bf16 %v12523_v32 }
 0x3b5   :  { %17012 = vst [vmem:[#allocation92_spill] sm:$0xff] %v13279_v34  ;;  %v2090_v34 = vadd.f32 %v17020_v44, %v17019_v58  ;;  %v2095_v56 = vsel %vm1717_vm0, %v17021_v5, 0.0  ;;  %v17027_v44 = vunpack.c.h.bf16 %v12700_v37  ;;  %v17028_v58 = vunpack.c.h.bf16 %v12709_v27  ;;  %v17129_v22 = vld [vmem:[#allocation32_spill] sm:$0xff] }
 0x3b6   :  { %v1831_v14 = vadd.f32 %v1830_v28, %v17025_v23  ;;  %v2221_v36 = vadd.f32 %v2220_v63, %v17031_v8  ;;  %v17032_v28 = vunpack.c.h.bf16 %v12751_v9  ;;  %v17033_v23 = vunpack.c.h.bf16 %v12756_v21 }
 0x3b7   :  { %v2350_v5 = vadd.f32 %v17028_v58, %v17027_v44  ;;  %v2091_v7 = vadd.f32 %v2090_v34, %v17030_v48  ;;  %v2485_v27 = vsel %vm1717_vm0, %v17034_v16, 0.0  ;;  %v17035_v44 = vunpack.c.h.bf16 %v12530_v31 }
 0x3b8   :  { %v2480_v42 = vadd.f32 %v17033_v23, %v17032_v28  ;;  %v1962_v3 = vadd.f32 %v1961_v26, %v17036_v13  ;;  %v17037_v34 = vunpack.c.h.bf16 %v12714_v33  ;;  %v17038_v63 = vunpack.c.h.bf16 %v12798_v45  ;;  %v17145_v45 = vld [vmem:[#allocation33_spill] sm:$0xff] }
 0x3b9   :  { %v1832_v58 = vadd.f32 %v1831_v14, %v17035_v44  ;;  %v17039_v8 = vunpack.c.h.bf16 %v12807_v61  ;;  %v17040_v28 = vunpack.c.h.bf16 %v12625_v0  ;;  %v2222_v16 = vadd.f32 %v2221_v36, %v17041_v35 }
 0x3ba   :  { %v2351_v48 = vadd.f32 %v2350_v5, %v17037_v34  ;;  %v17042_v21 = vunpack.c.h.bf16 %v12765_v20  ;;  %v17043_v44 = vunpack.c.h.bf16 %v12840_v24  ;;  %v17044_v5 = vunpack.c.h.bf16 %v12535_v47 }
 0x3bb   :  { %v2610_v9 = vadd.f32 %v17039_v8, %v17038_v63  ;;  %v2092_v23 = vadd.f32 %v2091_v7, %v17040_v28  ;;  %v17045_v34 = vunpack.c.h.bf16 %v12583_v55  ;;  %v17046_v63 = vunpack.c.h.bf16 %v12723_v59 }
 0x3bc   :  { %v2481_v14 = vadd.f32 %v2480_v42, %v17042_v21  ;;  %v2615_v26 = vsel %vm1717_vm0, %v17043_v44, 0.0  ;;  %v1833_v13 = vadd.f32 %v1832_v58, %v17044_v5  ;;  %v17047_v7 = vunpack.c.h.bf16 %v12812_v4  ;;  %v17063_v4 = vld [vmem:[#allocation35_spill] sm:$0xff] }
 0x3bd   :  { %v1963_v61 = vadd.f32 %v1962_v3, %v17045_v34  ;;  %v2352_v8 = vadd.f32 %v2351_v48, %v17046_v63  ;;  %v17048_v35 = vunpack.c.h.bf16 %v12630_v19  ;;  %v17049_v21 = vunpack.c.h.bf16 %v12681_v15 }
 0x3be   :  { %v2611_v28 = vadd.f32 %v2610_v9, %v17047_v7  ;;  %v17050_v44 = vunpack.c.h.bf16 %v12770_v1  ;;  %v17051_v58 = vunpack.c.h.bf16 %v12849_v25  ;;  %v17052_v5 = vunpack.c.h.bf16 %v12854_v11  ;;  %v17061_v11 = vld [vmem:[#allocation76_spill] sm:$0xff] }
 0x3bf   :  { %v2093_v36 = vadd.f32 %v2092_v23, %v17048_v35  ;;  %v2223_v42 = vadd.f32 %v2222_v16, %v17049_v21  ;;  %v17053_v34 = vunpack.c.h.bf16 %v12544_v41  ;;  %v17054_v63 = vunpack.c.h.bf16 %v12588_v30  ;;  %v17057_v21 = vld [vmem:[#allocation72_spill] sm:$0xff] }
 0x3c0   :  { %v2482_v24 = vadd.f32 %v2481_v14, %v17050_v44  ;;  %v2740_v3 = vadd.f32 %v17052_v5, %v17051_v58  ;;  %v17055_v7 = vunpack.c.h.bf16 %v12728_v17  ;;  %v17056_v35 = vunpack.c.h.bf16 %v12821_v39  ;;  %v17059_v44 = vld [vmem:[#allocation79_spill] sm:$0xff] }
 0x3c1   :  { %v1834_v48 = vadd.f32 %v1833_v13, %v17053_v34  ;;  %v1964_v9 = vadd.f32 %v1963_v61, %v17054_v63  ;;  %v17058_v1 = vunpack.c.h.bf16 %v17057_v21  ;;  %v17060_v25 = vunpack.c.h.bf16 %v17059_v44  ;;  %v17065_v63 = vld [vmem:[#allocation61_spill] sm:$0xff] }
 0x3c2   :  { %v2353_v23 = vadd.f32 %v2352_v8, %v17055_v7  ;;  %v2612_v16 = vadd.f32 %v2611_v28, %v17056_v35  ;;  %v17062_v58 = vunpack.c.h.bf16 %v17061_v11  ;;  %v17064_v13 = vunpack.c.h.bf16 %v17063_v4  ;;  %v17067_v7 = vld [vmem:[#allocation93_spill] sm:$0xff] }
 0x3c3   :  { %v2094_v14 = vadd.f32 %v2093_v36, %v17058_v1  ;;  %v2224_v15 = vadd.f32 %v2223_v42, %v17060_v25  ;;  %v1836_v59 = vadd.f32 %v1835_v43, %v1834_v48  ;;  %v1966_v61 = vadd.f32 %v1965_v10, %v1964_v9  ;;  %v17069_v1 = vld [vmem:[#allocation4_spill] sm:$0xff] }
 0x3c4   :  { %v2483_v5 = vadd.f32 %v2482_v24, %v17062_v58  ;;  %v2741_v34 = vadd.f32 %v2740_v3, %v17064_v13  ;;  %v17066_v17 = vunpack.c.h.bf16 %v17065_v63  ;;  %v17068_v39 = vunpack.c.h.bf16 %v17067_v7  ;;  %v17071_v25 = vld [vmem:[#allocation88_spill] sm:$0xff]  ;;  %v17073_v3 = vld [vmem:[#allocation5_spill] sm:$0xff] }
 0x3c5   :  { %v2096_v35 = vadd.f32 %v2095_v56, %v2094_v14  ;;  %v2226_v21 = vadd.f32 %v2225_v50, %v2224_v15  ;;  %v17070_v36 = vunpack.c.h.bf16 %v17069_v1  ;;  %v17072_v42 = vunpack.c.h.bf16 %v17071_v25 }
 0x3c6   :  { %v2354_v8 = vadd.f32 %v2353_v23, %v17066_v17  ;;  %v2613_v28 = vadd.f32 %v2612_v16, %v17068_v39  ;;  %v1837_v24 = vrot.slane %v1836_v59, 4  ;;  %v1967_v58 = vrot.slane %v1966_v61, 4  ;;  %v17075_v23 = vld [vmem:[#allocation54_spill] sm:$0xff] }
 0x3c7   :  { %v2484_v44 = vadd.f32 %v2483_v5, %v17070_v36  ;;  %v2742_v11 = vadd.f32 %v2741_v34, %v17072_v42  ;;  %v17074_v43 = vunpack.c.h.bf16 %v17073_v3  ;;  %v2097_v48 = vrot.slane %v2096_v35, 4  ;;  %v17077_v34 = vld [vmem:[#allocation23_spill] sm:$0xff] }
 0x3c8   :  { %v2356_v4 = vadd.f32 %v2355_v46, %v2354_v8  ;;  %v2227_v9 = vrot.slane %v2226_v21, 4  ;;  %v17076_v13 = vunpack.c.h.bf16 %v17075_v23  ;;  %v1838_v56 = vadd.f32 %v1837_v24, %v1836_v59 }
 0x3c9   :  { %v2614_v10 = vadd.f32 %v2613_v28, %v17074_v43  ;;  %v2486_v17 = vadd.f32 %v2485_v27, %v2484_v44  ;;  %v1968_v15 = vadd.f32 %v1967_v58, %v1966_v61  ;;  %v2098_v14 = vadd.f32 %v2097_v48, %v2096_v35  ;;  %v17079_v44 = vld [vmem:[#allocation18_spill] sm:$0xff] }
 0x3ca   :  { %v2743_v39 = vadd.f32 %v2742_v11, %v17076_v13  ;;  %v2357_v50 = vrot.slane %v2356_v4, 4  ;;  %v2228_v5 = vadd.f32 %v2227_v9, %v2226_v21  ;;  %v17078_v42 = vunpack.c.h.bf16 %v17077_v34  ;;  %v17115_v34 = vld [vmem:[#allocation51_spill] sm:$0xff] }
 0x3cb   :  { %v2616_v16 = vadd.f32 %v2615_v26, %v2614_v10  ;;  %v2487_v36 = vrot.slane %v2486_v17, 4  ;;  %v1839_v46 = vrot.slane %v1838_v56, 2  ;;  %v1969_v8 = vrot.slane %v1968_v15, 2 }
 0x3cc   :  { %v2744_v25 = vadd.f32 %v2743_v39, %v17078_v42  ;;  %v2358_v3 = vadd.f32 %v2357_v50, %v2356_v4  ;;  %v2099_v43 = vrot.slane %v2098_v14, 2  ;;  %v2229_v1 = vrot.slane %v2228_v5, 2  ;;  %v5660_v39 = vld [vmem:[%s14299_s3 + $0xe8] sm:$0xff] }
 0x3cd   :  { %v2617_v28 = vrot.slane %v2616_v16, 4  ;;  %v2488_v27 = vadd.f32 %v2487_v36, %v2486_v17  ;;  %v17080_v23 = vunpack.c.h.bf16 %v17079_v44  ;;  %v1840_v59 = vadd.f32 %v1839_v46, %v1838_v56  ;;  %v5662_v17 = vld [vmem:[%s14299_s3 + $0xf8] sm:$0xff] }
 0x3ce   :  { %v1970_v61 = vadd.f32 %v1969_v8, %v1968_v15  ;;  %v2359_v26 = vrot.slane %v2358_v3, 2  ;;  %v2100_v21 = vadd.f32 %v2099_v43, %v2098_v14  ;;  %v2230_v24 = vadd.f32 %v2229_v1, %v2228_v5  ;;  %5707 = vmatprep.subr.mxu1 %v5662_v17  ;;  %v5658_v36 = vld [vmem:[%s14299_s3 + $0xd8] sm:$0xff]  ;;  %v5657_v43 = vld [vmem:[%s14299_s3 + $0xd0] sm:$0xff] }
 0x3cf   :  { %v2745_v11 = vsel %vm1717_vm0, %v17080_v23, 0.0  ;;  %v2618_v35 = vadd.f32 %v2617_v28, %v2616_v16  ;;  %v2489_v58 = vrot.slane %v2488_v27, 2  ;;  %v1841_v48 = vrot.slane %v1840_v59, 1  ;;  %v5661_v23 = vld [vmem:[%s14299_s3 + $0xf0] sm:$0xff] }
 0x3d0   :  { %v2746_v10 = vadd.f32 %v2745_v11, %v2744_v25  ;;  %v1971_v9 = vrot.slane %v1970_v61, 1  ;;  %v2360_v13 = vadd.f32 %v2359_v26, %v2358_v3  ;;  %v2101_v56 = vrot.slane %v2100_v21, 1  ;;  %v5659_v3 = vld [vmem:[%s14299_s3 + $0xe0] sm:$0xff]  ;;  %5708 = vmatpush1.msra.mxu1 %v5661_v23 }
 0x3d1   :  { %v2619_v4 = vrot.slane %v2618_v35, 2  ;;  %v2231_v1 = vrot.slane %v2230_v24, 1  ;;  %v2490_v15 = vadd.f32 %v2489_v58, %v2488_v27  ;;  %v13429_v50 = vadd.f32 %v1841_v48, %v1840_v59  ;;  %5709 = vmatprep.subr.mxu1 %v5660_v39  ;;  %v17081_v59 = vld [vmem:[#allocation17_spill] sm:$0xff]  ;;  %v17083_v26 = vld [vmem:[#allocation30_spill] sm:$0xff] }
 0x3d2   :  { %v2747_v25 = vrot.slane %v2746_v10, 4  ;;  %v13431_v16 = vadd.f32 %v1971_v9, %v1970_v61  ;;  %v2361_v14 = vrot.slane %v2360_v13, 1  ;;  %v13436_v42 = vadd.f32 %v2101_v56, %v2100_v21  ;;  %v17085_v48 = vld [vmem:[#allocation21_spill] sm:$0xff]  ;;  %5710 = vmatpush1.msra.mxu1 %v5659_v3  ;;  %v17089_v23 = vld [vmem:[#allocation10_spill] sm:$0xff] }
 0x3d3   :  { %v2620_v5 = vadd.f32 %v2619_v4, %v2618_v35  ;;  %v13438_v46 = vadd.f32 %v2231_v1, %v2230_v24  ;;  %v2491_v8 = vrot.slane %v2490_v15, 1  ;;  %v17082_v61 = vunpack.c.h.bf16 %v17081_v59  ;;  %v17091_v1 = vld [vmem:[#allocation13_spill] sm:$0xff]  ;;  %5711 = vmatprep.subr.mxu1 %v5658_v36  ;;  %v5655_v3 = vld [vmem:[%s14299_s3 + $0xc0] sm:$0xff] }
 0x3d4   :  { %v2748_v28 = vadd.f32 %v2747_v25, %v2746_v10  ;;  %v13443_v27 = vadd.f32 %v2361_v14, %v2360_v13  ;;  %v17084_v35 = vunpack.c.h.bf16 %v17083_v26  ;;  %v17086_v21 = vunpack.c.h.bf16 %v17085_v48  ;;  %v5656_v10 = vld [vmem:[%s14299_s3 + $0xc8] sm:$0xff]  ;;  %v17087_v13 = vld [vmem:[#allocation34_spill] sm:$0xff]  ;;  %5712 = vmatpush1.msra.mxu1 %v5657_v43  ;;  %v5654_v36 = vld [vmem:[%s14299_s3 + $0xb8] sm:$0xff] }
 0x3d5   :  { %v2621_v11 = vrot.slane %v2620_v5, 1  ;;  %v13455_v9 = vadd.f32 %v2491_v8, %v2490_v15  ;;  %v17088_v17 = vunpack.c.h.bf16 %v17087_v13  ;;  %v17090_v39 = vunpack.c.h.bf16 %v17089_v23  ;;  %v17097_v13 = vld [vmem:[#allocation12_spill] sm:$0xff]  ;;  %5713 = vmatprep.subr.mxu1 %v5656_v10  ;;  %v5652_v10 = vld [vmem:[%s14299_s3 + $0xa8] sm:$0xff] }
 0x3d6   :  { %v2870_v58 = vadd.f32 %v17084_v35, %v17082_v61  ;;  %v2875_v24 = vsel %vm1717_vm0, %v17086_v21, 0.0  ;;  %v2749_v4 = vrot.slane %v2748_v28, 2  ;;  %v17092_v25 = vunpack.c.h.bf16 %v17091_v1  ;;  %v17093_v35 = vld [vmem:[#allocation6_spill] sm:$0xff]  ;;  %v17095_v21 = vld [vmem:[#allocation20_spill] sm:$0xff]  ;;  %5714 = vmatpush1.msra.mxu1 %v5655_v3  ;;  %v17127_v3 = vld [vmem:[#allocation11_spill] sm:$0xff] }
 0x3d7   :  { %v3000_v56 = vadd.f32 %v17090_v39, %v17088_v17  ;;  %v13467_v61 = vadd.f32 %v2621_v11, %v2620_v5  ;;  %v17094_v15 = vunpack.c.h.bf16 %v17093_v35  ;;  %v17096_v48 = vunpack.c.h.bf16 %v17095_v21  ;;  %v17099_v17 = vld [vmem:[#allocation48_spill] sm:$0xff]  ;;  %v17101_v5 = vld [vmem:[#allocation95_spill] sm:$0xff]  ;;  %5715 = vmatprep.subr.mxu1 %v5654_v36 }
 0x3d8   :  { %v3005_v14 = vsel %vm1717_vm0, %v17092_v25, 0.0  ;;  %v17098_v26 = vunpack.c.h.bf16 %v17097_v13  ;;  %v17100_v39 = vunpack.c.h.bf16 %v17099_v17  ;;  %v2750_v25 = vadd.f32 %v2749_v4, %v2748_v28  ;;  %v17103_v35 = vld [vmem:[#allocation36_spill] sm:$0xff]  ;;  %v17107_v13 = vld [vmem:[#allocation27_spill] sm:$0xff] }
 0x3d9   :  { %v2871_v8 = vadd.f32 %v2870_v58, %v17094_v15  ;;  %v17102_v11 = vunpack.c.h.bf16 %v17101_v5  ;;  %v17104_v58 = vunpack.c.h.bf16 %v17103_v35  ;;  %v17105_v15 = vld [vmem:[#allocation37_spill] sm:$0xff]  ;;  %v5653_v43 = vld [vmem:[%s14299_s3 + $0xb0] sm:$0xff]  ;;  %v17130_v19 = vunpack.c.h.bf16 %v17129_v22 }
 0x3da   :  { %v3130_v23 = vadd.f32 %v17098_v26, %v17096_v48  ;;  %v3135_v1 = vsel %vm1717_vm0, %v17100_v39, 0.0  ;;  %v17106_v21 = vunpack.c.h.bf16 %v17105_v15  ;;  %v17108_v26 = vunpack.c.h.bf16 %v17107_v13  ;;  %v17109_v39 = vld [vmem:[#allocation15_spill] sm:$0xff]  ;;  %v17111_v4 = vld [vmem:[#allocation8_spill] sm:$0xff]  ;;  %5716 = vmatpush1.msra.mxu1 %v5653_v43 }
 0x3db   :  { %v3001_v59 = vadd.f32 %v3000_v56, %v17102_v11  ;;  %v17110_v17 = vunpack.c.h.bf16 %v17109_v39  ;;  %v17112_v5 = vunpack.c.h.bf16 %v17111_v4  ;;  %v17113_v11 = vld [vmem:[#allocation14_spill] sm:$0xff]  ;;  %v17116_v15 = vunpack.c.h.bf16 %v17115_v34  ;;  %v17121_v4 = vld [vmem:[#allocation24_spill] sm:$0xff]  ;;  %5717 = vmatprep.subr.mxu1 %v5652_v10  ;;  %v5648_v10 = vld [vmem:[%s14299_s3 + $0x88] sm:$0xff] }
 0x3dc   :  { %v3260_v44 = vadd.f32 %v17106_v21, %v17104_v58  ;;  %v3265_v48 = vsel %vm1717_vm0, %v17108_v26, 0.0  ;;  %v17114_v35 = vunpack.c.h.bf16 %v17113_v11  ;;  %v17117_v58 = vld [vmem:[#allocation60_spill] sm:$0xff]  ;;  %v2751_v7 = vrot.slane %v2750_v25, 1  ;;  %v17119_v39 = vld [vmem:[#allocation2_spill] sm:$0xff] }
 0x3dd   :  { %v2872_v28 = vadd.f32 %v2871_v8, %v17110_v17  ;;  %v3131_v56 = vadd.f32 %v3130_v23, %v17112_v5  ;;  %v17118_v13 = vunpack.c.h.bf16 %v17117_v58  ;;  %v17120_v8 = vunpack.c.h.bf16 %v17119_v39  ;;  %v17123_v11 = vld [vmem:[#allocation50_spill] sm:$0xff]  ;;  %v5649_v43 = vld [vmem:[%s14299_s3 + $0x90] sm:$0xff] }
 0x3de   :  { %v3390_v21 = vadd.f32 %v17116_v15, %v17114_v35  ;;  %v17122_v23 = vunpack.c.h.bf16 %v17121_v4  ;;  %v17124_v63 = vunpack.c.h.bf16 %v17123_v11  ;;  %v17125_v34 = vld [vmem:[#allocation78_spill] sm:$0xff]  ;;  %v17128_v58 = vunpack.c.h.bf16 %v17127_v3  ;;  %v17143_v3 = vld [vmem:[#allocation43_spill] sm:$0xff] }
 0x3df   :  { %v3395_v26 = vsel %vm1717_vm0, %v17118_v13, 0.0  ;;  %v3002_v17 = vadd.f32 %v3001_v59, %v17120_v8  ;;  %v17126_v35 = vunpack.c.h.bf16 %v17125_v34  ;;  %v5651_v13 = vld [vmem:[%s14299_s3 + $0xa0] sm:$0xff]  ;;  %v3132_v39 = vadd.f32 %v3131_v56, %v17130_v19  ;;  %v17131_v59 = vld [vmem:[#allocation53_spill] sm:$0xff]  ;;  %v17139_v56 = vld [vmem:[#allocation44_spill] sm:$0xff] }
 0x3e0   :  { %v3261_v5 = vadd.f32 %v3260_v44, %v17122_v23  ;;  %v2873_v20 = vadd.f32 %v2872_v28, %v17128_v58  ;;  %v17132_v8 = vunpack.c.h.bf16 %v17131_v59  ;;  %v17133_v44 = vld [vmem:[#allocation46_spill] sm:$0xff]  ;;  %v13530_v36 = vadd.f32 %v2751_v7, %v2750_v25  ;;  %5718 = vmatpush1.msra.mxu1 %v5651_v13 }
 0x3e1   :  { %v3520_v15 = vadd.f32 %v17126_v35, %v17124_v63  ;;  %v17134_v23 = vunpack.c.h.bf16 %v17133_v44  ;;  %v5650_v63 = vld [vmem:[%s14299_s3 + $0x98] sm:$0xff]  ;;  %v17135_v35 = vld [vmem:[#allocation22_spill] sm:$0xff]  ;;  %v17140_v59 = vunpack.c.h.bf16 %v17139_v56  ;;  %v17144_v7 = vunpack.c.h.bf16 %v17143_v3 }
 0x3e2   :  { %v3391_v4 = vadd.f32 %v3390_v21, %v17132_v8  ;;  %v17136_v34 = vunpack.c.h.bf16 %v17135_v35  ;;  %v17137_v58 = vld [vmem:[#allocation62_spill] sm:$0xff]  ;;  %v17141_v8 = vld [vmem:[#allocation16_spill] sm:$0xff]  ;;  %v17146_v35 = vunpack.c.h.bf16 %v17145_v45  ;;  %5719 = vmatprep.subr.mxu1 %v5650_v63 }
 0x3e3   :  { %v3525_v11 = vsel %vm1717_vm0, %v17134_v23, 0.0  ;;  %v17138_v22 = vunpack.c.h.bf16 %v17137_v58  ;;  %v3521_v21 = vadd.f32 %v3520_v15, %v17140_v59  ;;  %v17142_v23 = vunpack.c.h.bf16 %v17141_v8  ;;  %v17151_v15 = vld [vmem:[#allocation9_spill] sm:$0xff]  ;;  %v5647_v13 = vld [vmem:[%s14299_s3 + $0x80] sm:$0xff]  ;;  %5720 = vmatpush1.msra.mxu1 %v5649_v43 }
 0x3e4   :  { %v3003_v28 = vadd.f32 %v3002_v17, %v17136_v34  ;;  %v3133_v25 = vadd.f32 %v3132_v39, %v17144_v7  ;;  %v3392_v34 = vadd.f32 %v3391_v4, %v17146_v35  ;;  %v17147_v17 = vld [vmem:[#allocation71_spill] sm:$0xff]  ;;  %v17152_v59 = vunpack.c.h.bf16 %v17151_v15  ;;  %v17155_v39 = vld [vmem:[#allocation25_spill] sm:$0xff]  ;;  %5721 = vmatprep.subr.mxu1 %v5648_v10 }
 0x3e5   :  { %v3262_v19 = vadd.f32 %v3261_v5, %v17138_v22  ;;  %v2874_v44 = vadd.f32 %v2873_v20, %v17142_v23  ;;  %v17148_v58 = vunpack.c.h.bf16 %v17147_v17  ;;  %v17149_v22 = vld [vmem:[#allocation41_spill] sm:$0xff]  ;;  %v17156_v7 = vunpack.c.h.bf16 %v17155_v39  ;;  %v17166_v15 = vld [vmem:[#allocation55_spill] sm:$0xff]  ;;  %5722 = vmatpush1.msra.mxu1 %v5647_v13 }
 0x3e6   :  { %v17150_v5 = vunpack.c.h.bf16 %v17149_v22  ;;  %v3004_v8 = vadd.f32 %v3003_v28, %v17152_v59  ;;  %v17153_v20 = vld [vmem:[#allocation45_spill] sm:$0xff]  ;;  %v17157_v4 = vunpack.c.h.bf16 %v13232_v40  ;;  %v17160_v28 = vld [vmem:[#allocation58_spill] sm:$0xff]  ;;  %v17174_v10 = vld [vmem:[#allocation39_spill] sm:$0xff]  ;;  %v17177_v13 = vunpack.c.h.bf16 %v13218_v57 }
 0x3e7   :  { %v17154_v23 = vunpack.c.h.bf16 %v17153_v20  ;;  %v3522_v45 = vadd.f32 %v3521_v21, %v17156_v7  ;;  %v17161_v59 = vunpack.c.h.bf16 %v17160_v28  ;;  %v5646_v21 = vld [vmem:[%s14299_s3 + $0x78] sm:$0xff] }
 0x3e8   :  { %v3650_v56 = vadd.f32 %v17150_v5, %v17148_v58  ;;  %v3655_v35 = vsel %vm1717_vm0, %v17157_v4, 0.0  ;;  %v2876_v58 = vadd.f32 %v2875_v24, %v2874_v44  ;;  %v17158_v5 = vld [vmem:[#allocation38_spill] sm:$0xff]  ;;  %v3006_v63 = vadd.f32 %v3005_v14, %v3004_v8  ;;  %v17164_v7 = vld [vmem:[#allocation57_spill] sm:$0xff]  ;;  %5723 = vmatprep.subr.mxu1 %v5646_v21 }
 0x3e9   :  { %v3263_v3 = vadd.f32 %v3262_v19, %v17154_v23  ;;  %v17159_v22 = vunpack.c.h.bf16 %v17158_v5  ;;  %v3393_v20 = vadd.f32 %v3392_v34, %v17161_v59  ;;  %v17162_v19 = vld [vmem:[#allocation59_spill] sm:$0xff]  ;;  %v17165_v4 = vunpack.c.h.bf16 %v17164_v7 }
 0x3ea   :  { %v17163_v23 = vunpack.c.h.bf16 %v17162_v19  ;;  %v17167_v24 = vunpack.c.h.bf16 %v17166_v15  ;;  %v2877_v43 = vrot.slane %v2876_v58, 4  ;;  %v17172_v19 = vld [vmem:[#allocation84_spill] sm:$0xff] }
 0x3eb   :  { %v3134_v17 = vadd.f32 %v3133_v25, %v17159_v22  ;;  %v3264_v40 = vadd.f32 %v3263_v3, %v17165_v4  ;;  %v17168_v25 = vunpack.c.h.bf16 %v13241_v52  ;;  %v17169_v22 = vunpack.c.h.bf16 %v13246_v6 }
 0x3ec   :  { %v3651_v39 = vadd.f32 %v3650_v56, %v17163_v23  ;;  %v3523_v44 = vadd.f32 %v3522_v45, %v17167_v24  ;;  %v5645_v56 = vld [vmem:[%s14299_s3 + $0x70] sm:$0xff]  ;;  %v17170_v23 = vld [vmem:[#allocation69_spill] sm:$0xff]  ;;  %v17173_v3 = vunpack.c.h.bf16 %v17172_v19  ;;  %v5644_v45 = vld [vmem:[%s14299_s3 + $0x68] sm:$0xff]  ;;  %v3007_v24 = vrot.slane %v3006_v63, 4 }
 0x3ed   :  { %v3780_v34 = vadd.f32 %v17169_v22, %v17168_v25  ;;  %v3136_v59 = vadd.f32 %v3135_v1, %v3134_v17  ;;  %v17171_v14 = vunpack.c.h.bf16 %v17170_v23  ;;  %v3266_v25 = vadd.f32 %v3265_v48, %v3264_v40  ;;  %v5643_v1 = vld [vmem:[%s14299_s3 + $0x60] sm:$0xff]  ;;  %5724 = vmatpush1.msra.mxu1 %v5645_v56  ;;  %v5642_v40 = vld [vmem:[%s14299_s3 + $0x58] sm:$0xff] }
 0x3ee   :  { %v3652_v4 = vadd.f32 %v3651_v39, %v17173_v3  ;;  %v17175_v22 = vunpack.c.h.bf16 %v17174_v10  ;;  %v17176_v52 = vunpack.c.h.bf16 %v13255_v54  ;;  %v2878_v17 = vadd.f32 %v2877_v43, %v2876_v58  ;;  %5725 = vmatprep.subr.mxu1 %v5644_v45  ;;  %v5641_v58 = vld [vmem:[%s14299_s3 + $0x50] sm:$0xff] }
 0x3ef   :  { %v3394_v8 = vadd.f32 %v3393_v20, %v17171_v14  ;;  %v3137_v20 = vrot.slane %v3136_v59, 4  ;;  %v3008_v48 = vadd.f32 %v3007_v24, %v3006_v63  ;;  %5726 = vmatpush1.msra.mxu1 %v5643_v1  ;;  %v5640_v63 = vld [vmem:[%s14299_s3 + $0x48] sm:$0xff]  ;;  %v5638_v1 = vld [vmem:[%s14299_s3 + $0x38] sm:$0xff] }
 0x3f0   :  { %v3524_v6 = vadd.f32 %v3523_v44, %v17175_v22  ;;  %v3781_v15 = vadd.f32 %v3780_v34, %v17176_v52  ;;  %v3653_v14 = vadd.f32 %v3652_v4, %v17177_v13  ;;  %v3267_v44 = vrot.slane %v3266_v25, 4  ;;  %5727 = vmatprep.subr.mxu1 %v5642_v40  ;;  %v5637_v40 = vld [vmem:[%s14299_s3 + $0x30] sm:$0xff] }
 0x3f1   :  { %v3396_v39 = vadd.f32 %v3395_v26, %v3394_v8  ;;  %v17178_v52 = vunpack.c.h.bf16 %v13260_v53  ;;  %v2879_v26 = vrot.slane %v2878_v17, 2  ;;  %v3138_v34 = vadd.f32 %v3137_v20, %v3136_v59  ;;  %v17179_v8 = vld [vmem:[#allocation77_spill] sm:$0xff]  ;;  %v5639_v59 = vld [vmem:[%s14299_s3 + $0x40] sm:$0xff]  ;;  %5728 = vmatpush1.msra.mxu1 %v5641_v58  ;;  %v5636_v58 = vld [vmem:[%s14299_s3 + $0x28] sm:$0xff] }
 0x3f2   :  { %v3526_v3 = vadd.f32 %v3525_v11, %v3524_v6  ;;  %v17180_v56 = vunpack.c.h.bf16 %v17179_v8  ;;  %v3009_v6 = vrot.slane %v3008_v48, 2  ;;  %v3268_v11 = vadd.f32 %v3267_v44, %v3266_v25  ;;  %5729 = vmatprep.subr.mxu1 %v5640_v63 }
 0x3f3   :  { %v3782_v21 = vadd.f32 %v3781_v15, %v17178_v52  ;;  %v3397_v43 = vrot.slane %v3396_v39, 4  ;;  %v17181_v15 = vunpack.c.h.bf16 %v13269_v38  ;;  %v2880_v22 = vadd.f32 %v2879_v26, %v2878_v17  ;;  %5730 = vmatpush1.msra.mxu1 %v5639_v59 }
 0x3f4   :  { %v3654_v4 = vadd.f32 %v3653_v14, %v17180_v56  ;;  %v3527_v24 = vrot.slane %v3526_v3, 4  ;;  %v3139_v20 = vrot.slane %v3138_v34, 2  ;;  %v3010_v52 = vadd.f32 %v3009_v6, %v3008_v48  ;;  %5731 = vmatprep.subr.mxu1 %v5638_v1  ;;  %v5633_v1 = vld [vmem:[%s14299_s3 + $0x10] sm:$0xff] }
 0x3f5   :  { %v3783_v45 = vadd.f32 %v3782_v21, %v17181_v15  ;;  %v3398_v13 = vadd.f32 %v3397_v43, %v3396_v39  ;;  %v3269_v25 = vrot.slane %v3268_v11, 2  ;;  %v17182_v56 = vunpack.c.h.bf16 %v13274_v62  ;;  %5732 = vmatpush1.msra.mxu1 %v5637_v40 }
 0x3f6   :  { %v3656_v14 = vadd.f32 %v3655_v35, %v3654_v4  ;;  %v3528_v44 = vadd.f32 %v3527_v24, %v3526_v3  ;;  %v2881_v17 = vrot.slane %v2880_v22, 1  ;;  %v3140_v26 = vadd.f32 %v3139_v20, %v3138_v34  ;;  %v17183_v4 = vld [vmem:[#allocation92_spill] sm:$0xff]  ;;  %v5635_v24 = vld [vmem:[%s14299_s3 + $0x20] sm:$0xff]  ;;  %5733 = vmatprep.subr.mxu1 %v5636_v58 }
 0x3f7   :  { %v3784_v21 = vadd.f32 %v3783_v45, %v17182_v56  ;;  %v3399_v39 = vrot.slane %v3398_v13, 2  ;;  %v3011_v48 = vrot.slane %v3010_v52, 1  ;;  %v3270_v43 = vadd.f32 %v3269_v25, %v3268_v11  ;;  %v5634_v11 = vld [vmem:[%s14299_s3 + $0x18] sm:$0xff]  ;;  %5734 = vmatpush1.msra.mxu1 %v5635_v24 }
 0x3f8   :  { %v3657_v35 = vrot.slane %v3656_v14, 4  ;;  %v3529_v3 = vrot.slane %v3528_v44, 2  ;;  %v17184_v6 = vunpack.c.h.bf16 %v17183_v4  ;;  %v13637_v34 = vadd.f32 %v2881_v17, %v2880_v22  ;;  %5735 = vmatprep.subr.mxu1 %v5634_v11 }
 0x3f9   :  { %v3141_v15 = vrot.slane %v3140_v26, 1  ;;  %v3400_v45 = vadd.f32 %v3399_v39, %v3398_v13  ;;  %v13642_v20 = vadd.f32 %v3011_v48, %v3010_v52  ;;  %v3271_v25 = vrot.slane %v3270_v43, 1  ;;  %5736 = vmatpush1.msra.mxu1 %v5633_v1  ;;  %v5694_v48 = vld [vmem:[%s14299_s3 + $0x1f8] sm:$0xff] }
 0x3fa   :  { %v3785_v63 = vsel %vm1717_vm0, %v17184_v6, 0.0  ;;  %v3658_v59 = vadd.f32 %v3657_v35, %v3656_v14  ;;  %v3530_v56 = vadd.f32 %v3529_v3, %v3528_v44  ;;  %v3802_v13 = vpack.c.bf16 %v13429_v50, %v13429_v50  ;;  %v5632_v14 = vld [vmem:[%s14299_s3 + $0x8] sm:$0xff] }
 0x3fb   :  { %v3786_v6 = vadd.f32 %v3785_v63, %v3784_v21  ;;  %v3142_v22 = vadd.f32 %v3141_v15, %v3140_v26  ;;  %v3401_v17 = vrot.slane %v3400_v45, 1  ;;  %v3272_v52 = vadd.f32 %v3271_v25, %v3270_v43  ;;  %v5631_v26 = vld [vmem:[%s14299_s3] sm:$0xff]  ;;  %5737 = vmatprep.subr.mxu1 %v5632_v14 }
 0x3fc   :  { %v3659_v8 = vrot.slane %v3658_v59, 2  ;;  %v3531_v40 = vrot.slane %v3530_v56, 1  ;;  %v3812_v21 = vpack.c.bf16 %v13431_v16, %v13431_v16  ;;  %v3822_v50 = vpack.c.bf16 %v13436_v42, %v13436_v42  ;;  %v5693_v42 = vld [vmem:[%s14299_s3 + $0x1f0] sm:$0xff]  ;;  %5738 = vmatpush1.msra.mxu1 %v5631_v26 }
 0x3fd   :  { %v3787_v44 = vrot.slane %v3786_v6, 4  ;;  %v3402_v39 = vadd.f32 %v3401_v17, %v3400_v45  ;;  %v3832_v58 = vpack.c.bf16 %v13438_v46, %v13438_v46  ;;  %v3842_v3 = vpack.c.bf16 %v13443_v27, %v13443_v27  ;;  %v5692_v27 = vld [vmem:[%s14299_s3 + $0x1e8] sm:$0xff]  ;;  %5739 = vmatprep.subr.mxu1 %v5694_v48 }
 0x3fe   :  { %v3660_v35 = vadd.f32 %v3659_v8, %v3658_v59  ;;  %v3532_v43 = vadd.f32 %v3531_v40, %v3530_v56  ;;  %v3852_v63 = vpack.c.bf16 %v13455_v9, %v13455_v9  ;;  %v3862_v46 = vpack.c.bf16 %v13467_v61, %v13467_v61  ;;  %v5691_v61 = vld [vmem:[%s14299_s3 + $0x1e0] sm:$0xff]  ;;  %5740 = vmatpush2.msra.mxu1 %v5693_v42 }
 0x3ff   :  { %v3788_v16 = vadd.f32 %v3787_v44, %v3786_v6  ;;  %v3872_v24 = vpack.c.bf16 %v13530_v36, %v13530_v36  ;;  %v3882_v15 = vpack.c.bf16 %v13637_v34, %v13637_v34  ;;  %v3892_v45 = vpack.c.bf16 %v13642_v20, %v13642_v20  ;;  %v5690_v6 = vld [vmem:[%s14299_s3 + $0x1d8] sm:$0xff]  ;;  %5741 = vmatprep.subr.mxu1 %v5692_v27 }
 0x400   :  { %v3661_v8 = vrot.slane %v3660_v35, 1  ;;  %v3902_v59 = vpack.c.bf16 %v3142_v22, %v3142_v22  ;;  %v3912_v11 = vpack.c.bf16 %v3272_v52, %v3272_v52  ;;  %v3922_v25 = vpack.c.bf16 %v3402_v39, %v3402_v39  ;;  %v5689_v22 = vld [vmem:[%s14299_s3 + $0x1d0] sm:$0xff]  ;;  %5742 = vmatpush2.msra.mxu1 %v5691_v61 }
 0x401   :  { %v3789_v9 = vrot.slane %v3788_v16, 2  ;;  %v3932_v56 = vpack.c.bf16 %v3532_v43, %v3532_v43  ;;  %v4294_v34 = vunpack.c.l.b16 %v3802_v13  ;;  %v4304_v17 = vunpack.c.l.b16 %v3812_v21  ;;  %v5688_v13 = vld [vmem:[%s14299_s3 + $0x1c8] sm:$0xff]  ;;  %5743 = vmatprep.subr.mxu1 %v5690_v6 }
 0x402   :  { %v3662_v36 = vadd.f32 %v3661_v8, %v3660_v35  ;;  %v4314_v14 = vunpack.c.l.b16 %v3822_v50  ;;  %v4324_v20 = vunpack.c.l.b16 %v3832_v58  ;;  %v4334_v40 = vunpack.c.l.b16 %v3842_v3  ;;  %v5687_v50 = vld [vmem:[%s14299_s3 + $0x1c0] sm:$0xff]  ;;  %5744 = vmatpush2.msra.mxu1 %v5689_v22 }
 0x403   :  { %v3790_v1 = vadd.f32 %v3789_v9, %v3788_v16  ;;  %v4344_v44 = vunpack.c.l.b16 %v3852_v63  ;;  %v4354_v26 = vunpack.c.l.b16 %v3862_v46  ;;  %v4364_v35 = vunpack.c.l.b16 %v3872_v24  ;;  %v5686_v63 = vld [vmem:[%s14299_s3 + $0x1b8] sm:$0xff]  ;;  %5745 = vmatprep.subr.mxu1 %v5688_v13  ;;  %v5683_v13 = vld [vmem:[%s14299_s3 + $0x1a0] sm:$0xff] }
 0x404   :  { %v3942_v52 = vpack.c.bf16 %v3662_v36, %v3662_v36  ;;  %v4374_v48 = vunpack.c.l.b16 %v3882_v15  ;;  %v4384_v21 = vunpack.c.l.b16 %v3892_v45  ;;  %v4394_v58 = vunpack.c.l.b16 %v3902_v59  ;;  %v5685_v15 = vld [vmem:[%s14299_s3 + $0x1b0] sm:$0xff]  ;;  %v17185_v45 = vld [vmem:[#allocation75_spill] sm:$0xff]  ;;  %v17188_v36 = vld [vmem:[#allocation26_spill] sm:$0xff]  ;;  %5746 = vmatpush2.msra.mxu1 %v5687_v50 }
 0x405   :  { %v3791_v39 = vrot.slane %v3790_v1, 1  ;;  %v4404_v43 = vunpack.c.l.b16 %v3912_v11  ;;  %v4414_v16 = vunpack.c.l.b16 %v3922_v25  ;;  %v4424_v3 = vunpack.c.l.b16 %v3932_v56  ;;  %5747 = vmatprep.subr.mxu1 %v5686_v63 }
 0x406   :  { %v4434_v8 = vunpack.c.l.b16 %v3942_v52  ;;  %v4515_v46 = vsel %vm4445_vm1, %v4304_v17, %v4294_v34  ;;  %v4585_v24 = vsel %vm4445_vm1, %v4384_v21, %v4374_v48  ;;  %v17186_v59 = vunpack.c.l.bf16 %v17185_v45  ;;  %v5684_v34 = vld [vmem:[%s14299_s3 + $0x1a8] sm:$0xff]  ;;  %5748 = vmatpush2.msra.mxu1 %v5685_v15  ;;  %v17198_v45 = vld [vmem:[#allocation81_spill] sm:$0xff] }
 0x407   :  { %v3792_v42 = vadd.f32 %v3791_v39, %v3790_v1  ;;  %v4516_v27 = vsel %vm4447_vm2, %v4314_v14, %v4515_v46  ;;  %v4586_v9 = vsel %vm4447_vm2, %v4394_v58, %v4585_v24  ;;  %v17187_v11 = vunpack.c.l.bf16 %v12516_v2  ;;  %v17190_v14 = vld [vmem:[#allocation56_spill] sm:$0xff]  ;;  %5749 = vmatprep.subr.mxu1 %v5684_v34 }
 0x408   :  { %v17189_v25 = vunpack.c.l.bf16 %v17188_v36  ;;  %v4517_v1 = vsel %vm4449_vm3, %v4324_v20, %v4516_v27  ;;  %v4587_v17 = vsel %vm4449_vm3, %v4404_v43, %v4586_v9  ;;  %v17191_v22 = vunpack.c.l.bf16 %v17190_v14  ;;  %v17194_v20 = vld [vmem:[#allocation64_spill] sm:$0xff]  ;;  %5750 = vmatpush2.msra.mxu1 %v5683_v13 }
 0x409   :  { %v1817_v61 = vadd.f32 %v17187_v11, %v17186_v59  ;;  %v3952_v6 = vpack.c.bf16 %v3792_v42, %v3792_v42  ;;  %v17192_v52 = vunpack.c.l.bf16 %v12563_v12  ;;  %v4518_v39 = vsel %vm4451_vm4, %v4334_v40, %v4517_v1  ;;  %v5682_v12 = vld [vmem:[%s14299_s3 + $0x198] sm:$0xff] }
 0x40a   :  { %v1822_v56 = vsel %vm1717_vm0, %v17189_v25, 0.0  ;;  %v4588_v48 = vsel %vm4451_vm4, %v4414_v16, %v4587_v17  ;;  %v17193_v21 = vunpack.c.l.bf16 %v12523_v32  ;;  %v17195_v58 = vunpack.c.l.bf16 %v17194_v20  ;;  %v5681_v32 = vld [vmem:[%s14299_s3 + $0x190] sm:$0xff]  ;;  %5751 = vmatprep.subr.mxu1 %v5682_v12  ;;  %v17216_v12 = vld [vmem:[#allocation3_spill] sm:$0xff] }
 0x40b   :  { %v1947_v2 = vadd.f32 %v17192_v52, %v17191_v22  ;;  %v4444_v63 = vunpack.c.l.b16 %v3952_v6  ;;  %v4519_v42 = vsel %vm4453_vm5, %v4344_v44, %v4518_v39  ;;  %v4589_v46 = vsel %vm4453_vm5, %v4424_v3, %v4588_v48  ;;  %v17200_v44 = vld [vmem:[#allocation74_spill] sm:$0xff]  ;;  %5752 = vmatpush2.msra.mxu1 %v5681_v32  ;;  %v17211_v48 = vld [vmem:[#allocation80_spill] sm:$0xff] }
 0x40c   :  { %v1818_v50 = vadd.f32 %v1817_v61, %v17193_v21  ;;  %v1952_v43 = vsel %vm1717_vm0, %v17195_v58, 0.0  ;;  %v17196_v40 = vunpack.c.l.bf16 %v12570_v18  ;;  %v4520_v24 = vsel %vm4455_vm6, %v4354_v26, %v4519_v42  ;;  %v5680_v18 = vld [vmem:[%s14299_s3 + $0x188] sm:$0xff]  ;;  %v17206_v22 = vld [vmem:[#allocation90_spill] sm:$0xff] }
 0x40d   :  { %v4590_v15 = vsel %vm4455_vm6, %v4434_v8, %v4589_v46  ;;  %v17197_v27 = vunpack.c.l.bf16 %v12530_v31  ;;  %v17199_v59 = vunpack.c.l.bf16 %v17198_v45  ;;  %v17201_v11 = vunpack.c.l.bf16 %v17200_v44  ;;  %5753 = vmatprep.subr.mxu1 %v5680_v18  ;;  %v5678_v46 = vld [vmem:[%s14299_s3 + $0x178] sm:$0xff]  ;;  %v5677_v44 = vld [vmem:[%s14299_s3 + $0x170] sm:$0xff] }
 0x40e   :  { %v1948_v16 = vadd.f32 %v1947_v2, %v17196_v40  ;;  %v4521_v61 = vsel %vm4457_vm7, %v4364_v35, %v4520_v24  ;;  %v4591_v36 = vsel %vm4457_vm7, %v4444_v63, %v4590_v15  ;;  %v17202_v26 = vunpack.c.l.bf16 %v12575_v60  ;;  %v17208_v35 = vld [vmem:[#allocation82_spill] sm:$0xff]  ;;  %v17221_v15 = vld [vmem:[#allocation89_spill] sm:$0xff] }
 0x40f   :  { %v1819_v9 = vadd.f32 %v1818_v50, %v17197_v27  ;;  %v2077_v3 = vadd.f32 %v17201_v11, %v17199_v59  ;;  %v17203_v31 = vunpack.c.l.bf16 %v12644_v51  ;;  %v4601_v34 = vpack.c.b16 %v4591_v36, %v4521_v61  ;;  %v5679_v60 = vld [vmem:[%s14299_s3 + $0x180] sm:$0xff]  ;;  %v17214_v50 = vld [vmem:[#allocation91_spill] sm:$0xff] }
 0x410   :  { %v1949_v8 = vadd.f32 %v1948_v16, %v17202_v26  ;;  %v17204_v6 = vunpack.c.l.bf16 %v12535_v47  ;;  %v17205_v17 = vunpack.c.l.bf16 %v12616_v29  ;;  %v17207_v52 = vunpack.c.l.bf16 %v17206_v22  ;;  %v17229_v36 = vld [vmem:[#allocation86_spill] sm:$0xff]  ;;  %5754 = vmatpush2.msra.mxu1 %v5679_v60 }
 0x411   :  { %v2082_v25 = vsel %vm1717_vm0, %v17203_v31, 0.0  ;;  %v17209_v2 = vunpack.c.l.bf16 %v17208_v35  ;;  %v17210_v51 = vunpack.c.l.bf16 %v12583_v55  ;;  %v17212_v21 = vunpack.c.l.bf16 %v17211_v48  ;;  %5616 = vmatprep.mubr.bf16.mxu0 %v4601_v34  ;;  %v17237_v35 = vld [vmem:[#allocation19_spill] sm:$0xff]  ;;  %5755 = vmatprep.subr.mxu1 %v5678_v46 }
 0x412   :  { %v1820_v1 = vadd.f32 %v1819_v9, %v17204_v6  ;;  %v2078_v14 = vadd.f32 %v2077_v3, %v17205_v17  ;;  %v17213_v29 = vunpack.c.l.bf16 %v12700_v37  ;;  %v17215_v20 = vunpack.c.l.bf16 %v17214_v50  ;;  %v17223_v9 = vld [vmem:[#allocation28_spill] sm:$0xff]  ;;  %v5676_v6 = vld [vmem:[%s14299_s3 + $0x168] sm:$0xff]  ;;  %5756 = vmatpush2.msra.mxu1 %v5677_v44 }
 0x413   :  { %v2207_v13 = vadd.f32 %v17209_v2, %v17207_v52  ;;  %v1950_v39 = vadd.f32 %v1949_v8, %v17210_v51  ;;  %v2212_v47 = vsel %vm1717_vm0, %v17212_v21, 0.0  ;;  %v17217_v63 = vunpack.c.l.bf16 %v17216_v12  ;;  %v17231_v8 = vld [vmem:[#allocation94_spill] sm:$0xff]  ;;  %5757 = vmatprep.subr.mxu1 %v5676_v6 }
 0x414   :  { %v2337_v58 = vadd.f32 %v17215_v20, %v17213_v29  ;;  %v17218_v55 = vunpack.c.l.bf16 %v12544_v41  ;;  %v17219_v16 = vunpack.c.l.bf16 %v12625_v0  ;;  %v17220_v37 = vunpack.c.l.bf16 %v12667_v49  ;;  %v17227_v0 = vld [vmem:[#allocation29_spill] sm:$0xff]  ;;  %v5675_v51 = vld [vmem:[%s14299_s3 + $0x160] sm:$0xff]  ;;  %v17241_v29 = vld [vmem:[#allocation67_spill] sm:$0xff] }
 0x415   :  { %v2342_v42 = vsel %vm1717_vm0, %v17217_v63, 0.0  ;;  %v17222_v27 = vunpack.c.l.bf16 %v17221_v15  ;;  %v17224_v45 = vunpack.c.l.bf16 %v17223_v9  ;;  %v17225_v11 = vunpack.c.l.bf16 %v12588_v30  ;;  %v17233_v30 = vld [vmem:[#allocation66_spill] sm:$0xff]  ;;  %v17243_v20 = vld [vmem:[#allocation87_spill] sm:$0xff]  ;;  %v5674_v63 = vld [vmem:[%s14299_s3 + $0x158] sm:$0xff]  ;;  %5758 = vmatpush2.msra.mxu1 %v5675_v51 }
 0x416   :  { %v1821_v40 = vadd.f32 %v1820_v1, %v17218_v55  ;;  %v2079_v32 = vadd.f32 %v2078_v14, %v17219_v16  ;;  %v2208_v24 = vadd.f32 %v2207_v13, %v17220_v37  ;;  %v17226_v41 = vunpack.c.l.bf16 %v12714_v33  ;;  %v17235_v33 = vld [vmem:[#allocation42_spill] sm:$0xff]  ;;  %v17245_v55 = vld [vmem:[#allocation72_spill] sm:$0xff]  ;;  %5759 = vmatprep.subr.mxu1 %v5674_v63 }
 0x417   :  { %v2467_v59 = vadd.f32 %v17224_v45, %v17222_v27  ;;  %v1951_v3 = vadd.f32 %v1950_v39, %v17225_v11  ;;  %v17228_v61 = vunpack.c.l.bf16 %v17227_v0  ;;  %v17230_v26 = vunpack.c.l.bf16 %v17229_v36  ;;  %v17239_v39 = vld [vmem:[#allocation40_spill] sm:$0xff] }
 0x418   :  { %v2338_v18 = vadd.f32 %v2337_v58, %v17226_v41  ;;  %v17232_v31 = vunpack.c.l.bf16 %v17231_v8  ;;  %v1823_v1 = vadd.f32 %v1822_v56, %v1821_v40  ;;  %v17234_v17 = vunpack.c.l.bf16 %v17233_v30  ;;  %v5673_v9 = vld [vmem:[%s14299_s3 + $0x150] sm:$0xff]  ;;  %v17259_v30 = vld [vmem:[#allocation79_spill] sm:$0xff] }
 0x419   :  { %v2472_v49 = vsel %vm1717_vm0, %v17228_v61, 0.0  ;;  %v17236_v22 = vunpack.c.l.bf16 %v17235_v33  ;;  %v17238_v2 = vunpack.c.l.bf16 %v17237_v35  ;;  %v1953_v60 = vadd.f32 %v1952_v43, %v1951_v3  ;;  %v17247_v43 = vld [vmem:[#allocation65_spill] sm:$0xff]  ;;  %v17253_v3 = vld [vmem:[#allocation31_spill] sm:$0xff]  ;;  %v17255_v0 = vld [vmem:[#allocation52_spill] sm:$0xff]  ;;  %5760 = vmatpush2.msra.mxu1 %v5673_v9 }
 0x41a   :  { %v2597_v34 = vadd.f32 %v17232_v31, %v17230_v26  ;;  %v2080_v14 = vadd.f32 %v2079_v32, %v17234_v17  ;;  %v17240_v48 = vunpack.c.l.bf16 %v17239_v39  ;;  %v17242_v56 = vunpack.c.l.bf16 %v17241_v29  ;;  %v17257_v36 = vld [vmem:[#allocation68_spill] sm:$0xff]  ;;  %v5672_v31 = vld [vmem:[%s14299_s3 + $0x148] sm:$0xff]  ;;  %v5671_v35 = vld [vmem:[%s14299_s3 + $0x140] sm:$0xff] }
 0x41b   :  { %v2209_v52 = vadd.f32 %v2208_v24, %v17236_v22  ;;  %v2468_v13 = vadd.f32 %v2467_v59, %v17238_v2  ;;  %v17244_v58 = vunpack.c.l.bf16 %v17243_v20  ;;  %v1824_v46 = vrot.slane %v1823_v1, 4  ;;  %v17249_v24 = vld [vmem:[#allocation7_spill] sm:$0xff]  ;;  %v17261_v33 = vld [vmem:[#allocation76_spill] sm:$0xff]  ;;  %5761 = vmatprep.subr.mxu1 %v5672_v31 }
 0x41c   :  { %v2339_v21 = vadd.f32 %v2338_v18, %v17240_v48  ;;  %v2598_v50 = vadd.f32 %v2597_v34, %v17242_v56  ;;  %v17246_v40 = vunpack.c.l.bf16 %v17245_v55  ;;  %v17248_v32 = vunpack.c.l.bf16 %v17247_v43  ;;  %v17251_v59 = vld [vmem:[#allocation47_spill] sm:$0xff]  ;;  %v17265_v48 = vld [vmem:[#allocation93_spill] sm:$0xff]  ;;  %5762 = vmatpush2.msra.mxu1 %v5671_v35  ;;  %v17279_v35 = vld [vmem:[#allocation18_spill] sm:$0xff] }
 0x41d   :  { %v2602_v12 = vsel %vm1717_vm0, %v17244_v58, 0.0  ;;  %v17250_v15 = vunpack.c.l.bf16 %v17249_v24  ;;  %v1954_v45 = vrot.slane %v1953_v60, 4  ;;  %v17252_v44 = vunpack.c.l.bf16 %v17251_v59 }
 0x41e   :  { %v2081_v16 = vadd.f32 %v2080_v14, %v17246_v40  ;;  %v2210_v37 = vadd.f32 %v2209_v52, %v17248_v32  ;;  %v17254_v41 = vunpack.c.l.bf16 %v17253_v3  ;;  %v17256_v61 = vunpack.c.l.bf16 %v17255_v0  ;;  %v17275_v3 = vld [vmem:[#allocation54_spill] sm:$0xff] }
 0x41f   :  { %v2469_v27 = vadd.f32 %v2468_v13, %v17250_v15  ;;  %v2340_v11 = vadd.f32 %v2339_v21, %v17252_v44  ;;  %v17258_v26 = vunpack.c.l.bf16 %v17257_v36  ;;  %v1825_v34 = vadd.f32 %v1824_v46, %v1823_v1  ;;  %v17263_v13 = vld [vmem:[#allocation61_spill] sm:$0xff]  ;;  %v17267_v1 = vld [vmem:[#allocation35_spill] sm:$0xff]  ;;  %v17269_v46 = vld [vmem:[#allocation4_spill] sm:$0xff] }
 0x420   :  { %v2599_v18 = vadd.f32 %v2598_v50, %v17254_v41  ;;  %v2083_v6 = vadd.f32 %v2082_v25, %v2081_v16  ;;  %v17260_v17 = vunpack.c.l.bf16 %v17259_v30  ;;  %v17262_v22 = vunpack.c.l.bf16 %v17261_v33  ;;  %v17277_v30 = vld [vmem:[#allocation23_spill] sm:$0xff] }
 0x421   :  { %v2727_v8 = vadd.f32 %v17258_v26, %v17256_v61  ;;  %v1955_v2 = vadd.f32 %v1954_v45, %v1953_v60  ;;  %v17264_v51 = vunpack.c.l.bf16 %v17263_v13  ;;  %v17266_v21 = vunpack.c.l.bf16 %v17265_v48  ;;  %v17271_v60 = vld [vmem:[#allocation5_spill] sm:$0xff] }
 0x422   :  { %v2211_v14 = vadd.f32 %v2210_v37, %v17260_v17  ;;  %v2470_v52 = vadd.f32 %v2469_v27, %v17262_v22  ;;  %v17268_v25 = vunpack.c.l.bf16 %v17267_v1  ;;  %v1826_v50 = vrot.slane %v1825_v34, 2  ;;  %v17273_v37 = vld [vmem:[#allocation88_spill] sm:$0xff] }
 0x423   :  { %v2341_v39 = vadd.f32 %v2340_v11, %v17264_v51  ;;  %v2600_v29 = vadd.f32 %v2599_v18, %v17266_v21  ;;  %v2084_v20 = vrot.slane %v2083_v6, 4  ;;  %v17270_v63 = vunpack.c.l.bf16 %v17269_v46 }
 0x424   :  { %v2728_v56 = vadd.f32 %v2727_v8, %v17268_v25  ;;  %v2213_v58 = vadd.f32 %v2212_v47, %v2211_v14  ;;  %v1956_v40 = vrot.slane %v1955_v2, 2  ;;  %v17272_v43 = vunpack.c.l.bf16 %v17271_v60 }
 0x425   :  { %v2471_v55 = vadd.f32 %v2470_v52, %v17270_v63  ;;  %v2343_v16 = vadd.f32 %v2342_v42, %v2341_v39  ;;  %v17274_v24 = vunpack.c.l.bf16 %v17273_v37  ;;  %v1827_v27 = vadd.f32 %v1826_v50, %v1825_v34 }
 0x426   :  { %v2601_v32 = vadd.f32 %v2600_v29, %v17272_v43  ;;  %v2085_v45 = vadd.f32 %v2084_v20, %v2083_v6  ;;  %v2214_v59 = vrot.slane %v2213_v58, 4  ;;  %v1690_v44 = vunpack.c.l.bf16 %v13269_v38  ;;  %v17283_v20 = vld [vmem:[#allocation30_spill] sm:$0xff] }
 0x427   :  { %v2729_v15 = vadd.f32 %v2728_v56, %v17274_v24  ;;  %v2473_v9 = vadd.f32 %v2472_v49, %v2471_v55  ;;  %v2344_v47 = vrot.slane %v2343_v16, 4  ;;  %v17276_v41 = vunpack.c.l.bf16 %v17275_v3  ;;  %v17281_v56 = vld [vmem:[#allocation17_spill] sm:$0xff] }
 0x428   :  { %v2603_v11 = vadd.f32 %v2602_v12, %v2601_v32  ;;  %v1957_v0 = vadd.f32 %v1956_v40, %v1955_v2  ;;  %v2086_v42 = vrot.slane %v2085_v45, 2  ;;  %v2215_v61 = vadd.f32 %v2214_v59, %v2213_v58  ;;  %v17285_v32 = vld [vmem:[#allocation6_spill] sm:$0xff] }
 0x429   :  { %v2730_v18 = vadd.f32 %v2729_v15, %v17276_v41  ;;  %v2474_v36 = vrot.slane %v2473_v9, 4  ;;  %v1700_v26 = vunpack.c.l.bf16 %v13274_v62  ;;  %v2345_v8 = vadd.f32 %v2344_v47, %v2343_v16  ;;  %v17287_v15 = vld [vmem:[#allocation34_spill] sm:$0xff] }
 0x42a   :  { %v2604_v31 = vrot.slane %v2603_v11, 4  ;;  %v17278_v34 = vunpack.c.l.bf16 %v17277_v30  ;;  %v1828_v17 = vrot.slane %v1827_v27, 1  ;;  %v2087_v49 = vadd.f32 %v2086_v42, %v2085_v45  ;;  %v17289_v59 = vld [vmem:[#allocation10_spill] sm:$0xff] }
 0x42b   :  { %v2216_v14 = vrot.slane %v2215_v61, 2  ;;  %v2475_v33 = vadd.f32 %v2474_v36, %v2473_v9  ;;  %v1710_v12 = vunpack.c.l.bf16 %v17183_v4  ;;  %v2346_v22 = vrot.slane %v2345_v8, 2 }
 0x42c   :  { %v2731_v6 = vadd.f32 %v2730_v18, %v17278_v34  ;;  %v2605_v52 = vadd.f32 %v2604_v31, %v2603_v11  ;;  %v17280_v2 = vunpack.c.l.bf16 %v17279_v35  ;;  %v1958_v51 = vrot.slane %v1957_v0, 1  ;;  %v17295_v34 = vld [vmem:[#allocation95_spill] sm:$0xff]  ;;  %v17299_v35 = vld [vmem:[#allocation20_spill] sm:$0xff] }
 0x42d   :  { %v2217_v39 = vadd.f32 %v2216_v14, %v2215_v61  ;;  %v2476_v48 = vrot.slane %v2475_v33, 2  ;;  %v2088_v29 = vrot.slane %v2087_v49, 1  ;;  %v2347_v1 = vadd.f32 %v2346_v22, %v2345_v8  ;;  %v17293_v8 = vld [vmem:[#allocation15_spill] sm:$0xff] }
 0x42e   :  { %v2732_v13 = vsel %vm1717_vm0, %v17280_v2, 0.0  ;;  %v2606_v25 = vrot.slane %v2605_v52, 2  ;;  %v17282_v50 = vunpack.c.l.bf16 %v17281_v56  ;;  %v17284_v58 = vunpack.c.l.bf16 %v17283_v20 }
 0x42f   :  { %v2733_v21 = vadd.f32 %v2732_v13, %v2731_v6  ;;  %v13886_v63 = vadd.f32 %v1828_v17, %v1827_v27  ;;  %v2218_v55 = vrot.slane %v2217_v39, 1  ;;  %v2477_v40 = vadd.f32 %v2476_v48, %v2475_v33  ;;  %v17291_v27 = vld [vmem:[#allocation21_spill] sm:$0xff]  ;;  %v17301_v13 = vld [vmem:[#allocation12_spill] sm:$0xff]  ;;  %v17303_v48 = vld [vmem:[#allocation11_spill] sm:$0xff] }
 0x430   :  { %v2857_v46 = vadd.f32 %v17284_v58, %v17282_v50  ;;  %v2348_v60 = vrot.slane %v2347_v1, 1  ;;  %v13888_v43 = vadd.f32 %v2606_v25, %v2605_v52  ;;  %v17286_v37 = vunpack.c.l.bf16 %v17285_v32  ;;  %v17297_v33 = vld [vmem:[#allocation13_spill] sm:$0xff]  ;;  %v17305_v25 = vld [vmem:[#allocation2_spill] sm:$0xff] }
 0x431   :  { %v2734_v16 = vrot.slane %v2733_v21, 4  ;;  %v17288_v45 = vunpack.c.l.bf16 %v17287_v15  ;;  %v17290_v9 = vunpack.c.l.bf16 %v17289_v59  ;;  %v13896_v11 = vadd.f32 %v1958_v51, %v1957_v0  ;;  %v17309_v58 = vld [vmem:[#allocation37_spill] sm:$0xff]  ;;  %v17315_v59 = vld [vmem:[#allocation14_spill] sm:$0xff] }
 0x432   :  { %v2858_v24 = vadd.f32 %v2857_v46, %v17286_v37  ;;  %v2478_v3 = vrot.slane %v2477_v40, 1  ;;  %v17292_v18 = vunpack.c.l.bf16 %v17291_v27  ;;  %v13901_v61 = vadd.f32 %v2088_v29, %v2087_v49 }
 0x433   :  { %v2987_v47 = vadd.f32 %v17290_v9, %v17288_v45  ;;  %v2735_v41 = vadd.f32 %v2734_v16, %v2733_v21  ;;  %v13903_v36 = vadd.f32 %v2218_v55, %v2217_v39  ;;  %v17294_v31 = vunpack.c.l.bf16 %v17293_v8 }
 0x434   :  { %v2862_v42 = vsel %vm1717_vm0, %v17292_v18, 0.0  ;;  %v17296_v6 = vunpack.c.l.bf16 %v17295_v34  ;;  %v13909_v14 = vadd.f32 %v2348_v60, %v2347_v1  ;;  %v17298_v22 = vunpack.c.l.bf16 %v17297_v33  ;;  %v17307_v1 = vld [vmem:[#allocation36_spill] sm:$0xff] }
 0x435   :  { %v2859_v30 = vadd.f32 %v2858_v24, %v17294_v31  ;;  %v2736_v0 = vrot.slane %v2735_v41, 2  ;;  %v17300_v2 = vunpack.c.l.bf16 %v17299_v35  ;;  %v17302_v49 = vunpack.c.l.bf16 %v17301_v13  ;;  %v17311_v60 = vld [vmem:[#allocation8_spill] sm:$0xff] }
 0x436   :  { %v2988_v17 = vadd.f32 %v2987_v47, %v17296_v6  ;;  %v2992_v52 = vsel %vm1717_vm0, %v17298_v22, 0.0  ;;  %v2608_v39 = vrot.slane %v13888_v43, 1  ;;  %v17304_v21 = vunpack.c.l.bf16 %v17303_v48  ;;  %v17313_v24 = vld [vmem:[#allocation48_spill] sm:$0xff]  ;;  %v17317_v47 = vld [vmem:[#allocation51_spill] sm:$0xff]  ;;  %v17321_v6 = vld [vmem:[#allocation22_spill] sm:$0xff] }
 0x437   :  { %v3117_v51 = vadd.f32 %v17302_v49, %v17300_v2  ;;  %v17306_v56 = vunpack.c.l.bf16 %v17305_v25  ;;  %v17308_v20 = vunpack.c.l.bf16 %v17307_v1  ;;  %v17310_v46 = vunpack.c.l.bf16 %v17309_v58  ;;  %v17319_v31 = vld [vmem:[#allocation16_spill] sm:$0xff]  ;;  %v17327_v49 = vld [vmem:[#allocation27_spill] sm:$0xff]  ;;  %v17333_v1 = vld [vmem:[#allocation78_spill] sm:$0xff] }
 0x438   :  { %v2860_v29 = vadd.f32 %v2859_v30, %v17304_v21  ;;  %v13927_v16 = vadd.f32 %v2478_v3, %v2477_v40  ;;  %v17312_v32 = vunpack.c.l.bf16 %v17311_v60  ;;  %v17314_v15 = vunpack.c.l.bf16 %v17313_v24  ;;  %v17325_v35 = vld [vmem:[#allocation32_spill] sm:$0xff]  ;;  %v17329_v21 = vld [vmem:[#allocation53_spill] sm:$0xff] }
 0x439   :  { %v2989_v50 = vadd.f32 %v2988_v17, %v17306_v56  ;;  %v3247_v55 = vadd.f32 %v17310_v46, %v17308_v20  ;;  %v17316_v9 = vunpack.c.l.bf16 %v17315_v59  ;;  %v17318_v27 = vunpack.c.l.bf16 %v17317_v47  ;;  %v17323_v17 = vld [vmem:[#allocation24_spill] sm:$0xff] }
 0x43a   :  { %v3118_v37 = vadd.f32 %v3117_v51, %v17312_v32  ;;  %v3122_v45 = vsel %vm1717_vm0, %v17314_v15, 0.0  ;;  %v13938_v8 = vadd.f32 %v2736_v0, %v2735_v41  ;;  %v17320_v30 = vunpack.c.l.bf16 %v17319_v31  ;;  %v17331_v0 = vld [vmem:[#allocation50_spill] sm:$0xff] }
 0x43b   :  { %v3377_v18 = vadd.f32 %v17318_v27, %v17316_v9  ;;  %v17322_v40 = vunpack.c.l.bf16 %v17321_v6  ;;  %v17324_v33 = vunpack.c.l.bf16 %v17323_v17  ;;  %v17326_v2 = vunpack.c.l.bf16 %v17325_v35  ;;  %v17341_v9 = vld [vmem:[#allocation43_spill] sm:$0xff]  ;;  %v17345_v6 = vld [vmem:[#allocation44_spill] sm:$0xff] }
 0x43c   :  { %v2861_v34 = vadd.f32 %v2860_v29, %v17320_v30  ;;  %v17328_v51 = vunpack.c.l.bf16 %v17327_v49  ;;  %v17330_v25 = vunpack.c.l.bf16 %v17329_v21  ;;  %v17332_v56 = vunpack.c.l.bf16 %v17331_v0 }
 0x43d   :  { %v2990_v3 = vadd.f32 %v2989_v50, %v17322_v40  ;;  %v3248_v22 = vadd.f32 %v3247_v55, %v17324_v33  ;;  %v3119_v13 = vadd.f32 %v3118_v37, %v17326_v2  ;;  %v17334_v29 = vunpack.c.l.bf16 %v17333_v1  ;;  %v17335_v50 = vld [vmem:[#allocation9_spill] sm:$0xff]  ;;  %v17337_v55 = vld [vmem:[#allocation62_spill] sm:$0xff]  ;;  %v17339_v37 = vld [vmem:[#allocation60_spill] sm:$0xff] }
 0x43e   :  { %v3252_v48 = vsel %vm1717_vm0, %v17328_v51, 0.0  ;;  %v3378_v41 = vadd.f32 %v3377_v18, %v17330_v25  ;;  %v2863_v58 = vadd.f32 %v2862_v42, %v2861_v34  ;;  %v17336_v46 = vunpack.c.l.bf16 %v17335_v50  ;;  %v17343_v18 = vld [vmem:[#allocation33_spill] sm:$0xff]  ;;  %v17347_v42 = vld [vmem:[#allocation46_spill] sm:$0xff]  ;;  %v17351_v51 = vld [vmem:[#allocation71_spill] sm:$0xff] }
 0x43f   :  { %v3507_v20 = vadd.f32 %v17334_v29, %v17332_v56  ;;  %v17338_v32 = vunpack.c.l.bf16 %v17337_v55  ;;  %v17340_v15 = vunpack.c.l.bf16 %v17339_v37  ;;  %v17342_v47 = vunpack.c.l.bf16 %v17341_v9  ;;  %v17353_v25 = vld [vmem:[#allocation41_spill] sm:$0xff]  ;;  %v17359_v55 = vld [vmem:[#allocation70_spill] sm:$0xff]  ;;  %v17362_v9 = vld [vmem:[#allocation59_spill] sm:$0xff] }
 0x440   :  { %v2991_v60 = vadd.f32 %v2990_v3, %v17336_v46  ;;  %v17344_v31 = vunpack.c.l.bf16 %v17343_v18  ;;  %v17346_v40 = vunpack.c.l.bf16 %v17345_v6  ;;  %v17348_v34 = vunpack.c.l.bf16 %v17347_v42  ;;  %v17369_v42 = vld [vmem:[#allocation63_spill] sm:$0xff] }
 0x441   :  { %v3249_v24 = vadd.f32 %v3248_v22, %v17338_v32  ;;  %v3382_v59 = vsel %vm1717_vm0, %v17340_v15, 0.0  ;;  %v3120_v27 = vadd.f32 %v3119_v13, %v17342_v47  ;;  %v2864_v33 = vrot.slane %v2863_v58, 4  ;;  %v17349_v22 = vld [vmem:[#allocation45_spill] sm:$0xff] }
 0x442   :  { %v3379_v30 = vadd.f32 %v3378_v41, %v17344_v31  ;;  %v3508_v17 = vadd.f32 %v3507_v20, %v17346_v40  ;;  %v3512_v3 = vsel %vm1717_vm0, %v17348_v34, 0.0  ;;  %v2993_v35 = vadd.f32 %v2992_v52, %v2991_v60  ;;  %v17357_v20 = vld [vmem:[#allocation25_spill] sm:$0xff]  ;;  %v17365_v31 = vld [vmem:[#allocation55_spill] sm:$0xff] }
 0x443   :  { %v17350_v2 = vunpack.c.l.bf16 %v17349_v22  ;;  %v17352_v21 = vunpack.c.l.bf16 %v17351_v51  ;;  %v17354_v0 = vunpack.c.l.bf16 %v17353_v25  ;;  %v17355_v56 = vunpack.c.l.bf16 %v17158_v5  ;;  %v17367_v40 = vld [vmem:[#allocation49_spill] sm:$0xff] }
 0x444   :  { %v17356_v1 = vunpack.c.l.bf16 %v17160_v28  ;;  %v17358_v50 = vunpack.c.l.bf16 %v17357_v20  ;;  %v17360_v32 = vunpack.c.l.bf16 %v17359_v55  ;;  %v2865_v60 = vadd.f32 %v2864_v33, %v2863_v58  ;;  %v17376_v55 = vld [vmem:[#allocation77_spill] sm:$0xff] }
 0x445   :  { %v3250_v49 = vadd.f32 %v3249_v24, %v17350_v2  ;;  %v3637_v13 = vadd.f32 %v17354_v0, %v17352_v21  ;;  %v3121_v41 = vadd.f32 %v3120_v27, %v17355_v56  ;;  %v2994_v24 = vrot.slane %v2993_v35, 4 }
 0x446   :  { %v3380_v29 = vadd.f32 %v3379_v30, %v17356_v1  ;;  %v3509_v46 = vadd.f32 %v3508_v17, %v17358_v50  ;;  %v3642_v52 = vsel %vm1717_vm0, %v17360_v32, 0.0  ;;  %v17361_v37 = vunpack.c.l.bf16 %v17164_v7 }
 0x447   :  { %v17363_v47 = vunpack.c.l.bf16 %v17362_v9  ;;  %v3123_v5 = vadd.f32 %v3122_v45, %v3121_v41  ;;  %v17364_v27 = vunpack.c.l.bf16 %v17170_v23  ;;  %v17366_v30 = vunpack.c.l.bf16 %v17365_v31 }
 0x448   :  { %v3251_v15 = vadd.f32 %v3250_v49, %v17361_v37  ;;  %v17368_v17 = vunpack.c.l.bf16 %v17367_v40  ;;  %v17370_v34 = vunpack.c.l.bf16 %v17369_v42  ;;  %v2866_v58 = vrot.slane %v2865_v60, 2 }
 0x449   :  { %v3638_v18 = vadd.f32 %v3637_v13, %v17363_v47  ;;  %v3381_v28 = vadd.f32 %v3380_v29, %v17364_v27  ;;  %v3510_v6 = vadd.f32 %v3509_v46, %v17366_v30  ;;  %v2995_v33 = vadd.f32 %v2994_v24, %v2993_v35 }
 0x44a   :  { %v3767_v22 = vadd.f32 %v17370_v34, %v17368_v17  ;;  %v3253_v2 = vadd.f32 %v3252_v48, %v3251_v15  ;;  %v17371_v7 = vunpack.c.l.bf16 %v17172_v19  ;;  %v3124_v51 = vrot.slane %v3123_v5, 4 }
 0x44b   :  { %v3383_v21 = vadd.f32 %v3382_v59, %v3381_v28  ;;  %v17372_v45 = vunpack.c.l.bf16 %v17174_v10  ;;  %v17373_v25 = vunpack.c.l.bf16 %v13255_v54  ;;  %v2867_v13 = vadd.f32 %v2866_v58, %v2865_v60 }
 0x44c   :  { %v3639_v49 = vadd.f32 %v3638_v18, %v17371_v7  ;;  %v2996_v56 = vrot.slane %v2995_v33, 2  ;;  %v3254_v41 = vrot.slane %v3253_v2, 4  ;;  %v17374_v1 = vunpack.c.l.bf16 %v13218_v57 }
 0x44d   :  { %v3511_v23 = vadd.f32 %v3510_v6, %v17372_v45  ;;  %v3768_v0 = vadd.f32 %v3767_v22, %v17373_v25  ;;  %v3125_v20 = vadd.f32 %v3124_v51, %v3123_v5  ;;  %v3384_v35 = vrot.slane %v3383_v21, 4 }
 0x44e   :  { %v3640_v29 = vadd.f32 %v3639_v49, %v17374_v1  ;;  %v17375_v19 = vunpack.c.l.bf16 %v13260_v53  ;;  %v2738_v59 = vrot.slane %v13938_v8, 1  ;;  %v2997_v46 = vadd.f32 %v2996_v56, %v2995_v33 }
 0x44f   :  { %v3513_v48 = vadd.f32 %v3512_v3, %v3511_v23  ;;  %v3255_v10 = vadd.f32 %v3254_v41, %v3253_v2  ;;  %v17377_v32 = vunpack.c.l.bf16 %v17376_v55  ;;  %v3126_v24 = vrot.slane %v3125_v20, 2 }
 0x450   :  { %v3769_v50 = vadd.f32 %v3768_v0, %v17375_v19  ;;  %v3385_v60 = vadd.f32 %v3384_v35, %v3383_v21  ;;  %v2868_v15 = vrot.slane %v2867_v13, 1  ;;  %v2998_v9 = vrot.slane %v2997_v46, 1 }
 0x451   :  { %v3641_v54 = vadd.f32 %v3640_v29, %v17377_v32  ;;  %v3514_v37 = vrot.slane %v3513_v48, 4  ;;  %v3256_v47 = vrot.slane %v3255_v10, 2  ;;  %v3127_v18 = vadd.f32 %v3126_v24, %v3125_v20 }
 0x452   :  { %v3770_v57 = vadd.f32 %v3769_v50, %v1690_v44  ;;  %v3386_v53 = vrot.slane %v3385_v60, 2  ;;  %v2609_v28 = vadd.f32 %v2608_v39, %v13888_v43  ;;  %v3772_v38 = vsel %vm1717_vm0, %v1710_v12, 0.0 }
 0x453   :  { %v3643_v3 = vadd.f32 %v3642_v52, %v3641_v54  ;;  %v3515_v5 = vadd.f32 %v3514_v37, %v3513_v48  ;;  %v3257_v31 = vadd.f32 %v3256_v47, %v3255_v10  ;;  %v3128_v44 = vrot.slane %v3127_v18, 1 }
 0x454   :  { %v3771_v27 = vadd.f32 %v3770_v57, %v1700_v26  ;;  %v3387_v6 = vadd.f32 %v3386_v53, %v3385_v60  ;;  %v2739_v17 = vadd.f32 %v2738_v59, %v13938_v8  ;;  %v2869_v42 = vadd.f32 %v2868_v15, %v2867_v13 }
 0x455   :  { %v3644_v30 = vrot.slane %v3643_v3, 4  ;;  %v3516_v40 = vrot.slane %v3515_v5, 2  ;;  %v3258_v34 = vrot.slane %v3257_v31, 1  ;;  %v2999_v26 = vadd.f32 %v2998_v9, %v2997_v46 }
 0x456   :  { %v3773_v52 = vadd.f32 %v3772_v38, %v3771_v27  ;;  %v3388_v22 = vrot.slane %v3387_v6, 1  ;;  %v3129_v43 = vadd.f32 %v3128_v44, %v3127_v18  ;;  %v3801_v4 = vpack.c.bf16 %v13886_v63, %v13886_v63 }
 0x457   :  { %v3645_v62 = vadd.f32 %v3644_v30, %v3643_v3  ;;  %v3517_v58 = vadd.f32 %v3516_v40, %v3515_v5  ;;  %v3811_v12 = vpack.c.bf16 %v13896_v11, %v13896_v11  ;;  %v3259_v2 = vadd.f32 %v3258_v34, %v3257_v31 }
 0x458   :  { %v3774_v33 = vrot.slane %v3773_v52, 4  ;;  %v3389_v7 = vadd.f32 %v3388_v22, %v3387_v6  ;;  %v3821_v21 = vpack.c.bf16 %v13901_v61, %v13901_v61  ;;  %v3831_v45 = vpack.c.bf16 %v13903_v36, %v13903_v36  ;;  %v5670_v22 = vld [vmem:[%s14299_s3 + $0x138] sm:$0xff] }
 0x459   :  { %v3646_v39 = vrot.slane %v3645_v62, 2  ;;  %v3518_v49 = vrot.slane %v3517_v58, 1  ;;  %v3841_v23 = vpack.c.bf16 %v13909_v14, %v13909_v14  ;;  %v3851_v63 = vpack.c.bf16 %v13927_v16, %v13927_v16  ;;  %5763 = vmatprep.subr.mxu1 %v5670_v22 }
 0x45a   :  { %v3775_v51 = vadd.f32 %v3774_v33, %v3773_v52  ;;  %v3861_v11 = vpack.c.bf16 %v2609_v28, %v2609_v28  ;;  %v3881_v56 = vpack.c.bf16 %v2869_v42, %v2869_v42  ;;  %v3891_v41 = vpack.c.bf16 %v2999_v26, %v2999_v26  ;;  %v5668_v33 = vld [vmem:[%s14299_s3 + $0x128] sm:$0xff] }
 0x45b   :  { %v3647_v8 = vadd.f32 %v3646_v39, %v3645_v62  ;;  %v3519_v25 = vadd.f32 %v3518_v49, %v3517_v58  ;;  %v3901_v1 = vpack.c.bf16 %v3129_v43, %v3129_v43  ;;  %v3871_v20 = vpack.c.bf16 %v2739_v17, %v2739_v17  ;;  %v5669_v58 = vld [vmem:[%s14299_s3 + $0x130] sm:$0xff]  ;;  %v5667_v43 = vld [vmem:[%s14299_s3 + $0x120] sm:$0xff]  ;;  %v5666_v39 = vld [vmem:[%s14299_s3 + $0x118] sm:$0xff] }
 0x45c   :  { %v3776_v0 = vrot.slane %v3775_v51, 2  ;;  %v3911_v35 = vpack.c.bf16 %v3259_v2, %v3259_v2  ;;  %v3921_v61 = vpack.c.bf16 %v3389_v7, %v3389_v7  ;;  %v4293_v36 = vunpack.c.l.b16 %v3801_v4  ;;  %5764 = vmatpush2.msra.mxu1 %v5669_v58  ;;  %v5665_v4 = vld [vmem:[%s14299_s3 + $0x110] sm:$0xff]  ;;  %v5663_v2 = vld [vmem:[%s14299_s3 + $0x100] sm:$0xff]  ;;  %v5803_v7 = vld [vmem:[%s14300_s5 + $0x78] sm:$0xff] }
 0x45d   :  { %v3648_v13 = vrot.slane %v3647_v8, 1  ;;  %v3931_v19 = vpack.c.bf16 %v3519_v25, %v3519_v25  ;;  %v4303_v50 = vunpack.c.l.b16 %v3811_v12  ;;  %v4313_v14 = vunpack.c.l.b16 %v3821_v21  ;;  %5765 = vmatprep.subr.mxu1 %v5668_v33  ;;  %v5664_v12 = vld [vmem:[%s14299_s3 + $0x108] sm:$0xff]  ;;  %v5802_v49 = vld [vmem:[%s14300_s5 + $0x70] sm:$0xff]  ;;  %6283 = vmatprep.subr.mxu0 %v5803_v7  ;;  %v5799_v21 = vld [vmem:[%s14300_s5 + $0x58] sm:$0xff] }
 0x45e   :  { %v3777_v29 = vadd.f32 %v3776_v0, %v3775_v51  ;;  %v4323_v46 = vunpack.c.l.b16 %v3831_v45  ;;  %v4333_v10 = vunpack.c.l.b16 %v3841_v23  ;;  %v4373_v32 = vunpack.c.l.b16 %v3881_v56  ;;  %5766 = vmatpush2.msra.mxu1 %v5667_v43  ;;  %v5801_v51 = vld [vmem:[%s14300_s5 + $0x68] sm:$0xff]  ;;  %v5798_v45 = vld [vmem:[%s14300_s5 + $0x50] sm:$0xff]  ;;  %v5796_v25 = vld [vmem:[%s14300_s5 + $0x40] sm:$0xff] }
 0x45f   :  { %v3649_v48 = vadd.f32 %v3648_v13, %v3647_v8  ;;  %v4383_v16 = vunpack.c.l.b16 %v3891_v41  ;;  %v4393_v54 = vunpack.c.l.b16 %v3901_v1  ;;  %v4343_v60 = vunpack.c.l.b16 %v3851_v63  ;;  %5767 = vmatprep.subr.mxu1 %v5666_v39  ;;  %v5800_v8 = vld [vmem:[%s14300_s5 + $0x60] sm:$0xff]  ;;  %v5797_v23 = vld [vmem:[%s14300_s5 + $0x48] sm:$0xff]  ;;  %v5795_v0 = vld [vmem:[%s14300_s5 + $0x38] sm:$0xff]  ;;  %v5446_v13 = vpop.f32.mrf.mxu0  ;;  %v5489_v1 = vpop.f32.mrf.mxu1 }
 0x460   :  { %v3778_v59 = vrot.slane %v3777_v29, 1  ;;  %v4403_v37 = vunpack.c.l.b16 %v3911_v35  ;;  %v4413_v57 = vunpack.c.l.b16 %v3921_v61  ;;  %v4353_v15 = vunpack.c.l.b16 %v3861_v11  ;;  %5768 = vmatpush2.msra.mxu1 %v5665_v4  ;;  %v5794_v63 = vld [vmem:[%s14300_s5 + $0x30] sm:$0xff]  ;;  %v5793_v11 = vld [vmem:[%s14300_s5 + $0x28] sm:$0xff] }
 0x461   :  { %v3941_v55 = vpack.c.bf16 %v3649_v48, %v3649_v48  ;;  %v4423_v9 = vunpack.c.l.b16 %v3931_v19  ;;  %v4508_v47 = vsel %vm4445_vm1, %v4303_v50, %v4293_v36  ;;  %v4578_v3 = vsel %vm4445_vm1, %v4383_v16, %v4373_v32  ;;  %5769 = vmatprep.subr.mxu1 %v5664_v12  ;;  %v5448_v41 = vpop.f32.mrf.mxu0  ;;  %v5491_v35 = vpop.f32.mrf.mxu1  ;;  %v4113_v48 = vld [vmem:[%s14301_s2] sm:$0x3] }
 0x462   :  { %v3779_v24 = vadd.f32 %v3778_v59, %v3777_v29  ;;  %v4509_v5 = vsel %vm4447_vm2, %v4313_v14, %v4508_v47  ;;  %v4579_v27 = vsel %vm4447_vm2, %v4393_v54, %v4578_v3  ;;  %v4363_v28 = vunpack.c.l.b16 %v3871_v20  ;;  %5770 = vmatpush2.msra.mxu1 %v5663_v2  ;;  %v5792_v12 = vld [vmem:[%s14300_s5 + $0x20] sm:$0xff]  ;;  %v5791_v2 = vld [vmem:[%s14300_s5 + $0x18] sm:$0xff] }
 0x463   :  { %v4433_v53 = vunpack.c.l.b16 %v3941_v55  ;;  %v4510_v31 = vsel %vm4449_vm3, %v4323_v46, %v4509_v5  ;;  %v4580_v30 = vsel %vm4449_vm3, %v4403_v37, %v4579_v27  ;;  %v4115_v56 = vlaneseq  ;;  %v5450_v20 = vpop.f32.mrf.mxu0  ;;  %v5493_v50 = vpop.f32.mrf.mxu1 }
 0x464   :  { %v3951_v18 = vpack.c.bf16 %v3779_v24, %v3779_v24  ;;  %v4511_v44 = vsel %vm4451_vm4, %v4333_v10, %v4510_v31  ;;  %v4581_v6 = vsel %vm4451_vm4, %v4413_v57, %v4580_v30 }
 0x465   :  { %v4512_v40 = vsel %vm4453_vm5, %v4343_v60, %v4511_v44  ;;  %v4582_v52 = vsel %vm4453_vm5, %v4423_v9, %v4581_v6  ;;  %v14108_v29 = vshrl.u32 %v4115_v56, 7  ;;  %v5452_v36 = vpop.f32.mrf.mxu0  ;;  %v5495_v10 = vpop.f32.mrf.mxu1 }
 0x466   :  { %v4443_v38 = vunpack.c.l.b16 %v3951_v18  ;;  %v4513_v17 = vsel %vm4455_vm6, %v4353_v15, %v4512_v40  ;;  %v4583_v42 = vsel %vm4455_vm6, %v4433_v53, %v4582_v52 }
 0x467   :  { %v4514_v34 = vsel %vm4457_vm7, %v4363_v28, %v4513_v17  ;;  %v4117_v61 = vsub.s32 0, %v14108_v29  ;;  %v4121_v19 = vsub.s32 1, %v14108_v29  ;;  %v5532_v14 = vpop.f32.mrf.mxu0  ;;  %v5575_v16 = vpop.f32.mrf.mxu1  ;;  %v14241_v29 = vand.u32 127, %v4115_v56 }
 0x468   :  { %v4584_v62 = vsel %vm4457_vm7, %v4443_v38, %v4583_v42 }
 0x469   :  { %v4600_v26 = vpack.c.b16 %v4584_v62, %v4514_v34  ;;  %v4118_v59 = vrot.slane %v4113_v48, %v4117_v61  ;;  %v4122_v46 = vrot.slane %v4113_v48, %v4121_v19  ;;  %v5534_v32 = vpop.f32.mrf.mxu0  ;;  %v5577_v57 = vpop.f32.mrf.mxu1  ;;  %v5897_v48 = vld [vmem:[%s14302_s7 + $0x48] sm:$0xff]  ;;  %vm6004_vm8 = vcmp.ge.s32.totalorder %v14241_v29, 64 }
 0x46a   :  { %vm6006_vm9 = vcmp.lt.s32.totalorder %v14241_v29, 68  ;;  %vm6005_vm10 = vcmp.lt.s32.totalorder %v14241_v29, 7 }
 0x46b   :  { %5617 = vmatmul.mubr.bf16.vlgmr.msra.gmra.mxu0 %v4600_v26  ;;  %v5447_v55 = vadd.f32 %v5446_v13, %v4118_v59  ;;  %v5449_v54 = vadd.f32 %v5448_v41, %v4122_v46  ;;  %v5451_v60 = vadd.f32 %v5450_v20, %v4118_v59  ;;  %v5536_v37 = vpop.f32.mrf.mxu0  ;;  %v5453_v9 = vadd.f32 %v5452_v36, %v4122_v46  ;;  %v5579_v5 = vpop.f32.mrf.mxu1  ;;  %v5915_v13 = vld [vmem:[%s14302_s7 + $0xd8] sm:$0xff]  ;;  %v5898_v20 = vld [vmem:[%s14302_s7 + $0x50] sm:$0xff]  ;;  %v5912_v36 = vld [vmem:[%s14302_s7 + $0xc0] sm:$0xff] }
 0x46c   :  { %6284 = vmatpush3.msra.mxu0 %v5803_v7  ;;  %v5790_v7 = vld [vmem:[%s14300_s5 + $0x10] sm:$0xff]  ;;  %v5899_v41 = vld [vmem:[%s14302_s7 + $0x58] sm:$0xff]  ;;  %vm6007_vm11 = vmand %vm6004_vm8, %vm6006_vm9 }
 0x46d   :  { %6285 = vmatprep.subr.mxu0 %v5802_v49  ;;  %v5490_v24 = vadd.f32 %v5489_v1, %v5447_v55  ;;  %v5492_v15 = vadd.f32 %v5491_v35, %v5449_v54  ;;  %v5494_v18 = vadd.f32 %v5493_v50, %v5451_v60  ;;  %v5538_v53 = vpop.f32.mrf.mxu0  ;;  %v5496_v27 = vadd.f32 %v5495_v10, %v5453_v9  ;;  %v5581_v6 = vpop.f32.mrf.mxu1  ;;  %v5914_v1 = vld [vmem:[%s14302_s7 + $0xd0] sm:$0xff]  ;;  %v5913_v35 = vld [vmem:[%s14302_s7 + $0xc8] sm:$0xff]  ;;  %v5896_v50 = vld [vmem:[%s14302_s7 + $0x40] sm:$0xff] }
 0x46e   :  { %6286 = vmatpush3.msra.mxu0 %v5802_v49  ;;  %v5789_v49 = vld [vmem:[%s14300_s5 + $0x8] sm:$0xff]  ;;  %v5911_v59 = vld [vmem:[%s14302_s7 + $0xb8] sm:$0xff]  ;;  %v5910_v46 = vld [vmem:[%s14302_s7 + $0xb0] sm:$0xff] }
 0x46f   :  { %6287 = vmatprep.subr.mxu0 %v5801_v51  ;;  %v5533_v47 = vadd.f32 %v5532_v14, %v5490_v24  ;;  %v5535_v3 = vadd.f32 %v5534_v32, %v5492_v15  ;;  %v5537_v31 = vadd.f32 %v5536_v37, %v5494_v18  ;;  %v5539_v44 = vadd.f32 %v5538_v53, %v5496_v27  ;;  %v5895_v14 = vld [vmem:[%s14302_s7 + $0x38] sm:$0xff]  ;;  %v5894_v10 = vld [vmem:[%s14302_s7 + $0x30] sm:$0xff]  ;;  %v5909_v55 = vld [vmem:[%s14302_s7 + $0xa8] sm:$0xff] }
 0x470   :  { %6288 = vmatpush3.msra.mxu0 %v5801_v51  ;;  %v5788_v51 = vld [vmem:[%s14300_s5] sm:$0xff]  ;;  %v5893_v32 = vld [vmem:[%s14302_s7 + $0x28] sm:$0xff]  ;;  %v5891_v27 = vld [vmem:[%s14302_s7 + $0x18] sm:$0xff] }
 0x471   :  { %6289 = vmatprep.subr.mxu0 %v5800_v8  ;;  %v5576_v28 = vadd.f32 %v5575_v16, %v5533_v47  ;;  %v5578_v38 = vadd.f32 %v5577_v57, %v5535_v3  ;;  %v5580_v42 = vadd.f32 %v5579_v5, %v5537_v31  ;;  %v5582_v62 = vadd.f32 %v5581_v6, %v5539_v44  ;;  %v5908_v16 = vld [vmem:[%s14302_s7 + $0xa0] sm:$0xff]  ;;  %v5907_v5 = vld [vmem:[%s14302_s7 + $0x98] sm:$0xff]  ;;  %v5905_v31 = vld [vmem:[%s14302_s7 + $0x88] sm:$0xff] }
 0x472   :  { %6290 = vmatpush3.msra.mxu0 %v5800_v8  ;;  %v5919_v8 = vld [vmem:[%s14302_s7 + $0xf8] sm:$0xff]  ;;  %v5892_v54 = vld [vmem:[%s14302_s7 + $0x20] sm:$0xff]  ;;  %vm14251_vm12 = vmor %vm6005_vm10, %vm6007_vm11 }
 0x473   :  { %6291 = vmatprep.subr.mxu0 %v5799_v21  ;;  %6245 = vmatprep.subr.mxu1 %v5919_v8  ;;  %v5695_v24 = vld [vmem:[%s14303_s4] sm:$0x3] }
 0x474   :  { %6292 = vmatpush3.msra.mxu0 %v5799_v21  ;;  %v5903_v21 = vld [vmem:[%s14302_s7 + $0x78] sm:$0xff]  ;;  %v5704_v60 = vrot.slane %v5695_v24, %v4121_v19  ;;  %v5906_v19 = vld [vmem:[%s14302_s7 + $0x90] sm:$0xff]  ;;  %v5888_v44 = vld [vmem:[%s14302_s7] sm:$0xff]  ;;  %v5700_v6 = vrot.slane %v5695_v24, %v4117_v61 }
 0x475   :  { %6293 = vmatprep.subr.mxu0 %v5798_v45 }
 0x476   :  { %6294 = vmatpush3.msra.mxu0 %v5798_v45  ;;  %v5918_v45 = vld [vmem:[%s14302_s7 + $0xf0] sm:$0xff] }
 0x477   :  { %6295 = vmatprep.subr.mxu0 %v5797_v23 }
 0x478   :  { %6296 = vmatpush3.msra.mxu0 %v5797_v23  ;;  %v5902_v23 = vld [vmem:[%s14302_s7 + $0x70] sm:$0xff] }
 0x479   :  { %6297 = vmatprep.subr.mxu0 %v5796_v25 }
 0x47a   :  { %6298 = vmatpush3.msra.mxu0 %v5796_v25  ;;  %v5917_v25 = vld [vmem:[%s14302_s7 + $0xe8] sm:$0xff] }
 0x47b   :  { %6299 = vmatprep.subr.mxu0 %v5795_v0 }
 0x47c   :  { %6300 = vmatpush3.msra.mxu0 %v5795_v0  ;;  %v5901_v0 = vld [vmem:[%s14302_s7 + $0x68] sm:$0xff] }
 0x47d   :  { %6301 = vmatprep.subr.mxu0 %v5794_v63 }
 0x47e   :  { %6302 = vmatpush3.msra.mxu0 %v5794_v63  ;;  %v5916_v63 = vld [vmem:[%s14302_s7 + $0xe0] sm:$0xff] }
 0x47f   :  { %6303 = vmatprep.subr.mxu0 %v5793_v11 }
 0x480   :  { %6304 = vmatpush3.msra.mxu0 %v5793_v11  ;;  %v5900_v11 = vld [vmem:[%s14302_s7 + $0x60] sm:$0xff] }
 0x481   :  { %6305 = vmatprep.subr.mxu0 %v5792_v12 }
 0x482   :  { %6306 = vmatpush3.msra.mxu0 %v5792_v12 }
 0x483   :  { %6307 = vmatprep.subr.mxu0 %v5791_v2 }
 0x484   :  { %6308 = vmatpush3.msra.mxu0 %v5791_v2 }
 0x485   :  { %6309 = vmatprep.subr.mxu0 %v5790_v7 }
 0x486   :  { %6310 = vmatpush3.msra.mxu0 %v5790_v7 }
 0x487   :  { %6311 = vmatprep.subr.mxu0 %v5789_v49 }
 0x488   :  { %6312 = vmatpush3.msra.mxu0 %v5789_v49 }
 0x489   :  { %6313 = vmatprep.subr.mxu0 %v5788_v51 }
 0x48a   :  { %6314 = vmatpush3.msra.mxu0 %v5788_v51 }
 0x52b   :  { %v5618_v30 = vpop.f32.mrf.mxu0 }
 0x52c   :  { %v5619_v40 = vadd.f32 %v5618_v30, %v5576_v28  ;;  %v5890_v28 = vld [vmem:[%s14302_s7 + $0x10] sm:$0xff]  ;;  %v5889_v30 = vld [vmem:[%s14302_s7 + $0x8] sm:$0xff] }
 0x52d   :  { %v5620_v52 = vpop.f32.mrf.mxu0 }
 0x52e   :  { %v5621_v17 = vadd.f32 %v5620_v52, %v5578_v38  ;;  %v5627_v22 = vmax.f32 %v5619_v40, 0.0  ;;  %v5904_v38 = vld [vmem:[%s14302_s7 + $0x80] sm:$0xff] }
 0x52f   :  { %v5622_v34 = vpop.f32.mrf.mxu0  ;;  %v6225_v52 = vld [vmem:[%s14304_s6] ss:$0 sm:$0xff] }
 0x530   :  { %v5628_v26 = vmax.f32 %v5621_v17, 0.0  ;;  %v5623_v58 = vadd.f32 %v5622_v34, %v5580_v42 }
 0x531   :  { %v5624_v33 = vpop.f32.mrf.mxu0 }
 0x532   :  { %v5625_v43 = vadd.f32 %v5624_v33, %v5582_v62  ;;  %5771 = vmatprep.mubr.f32.mxu1 %v5628_v26  ;;  %v5629_v4 = vmax.f32 %v5623_v58, 0.0 }
 0x533   :  { %5772 = vmatmul.mubr.f32.vlgmr.msra.gmra.mxu1 %v5627_v22 }
 0x534   :  { %v5630_v39 = vmax.f32 %v5625_v43, 0.0  ;;  %6246 = vmatpush3.msra.mxu1 %v5903_v21 }
 0x535   :  { %6247 = vmatprep.subr.mxu1 %v5918_v45 }
 0x536   :  { %5777 = vmatprep.mubr.f32.mxu1 %v5630_v39  ;;  %6248 = vmatpush3.msra.mxu1 %v5902_v23  ;;  %v6226_v39 = vld [vmem:[%s14305_s8] ss:$0 sm:$0xff] }
 0x537   :  { %5778 = vmatmul.mubr.f32.gmra.mxu1 %v5629_v4  ;;  %6249 = vmatprep.subr.mxu1 %v5917_v25 }
 0x538   :  { %6250 = vmatpush3.msra.mxu1 %v5901_v0 }
 0x539   :  { %6251 = vmatprep.subr.mxu1 %v5916_v63 }
 0x53a   :  { %6252 = vmatpush3.msra.mxu1 %v5900_v11 }
 0x53b   :  { %6253 = vmatprep.subr.mxu1 %v5915_v13 }
 0x53c   :  { %6254 = vmatpush3.msra.mxu1 %v5899_v41 }
 0x53d   :  { %6255 = vmatprep.subr.mxu1 %v5914_v1 }
 0x53e   :  { %6256 = vmatpush3.msra.mxu1 %v5898_v20 }
 0x53f   :  { %6257 = vmatprep.subr.mxu1 %v5913_v35 }
 0x540   :  { %6258 = vmatpush3.msra.mxu1 %v5897_v48 }
 0x541   :  { %6259 = vmatprep.subr.mxu1 %v5912_v36 }
 0x542   :  { %6260 = vmatpush3.msra.mxu1 %v5896_v50 }
 0x543   :  { %6261 = vmatprep.subr.mxu1 %v5911_v59 }
 0x544   :  { %6262 = vmatpush3.msra.mxu1 %v5895_v14 }
 0x545   :  { %6263 = vmatprep.subr.mxu1 %v5910_v46 }
 0x546   :  { %6264 = vmatpush3.msra.mxu1 %v5894_v10 }
 0x547   :  { %6265 = vmatprep.subr.mxu1 %v5909_v55 }
 0x548   :  { %6266 = vmatpush3.msra.mxu1 %v5893_v32 }
 0x549   :  { %6267 = vmatprep.subr.mxu1 %v5908_v16 }
 0x54a   :  { %6268 = vmatpush3.msra.mxu1 %v5892_v54 }
 0x54b   :  { %6269 = vmatprep.subr.mxu1 %v5907_v5 }
 0x54c   :  { %6270 = vmatpush3.msra.mxu1 %v5891_v27 }
 0x54d   :  { %6271 = vmatprep.subr.mxu1 %v5906_v19 }
 0x54e   :  { %6272 = vmatpush3.msra.mxu1 %v5890_v28 }
 0x54f   :  { %6273 = vmatprep.subr.mxu1 %v5905_v31 }
 0x550   :  { %6274 = vmatpush3.msra.mxu1 %v5889_v30 }
 0x551   :  { %6275 = vmatprep.subr.mxu1 %v5904_v38 }
 0x552   :  { %6276 = vmatpush3.msra.mxu1 %v5888_v44 }
 0x5f3   :  { %v5773_v37 = vpop.f32.mrf.mxu1 }
 0x5f4   :  { %v5774_v17 = vadd.f32 %v5773_v37, %v5700_v6 }
 0x5f5   :  { %v5775_v57 = vpop.f32.mrf.mxu1 }
 0x5f6   :  { %v5776_v15 = vadd.f32 %v5775_v57, %v5704_v60  ;;  %v5784_v22 = vmax.f32 %v5774_v17, 0.0 }
 0x5f7   :  { %v5779_v9 = vpop.f32.mrf.mxu1 }
 0x5f8   :  { %v5785_v47 = vmax.f32 %v5776_v15, 0.0  ;;  %v5780_v58 = vadd.f32 %v5779_v9, %v5700_v6 }
 0x5f9   :  { %v5781_v3 = vpop.f32.mrf.mxu1 }
 0x5fa   :  { %v5782_v18 = vadd.f32 %v5781_v3, %v5704_v60  ;;  %6315 = vmatprep.mubr.f32.mxu0 %v5785_v47  ;;  %v5786_v43 = vmax.f32 %v5780_v58, 0.0 }
 0x5fc   :  { %v5787_v53 = vmax.f32 %v5782_v18, 0.0 }
 0x5fe   :  { %6316 = vmatmul.mubr.f32.vlgmr.msra.gmra.mxu0 %v5787_v53 }
 0x6be   :  { %v6317_v40 = vpop.f32.mrf.mxu0 }
 0x6bf   :  { %v5883_v34 = vadd.f32 %v6317_v40, %v6225_v52 }
 0x6c0   :  { %v5877_v42 = vpop.f32.mrf.mxu0 }
 0x6c1   :  { %v5878_v62 = vadd.f32 %v6225_v52, %v5877_v42  ;;  %v5887_v33 = vmax.f32 %v5883_v34, 0.0 }
 0x6c3   :  { %v5886_v26 = vmax.f32 %v5878_v62, 0.0 }
 0x6c5   :  { %5991 = vmatprep.mubr.f32.mxu1 %v5886_v26 }
 0x6c6   :  { %5992 = vmatmul.mubr.f32.vlgmr.msra.gmra.mxu1 %v5784_v22 }
 0x6c7   :  { %5996 = vmatprep.mubr.f32.mxu1 %v5887_v33 }
 0x6ca   :  { %5997 = vmatmul.mubr.f32.gmra.mxu1 %v5786_v43 }
 0x786   :  { %v6277_v61 = vpop.f32.mrf.mxu1 }
 0x788   :  { %v6278_v4 = vpop.f32.mrf.mxu1 }
 0x789   :  { %v6279_v12 = vadd.f32 %v6278_v4, %v6277_v61 }
 0x78a   :  { %v6280_v2 = vpop.f32.mrf.mxu1 }
 0x78b   :  { %v5994_v7 = vadd.f32 %v6279_v12, %v6226_v39 }
 0x78c   :  { %v6281_v49 = vpop.f32.mrf.mxu1 }
 0x78d   :  { %v6282_v51 = vadd.f32 %v6281_v49, %v6280_v2  ;;  %v6009_v8 = vsel %vm14251_vm12, %v5994_v7, -1e+30 }
 0x78e   :  { %v6017_v21 = vsel %vm6004_vm8, %v6009_v8, -1e+30  ;;  %v6011_v45 = vsel %vm6004_vm8, -1e+30, %v6009_v8 }
 0x78f   :  { %v5999_v23 = vadd.f32 %v6282_v51, %v6226_v39  ;;  %6019 = vmax.xlane.f32.xlu1 %v6017_v21  ;;  %6013 = vmax.xlane.f32.xlu0 %v6011_v45 }
 0x791   :  { %v6010_v25 = vsel %vm14251_vm12, %v5999_v23, -1e+30 }
 0x792   :  { %v6018_v0 = vsel %vm6004_vm8, %v6010_v25, -1e+30  ;;  %v6012_v63 = vsel %vm6004_vm8, -1e+30, %v6010_v25 }
 0x793   :  { %6021 = vmax.xlane.f32.xlu1 %v6018_v0  ;;  %6015 = vmax.xlane.f32.xlu0 %v6012_v63 }
 0x818   :  { %v6020_v11 = vpop.xlane.xlu1 %6019  ;;  %v6014_v13 = vpop.xlane.xlu0 %6013 }
 0x819   :  { %v6023_v41 = vsel %vm6004_vm8, %v6020_v11, %v6014_v13 }
 0x81a   :  { %v6025_v1 = vsub.f32 %v6009_v8, %v6023_v41 }
 0x81c   :  { %v6027_v20 = vmul.f32 1.442695, %v6025_v1  ;;  %v6022_v35 = vpop.xlane.xlu1 %6021  ;;  %v6016_v48 = vpop.xlane.xlu0 %6015 }
 0x81d   :  { %v6024_v36 = vsel %vm6004_vm8, %v6022_v35, %v6016_v48 }
 0x81e   :  { %6558 = vpow2.f32 %v6027_v20  ;;  %v6026_v50 = vsub.f32 %v6010_v25, %v6024_v36 }
 0x820   :  { %v6029_v59 = vmul.f32 1.442695, %v6026_v50 }
 0x822   :  { %6560 = vpow2.f32 %v6029_v59 }
 0x82b   :  { %v6559_v14 = vpop.eup %6558 }
 0x82c   :  { %v6031_v46 = vsel %vm14251_vm12, %v6559_v14, 0.0 }
 0x82d   :  { %v6033_v10 = vsel %vm6004_vm8, 0.0, %v6031_v46  ;;  %v6039_v16 = vsel %vm6004_vm8, %v6031_v46, 0.0 }
 0x82e   :  { %6035 = vadd.xlane.f32.xlu0 %v6033_v10 }
 0x82f   :  { %v6561_v55 = vpop.eup %6560 }
 0x830   :  { %v6032_v32 = vsel %vm14251_vm12, %v6561_v55, 0.0 }
 0x831   :  { %v6034_v54 = vsel %vm6004_vm8, 0.0, %v6032_v32  ;;  %v6040_v24 = vsel %vm6004_vm8, %v6032_v32, 0.0 }
 0x832   :  { %6041 = vadd.xlane.f32.xlu0 %v6039_v16  ;;  %6037 = vadd.xlane.f32.xlu1 %v6034_v54 }
 0x836   :  { %6043 = vadd.xlane.f32.xlu1 %v6040_v24 }
 0x8b7   :  { %v6036_v60 = vpop.xlane.xlu0 %6035 }
 0x8b8   :  { %6562 = vlog2.f32 %v6036_v60 }
 0x8bb   :  { %v6038_v37 = vpop.xlane.xlu1 %6037  ;;  %v6042_v57 = vpop.xlane.xlu0 %6041 }
 0x8bc   :  { %6564 = vlog2.f32 %v6042_v57 }
 0x8bd   :  { %6566 = vlog2.f32 %v6038_v37 }
 0x8bf   :  { %v6044_v15 = vpop.xlane.xlu1 %6043 }
 0x8c0   :  { %6568 = vlog2.f32 %v6044_v15 }
 0x8c5   :  { %v6563_v9 = vpop.eup %6562 }
 0x8c6   :  { %v6050_v18 = vmul.f32 0.6931472, %v6563_v9 }
 0x8c9   :  { %v6565_v47 = vpop.eup %6564 }
 0x8ca   :  { %v6567_v3 = vpop.eup %6566  ;;  %v6046_v53 = vmul.f32 0.6931472, %v6565_v47 }
 0x8cb   :  { %v6052_v19 = vmul.f32 0.6931472, %v6567_v3 }
 0x8cc   :  { %v6053_v27 = vsel %vm6004_vm8, %v6046_v53, %v6050_v18 }
 0x8cd   :  { %v6569_v5 = vpop.eup %6568  ;;  %v6055_v28 = vsub.f32 %v6025_v1, %v6053_v27 }
 0x8ce   :  { %v6048_v31 = vmul.f32 0.6931472, %v6569_v5 }
 0x8cf   :  { %v6057_v30 = vsel %vm14251_vm12, %v6055_v28, 0.0 }
 0x8d0   :  { %v6054_v38 = vsel %vm6004_vm8, %v6048_v31, %v6052_v19  ;;  %6059 = vst [vmem:[%s14306_s9] sm:$0xff] %v6057_v30 }
 0x8d1   :  { %v6056_v44 = vsub.f32 %v6026_v50, %v6054_v38 }
 0x8d3   :  { %v6058_v6 = vsel %vm14251_vm12, %v6056_v44, 0.0 }
 0x8d4   :  { %6060 = vst [vmem:[%s14306_s9 + $0x8] sm:$0xff] %v6058_v6 }

</bundles_post_ra>
